<compile_context>
chip_gen: v7x
topology: tpu7x:2x2x1
jax: 0.10.0
libtpu: 0.0.40
codegen_flags: <defaults>
</compile_context>

<pallas_src>
import functools

import jax
import jax.numpy as jnp
from jax import lax
from jax.experimental import pallas as pl
from jax.experimental.pallas import tpu as pltpu


def _full_spec(a):
    nd = a.ndim
    return pl.BlockSpec(a.shape, lambda i: (0,) * nd)


# ----------------------------------------------------------------------------
# Kernel 1: fused Conv1d(k=3, pad=1)+ReLU x3, time-major flattened rows.
# ----------------------------------------------------------------------------
def _conv_stack_kernel(x_ref,
                       w10, w11, w12, b1,
                       w20, w21, w22, b2,
                       w30, w31, w32, b3,
                       o_ref, *, batch):
    def conv3_relu(x, w0_ref, w1_ref, w2_ref, b_ref):
        n = x.shape[0]
        row = lax.broadcasted_iota(jnp.int32, x.shape, 0)
        # shift time by +/-1  ==  shift rows by +/-batch (time-major, b inner)
        x_prev = jnp.where(row < batch, 0.0, pltpu.roll(x, batch, 0))
        x_next = jnp.where(row >= n - batch, 0.0, pltpu.roll(x, n - batch, 0))
        y = (jnp.dot(x_prev, w0_ref[...], preferred_element_type=jnp.float32)
             + jnp.dot(x,      w1_ref[...], preferred_element_type=jnp.float32)
             + jnp.dot(x_next, w2_ref[...], preferred_element_type=jnp.float32)
             + b_ref[...])
        return jnp.maximum(y, 0.0)

    h = x_ref[...]
    h = conv3_relu(h, w10, w11, w12, b1)
    h = conv3_relu(h, w20, w21, w22, b2)
    h = conv3_relu(h, w30, w31, w32, b3)
    o_ref[...] = h


def conv_stack(x2d, conv_params, *, batch):
    (w10, w11, w12, cb1), (w20, w21, w22, cb2), (w30, w31, w32, cb3) = conv_params
    n_rows = x2d.shape[0]
    c_out = w31.shape[1]
    args = (x2d, w10, w11, w12, cb1, w20, w21, w22, cb2, w30, w31, w32, cb3)
    return pl.pallas_call(
        functools.partial(_conv_stack_kernel, batch=batch),
        out_shape=jax.ShapeDtypeStruct((n_rows, c_out), jnp.float32),
        grid=(1,),
        in_specs=[_full_spec(a) for a in args],
        out_specs=pl.BlockSpec((n_rows, c_out), lambda i: (0, 0)),
        compiler_params=pltpu.CompilerParams(dimension_semantics=("arbitrary",)),
    )(*args)


# ----------------------------------------------------------------------------
# Kernel 2: one bidirectional LSTM layer.  grid=(2,) over direction.
# Gate order follows PyTorch: i, f, g, o.
# ----------------------------------------------------------------------------
def _lstm_layer_kernel(x_ref, wih_ref, whh_ref, b_ref, o_ref, *, seq, batch):
    H = whh_ref.shape[0]
    # Hoisted input projection: one (S*B, Din) x (Din, 4H) matmul (+ bias).
    xw = (jnp.dot(x_ref[...], wih_ref[...], preferred_element_type=jnp.float32)
          + b_ref[...])                                          # (S*B, 4H)
    whh = whh_ref[...]

    def run(reverse):
        h = jnp.zeros((batch, H), jnp.float32)
        c = jnp.zeros((batch, H), jnp.float32)
        outs = [None] * seq
        order = range(seq - 1, -1, -1) if reverse else range(seq)
        for t in order:                                          # fully unrolled
            gates = (xw[t * batch:(t + 1) * batch, :]
                     + jnp.dot(h, whh, preferred_element_type=jnp.float32))
            i = jax.nn.sigmoid(gates[:, 0 * H:1 * H])
            f = jax.nn.sigmoid(gates[:, 1 * H:2 * H])
            g = jnp.tanh(gates[:, 2 * H:3 * H])
            o = jax.nn.sigmoid(gates[:, 3 * H:4 * H])
            c = f * c + i * g
            h = o * jnp.tanh(c)
            outs[t] = h
        # single dense writeback of the whole sequence for this direction
        o_ref[...] = jnp.concatenate(outs, axis=0)               # (S*B, H)

    d = pl.program_id(0)

    @pl.when(d == 0)
    def _fwd():
        run(False)

    @pl.when(d == 1)
    def _bwd():
        run(True)


def lstm_layer(x2d, wih, whh, b, *, seq, batch, hidden):
    n_rows, din = x2d.shape
    H = hidden
    return pl.pallas_call(
        functools.partial(_lstm_layer_kernel, seq=seq, batch=batch),
        out_shape=jax.ShapeDtypeStruct((2, n_rows, H), jnp.float32),
        grid=(2,),
        in_specs=[
            pl.BlockSpec((n_rows, din), lambda d: (0, 0)),
            pl.BlockSpec((pl.Squeezed(), din, 4 * H), lambda d: (d, 0, 0)),
            pl.BlockSpec((pl.Squeezed(), H, 4 * H), lambda d: (d, 0, 0)),
            pl.BlockSpec((pl.Squeezed(), 1, 4 * H), lambda d: (d, 0, 0)),
        ],
        out_specs=pl.BlockSpec((pl.Squeezed(), n_rows, H), lambda d: (d, 0, 0)),
        compiler_params=pltpu.CompilerParams(dimension_semantics=("parallel",)),
    )(x2d, wih, whh, b)


# ----------------------------------------------------------------------------
# Kernel 3: attention (softmax over seq) + context + 4-layer MLP head,
# whole batch in one block (head matmuls have M = B).
# ----------------------------------------------------------------------------
def _attn_head_kernel(h_ref, wa_ref, ba_ref, w1_ref, b1_ref, w2_ref, b2_ref,
                      w3_ref, b3_ref, wo_ref, bo_ref, logit_ref, attw_ref):
    h = h_ref[...]                                               # (B, S, 2H)
    # attention logits: VPU multiply + lane reduction (no N=1 matmul)
    scores = jnp.sum(h * wa_ref[...], axis=-1) + ba_ref[...]     # (B, S)
    m = jnp.max(scores, axis=-1, keepdims=True)
    e = jnp.exp(scores - m)
    w = e * pl.reciprocal(jnp.sum(e, axis=-1, keepdims=True), approx=True)
    attw_ref[...] = w                                            # lane-dense (B, S)
    ctx = jnp.sum(w[:, :, None] * h, axis=1)                     # (B, 2H)
    a = jnp.maximum(jnp.dot(ctx, w1_ref[...],
                            preferred_element_type=jnp.float32) + b1_ref[...], 0.0)
    a = jnp.maximum(jnp.dot(a, w2_ref[...],
                            preferred_element_type=jnp.float32) + b2_ref[...], 0.0)
    a = jnp.maximum(jnp.dot(a, w3_ref[...],
                            preferred_element_type=jnp.float32) + b3_ref[...], 0.0)
    logit_ref[...] = jnp.dot(a, wo_ref[...],
                             preferred_element_type=jnp.float32) + bo_ref[...]


def attn_head(h, wa, ba, w1, b1, w2, b2, w3, b3, wo, bo):
    B, S, _ = h.shape
    n_out = wo.shape[1]
    args = (h, wa, ba, w1, b1, w2, b2, w3, b3, wo, bo)
    return pl.pallas_call(
        _attn_head_kernel,
        out_shape=(jax.ShapeDtypeStruct((B, n_out), jnp.float32),
                   jax.ShapeDtypeStruct((B, S), jnp.float32)),
        grid=(1,),
        in_specs=[_full_spec(a) for a in args],
        out_specs=[pl.BlockSpec((B, n_out), lambda i: (0, 0)),
                   pl.BlockSpec((B, S), lambda i: (0, 0))],
        compiler_params=pltpu.CompilerParams(dimension_semantics=("arbitrary",)),
    )(*args)


# ----------------------------------------------------------------------------
# Parameter init (deterministic, synthetic) + full forward pass.
# ----------------------------------------------------------------------------
def init_params(key, input_size, hidden_size):
    keys = iter(jax.random.split(key, 64))
    mat = lambda shape, s=0.1: jax.random.normal(next(keys), shape, jnp.float32) * s

    p = {}
    # conv stack: per layer (w_tap0, w_tap1, w_tap2, bias), weights as (Cin, Cout)
    chans = [(input_size, 64), (64, 128), (128, 256)]
    p["convs"] = [
        (mat((cin, cout)), mat((cin, cout)), mat((cin, cout)), mat((1, cout)))
        for cin, cout in chans
    ]
    # bidirectional 2-layer LSTM: per layer, fwd/bwd stacked on a leading dim.
    # TODO(synk): PyTorch nn.LSTM has separate b_ih/b_hh; a single combined bias
    # is used here (sum the two when importing real weights).
    H = hidden_size
    p["lstm"] = []
    for layer in range(2):
        din = 256 if layer == 0 else 2 * H
        p["lstm"].append((mat((2, din, 4 * H)),       # W_ih (fwd, bwd)
                          mat((2, H, 4 * H)),         # W_hh (fwd, bwd)
                          mat((2, 1, 4 * H))))        # bias (fwd, bwd)
    # attention + MLP head
    p["attn"] = (mat((1, 2 * H)), mat((1, 1)))
    p["fc1"] = (mat((2 * H, 128)), mat((1, 128)))
    p["fc2"] = (mat((128, 64)), mat((1, 64)))
    p["fc3"] = (mat((64, 32)), mat((1, 32)))
    p["out"] = (mat((32, 3)), mat((1, 3)))
    return p


@functools.partial(jax.jit, static_argnames=("hidden_size",))
def cnn_lstm_attention_forward(x, params, hidden_size=32):
    B, S, _ = x.shape
    H = hidden_size

    # time-major flattened layout: row = t*B + b
    x2d = jnp.transpose(x, (1, 0, 2)).reshape(S * B, x.shape[-1])

    # fused conv1->relu->conv2->relu->conv3->relu (dropout = identity)
    h = conv_stack(x2d, params["convs"], batch=B)                # (S*B, 256)

    # 2-layer bidirectional LSTM (inter-layer dropout = identity in eval)
    inp = h
    for (wih, whh, b) in params["lstm"]:
        out = lstm_layer(inp, wih, whh, b, seq=S, batch=B, hidden=H)  # (2, S*B, H)
        inp = jnp.concatenate([out[0], out[1]], axis=-1)              # (S*B, 2H)

    # back to batch-major for attention + head
    lstm_out = jnp.transpose(inp.reshape(S, B, 2 * H), (1, 0, 2))     # (B, S, 2H)

    wa, ba = params["attn"]
    w1, b1 = params["fc1"]
    w2, b2 = params["fc2"]
    w3, b3 = params["fc3"]
    wo, bo = params["out"]
    logits, attw = attn_head(lstm_out, wa, ba, w1, b1, w2, b2, w3, b3, wo, bo)
    return logits, attw[..., None]                                    # (B,3), (B,S,1)


if __name__ == "__main__":
    B, S, INPUT_SIZE, HIDDEN = 2, 16, 8, 32
    key = jax.random.PRNGKey(0)
    k_x, k_p = jax.random.split(key)
    x = jax.random.normal(k_x, (B, S, INPUT_SIZE), jnp.float32)
    params = init_params(k_p, INPUT_SIZE, HIDDEN)

    logits, attn_w = cnn_lstm_attention_forward(x, params, hidden_size=HIDDEN)
    jax.block_until_ready((logits, attn_w))

    assert logits.shape == (B, 3)
    assert attn_w.shape == (B, S, 1)
    # softmax over seq sums to ~1 (approx reciprocal used for the denominator)
    assert jnp.allclose(jnp.sum(attn_w, axis=1), 1.0, atol=1e-2)
    print("KERNEL_OK")
</pallas_src>

<mosaic_0001>
module attributes {stable_mosaic.version = 11 : i64} {
  func.func @_conv_stack_kernel(%arg0: i32, %arg1: memref<32x8xf32, #tpu.memory_space<vmem>>, %arg2: memref<8x64xf32, #tpu.memory_space<vmem>>, %arg3: memref<8x64xf32, #tpu.memory_space<vmem>>, %arg4: memref<8x64xf32, #tpu.memory_space<vmem>>, %arg5: memref<1x64xf32, #tpu.memory_space<vmem>>, %arg6: memref<64x128xf32, #tpu.memory_space<vmem>>, %arg7: memref<64x128xf32, #tpu.memory_space<vmem>>, %arg8: memref<64x128xf32, #tpu.memory_space<vmem>>, %arg9: memref<1x128xf32, #tpu.memory_space<vmem>>, %arg10: memref<128x256xf32, #tpu.memory_space<vmem>>, %arg11: memref<128x256xf32, #tpu.memory_space<vmem>>, %arg12: memref<128x256xf32, #tpu.memory_space<vmem>>, %arg13: memref<1x256xf32, #tpu.memory_space<vmem>>, %arg14: memref<32x256xf32, #tpu.memory_space<vmem>>) attributes {dimension_semantics = [#tpu.dimension_semantics<arbitrary>], iteration_bounds = array<i64: 1>, scalar_prefetch = 0 : i64, scratch_operands = 0 : i64, tpu.core_type = #tpu.core_type<tc>, window_params = [{pipeline_mode = #tpu.pipeline_mode<synchronous>, transform_indices = @transform_0, window_bounds = array<i64: 32, 8>}, {pipeline_mode = #tpu.pipeline_mode<synchronous>, transform_indices = @transform_1, window_bounds = array<i64: 8, 64>}, {pipeline_mode = #tpu.pipeline_mode<synchronous>, transform_indices = @transform_2, window_bounds = array<i64: 8, 64>}, {pipeline_mode = #tpu.pipeline_mode<synchronous>, transform_indices = @transform_3, window_bounds = array<i64: 8, 64>}, {pipeline_mode = #tpu.pipeline_mode<synchronous>, transform_indices = @transform_4, window_bounds = array<i64: 1, 64>}, {pipeline_mode = #tpu.pipeline_mode<synchronous>, transform_indices = @transform_5, window_bounds = array<i64: 64, 128>}, {pipeline_mode = #tpu.pipeline_mode<synchronous>, transform_indices = @transform_6, window_bounds = array<i64: 64, 128>}, {pipeline_mode = #tpu.pipeline_mode<synchronous>, transform_indices = @transform_7, window_bounds = array<i64: 64, 128>}, {pipeline_mode = #tpu.pipeline_mode<synchronous>, transform_indices = @transform_8, window_bounds = array<i64: 1, 128>}, {pipeline_mode = #tpu.pipeline_mode<synchronous>, transform_indices = @transform_9, window_bounds = array<i64: 128, 256>}, {pipeline_mode = #tpu.pipeline_mode<synchronous>, transform_indices = @transform_10, window_bounds = array<i64: 128, 256>}, {pipeline_mode = #tpu.pipeline_mode<synchronous>, transform_indices = @transform_11, window_bounds = array<i64: 128, 256>}, {pipeline_mode = #tpu.pipeline_mode<synchronous>, transform_indices = @transform_12, window_bounds = array<i64: 1, 256>}, {pipeline_mode = #tpu.pipeline_mode<synchronous>, transform_indices = @transform_13, window_bounds = array<i64: 32, 256>}]} {
    %c0 = arith.constant 0 : index
    %c0_0 = arith.constant 0 : index
    %0 = vector.load %arg1[%c0, %c0_0] : memref<32x8xf32, #tpu.memory_space<vmem>>, vector<32x8xf32>
    %1 = tpu.iota {dimensions = array<i32: 0>} : vector<32x8xi32>
    %c2_i32 = arith.constant 2 : i32
    %2 = vector.broadcast %c2_i32 : i32 to vector<32x8xi32>
    %3 = arith.cmpi slt, %1, %2 : vector<32x8xi32>
    %c2_i32_1 = arith.constant 2 : i32
    %4 = tpu.dynamic_rotate %0 by %c2_i32_1 dim 0 : vector<32x8xf32>, i32 -> vector<32x8xf32>
    %cst = arith.constant 0.000000e+00 : f32
    %5 = vector.broadcast %cst : f32 to vector<32x8xf32>
    %6 = arith.select %3, %5, %4 : vector<32x8xi1>, vector<32x8xf32>
    %c30_i32 = arith.constant 30 : i32
    %7 = vector.broadcast %c30_i32 : i32 to vector<32x8xi32>
    %8 = arith.cmpi sge, %1, %7 : vector<32x8xi32>
    %c30_i32_2 = arith.constant 30 : i32
    %9 = tpu.dynamic_rotate %0 by %c30_i32_2 dim 0 : vector<32x8xf32>, i32 -> vector<32x8xf32>
    %cst_3 = arith.constant 0.000000e+00 : f32
    %10 = vector.broadcast %cst_3 : f32 to vector<32x8xf32>
    %11 = arith.select %8, %10, %9 : vector<32x8xi1>, vector<32x8xf32>
    %c0_4 = arith.constant 0 : index
    %c0_5 = arith.constant 0 : index
    %12 = vector.load %arg2[%c0_4, %c0_5] : memref<8x64xf32, #tpu.memory_space<vmem>>, vector<8x64xf32>
    %cst_6 = arith.constant dense<0.000000e+00> : vector<32x64xf32>
    %13 = tpu.matmul %6, %12, %cst_6 {dimension_numbers = #tpu.dot_dimension_numbers<[1], [0], [0], [1], [0, 0, 1, 1], [], []>} : vector<32x8xf32>, vector<8x64xf32>, vector<32x64xf32> -> vector<32x64xf32>
    %c0_7 = arith.constant 0 : index
    %c0_8 = arith.constant 0 : index
    %14 = vector.load %arg3[%c0_7, %c0_8] : memref<8x64xf32, #tpu.memory_space<vmem>>, vector<8x64xf32>
    %cst_9 = arith.constant dense<0.000000e+00> : vector<32x64xf32>
    %15 = tpu.matmul %0, %14, %cst_9 {dimension_numbers = #tpu.dot_dimension_numbers<[1], [0], [0], [1], [0, 0, 1, 1], [], []>} : vector<32x8xf32>, vector<8x64xf32>, vector<32x64xf32> -> vector<32x64xf32>
    %16 = arith.addf %13, %15 : vector<32x64xf32>
    %c0_10 = arith.constant 0 : index
    %c0_11 = arith.constant 0 : index
    %17 = vector.load %arg4[%c0_10, %c0_11] : memref<8x64xf32, #tpu.memory_space<vmem>>, vector<8x64xf32>
    %cst_12 = arith.constant dense<0.000000e+00> : vector<32x64xf32>
    %18 = tpu.matmul %11, %17, %cst_12 {dimension_numbers = #tpu.dot_dimension_numbers<[1], [0], [0], [1], [0, 0, 1, 1], [], []>} : vector<32x8xf32>, vector<8x64xf32>, vector<32x64xf32> -> vector<32x64xf32>
    %19 = arith.addf %16, %18 : vector<32x64xf32>
    %c0_13 = arith.constant 0 : index
    %c0_14 = arith.constant 0 : index
    %20 = vector.load %arg5[%c0_13, %c0_14] : memref<1x64xf32, #tpu.memory_space<vmem>>, vector<1x64xf32>
    %21 = vector.broadcast %20 : vector<1x64xf32> to vector<32x64xf32>
    %22 = arith.addf %19, %21 : vector<32x64xf32>
    %cst_15 = arith.constant 0.000000e+00 : f32
    %23 = vector.broadcast %cst_15 : f32 to vector<32x64xf32>
    %24 = arith.maximumf %22, %23 : vector<32x64xf32>
    %25 = tpu.iota {dimensions = array<i32: 0>} : vector<32x64xi32>
    %c2_i32_16 = arith.constant 2 : i32
    %26 = vector.broadcast %c2_i32_16 : i32 to vector<32x64xi32>
    %27 = arith.cmpi slt, %25, %26 : vector<32x64xi32>
    %c2_i32_17 = arith.constant 2 : i32
    %28 = tpu.dynamic_rotate %24 by %c2_i32_17 dim 0 : vector<32x64xf32>, i32 -> vector<32x64xf32>
    %cst_18 = arith.constant 0.000000e+00 : f32
    %29 = vector.broadcast %cst_18 : f32 to vector<32x64xf32>
    %30 = arith.select %27, %29, %28 : vector<32x64xi1>, vector<32x64xf32>
    %c30_i32_19 = arith.constant 30 : i32
    %31 = vector.broadcast %c30_i32_19 : i32 to vector<32x64xi32>
    %32 = arith.cmpi sge, %25, %31 : vector<32x64xi32>
    %c30_i32_20 = arith.constant 30 : i32
    %33 = tpu.dynamic_rotate %24 by %c30_i32_20 dim 0 : vector<32x64xf32>, i32 -> vector<32x64xf32>
    %cst_21 = arith.constant 0.000000e+00 : f32
    %34 = vector.broadcast %cst_21 : f32 to vector<32x64xf32>
    %35 = arith.select %32, %34, %33 : vector<32x64xi1>, vector<32x64xf32>
    %c0_22 = arith.constant 0 : index
    %c0_23 = arith.constant 0 : index
    %36 = vector.load %arg6[%c0_22, %c0_23] : memref<64x128xf32, #tpu.memory_space<vmem>>, vector<64x128xf32>
    %cst_24 = arith.constant dense<0.000000e+00> : vector<32x128xf32>
    %37 = tpu.matmul %30, %36, %cst_24 {dimension_numbers = #tpu.dot_dimension_numbers<[1], [0], [0], [1], [0, 0, 1, 1], [], []>} : vector<32x64xf32>, vector<64x128xf32>, vector<32x128xf32> -> vector<32x128xf32>
    %c0_25 = arith.constant 0 : index
    %c0_26 = arith.constant 0 : index
    %38 = vector.load %arg7[%c0_25, %c0_26] : memref<64x128xf32, #tpu.memory_space<vmem>>, vector<64x128xf32>
    %cst_27 = arith.constant dense<0.000000e+00> : vector<32x128xf32>
    %39 = tpu.matmul %24, %38, %cst_27 {dimension_numbers = #tpu.dot_dimension_numbers<[1], [0], [0], [1], [0, 0, 1, 1], [], []>} : vector<32x64xf32>, vector<64x128xf32>, vector<32x128xf32> -> vector<32x128xf32>
    %40 = arith.addf %37, %39 : vector<32x128xf32>
    %c0_28 = arith.constant 0 : index
    %c0_29 = arith.constant 0 : index
    %41 = vector.load %arg8[%c0_28, %c0_29] : memref<64x128xf32, #tpu.memory_space<vmem>>, vector<64x128xf32>
    %cst_30 = arith.constant dense<0.000000e+00> : vector<32x128xf32>
    %42 = tpu.matmul %35, %41, %cst_30 {dimension_numbers = #tpu.dot_dimension_numbers<[1], [0], [0], [1], [0, 0, 1, 1], [], []>} : vector<32x64xf32>, vector<64x128xf32>, vector<32x128xf32> -> vector<32x128xf32>
    %43 = arith.addf %40, %42 : vector<32x128xf32>
    %c0_31 = arith.constant 0 : index
    %c0_32 = arith.constant 0 : index
    %44 = vector.load %arg9[%c0_31, %c0_32] : memref<1x128xf32, #tpu.memory_space<vmem>>, vector<1x128xf32>
    %45 = vector.broadcast %44 : vector<1x128xf32> to vector<32x128xf32>
    %46 = arith.addf %43, %45 : vector<32x128xf32>
    %cst_33 = arith.constant 0.000000e+00 : f32
    %47 = vector.broadcast %cst_33 : f32 to vector<32x128xf32>
    %48 = arith.maximumf %46, %47 : vector<32x128xf32>
    %49 = tpu.iota {dimensions = array<i32: 0>} : vector<32x128xi32>
    %c2_i32_34 = arith.constant 2 : i32
    %50 = vector.broadcast %c2_i32_34 : i32 to vector<32x128xi32>
    %51 = arith.cmpi slt, %49, %50 : vector<32x128xi32>
    %c2_i32_35 = arith.constant 2 : i32
    %52 = tpu.dynamic_rotate %48 by %c2_i32_35 dim 0 : vector<32x128xf32>, i32 -> vector<32x128xf32>
    %cst_36 = arith.constant 0.000000e+00 : f32
    %53 = vector.broadcast %cst_36 : f32 to vector<32x128xf32>
    %54 = arith.select %51, %53, %52 : vector<32x128xi1>, vector<32x128xf32>
    %c30_i32_37 = arith.constant 30 : i32
    %55 = vector.broadcast %c30_i32_37 : i32 to vector<32x128xi32>
    %56 = arith.cmpi sge, %49, %55 : vector<32x128xi32>
    %c30_i32_38 = arith.constant 30 : i32
    %57 = tpu.dynamic_rotate %48 by %c30_i32_38 dim 0 : vector<32x128xf32>, i32 -> vector<32x128xf32>
    %cst_39 = arith.constant 0.000000e+00 : f32
    %58 = vector.broadcast %cst_39 : f32 to vector<32x128xf32>
    %59 = arith.select %56, %58, %57 : vector<32x128xi1>, vector<32x128xf32>
    %c0_40 = arith.constant 0 : index
    %c0_41 = arith.constant 0 : index
    %60 = vector.load %arg10[%c0_40, %c0_41] : memref<128x256xf32, #tpu.memory_space<vmem>>, vector<128x256xf32>
    %cst_42 = arith.constant dense<0.000000e+00> : vector<32x256xf32>
    %61 = tpu.matmul %54, %60, %cst_42 {dimension_numbers = #tpu.dot_dimension_numbers<[1], [0], [0], [1], [0, 0, 1, 1], [], []>} : vector<32x128xf32>, vector<128x256xf32>, vector<32x256xf32> -> vector<32x256xf32>
    %c0_43 = arith.constant 0 : index
    %c0_44 = arith.constant 0 : index
    %62 = vector.load %arg11[%c0_43, %c0_44] : memref<128x256xf32, #tpu.memory_space<vmem>>, vector<128x256xf32>
    %cst_45 = arith.constant dense<0.000000e+00> : vector<32x256xf32>
    %63 = tpu.matmul %48, %62, %cst_45 {dimension_numbers = #tpu.dot_dimension_numbers<[1], [0], [0], [1], [0, 0, 1, 1], [], []>} : vector<32x128xf32>, vector<128x256xf32>, vector<32x256xf32> -> vector<32x256xf32>
    %64 = arith.addf %61, %63 : vector<32x256xf32>
    %c0_46 = arith.constant 0 : index
    %c0_47 = arith.constant 0 : index
    %65 = vector.load %arg12[%c0_46, %c0_47] : memref<128x256xf32, #tpu.memory_space<vmem>>, vector<128x256xf32>
    %cst_48 = arith.constant dense<0.000000e+00> : vector<32x256xf32>
    %66 = tpu.matmul %59, %65, %cst_48 {dimension_numbers = #tpu.dot_dimension_numbers<[1], [0], [0], [1], [0, 0, 1, 1], [], []>} : vector<32x128xf32>, vector<128x256xf32>, vector<32x256xf32> -> vector<32x256xf32>
    %67 = arith.addf %64, %66 : vector<32x256xf32>
    %c0_49 = arith.constant 0 : index
    %c0_50 = arith.constant 0 : index
    %68 = vector.load %arg13[%c0_49, %c0_50] : memref<1x256xf32, #tpu.memory_space<vmem>>, vector<1x256xf32>
    %69 = vector.broadcast %68 : vector<1x256xf32> to vector<32x256xf32>
    %70 = arith.addf %67, %69 : vector<32x256xf32>
    %cst_51 = arith.constant 0.000000e+00 : f32
    %71 = vector.broadcast %cst_51 : f32 to vector<32x256xf32>
    %72 = arith.maximumf %70, %71 : vector<32x256xf32>
    %c0_52 = arith.constant 0 : index
    %c0_53 = arith.constant 0 : index
    %73 = vector.load %arg14[%c0_52, %c0_53] : memref<32x256xf32, #tpu.memory_space<vmem>>, vector<32x256xf32>
    tpu.vector_store %arg14[%c0_52, %c0_53], %72 {strides = array<i32>} : memref<32x256xf32, #tpu.memory_space<vmem>>, vector<32x256xf32>,
    return
  }
  func.func @transform_0(%arg0: i32) -> (i32, i32) {
    %c0_i32 = arith.constant 0 : i32
    %c0_i32_0 = arith.constant 0 : i32
    %c0_i32_1 = arith.constant 0 : i32
    return %c0_i32, %c0_i32_0 : i32, i32
  }
  func.func @transform_1(%arg0: i32) -> (i32, i32) {
    %c0_i32 = arith.constant 0 : i32
    %c0_i32_0 = arith.constant 0 : i32
    %c0_i32_1 = arith.constant 0 : i32
    return %c0_i32, %c0_i32_0 : i32, i32
  }
  func.func @transform_2(%arg0: i32) -> (i32, i32) {
    %c0_i32 = arith.constant 0 : i32
    %c0_i32_0 = arith.constant 0 : i32
    %c0_i32_1 = arith.constant 0 : i32
    return %c0_i32, %c0_i32_0 : i32, i32
  }
  func.func @transform_3(%arg0: i32) -> (i32, i32) {
    %c0_i32 = arith.constant 0 : i32
    %c0_i32_0 = arith.constant 0 : i32
    %c0_i32_1 = arith.constant 0 : i32
    return %c0_i32, %c0_i32_0 : i32, i32
  }
  func.func @transform_4(%arg0: i32) -> (i32, i32) {
    %c0_i32 = arith.constant 0 : i32
    %c0_i32_0 = arith.constant 0 : i32
    %c0_i32_1 = arith.constant 0 : i32
    return %c0_i32, %c0_i32_0 : i32, i32
  }
  func.func @transform_5(%arg0: i32) -> (i32, i32) {
    %c0_i32 = arith.constant 0 : i32
    %c0_i32_0 = arith.constant 0 : i32
    %c0_i32_1 = arith.constant 0 : i32
    return %c0_i32, %c0_i32_0 : i32, i32
  }
  func.func @transform_6(%arg0: i32) -> (i32, i32) {
    %c0_i32 = arith.constant 0 : i32
    %c0_i32_0 = arith.constant 0 : i32
    %c0_i32_1 = arith.constant 0 : i32
    return %c0_i32, %c0_i32_0 : i32, i32
  }
  func.func @transform_7(%arg0: i32) -> (i32, i32) {
    %c0_i32 = arith.constant 0 : i32
    %c0_i32_0 = arith.constant 0 : i32
    %c0_i32_1 = arith.constant 0 : i32
    return %c0_i32, %c0_i32_0 : i32, i32
  }
  func.func @transform_8(%arg0: i32) -> (i32, i32) {
    %c0_i32 = arith.constant 0 : i32
    %c0_i32_0 = arith.constant 0 : i32
    %c0_i32_1 = arith.constant 0 : i32
    return %c0_i32, %c0_i32_0 : i32, i32
  }
  func.func @transform_9(%arg0: i32) -> (i32, i32) {
    %c0_i32 = arith.constant 0 : i32
    %c0_i32_0 = arith.constant 0 : i32
    %c0_i32_1 = arith.constant 0 : i32
    return %c0_i32, %c0_i32_0 : i32, i32
  }
  func.func @transform_10(%arg0: i32) -> (i32, i32) {
    %c0_i32 = arith.constant 0 : i32
    %c0_i32_0 = arith.constant 0 : i32
    %c0_i32_1 = arith.constant 0 : i32
    return %c0_i32, %c0_i32_0 : i32, i32
  }
  func.func @transform_11(%arg0: i32) -> (i32, i32) {
    %c0_i32 = arith.constant 0 : i32
    %c0_i32_0 = arith.constant 0 : i32
    %c0_i32_1 = arith.constant 0 : i32
    return %c0_i32, %c0_i32_0 : i32, i32
  }
  func.func @transform_12(%arg0: i32) -> (i32, i32) {
    %c0_i32 = arith.constant 0 : i32
    %c0_i32_0 = arith.constant 0 : i32
    %c0_i32_1 = arith.constant 0 : i32
    return %c0_i32, %c0_i32_0 : i32, i32
  }
  func.func @transform_13(%arg0: i32) -> (i32, i32) {
    %c0_i32 = arith.constant 0 : i32
    %c0_i32_0 = arith.constant 0 : i32
    %c0_i32_1 = arith.constant 0 : i32
    return %c0_i32, %c0_i32_0 : i32, i32
  }
}

module attributes {stable_mosaic.version = 11 : i64} {
  func.func @_lstm_layer_kernel(%arg0: i32, %arg1: memref<32x256xf32, #tpu.memory_space<vmem>>, %arg2: memref<1x256x128xf32, #tpu.memory_space<vmem>>, %arg3: memref<1x32x128xf32, #tpu.memory_space<vmem>>, %arg4: memref<1x1x128xf32, #tpu.memory_space<vmem>>, %arg5: memref<1x32x32xf32, #tpu.memory_space<vmem>>) attributes {dimension_semantics = [#tpu.dimension_semantics<parallel>], iteration_bounds = array<i64: 2>, scalar_prefetch = 0 : i64, scratch_operands = 0 : i64, tpu.core_type = #tpu.core_type<tc>, window_params = [{pipeline_mode = #tpu.pipeline_mode<synchronous>, transform_indices = @transform_0, window_bounds = array<i64: 32, 256>}, {transform_indices = @transform_1, window_bounds = array<i64: 1, 256, 128>}, {transform_indices = @transform_2, window_bounds = array<i64: 1, 32, 128>}, {transform_indices = @transform_3, window_bounds = array<i64: 1, 1, 128>}, {transform_indices = @transform_4, window_bounds = array<i64: 1, 32, 32>}]} {
    %c0 = arith.constant 0 : index
    %c0_0 = arith.constant 0 : index
    %0 = vector.load %arg1[%c0, %c0_0] : memref<32x256xf32, #tpu.memory_space<vmem>>, vector<32x256xf32>
    %c0_1 = arith.constant 0 : index
    %c0_2 = arith.constant 0 : index
    %c0_3 = arith.constant 0 : index
    %1 = vector.load %arg2[%c0_1, %c0_2, %c0_3] : memref<1x256x128xf32, #tpu.memory_space<vmem>>, vector<1x256x128xf32>
    %2 = vector.shape_cast %1 : vector<1x256x128xf32> to vector<256x128xf32>
    %cst = arith.constant dense<0.000000e+00> : vector<32x128xf32>
    %3 = tpu.matmul %0, %2, %cst {dimension_numbers = #tpu.dot_dimension_numbers<[1], [0], [0], [1], [0, 0, 1, 1], [], []>} : vector<32x256xf32>, vector<256x128xf32>, vector<32x128xf32> -> vector<32x128xf32>
    %c0_4 = arith.constant 0 : index
    %c0_5 = arith.constant 0 : index
    %c0_6 = arith.constant 0 : index
    %4 = vector.load %arg4[%c0_4, %c0_5, %c0_6] : memref<1x1x128xf32, #tpu.memory_space<vmem>>, vector<1x1x128xf32>
    %5 = vector.shape_cast %4 : vector<1x1x128xf32> to vector<1x128xf32>
    %6 = vector.broadcast %5 : vector<1x128xf32> to vector<32x128xf32>
    %7 = arith.addf %3, %6 : vector<32x128xf32>
    %c0_7 = arith.constant 0 : index
    %c0_8 = arith.constant 0 : index
    %c0_9 = arith.constant 0 : index
    %8 = vector.load %arg3[%c0_7, %c0_8, %c0_9] : memref<1x32x128xf32, #tpu.memory_space<vmem>>, vector<1x32x128xf32>
    %9 = vector.shape_cast %8 : vector<1x32x128xf32> to vector<32x128xf32>
    %c0_i32 = arith.constant 0 : i32
    %10 = arith.cmpi eq, %arg0, %c0_i32 : i32
    %11 = arith.extui %10 : i1 to i32
    %c0_i32_10 = arith.constant 0 : i32
    %12 = arith.cmpi ne, %11, %c0_i32_10 : i32
    scf.if %12 {
      %cst_12 = arith.constant 0.000000e+00 : f32
      %16 = vector.broadcast %cst_12 : f32 to vector<2x32xf32>
      %cst_13 = arith.constant 0.000000e+00 : f32
      %17 = vector.broadcast %cst_13 : f32 to vector<2x32xf32>
      %18 = vector.extract_strided_slice %7 {offsets = [0, 0], sizes = [2, 128], strides = [1, 1]} : vector<32x128xf32> to vector<2x128xf32>
      %cst_14 = arith.constant dense<0.000000e+00> : vector<2x128xf32>
      %19 = tpu.matmul %16, %9, %cst_14 {dimension_numbers = #tpu.dot_dimension_numbers<[1], [0], [0], [1], [0, 0, 1, 1], [], []>} : vector<2x32xf32>, vector<32x128xf32>, vector<2x128xf32> -> vector<2x128xf32>
      %20 = arith.addf %18, %19 : vector<2x128xf32>
      %21 = vector.extract_strided_slice %20 {offsets = [0, 0], sizes = [2, 32], strides = [1, 1]} : vector<2x128xf32> to vector<2x32xf32>
      %22 = arith.negf %21 : vector<2x32xf32>
      %23 = math.exp %22 : vector<2x32xf32>
      %cst_15 = arith.constant 1.000000e+00 : f32
      %24 = vector.broadcast %cst_15 : f32 to vector<2x32xf32>
      %25 = arith.addf %24, %23 : vector<2x32xf32>
      %26 = arith.divf %24, %25 : vector<2x32xf32>
      %27 = vector.extract_strided_slice %20 {offsets = [0, 32], sizes = [2, 32], strides = [1, 1]} : vector<2x128xf32> to vector<2x32xf32>
      %28 = arith.negf %27 : vector<2x32xf32>
      %29 = math.exp %28 : vector<2x32xf32>
      %cst_16 = arith.constant 1.000000e+00 : f32
      %30 = vector.broadcast %cst_16 : f32 to vector<2x32xf32>
      %31 = arith.addf %30, %29 : vector<2x32xf32>
      %32 = arith.divf %30, %31 : vector<2x32xf32>
      %33 = vector.extract_strided_slice %20 {offsets = [0, 64], sizes = [2, 32], strides = [1, 1]} : vector<2x128xf32> to vector<2x32xf32>
      %34 = math.tanh %33 : vector<2x32xf32>
      %35 = vector.extract_strided_slice %20 {offsets = [0, 96], sizes = [2, 32], strides = [1, 1]} : vector<2x128xf32> to vector<2x32xf32>
      %36 = arith.negf %35 : vector<2x32xf32>
      %37 = math.exp %36 : vector<2x32xf32>
      %cst_17 = arith.constant 1.000000e+00 : f32
      %38 = vector.broadcast %cst_17 : f32 to vector<2x32xf32>
      %39 = arith.addf %38, %37 : vector<2x32xf32>
      %40 = arith.divf %38, %39 : vector<2x32xf32>
      %41 = arith.mulf %32, %17 : vector<2x32xf32>
      %42 = arith.mulf %26, %34 : vector<2x32xf32>
      %43 = arith.addf %41, %42 : vector<2x32xf32>
      %44 = math.tanh %43 : vector<2x32xf32>
      %45 = arith.mulf %40, %44 : vector<2x32xf32>
      %46 = vector.extract_strided_slice %7 {offsets = [2, 0], sizes = [2, 128], strides = [1, 1]} : vector<32x128xf32> to vector<2x128xf32>
      %cst_18 = arith.constant dense<0.000000e+00> : vector<2x128xf32>
      %47 = tpu.matmul %45, %9, %cst_18 {dimension_numbers = #tpu.dot_dimension_numbers<[1], [0], [0], [1], [0, 0, 1, 1], [], []>} : vector<2x32xf32>, vector<32x128xf32>, vector<2x128xf32> -> vector<2x128xf32>
      %48 = arith.addf %46, %47 : vector<2x128xf32>
      %49 = vector.extract_strided_slice %48 {offsets = [0, 0], sizes = [2, 32], strides = [1, 1]} : vector<2x128xf32> to vector<2x32xf32>
      %50 = arith.negf %49 : vector<2x32xf32>
      %51 = math.exp %50 : vector<2x32xf32>
      %cst_19 = arith.constant 1.000000e+00 : f32
      %52 = vector.broadcast %cst_19 : f32 to vector<2x32xf32>
      %53 = arith.addf %52, %51 : vector<2x32xf32>
      %54 = arith.divf %52, %53 : vector<2x32xf32>
      %55 = vector.extract_strided_slice %48 {offsets = [0, 32], sizes = [2, 32], strides = [1, 1]} : vector<2x128xf32> to vector<2x32xf32>
      %56 = arith.negf %55 : vector<2x32xf32>
      %57 = math.exp %56 : vector<2x32xf32>
      %cst_20 = arith.constant 1.000000e+00 : f32
      %58 = vector.broadcast %cst_20 : f32 to vector<2x32xf32>
      %59 = arith.addf %58, %57 : vector<2x32xf32>
      %60 = arith.divf %58, %59 : vector<2x32xf32>
      %61 = vector.extract_strided_slice %48 {offsets = [0, 64], sizes = [2, 32], strides = [1, 1]} : vector<2x128xf32> to vector<2x32xf32>
      %62 = math.tanh %61 : vector<2x32xf32>
      %63 = vector.extract_strided_slice %48 {offsets = [0, 96], sizes = [2, 32], strides = [1, 1]} : vector<2x128xf32> to vector<2x32xf32>
      %64 = arith.negf %63 : vector<2x32xf32>
      %65 = math.exp %64 : vector<2x32xf32>
      %cst_21 = arith.constant 1.000000e+00 : f32
      %66 = vector.broadcast %cst_21 : f32 to vector<2x32xf32>
      %67 = arith.addf %66, %65 : vector<2x32xf32>
      %68 = arith.divf %66, %67 : vector<2x32xf32>
      %69 = arith.mulf %60, %43 : vector<2x32xf32>
      %70 = arith.mulf %54, %62 : vector<2x32xf32>
      %71 = arith.addf %69, %70 : vector<2x32xf32>
      %72 = math.tanh %71 : vector<2x32xf32>
      %73 = arith.mulf %68, %72 : vector<2x32xf32>
      %74 = vector.extract_strided_slice %7 {offsets = [4, 0], sizes = [2, 128], strides = [1, 1]} : vector<32x128xf32> to vector<2x128xf32>
      %cst_22 = arith.constant dense<0.000000e+00> : vector<2x128xf32>
      %75 = tpu.matmul %73, %9, %cst_22 {dimension_numbers = #tpu.dot_dimension_numbers<[1], [0], [0], [1], [0, 0, 1, 1], [], []>} : vector<2x32xf32>, vector<32x128xf32>, vector<2x128xf32> -> vector<2x128xf32>
      %76 = arith.addf %74, %75 : vector<2x128xf32>
      %77 = vector.extract_strided_slice %76 {offsets = [0, 0], sizes = [2, 32], strides = [1, 1]} : vector<2x128xf32> to vector<2x32xf32>
      %78 = arith.negf %77 : vector<2x32xf32>
      %79 = math.exp %78 : vector<2x32xf32>
      %cst_23 = arith.constant 1.000000e+00 : f32
      %80 = vector.broadcast %cst_23 : f32 to vector<2x32xf32>
      %81 = arith.addf %80, %79 : vector<2x32xf32>
      %82 = arith.divf %80, %81 : vector<2x32xf32>
      %83 = vector.extract_strided_slice %76 {offsets = [0, 32], sizes = [2, 32], strides = [1, 1]} : vector<2x128xf32> to vector<2x32xf32>
      %84 = arith.negf %83 : vector<2x32xf32>
      %85 = math.exp %84 : vector<2x32xf32>
      %cst_24 = arith.constant 1.000000e+00 : f32
      %86 = vector.broadcast %cst_24 : f32 to vector<2x32xf32>
      %87 = arith.addf %86, %85 : vector<2x32xf32>
      %88 = arith.divf %86, %87 : vector<2x32xf32>
      %89 = vector.extract_strided_slice %76 {offsets = [0, 64], sizes = [2, 32], strides = [1, 1]} : vector<2x128xf32> to vector<2x32xf32>
      %90 = math.tanh %89 : vector<2x32xf32>
      %91 = vector.extract_strided_slice %76 {offsets = [0, 96], sizes = [2, 32], strides = [1, 1]} : vector<2x128xf32> to vector<2x32xf32>
      %92 = arith.negf %91 : vector<2x32xf32>
      %93 = math.exp %92 : vector<2x32xf32>
      %cst_25 = arith.constant 1.000000e+00 : f32
      %94 = vector.broadcast %cst_25 : f32 to vector<2x32xf32>
      %95 = arith.addf %94, %93 : vector<2x32xf32>
      %96 = arith.divf %94, %95 : vector<2x32xf32>
      %97 = arith.mulf %88, %71 : vector<2x32xf32>
      %98 = arith.mulf %82, %90 : vector<2x32xf32>
      %99 = arith.addf %97, %98 : vector<2x32xf32>
      %100 = math.tanh %99 : vector<2x32xf32>
      %101 = arith.mulf %96, %100 : vector<2x32xf32>
      %102 = vector.extract_strided_slice %7 {offsets = [6, 0], sizes = [2, 128], strides = [1, 1]} : vector<32x128xf32> to vector<2x128xf32>
      %cst_26 = arith.constant dense<0.000000e+00> : vector<2x128xf32>
      %103 = tpu.matmul %101, %9, %cst_26 {dimension_numbers = #tpu.dot_dimension_numbers<[1], [0], [0], [1], [0, 0, 1, 1], [], []>} : vector<2x32xf32>, vector<32x128xf32>, vector<2x128xf32> -> vector<2x128xf32>
      %104 = arith.addf %102, %103 : vector<2x128xf32>
      %105 = vector.extract_strided_slice %104 {offsets = [0, 0], sizes = [2, 32], strides = [1, 1]} : vector<2x128xf32> to vector<2x32xf32>
      %106 = arith.negf %105 : vector<2x32xf32>
      %107 = math.exp %106 : vector<2x32xf32>
      %cst_27 = arith.constant 1.000000e+00 : f32
      %108 = vector.broadcast %cst_27 : f32 to vector<2x32xf32>
      %109 = arith.addf %108, %107 : vector<2x32xf32>
      %110 = arith.divf %108, %109 : vector<2x32xf32>
      %111 = vector.extract_strided_slice %104 {offsets = [0, 32], sizes = [2, 32], strides = [1, 1]} : vector<2x128xf32> to vector<2x32xf32>
      %112 = arith.negf %111 : vector<2x32xf32>
      %113 = math.exp %112 : vector<2x32xf32>
      %cst_28 = arith.constant 1.000000e+00 : f32
      %114 = vector.broadcast %cst_28 : f32 to vector<2x32xf32>
      %115 = arith.addf %114, %113 : vector<2x32xf32>
      %116 = arith.divf %114, %115 : vector<2x32xf32>
      %117 = vector.extract_strided_slice %104 {offsets = [0, 64], sizes = [2, 32], strides = [1, 1]} : vector<2x128xf32> to vector<2x32xf32>
      %118 = math.tanh %117 : vector<2x32xf32>
      %119 = vector.extract_strided_slice %104 {offsets = [0, 96], sizes = [2, 32], strides = [1, 1]} : vector<2x128xf32> to vector<2x32xf32>
      %120 = arith.negf %119 : vector<2x32xf32>
      %121 = math.exp %120 : vector<2x32xf32>
      %cst_29 = arith.constant 1.000000e+00 : f32
      %122 = vector.broadcast %cst_29 : f32 to vector<2x32xf32>
      %123 = arith.addf %122, %121 : vector<2x32xf32>
      %124 = arith.divf %122, %123 : vector<2x32xf32>
      %125 = arith.mulf %116, %99 : vector<2x32xf32>
      %126 = arith.mulf %110, %118 : vector<2x32xf32>
      %127 = arith.addf %125, %126 : vector<2x32xf32>
      %128 = math.tanh %127 : vector<2x32xf32>
      %129 = arith.mulf %124, %128 : vector<2x32xf32>
      %130 = vector.extract_strided_slice %7 {offsets = [8, 0], sizes = [2, 128], strides = [1, 1]} : vector<32x128xf32> to vector<2x128xf32>
      %cst_30 = arith.constant dense<0.000000e+00> : vector<2x128xf32>
      %131 = tpu.matmul %129, %9, %cst_30 {dimension_numbers = #tpu.dot_dimension_numbers<[1], [0], [0], [1], [0, 0, 1, 1], [], []>} : vector<2x32xf32>, vector<32x128xf32>, vector<2x128xf32> -> vector<2x128xf32>
      %132 = arith.addf %130, %131 : vector<2x128xf32>
      %133 = vector.extract_strided_slice %132 {offsets = [0, 0], sizes = [2, 32], strides = [1, 1]} : vector<2x128xf32> to vector<2x32xf32>
      %134 = arith.negf %133 : vector<2x32xf32>
      %135 = math.exp %134 : vector<2x32xf32>
      %cst_31 = arith.constant 1.000000e+00 : f32
      %136 = vector.broadcast %cst_31 : f32 to vector<2x32xf32>
      %137 = arith.addf %136, %135 : vector<2x32xf32>
      %138 = arith.divf %136, %137 : vector<2x32xf32>
      %139 = vector.extract_strided_slice %132 {offsets = [0, 32], sizes = [2, 32], strides = [1, 1]} : vector<2x128xf32> to vector<2x32xf32>
      %140 = arith.negf %139 : vector<2x32xf32>
      %141 = math.exp %140 : vector<2x32xf32>
      %cst_32 = arith.constant 1.000000e+00 : f32
      %142 = vector.broadcast %cst_32 : f32 to vector<2x32xf32>
      %143 = arith.addf %142, %141 : vector<2x32xf32>
      %144 = arith.divf %142, %143 : vector<2x32xf32>
      %145 = vector.extract_strided_slice %132 {offsets = [0, 64], sizes = [2, 32], strides = [1, 1]} : vector<2x128xf32> to vector<2x32xf32>
      %146 = math.tanh %145 : vector<2x32xf32>
      %147 = vector.extract_strided_slice %132 {offsets = [0, 96], sizes = [2, 32], strides = [1, 1]} : vector<2x128xf32> to vector<2x32xf32>
      %148 = arith.negf %147 : vector<2x32xf32>
      %149 = math.exp %148 : vector<2x32xf32>
      %cst_33 = arith.constant 1.000000e+00 : f32
      %150 = vector.broadcast %cst_33 : f32 to vector<2x32xf32>
      %151 = arith.addf %150, %149 : vector<2x32xf32>
      %152 = arith.divf %150, %151 : vector<2x32xf32>
      %153 = arith.mulf %144, %127 : vector<2x32xf32>
      %154 = arith.mulf %138, %146 : vector<2x32xf32>
      %155 = arith.addf %153, %154 : vector<2x32xf32>
      %156 = math.tanh %155 : vector<2x32xf32>
      %157 = arith.mulf %152, %156 : vector<2x32xf32>
      %158 = vector.extract_strided_slice %7 {offsets = [10, 0], sizes = [2, 128], strides = [1, 1]} : vector<32x128xf32> to vector<2x128xf32>
      %cst_34 = arith.constant dense<0.000000e+00> : vector<2x128xf32>
      %159 = tpu.matmul %157, %9, %cst_34 {dimension_numbers = #tpu.dot_dimension_numbers<[1], [0], [0], [1], [0, 0, 1, 1], [], []>} : vector<2x32xf32>, vector<32x128xf32>, vector<2x128xf32> -> vector<2x128xf32>
      %160 = arith.addf %158, %159 : vector<2x128xf32>
      %161 = vector.extract_strided_slice %160 {offsets = [0, 0], sizes = [2, 32], strides = [1, 1]} : vector<2x128xf32> to vector<2x32xf32>
      %162 = arith.negf %161 : vector<2x32xf32>
      %163 = math.exp %162 : vector<2x32xf32>
      %cst_35 = arith.constant 1.000000e+00 : f32
      %164 = vector.broadcast %cst_35 : f32 to vector<2x32xf32>
      %165 = arith.addf %164, %163 : vector<2x32xf32>
      %166 = arith.divf %164, %165 : vector<2x32xf32>
      %167 = vector.extract_strided_slice %160 {offsets = [0, 32], sizes = [2, 32], strides = [1, 1]} : vector<2x128xf32> to vector<2x32xf32>
      %168 = arith.negf %167 : vector<2x32xf32>
      %169 = math.exp %168 : vector<2x32xf32>
      %cst_36 = arith.constant 1.000000e+00 : f32
      %170 = vector.broadcast %cst_36 : f32 to vector<2x32xf32>
      %171 = arith.addf %170, %169 : vector<2x32xf32>
      %172 = arith.divf %170, %171 : vector<2x32xf32>
      %173 = vector.extract_strided_slice %160 {offsets = [0, 64], sizes = [2, 32], strides = [1, 1]} : vector<2x128xf32> to vector<2x32xf32>
      %174 = math.tanh %173 : vector<2x32xf32>
      %175 = vector.extract_strided_slice %160 {offsets = [0, 96], sizes = [2, 32], strides = [1, 1]} : vector<2x128xf32> to vector<2x32xf32>
      %176 = arith.negf %175 : vector<2x32xf32>
      %177 = math.exp %176 : vector<2x32xf32>
      %cst_37 = arith.constant 1.000000e+00 : f32
      %178 = vector.broadcast %cst_37 : f32 to vector<2x32xf32>
      %179 = arith.addf %178, %177 : vector<2x32xf32>
      %180 = arith.divf %178, %179 : vector<2x32xf32>
      %181 = arith.mulf %172, %155 : vector<2x32xf32>
      %182 = arith.mulf %166, %174 : vector<2x32xf32>
      %183 = arith.addf %181, %182 : vector<2x32xf32>
      %184 = math.tanh %183 : vector<2x32xf32>
      %185 = arith.mulf %180, %184 : vector<2x32xf32>
      %186 = vector.extract_strided_slice %7 {offsets = [12, 0], sizes = [2, 128], strides = [1, 1]} : vector<32x128xf32> to vector<2x128xf32>
      %cst_38 = arith.constant dense<0.000000e+00> : vector<2x128xf32>
      %187 = tpu.matmul %185, %9, %cst_38 {dimension_numbers = #tpu.dot_dimension_numbers<[1], [0], [0], [1], [0, 0, 1, 1], [], []>} : vector<2x32xf32>, vector<32x128xf32>, vector<2x128xf32> -> vector<2x128xf32>
      %188 = arith.addf %186, %187 : vector<2x128xf32>
      %189 = vector.extract_strided_slice %188 {offsets = [0, 0], sizes = [2, 32], strides = [1, 1]} : vector<2x128xf32> to vector<2x32xf32>
      %190 = arith.negf %189 : vector<2x32xf32>
      %191 = math.exp %190 : vector<2x32xf32>
      %cst_39 = arith.constant 1.000000e+00 : f32
      %192 = vector.broadcast %cst_39 : f32 to vector<2x32xf32>
      %193 = arith.addf %192, %191 : vector<2x32xf32>
      %194 = arith.divf %192, %193 : vector<2x32xf32>
      %195 = vector.extract_strided_slice %188 {offsets = [0, 32], sizes = [2, 32], strides = [1, 1]} : vector<2x128xf32> to vector<2x32xf32>
      %196 = arith.negf %195 : vector<2x32xf32>
      %197 = math.exp %196 : vector<2x32xf32>
      %cst_40 = arith.constant 1.000000e+00 : f32
      %198 = vector.broadcast %cst_40 : f32 to vector<2x32xf32>
      %199 = arith.addf %198, %197 : vector<2x32xf32>
      %200 = arith.divf %198, %199 : vector<2x32xf32>
      %201 = vector.extract_strided_slice %188 {offsets = [0, 64], sizes = [2, 32], strides = [1, 1]} : vector<2x128xf32> to vector<2x32xf32>
      %202 = math.tanh %201 : vector<2x32xf32>
      %203 = vector.extract_strided_slice %188 {offsets = [0, 96], sizes = [2, 32], strides = [1, 1]} : vector<2x128xf32> to vector<2x32xf32>
      %204 = arith.negf %203 : vector<2x32xf32>
      %205 = math.exp %204 : vector<2x32xf32>
      %cst_41 = arith.constant 1.000000e+00 : f32
      %206 = vector.broadcast %cst_41 : f32 to vector<2x32xf32>
      %207 = arith.addf %206, %205 : vector<2x32xf32>
      %208 = arith.divf %206, %207 : vector<2x32xf32>
      %209 = arith.mulf %200, %183 : vector<2x32xf32>
      %210 = arith.mulf %194, %202 : vector<2x32xf32>
      %211 = arith.addf %209, %210 : vector<2x32xf32>
      %212 = math.tanh %211 : vector<2x32xf32>
      %213 = arith.mulf %208, %212 : vector<2x32xf32>
      %214 = vector.extract_strided_slice %7 {offsets = [14, 0], sizes = [2, 128], strides = [1, 1]} : vector<32x128xf32> to vector<2x128xf32>
      %cst_42 = arith.constant dense<0.000000e+00> : vector<2x128xf32>
      %215 = tpu.matmul %213, %9, %cst_42 {dimension_numbers = #tpu.dot_dimension_numbers<[1], [0], [0], [1], [0, 0, 1, 1], [], []>} : vector<2x32xf32>, vector<32x128xf32>, vector<2x128xf32> -> vector<2x128xf32>
      %216 = arith.addf %214, %215 : vector<2x128xf32>
      %217 = vector.extract_strided_slice %216 {offsets = [0, 0], sizes = [2, 32], strides = [1, 1]} : vector<2x128xf32> to vector<2x32xf32>
      %218 = arith.negf %217 : vector<2x32xf32>
      %219 = math.exp %218 : vector<2x32xf32>
      %cst_43 = arith.constant 1.000000e+00 : f32
      %220 = vector.broadcast %cst_43 : f32 to vector<2x32xf32>
      %221 = arith.addf %220, %219 : vector<2x32xf32>
      %222 = arith.divf %220, %221 : vector<2x32xf32>
      %223 = vector.extract_strided_slice %216 {offsets = [0, 32], sizes = [2, 32], strides = [1, 1]} : vector<2x128xf32> to vector<2x32xf32>
      %224 = arith.negf %223 : vector<2x32xf32>
      %225 = math.exp %224 : vector<2x32xf32>
      %cst_44 = arith.constant 1.000000e+00 : f32
      %226 = vector.broadcast %cst_44 : f32 to vector<2x32xf32>
      %227 = arith.addf %226, %225 : vector<2x32xf32>
      %228 = arith.divf %226, %227 : vector<2x32xf32>
      %229 = vector.extract_strided_slice %216 {offsets = [0, 64], sizes = [2, 32], strides = [1, 1]} : vector<2x128xf32> to vector<2x32xf32>
      %230 = math.tanh %229 : vector<2x32xf32>
      %231 = vector.extract_strided_slice %216 {offsets = [0, 96], sizes = [2, 32], strides = [1, 1]} : vector<2x128xf32> to vector<2x32xf32>
      %232 = arith.negf %231 : vector<2x32xf32>
      %233 = math.exp %232 : vector<2x32xf32>
      %cst_45 = arith.constant 1.000000e+00 : f32
      %234 = vector.broadcast %cst_45 : f32 to vector<2x32xf32>
      %235 = arith.addf %234, %233 : vector<2x32xf32>
      %236 = arith.divf %234, %235 : vector<2x32xf32>
      %237 = arith.mulf %228, %211 : vector<2x32xf32>
      %238 = arith.mulf %222, %230 : vector<2x32xf32>
      %239 = arith.addf %237, %238 : vector<2x32xf32>
      %240 = math.tanh %239 : vector<2x32xf32>
      %241 = arith.mulf %236, %240 : vector<2x32xf32>
      %242 = vector.extract_strided_slice %7 {offsets = [16, 0], sizes = [2, 128], strides = [1, 1]} : vector<32x128xf32> to vector<2x128xf32>
      %cst_46 = arith.constant dense<0.000000e+00> : vector<2x128xf32>
      %243 = tpu.matmul %241, %9, %cst_46 {dimension_numbers = #tpu.dot_dimension_numbers<[1], [0], [0], [1], [0, 0, 1, 1], [], []>} : vector<2x32xf32>, vector<32x128xf32>, vector<2x128xf32> -> vector<2x128xf32>
      %244 = arith.addf %242, %243 : vector<2x128xf32>
      %245 = vector.extract_strided_slice %244 {offsets = [0, 0], sizes = [2, 32], strides = [1, 1]} : vector<2x128xf32> to vector<2x32xf32>
      %246 = arith.negf %245 : vector<2x32xf32>
      %247 = math.exp %246 : vector<2x32xf32>
      %cst_47 = arith.constant 1.000000e+00 : f32
      %248 = vector.broadcast %cst_47 : f32 to vector<2x32xf32>
      %249 = arith.addf %248, %247 : vector<2x32xf32>
      %250 = arith.divf %248, %249 : vector<2x32xf32>
      %251 = vector.extract_strided_slice %244 {offsets = [0, 32], sizes = [2, 32], strides = [1, 1]} : vector<2x128xf32> to vector<2x32xf32>
      %252 = arith.negf %251 : vector<2x32xf32>
      %253 = math.exp %252 : vector<2x32xf32>
      %cst_48 = arith.constant 1.000000e+00 : f32
      %254 = vector.broadcast %cst_48 : f32 to vector<2x32xf32>
      %255 = arith.addf %254, %253 : vector<2x32xf32>
      %256 = arith.divf %254, %255 : vector<2x32xf32>
      %257 = vector.extract_strided_slice %244 {offsets = [0, 64], sizes = [2, 32], strides = [1, 1]} : vector<2x128xf32> to vector<2x32xf32>
      %258 = math.tanh %257 : vector<2x32xf32>
      %259 = vector.extract_strided_slice %244 {offsets = [0, 96], sizes = [2, 32], strides = [1, 1]} : vector<2x128xf32> to vector<2x32xf32>
      %260 = arith.negf %259 : vector<2x32xf32>
      %261 = math.exp %260 : vector<2x32xf32>
      %cst_49 = arith.constant 1.000000e+00 : f32
      %262 = vector.broadcast %cst_49 : f32 to vector<2x32xf32>
      %263 = arith.addf %262, %261 : vector<2x32xf32>
      %264 = arith.divf %262, %263 : vector<2x32xf32>
      %265 = arith.mulf %256, %239 : vector<2x32xf32>
      %266 = arith.mulf %250, %258 : vector<2x32xf32>
      %267 = arith.addf %265, %266 : vector<2x32xf32>
      %268 = math.tanh %267 : vector<2x32xf32>
      %269 = arith.mulf %264, %268 : vector<2x32xf32>
      %270 = vector.extract_strided_slice %7 {offsets = [18, 0], sizes = [2, 128], strides = [1, 1]} : vector<32x128xf32> to vector<2x128xf32>
      %cst_50 = arith.constant dense<0.000000e+00> : vector<2x128xf32>
      %271 = tpu.matmul %269, %9, %cst_50 {dimension_numbers = #tpu.dot_dimension_numbers<[1], [0], [0], [1], [0, 0, 1, 1], [], []>} : vector<2x32xf32>, vector<32x128xf32>, vector<2x128xf32> -> vector<2x128xf32>
      %272 = arith.addf %270, %271 : vector<2x128xf32>
      %273 = vector.extract_strided_slice %272 {offsets = [0, 0], sizes = [2, 32], strides = [1, 1]} : vector<2x128xf32> to vector<2x32xf32>
      %274 = arith.negf %273 : vector<2x32xf32>
      %275 = math.exp %274 : vector<2x32xf32>
      %cst_51 = arith.constant 1.000000e+00 : f32
      %276 = vector.broadcast %cst_51 : f32 to vector<2x32xf32>
      %277 = arith.addf %276, %275 : vector<2x32xf32>
      %278 = arith.divf %276, %277 : vector<2x32xf32>
      %279 = vector.extract_strided_slice %272 {offsets = [0, 32], sizes = [2, 32], strides = [1, 1]} : vector<2x128xf32> to vector<2x32xf32>
      %280 = arith.negf %279 : vector<2x32xf32>
      %281 = math.exp %280 : vector<2x32xf32>
      %cst_52 = arith.constant 1.000000e+00 : f32
      %282 = vector.broadcast %cst_52 : f32 to vector<2x32xf32>
      %283 = arith.addf %282, %281 : vector<2x32xf32>
      %284 = arith.divf %282, %283 : vector<2x32xf32>
      %285 = vector.extract_strided_slice %272 {offsets = [0, 64], sizes = [2, 32], strides = [1, 1]} : vector<2x128xf32> to vector<2x32xf32>
      %286 = math.tanh %285 : vector<2x32xf32>
      %287 = vector.extract_strided_slice %272 {offsets = [0, 96], sizes = [2, 32], strides = [1, 1]} : vector<2x128xf32> to vector<2x32xf32>
      %288 = arith.negf %287 : vector<2x32xf32>
      %289 = math.exp %288 : vector<2x32xf32>
      %cst_53 = arith.constant 1.000000e+00 : f32
      %290 = vector.broadcast %cst_53 : f32 to vector<2x32xf32>
      %291 = arith.addf %290, %289 : vector<2x32xf32>
      %292 = arith.divf %290, %291 : vector<2x32xf32>
      %293 = arith.mulf %284, %267 : vector<2x32xf32>
      %294 = arith.mulf %278, %286 : vector<2x32xf32>
      %295 = arith.addf %293, %294 : vector<2x32xf32>
      %296 = math.tanh %295 : vector<2x32xf32>
      %297 = arith.mulf %292, %296 : vector<2x32xf32>
      %298 = vector.extract_strided_slice %7 {offsets = [20, 0], sizes = [2, 128], strides = [1, 1]} : vector<32x128xf32> to vector<2x128xf32>
      %cst_54 = arith.constant dense<0.000000e+00> : vector<2x128xf32>
      %299 = tpu.matmul %297, %9, %cst_54 {dimension_numbers = #tpu.dot_dimension_numbers<[1], [0], [0], [1], [0, 0, 1, 1], [], []>} : vector<2x32xf32>, vector<32x128xf32>, vector<2x128xf32> -> vector<2x128xf32>
      %300 = arith.addf %298, %299 : vector<2x128xf32>
      %301 = vector.extract_strided_slice %300 {offsets = [0, 0], sizes = [2, 32], strides = [1, 1]} : vector<2x128xf32> to vector<2x32xf32>
      %302 = arith.negf %301 : vector<2x32xf32>
      %303 = math.exp %302 : vector<2x32xf32>
      %cst_55 = arith.constant 1.000000e+00 : f32
      %304 = vector.broadcast %cst_55 : f32 to vector<2x32xf32>
      %305 = arith.addf %304, %303 : vector<2x32xf32>
      %306 = arith.divf %304, %305 : vector<2x32xf32>
      %307 = vector.extract_strided_slice %300 {offsets = [0, 32], sizes = [2, 32], strides = [1, 1]} : vector<2x128xf32> to vector<2x32xf32>
      %308 = arith.negf %307 : vector<2x32xf32>
      %309 = math.exp %308 : vector<2x32xf32>
      %cst_56 = arith.constant 1.000000e+00 : f32
      %310 = vector.broadcast %cst_56 : f32 to vector<2x32xf32>
      %311 = arith.addf %310, %309 : vector<2x32xf32>
      %312 = arith.divf %310, %311 : vector<2x32xf32>
      %313 = vector.extract_strided_slice %300 {offsets = [0, 64], sizes = [2, 32], strides = [1, 1]} : vector<2x128xf32> to vector<2x32xf32>
      %314 = math.tanh %313 : vector<2x32xf32>
      %315 = vector.extract_strided_slice %300 {offsets = [0, 96], sizes = [2, 32], strides = [1, 1]} : vector<2x128xf32> to vector<2x32xf32>
      %316 = arith.negf %315 : vector<2x32xf32>
      %317 = math.exp %316 : vector<2x32xf32>
      %cst_57 = arith.constant 1.000000e+00 : f32
      %318 = vector.broadcast %cst_57 : f32 to vector<2x32xf32>
      %319 = arith.addf %318, %317 : vector<2x32xf32>
      %320 = arith.divf %318, %319 : vector<2x32xf32>
      %321 = arith.mulf %312, %295 : vector<2x32xf32>
      %322 = arith.mulf %306, %314 : vector<2x32xf32>
      %323 = arith.addf %321, %322 : vector<2x32xf32>
      %324 = math.tanh %323 : vector<2x32xf32>
      %325 = arith.mulf %320, %324 : vector<2x32xf32>
      %326 = vector.extract_strided_slice %7 {offsets = [22, 0], sizes = [2, 128], strides = [1, 1]} : vector<32x128xf32> to vector<2x128xf32>
      %cst_58 = arith.constant dense<0.000000e+00> : vector<2x128xf32>
      %327 = tpu.matmul %325, %9, %cst_58 {dimension_numbers = #tpu.dot_dimension_numbers<[1], [0], [0], [1], [0, 0, 1, 1], [], []>} : vector<2x32xf32>, vector<32x128xf32>, vector<2x128xf32> -> vector<2x128xf32>
      %328 = arith.addf %326, %327 : vector<2x128xf32>
      %329 = vector.extract_strided_slice %328 {offsets = [0, 0], sizes = [2, 32], strides = [1, 1]} : vector<2x128xf32> to vector<2x32xf32>
      %330 = arith.negf %329 : vector<2x32xf32>
      %331 = math.exp %330 : vector<2x32xf32>
      %cst_59 = arith.constant 1.000000e+00 : f32
      %332 = vector.broadcast %cst_59 : f32 to vector<2x32xf32>
      %333 = arith.addf %332, %331 : vector<2x32xf32>
      %334 = arith.divf %332, %333 : vector<2x32xf32>
      %335 = vector.extract_strided_slice %328 {offsets = [0, 32], sizes = [2, 32], strides = [1, 1]} : vector<2x128xf32> to vector<2x32xf32>
      %336 = arith.negf %335 : vector<2x32xf32>
      %337 = math.exp %336 : vector<2x32xf32>
      %cst_60 = arith.constant 1.000000e+00 : f32
      %338 = vector.broadcast %cst_60 : f32 to vector<2x32xf32>
      %339 = arith.addf %338, %337 : vector<2x32xf32>
      %340 = arith.divf %338, %339 : vector<2x32xf32>
      %341 = vector.extract_strided_slice %328 {offsets = [0, 64], sizes = [2, 32], strides = [1, 1]} : vector<2x128xf32> to vector<2x32xf32>
      %342 = math.tanh %341 : vector<2x32xf32>
      %343 = vector.extract_strided_slice %328 {offsets = [0, 96], sizes = [2, 32], strides = [1, 1]} : vector<2x128xf32> to vector<2x32xf32>
      %344 = arith.negf %343 : vector<2x32xf32>
      %345 = math.exp %344 : vector<2x32xf32>
      %cst_61 = arith.constant 1.000000e+00 : f32
      %346 = vector.broadcast %cst_61 : f32 to vector<2x32xf32>
      %347 = arith.addf %346, %345 : vector<2x32xf32>
      %348 = arith.divf %346, %347 : vector<2x32xf32>
      %349 = arith.mulf %340, %323 : vector<2x32xf32>
      %350 = arith.mulf %334, %342 : vector<2x32xf32>
      %351 = arith.addf %349, %350 : vector<2x32xf32>
      %352 = math.tanh %351 : vector<2x32xf32>
      %353 = arith.mulf %348, %352 : vector<2x32xf32>
      %354 = vector.extract_strided_slice %7 {offsets = [24, 0], sizes = [2, 128], strides = [1, 1]} : vector<32x128xf32> to vector<2x128xf32>
      %cst_62 = arith.constant dense<0.000000e+00> : vector<2x128xf32>
      %355 = tpu.matmul %353, %9, %cst_62 {dimension_numbers = #tpu.dot_dimension_numbers<[1], [0], [0], [1], [0, 0, 1, 1], [], []>} : vector<2x32xf32>, vector<32x128xf32>, vector<2x128xf32> -> vector<2x128xf32>
      %356 = arith.addf %354, %355 : vector<2x128xf32>
      %357 = vector.extract_strided_slice %356 {offsets = [0, 0], sizes = [2, 32], strides = [1, 1]} : vector<2x128xf32> to vector<2x32xf32>
      %358 = arith.negf %357 : vector<2x32xf32>
      %359 = math.exp %358 : vector<2x32xf32>
      %cst_63 = arith.constant 1.000000e+00 : f32
      %360 = vector.broadcast %cst_63 : f32 to vector<2x32xf32>
      %361 = arith.addf %360, %359 : vector<2x32xf32>
      %362 = arith.divf %360, %361 : vector<2x32xf32>
      %363 = vector.extract_strided_slice %356 {offsets = [0, 32], sizes = [2, 32], strides = [1, 1]} : vector<2x128xf32> to vector<2x32xf32>
      %364 = arith.negf %363 : vector<2x32xf32>
      %365 = math.exp %364 : vector<2x32xf32>
      %cst_64 = arith.constant 1.000000e+00 : f32
      %366 = vector.broadcast %cst_64 : f32 to vector<2x32xf32>
      %367 = arith.addf %366, %365 : vector<2x32xf32>
      %368 = arith.divf %366, %367 : vector<2x32xf32>
      %369 = vector.extract_strided_slice %356 {offsets = [0, 64], sizes = [2, 32], strides = [1, 1]} : vector<2x128xf32> to vector<2x32xf32>
      %370 = math.tanh %369 : vector<2x32xf32>
      %371 = vector.extract_strided_slice %356 {offsets = [0, 96], sizes = [2, 32], strides = [1, 1]} : vector<2x128xf32> to vector<2x32xf32>
      %372 = arith.negf %371 : vector<2x32xf32>
      %373 = math.exp %372 : vector<2x32xf32>
      %cst_65 = arith.constant 1.000000e+00 : f32
      %374 = vector.broadcast %cst_65 : f32 to vector<2x32xf32>
      %375 = arith.addf %374, %373 : vector<2x32xf32>
      %376 = arith.divf %374, %375 : vector<2x32xf32>
      %377 = arith.mulf %368, %351 : vector<2x32xf32>
      %378 = arith.mulf %362, %370 : vector<2x32xf32>
      %379 = arith.addf %377, %378 : vector<2x32xf32>
      %380 = math.tanh %379 : vector<2x32xf32>
      %381 = arith.mulf %376, %380 : vector<2x32xf32>
      %382 = vector.extract_strided_slice %7 {offsets = [26, 0], sizes = [2, 128], strides = [1, 1]} : vector<32x128xf32> to vector<2x128xf32>
      %cst_66 = arith.constant dense<0.000000e+00> : vector<2x128xf32>
      %383 = tpu.matmul %381, %9, %cst_66 {dimension_numbers = #tpu.dot_dimension_numbers<[1], [0], [0], [1], [0, 0, 1, 1], [], []>} : vector<2x32xf32>, vector<32x128xf32>, vector<2x128xf32> -> vector<2x128xf32>
      %384 = arith.addf %382, %383 : vector<2x128xf32>
      %385 = vector.extract_strided_slice %384 {offsets = [0, 0], sizes = [2, 32], strides = [1, 1]} : vector<2x128xf32> to vector<2x32xf32>
      %386 = arith.negf %385 : vector<2x32xf32>
      %387 = math.exp %386 : vector<2x32xf32>
      %cst_67 = arith.constant 1.000000e+00 : f32
      %388 = vector.broadcast %cst_67 : f32 to vector<2x32xf32>
      %389 = arith.addf %388, %387 : vector<2x32xf32>
      %390 = arith.divf %388, %389 : vector<2x32xf32>
      %391 = vector.extract_strided_slice %384 {offsets = [0, 32], sizes = [2, 32], strides = [1, 1]} : vector<2x128xf32> to vector<2x32xf32>
      %392 = arith.negf %391 : vector<2x32xf32>
      %393 = math.exp %392 : vector<2x32xf32>
      %cst_68 = arith.constant 1.000000e+00 : f32
      %394 = vector.broadcast %cst_68 : f32 to vector<2x32xf32>
      %395 = arith.addf %394, %393 : vector<2x32xf32>
      %396 = arith.divf %394, %395 : vector<2x32xf32>
      %397 = vector.extract_strided_slice %384 {offsets = [0, 64], sizes = [2, 32], strides = [1, 1]} : vector<2x128xf32> to vector<2x32xf32>
      %398 = math.tanh %397 : vector<2x32xf32>
      %399 = vector.extract_strided_slice %384 {offsets = [0, 96], sizes = [2, 32], strides = [1, 1]} : vector<2x128xf32> to vector<2x32xf32>
      %400 = arith.negf %399 : vector<2x32xf32>
      %401 = math.exp %400 : vector<2x32xf32>
      %cst_69 = arith.constant 1.000000e+00 : f32
      %402 = vector.broadcast %cst_69 : f32 to vector<2x32xf32>
      %403 = arith.addf %402, %401 : vector<2x32xf32>
      %404 = arith.divf %402, %403 : vector<2x32xf32>
      %405 = arith.mulf %396, %379 : vector<2x32xf32>
      %406 = arith.mulf %390, %398 : vector<2x32xf32>
      %407 = arith.addf %405, %406 : vector<2x32xf32>
      %408 = math.tanh %407 : vector<2x32xf32>
      %409 = arith.mulf %404, %408 : vector<2x32xf32>
      %410 = vector.extract_strided_slice %7 {offsets = [28, 0], sizes = [2, 128], strides = [1, 1]} : vector<32x128xf32> to vector<2x128xf32>
      %cst_70 = arith.constant dense<0.000000e+00> : vector<2x128xf32>
      %411 = tpu.matmul %409, %9, %cst_70 {dimension_numbers = #tpu.dot_dimension_numbers<[1], [0], [0], [1], [0, 0, 1, 1], [], []>} : vector<2x32xf32>, vector<32x128xf32>, vector<2x128xf32> -> vector<2x128xf32>
      %412 = arith.addf %410, %411 : vector<2x128xf32>
      %413 = vector.extract_strided_slice %412 {offsets = [0, 0], sizes = [2, 32], strides = [1, 1]} : vector<2x128xf32> to vector<2x32xf32>
      %414 = arith.negf %413 : vector<2x32xf32>
      %415 = math.exp %414 : vector<2x32xf32>
      %cst_71 = arith.constant 1.000000e+00 : f32
      %416 = vector.broadcast %cst_71 : f32 to vector<2x32xf32>
      %417 = arith.addf %416, %415 : vector<2x32xf32>
      %418 = arith.divf %416, %417 : vector<2x32xf32>
      %419 = vector.extract_strided_slice %412 {offsets = [0, 32], sizes = [2, 32], strides = [1, 1]} : vector<2x128xf32> to vector<2x32xf32>
      %420 = arith.negf %419 : vector<2x32xf32>
      %421 = math.exp %420 : vector<2x32xf32>
      %cst_72 = arith.constant 1.000000e+00 : f32
      %422 = vector.broadcast %cst_72 : f32 to vector<2x32xf32>
      %423 = arith.addf %422, %421 : vector<2x32xf32>
      %424 = arith.divf %422, %423 : vector<2x32xf32>
      %425 = vector.extract_strided_slice %412 {offsets = [0, 64], sizes = [2, 32], strides = [1, 1]} : vector<2x128xf32> to vector<2x32xf32>
      %426 = math.tanh %425 : vector<2x32xf32>
      %427 = vector.extract_strided_slice %412 {offsets = [0, 96], sizes = [2, 32], strides = [1, 1]} : vector<2x128xf32> to vector<2x32xf32>
      %428 = arith.negf %427 : vector<2x32xf32>
      %429 = math.exp %428 : vector<2x32xf32>
      %cst_73 = arith.constant 1.000000e+00 : f32
      %430 = vector.broadcast %cst_73 : f32 to vector<2x32xf32>
      %431 = arith.addf %430, %429 : vector<2x32xf32>
      %432 = arith.divf %430, %431 : vector<2x32xf32>
      %433 = arith.mulf %424, %407 : vector<2x32xf32>
      %434 = arith.mulf %418, %426 : vector<2x32xf32>
      %435 = arith.addf %433, %434 : vector<2x32xf32>
      %436 = math.tanh %435 : vector<2x32xf32>
      %437 = arith.mulf %432, %436 : vector<2x32xf32>
      %438 = vector.extract_strided_slice %7 {offsets = [30, 0], sizes = [2, 128], strides = [1, 1]} : vector<32x128xf32> to vector<2x128xf32>
      %cst_74 = arith.constant dense<0.000000e+00> : vector<2x128xf32>
      %439 = tpu.matmul %437, %9, %cst_74 {dimension_numbers = #tpu.dot_dimension_numbers<[1], [0], [0], [1], [0, 0, 1, 1], [], []>} : vector<2x32xf32>, vector<32x128xf32>, vector<2x128xf32> -> vector<2x128xf32>
      %440 = arith.addf %438, %439 : vector<2x128xf32>
      %441 = vector.extract_strided_slice %440 {offsets = [0, 0], sizes = [2, 32], strides = [1, 1]} : vector<2x128xf32> to vector<2x32xf32>
      %442 = arith.negf %441 : vector<2x32xf32>
      %443 = math.exp %442 : vector<2x32xf32>
      %cst_75 = arith.constant 1.000000e+00 : f32
      %444 = vector.broadcast %cst_75 : f32 to vector<2x32xf32>
      %445 = arith.addf %444, %443 : vector<2x32xf32>
      %446 = arith.divf %444, %445 : vector<2x32xf32>
      %447 = vector.extract_strided_slice %440 {offsets = [0, 32], sizes = [2, 32], strides = [1, 1]} : vector<2x128xf32> to vector<2x32xf32>
      %448 = arith.negf %447 : vector<2x32xf32>
      %449 = math.exp %448 : vector<2x32xf32>
      %cst_76 = arith.constant 1.000000e+00 : f32
      %450 = vector.broadcast %cst_76 : f32 to vector<2x32xf32>
      %451 = arith.addf %450, %449 : vector<2x32xf32>
      %452 = arith.divf %450, %451 : vector<2x32xf32>
      %453 = vector.extract_strided_slice %440 {offsets = [0, 64], sizes = [2, 32], strides = [1, 1]} : vector<2x128xf32> to vector<2x32xf32>
      %454 = math.tanh %453 : vector<2x32xf32>
      %455 = vector.extract_strided_slice %440 {offsets = [0, 96], sizes = [2, 32], strides = [1, 1]} : vector<2x128xf32> to vector<2x32xf32>
      %456 = arith.negf %455 : vector<2x32xf32>
      %457 = math.exp %456 : vector<2x32xf32>
      %cst_77 = arith.constant 1.000000e+00 : f32
      %458 = vector.broadcast %cst_77 : f32 to vector<2x32xf32>
      %459 = arith.addf %458, %457 : vector<2x32xf32>
      %460 = arith.divf %458, %459 : vector<2x32xf32>
      %461 = arith.mulf %452, %435 : vector<2x32xf32>
      %462 = arith.mulf %446, %454 : vector<2x32xf32>
      %463 = arith.addf %461, %462 : vector<2x32xf32>
      %464 = math.tanh %463 : vector<2x32xf32>
      %465 = arith.mulf %460, %464 : vector<2x32xf32>
      %466 = tpu.concatenate %45, %73, %101, %129, %157, %185, %213, %241, %269, %297, %325, %353, %381, %409, %437, %465 in 0 : vector<2x32xf32>, vector<2x32xf32>, vector<2x32xf32>, vector<2x32xf32>, vector<2x32xf32>, vector<2x32xf32>, vector<2x32xf32>, vector<2x32xf32>, vector<2x32xf32>, vector<2x32xf32>, vector<2x32xf32>, vector<2x32xf32>, vector<2x32xf32>, vector<2x32xf32>, vector<2x32xf32>, vector<2x32xf32> -> vector<32x32xf32>
      %c0_78 = arith.constant 0 : index
      %c0_79 = arith.constant 0 : index
      %c0_80 = arith.constant 0 : index
      %467 = vector.load %arg5[%c0_78, %c0_79, %c0_80] : memref<1x32x32xf32, #tpu.memory_space<vmem>>, vector<1x32x32xf32>
      %468 = vector.shape_cast %467 : vector<1x32x32xf32> to vector<32x32xf32>
      %469 = vector.shape_cast %466 : vector<32x32xf32> to vector<1x32x32xf32>
      tpu.vector_store %arg5[%c0_78, %c0_79, %c0_80], %469 {strides = array<i32>} : memref<1x32x32xf32, #tpu.memory_space<vmem>>, vector<1x32x32xf32>,
    } else {
    }
    %c1_i32 = arith.constant 1 : i32
    %13 = arith.cmpi eq, %arg0, %c1_i32 : i32
    %14 = arith.extui %13 : i1 to i32
    %c0_i32_11 = arith.constant 0 : i32
    %15 = arith.cmpi ne, %14, %c0_i32_11 : i32
    scf.if %15 {
      %cst_12 = arith.constant 0.000000e+00 : f32
      %16 = vector.broadcast %cst_12 : f32 to vector<2x32xf32>
      %cst_13 = arith.constant 0.000000e+00 : f32
      %17 = vector.broadcast %cst_13 : f32 to vector<2x32xf32>
      %18 = vector.extract_strided_slice %7 {offsets = [30, 0], sizes = [2, 128], strides = [1, 1]} : vector<32x128xf32> to vector<2x128xf32>
      %cst_14 = arith.constant dense<0.000000e+00> : vector<2x128xf32>
      %19 = tpu.matmul %16, %9, %cst_14 {dimension_numbers = #tpu.dot_dimension_numbers<[1], [0], [0], [1], [0, 0, 1, 1], [], []>} : vector<2x32xf32>, vector<32x128xf32>, vector<2x128xf32> -> vector<2x128xf32>
      %20 = arith.addf %18, %19 : vector<2x128xf32>
      %21 = vector.extract_strided_slice %20 {offsets = [0, 0], sizes = [2, 32], strides = [1, 1]} : vector<2x128xf32> to vector<2x32xf32>
      %22 = arith.negf %21 : vector<2x32xf32>
      %23 = math.exp %22 : vector<2x32xf32>
      %cst_15 = arith.constant 1.000000e+00 : f32
      %24 = vector.broadcast %cst_15 : f32 to vector<2x32xf32>
      %25 = arith.addf %24, %23 : vector<2x32xf32>
      %26 = arith.divf %24, %25 : vector<2x32xf32>
      %27 = vector.extract_strided_slice %20 {offsets = [0, 32], sizes = [2, 32], strides = [1, 1]} : vector<2x128xf32> to vector<2x32xf32>
      %28 = arith.negf %27 : vector<2x32xf32>
      %29 = math.exp %28 : vector<2x32xf32>
      %cst_16 = arith.constant 1.000000e+00 : f32
      %30 = vector.broadcast %cst_16 : f32 to vector<2x32xf32>
      %31 = arith.addf %30, %29 : vector<2x32xf32>
      %32 = arith.divf %30, %31 : vector<2x32xf32>
      %33 = vector.extract_strided_slice %20 {offsets = [0, 64], sizes = [2, 32], strides = [1, 1]} : vector<2x128xf32> to vector<2x32xf32>
      %34 = math.tanh %33 : vector<2x32xf32>
      %35 = vector.extract_strided_slice %20 {offsets = [0, 96], sizes = [2, 32], strides = [1, 1]} : vector<2x128xf32> to vector<2x32xf32>
      %36 = arith.negf %35 : vector<2x32xf32>
      %37 = math.exp %36 : vector<2x32xf32>
      %cst_17 = arith.constant 1.000000e+00 : f32
      %38 = vector.broadcast %cst_17 : f32 to vector<2x32xf32>
      %39 = arith.addf %38, %37 : vector<2x32xf32>
      %40 = arith.divf %38, %39 : vector<2x32xf32>
      %41 = arith.mulf %32, %17 : vector<2x32xf32>
      %42 = arith.mulf %26, %34 : vector<2x32xf32>
      %43 = arith.addf %41, %42 : vector<2x32xf32>
      %44 = math.tanh %43 : vector<2x32xf32>
      %45 = arith.mulf %40, %44 : vector<2x32xf32>
      %46 = vector.extract_strided_slice %7 {offsets = [28, 0], sizes = [2, 128], strides = [1, 1]} : vector<32x128xf32> to vector<2x128xf32>
      %cst_18 = arith.constant dense<0.000000e+00> : vector<2x128xf32>
      %47 = tpu.matmul %45, %9, %cst_18 {dimension_numbers = #tpu.dot_dimension_numbers<[1], [0], [0], [1], [0, 0, 1, 1], [], []>} : vector<2x32xf32>, vector<32x128xf32>, vector<2x128xf32> -> vector<2x128xf32>
      %48 = arith.addf %46, %47 : vector<2x128xf32>
      %49 = vector.extract_strided_slice %48 {offsets = [0, 0], sizes = [2, 32], strides = [1, 1]} : vector<2x128xf32> to vector<2x32xf32>
      %50 = arith.negf %49 : vector<2x32xf32>
      %51 = math.exp %50 : vector<2x32xf32>
      %cst_19 = arith.constant 1.000000e+00 : f32
      %52 = vector.broadcast %cst_19 : f32 to vector<2x32xf32>
      %53 = arith.addf %52, %51 : vector<2x32xf32>
      %54 = arith.divf %52, %53 : vector<2x32xf32>
      %55 = vector.extract_strided_slice %48 {offsets = [0, 32], sizes = [2, 32], strides = [1, 1]} : vector<2x128xf32> to vector<2x32xf32>
      %56 = arith.negf %55 : vector<2x32xf32>
      %57 = math.exp %56 : vector<2x32xf32>
      %cst_20 = arith.constant 1.000000e+00 : f32
      %58 = vector.broadcast %cst_20 : f32 to vector<2x32xf32>
      %59 = arith.addf %58, %57 : vector<2x32xf32>
      %60 = arith.divf %58, %59 : vector<2x32xf32>
      %61 = vector.extract_strided_slice %48 {offsets = [0, 64], sizes = [2, 32], strides = [1, 1]} : vector<2x128xf32> to vector<2x32xf32>
      %62 = math.tanh %61 : vector<2x32xf32>
      %63 = vector.extract_strided_slice %48 {offsets = [0, 96], sizes = [2, 32], strides = [1, 1]} : vector<2x128xf32> to vector<2x32xf32>
      %64 = arith.negf %63 : vector<2x32xf32>
      %65 = math.exp %64 : vector<2x32xf32>
      %cst_21 = arith.constant 1.000000e+00 : f32
      %66 = vector.broadcast %cst_21 : f32 to vector<2x32xf32>
      %67 = arith.addf %66, %65 : vector<2x32xf32>
      %68 = arith.divf %66, %67 : vector<2x32xf32>
      %69 = arith.mulf %60, %43 : vector<2x32xf32>
      %70 = arith.mulf %54, %62 : vector<2x32xf32>
      %71 = arith.addf %69, %70 : vector<2x32xf32>
      %72 = math.tanh %71 : vector<2x32xf32>
      %73 = arith.mulf %68, %72 : vector<2x32xf32>
      %74 = vector.extract_strided_slice %7 {offsets = [26, 0], sizes = [2, 128], strides = [1, 1]} : vector<32x128xf32> to vector<2x128xf32>
      %cst_22 = arith.constant dense<0.000000e+00> : vector<2x128xf32>
      %75 = tpu.matmul %73, %9, %cst_22 {dimension_numbers = #tpu.dot_dimension_numbers<[1], [0], [0], [1], [0, 0, 1, 1], [], []>} : vector<2x32xf32>, vector<32x128xf32>, vector<2x128xf32> -> vector<2x128xf32>
      %76 = arith.addf %74, %75 : vector<2x128xf32>
      %77 = vector.extract_strided_slice %76 {offsets = [0, 0], sizes = [2, 32], strides = [1, 1]} : vector<2x128xf32> to vector<2x32xf32>
      %78 = arith.negf %77 : vector<2x32xf32>
      %79 = math.exp %78 : vector<2x32xf32>
      %cst_23 = arith.constant 1.000000e+00 : f32
      %80 = vector.broadcast %cst_23 : f32 to vector<2x32xf32>
      %81 = arith.addf %80, %79 : vector<2x32xf32>
      %82 = arith.divf %80, %81 : vector<2x32xf32>
      %83 = vector.extract_strided_slice %76 {offsets = [0, 32], sizes = [2, 32], strides = [1, 1]} : vector<2x128xf32> to vector<2x32xf32>
      %84 = arith.negf %83 : vector<2x32xf32>
      %85 = math.exp %84 : vector<2x32xf32>
      %cst_24 = arith.constant 1.000000e+00 : f32
      %86 = vector.broadcast %cst_24 : f32 to vector<2x32xf32>
      %87 = arith.addf %86, %85 : vector<2x32xf32>
      %88 = arith.divf %86, %87 : vector<2x32xf32>
      %89 = vector.extract_strided_slice %76 {offsets = [0, 64], sizes = [2, 32], strides = [1, 1]} : vector<2x128xf32> to vector<2x32xf32>
      %90 = math.tanh %89 : vector<2x32xf32>
      %91 = vector.extract_strided_slice %76 {offsets = [0, 96], sizes = [2, 32], strides = [1, 1]} : vector<2x128xf32> to vector<2x32xf32>
      %92 = arith.negf %91 : vector<2x32xf32>
      %93 = math.exp %92 : vector<2x32xf32>
      %cst_25 = arith.constant 1.000000e+00 : f32
      %94 = vector.broadcast %cst_25 : f32 to vector<2x32xf32>
      %95 = arith.addf %94, %93 : vector<2x32xf32>
      %96 = arith.divf %94, %95 : vector<2x32xf32>
      %97 = arith.mulf %88, %71 : vector<2x32xf32>
      %98 = arith.mulf %82, %90 : vector<2x32xf32>
      %99 = arith.addf %97, %98 : vector<2x32xf32>
      %100 = math.tanh %99 : vector<2x32xf32>
      %101 = arith.mulf %96, %100 : vector<2x32xf32>
      %102 = vector.extract_strided_slice %7 {offsets = [24, 0], sizes = [2, 128], strides = [1, 1]} : vector<32x128xf32> to vector<2x128xf32>
      %cst_26 = arith.constant dense<0.000000e+00> : vector<2x128xf32>
      %103 = tpu.matmul %101, %9, %cst_26 {dimension_numbers = #tpu.dot_dimension_numbers<[1], [0], [0], [1], [0, 0, 1, 1], [], []>} : vector<2x32xf32>, vector<32x128xf32>, vector<2x128xf32> -> vector<2x128xf32>
      %104 = arith.addf %102, %103 : vector<2x128xf32>
      %105 = vector.extract_strided_slice %104 {offsets = [0, 0], sizes = [2, 32], strides = [1, 1]} : vector<2x128xf32> to vector<2x32xf32>
      %106 = arith.negf %105 : vector<2x32xf32>
      %107 = math.exp %106 : vector<2x32xf32>
      %cst_27 = arith.constant 1.000000e+00 : f32
      %108 = vector.broadcast %cst_27 : f32 to vector<2x32xf32>
      %109 = arith.addf %108, %107 : vector<2x32xf32>
      %110 = arith.divf %108, %109 : vector<2x32xf32>
      %111 = vector.extract_strided_slice %104 {offsets = [0, 32], sizes = [2, 32], strides = [1, 1]} : vector<2x128xf32> to vector<2x32xf32>
      %112 = arith.negf %111 : vector<2x32xf32>
      %113 = math.exp %112 : vector<2x32xf32>
      %cst_28 = arith.constant 1.000000e+00 : f32
      %114 = vector.broadcast %cst_28 : f32 to vector<2x32xf32>
      %115 = arith.addf %114, %113 : vector<2x32xf32>
      %116 = arith.divf %114, %115 : vector<2x32xf32>
      %117 = vector.extract_strided_slice %104 {offsets = [0, 64], sizes = [2, 32], strides = [1, 1]} : vector<2x128xf32> to vector<2x32xf32>
      %118 = math.tanh %117 : vector<2x32xf32>
      %119 = vector.extract_strided_slice %104 {offsets = [0, 96], sizes = [2, 32], strides = [1, 1]} : vector<2x128xf32> to vector<2x32xf32>
      %120 = arith.negf %119 : vector<2x32xf32>
      %121 = math.exp %120 : vector<2x32xf32>
      %cst_29 = arith.constant 1.000000e+00 : f32
      %122 = vector.broadcast %cst_29 : f32 to vector<2x32xf32>
      %123 = arith.addf %122, %121 : vector<2x32xf32>
      %124 = arith.divf %122, %123 : vector<2x32xf32>
      %125 = arith.mulf %116, %99 : vector<2x32xf32>
      %126 = arith.mulf %110, %118 : vector<2x32xf32>
      %127 = arith.addf %125, %126 : vector<2x32xf32>
      %128 = math.tanh %127 : vector<2x32xf32>
      %129 = arith.mulf %124, %128 : vector<2x32xf32>
      %130 = vector.extract_strided_slice %7 {offsets = [22, 0], sizes = [2, 128], strides = [1, 1]} : vector<32x128xf32> to vector<2x128xf32>
      %cst_30 = arith.constant dense<0.000000e+00> : vector<2x128xf32>
      %131 = tpu.matmul %129, %9, %cst_30 {dimension_numbers = #tpu.dot_dimension_numbers<[1], [0], [0], [1], [0, 0, 1, 1], [], []>} : vector<2x32xf32>, vector<32x128xf32>, vector<2x128xf32> -> vector<2x128xf32>
      %132 = arith.addf %130, %131 : vector<2x128xf32>
      %133 = vector.extract_strided_slice %132 {offsets = [0, 0], sizes = [2, 32], strides = [1, 1]} : vector<2x128xf32> to vector<2x32xf32>
      %134 = arith.negf %133 : vector<2x32xf32>
      %135 = math.exp %134 : vector<2x32xf32>
      %cst_31 = arith.constant 1.000000e+00 : f32
      %136 = vector.broadcast %cst_31 : f32 to vector<2x32xf32>
      %137 = arith.addf %136, %135 : vector<2x32xf32>
      %138 = arith.divf %136, %137 : vector<2x32xf32>
      %139 = vector.extract_strided_slice %132 {offsets = [0, 32], sizes = [2, 32], strides = [1, 1]} : vector<2x128xf32> to vector<2x32xf32>
      %140 = arith.negf %139 : vector<2x32xf32>
      %141 = math.exp %140 : vector<2x32xf32>
      %cst_32 = arith.constant 1.000000e+00 : f32
      %142 = vector.broadcast %cst_32 : f32 to vector<2x32xf32>
      %143 = arith.addf %142, %141 : vector<2x32xf32>
      %144 = arith.divf %142, %143 : vector<2x32xf32>
      %145 = vector.extract_strided_slice %132 {offsets = [0, 64], sizes = [2, 32], strides = [1, 1]} : vector<2x128xf32> to vector<2x32xf32>
      %146 = math.tanh %145 : vector<2x32xf32>
      %147 = vector.extract_strided_slice %132 {offsets = [0, 96], sizes = [2, 32], strides = [1, 1]} : vector<2x128xf32> to vector<2x32xf32>
      %148 = arith.negf %147 : vector<2x32xf32>
      %149 = math.exp %148 : vector<2x32xf32>
      %cst_33 = arith.constant 1.000000e+00 : f32
      %150 = vector.broadcast %cst_33 : f32 to vector<2x32xf32>
      %151 = arith.addf %150, %149 : vector<2x32xf32>
      %152 = arith.divf %150, %151 : vector<2x32xf32>
      %153 = arith.mulf %144, %127 : vector<2x32xf32>
      %154 = arith.mulf %138, %146 : vector<2x32xf32>
      %155 = arith.addf %153, %154 : vector<2x32xf32>
      %156 = math.tanh %155 : vector<2x32xf32>
      %157 = arith.mulf %152, %156 : vector<2x32xf32>
      %158 = vector.extract_strided_slice %7 {offsets = [20, 0], sizes = [2, 128], strides = [1, 1]} : vector<32x128xf32> to vector<2x128xf32>
      %cst_34 = arith.constant dense<0.000000e+00> : vector<2x128xf32>
      %159 = tpu.matmul %157, %9, %cst_34 {dimension_numbers = #tpu.dot_dimension_numbers<[1], [0], [0], [1], [0, 0, 1, 1], [], []>} : vector<2x32xf32>, vector<32x128xf32>, vector<2x128xf32> -> vector<2x128xf32>
      %160 = arith.addf %158, %159 : vector<2x128xf32>
      %161 = vector.extract_strided_slice %160 {offsets = [0, 0], sizes = [2, 32], strides = [1, 1]} : vector<2x128xf32> to vector<2x32xf32>
      %162 = arith.negf %161 : vector<2x32xf32>
      %163 = math.exp %162 : vector<2x32xf32>
      %cst_35 = arith.constant 1.000000e+00 : f32
      %164 = vector.broadcast %cst_35 : f32 to vector<2x32xf32>
      %165 = arith.addf %164, %163 : vector<2x32xf32>
      %166 = arith.divf %164, %165 : vector<2x32xf32>
      %167 = vector.extract_strided_slice %160 {offsets = [0, 32], sizes = [2, 32], strides = [1, 1]} : vector<2x128xf32> to vector<2x32xf32>
      %168 = arith.negf %167 : vector<2x32xf32>
      %169 = math.exp %168 : vector<2x32xf32>
      %cst_36 = arith.constant 1.000000e+00 : f32
      %170 = vector.broadcast %cst_36 : f32 to vector<2x32xf32>
      %171 = arith.addf %170, %169 : vector<2x32xf32>
      %172 = arith.divf %170, %171 : vector<2x32xf32>
      %173 = vector.extract_strided_slice %160 {offsets = [0, 64], sizes = [2, 32], strides = [1, 1]} : vector<2x128xf32> to vector<2x32xf32>
      %174 = math.tanh %173 : vector<2x32xf32>
      %175 = vector.extract_strided_slice %160 {offsets = [0, 96], sizes = [2, 32], strides = [1, 1]} : vector<2x128xf32> to vector<2x32xf32>
      %176 = arith.negf %175 : vector<2x32xf32>
      %177 = math.exp %176 : vector<2x32xf32>
      %cst_37 = arith.constant 1.000000e+00 : f32
      %178 = vector.broadcast %cst_37 : f32 to vector<2x32xf32>
      %179 = arith.addf %178, %177 : vector<2x32xf32>
      %180 = arith.divf %178, %179 : vector<2x32xf32>
      %181 = arith.mulf %172, %155 : vector<2x32xf32>
      %182 = arith.mulf %166, %174 : vector<2x32xf32>
      %183 = arith.addf %181, %182 : vector<2x32xf32>
      %184 = math.tanh %183 : vector<2x32xf32>
      %185 = arith.mulf %180, %184 : vector<2x32xf32>
      %186 = vector.extract_strided_slice %7 {offsets = [18, 0], sizes = [2, 128], strides = [1, 1]} : vector<32x128xf32> to vector<2x128xf32>
      %cst_38 = arith.constant dense<0.000000e+00> : vector<2x128xf32>
      %187 = tpu.matmul %185, %9, %cst_38 {dimension_numbers = #tpu.dot_dimension_numbers<[1], [0], [0], [1], [0, 0, 1, 1], [], []>} : vector<2x32xf32>, vector<32x128xf32>, vector<2x128xf32> -> vector<2x128xf32>
      %188 = arith.addf %186, %187 : vector<2x128xf32>
      %189 = vector.extract_strided_slice %188 {offsets = [0, 0], sizes = [2, 32], strides = [1, 1]} : vector<2x128xf32> to vector<2x32xf32>
      %190 = arith.negf %189 : vector<2x32xf32>
      %191 = math.exp %190 : vector<2x32xf32>
      %cst_39 = arith.constant 1.000000e+00 : f32
      %192 = vector.broadcast %cst_39 : f32 to vector<2x32xf32>
      %193 = arith.addf %192, %191 : vector<2x32xf32>
      %194 = arith.divf %192, %193 : vector<2x32xf32>
      %195 = vector.extract_strided_slice %188 {offsets = [0, 32], sizes = [2, 32], strides = [1, 1]} : vector<2x128xf32> to vector<2x32xf32>
      %196 = arith.negf %195 : vector<2x32xf32>
      %197 = math.exp %196 : vector<2x32xf32>
      %cst_40 = arith.constant 1.000000e+00 : f32
      %198 = vector.broadcast %cst_40 : f32 to vector<2x32xf32>
      %199 = arith.addf %198, %197 : vector<2x32xf32>
      %200 = arith.divf %198, %199 : vector<2x32xf32>
      %201 = vector.extract_strided_slice %188 {offsets = [0, 64], sizes = [2, 32], strides = [1, 1]} : vector<2x128xf32> to vector<2x32xf32>
      %202 = math.tanh %201 : vector<2x32xf32>
      %203 = vector.extract_strided_slice %188 {offsets = [0, 96], sizes = [2, 32], strides = [1, 1]} : vector<2x128xf32> to vector<2x32xf32>
      %204 = arith.negf %203 : vector<2x32xf32>
      %205 = math.exp %204 : vector<2x32xf32>
      %cst_41 = arith.constant 1.000000e+00 : f32
      %206 = vector.broadcast %cst_41 : f32 to vector<2x32xf32>
      %207 = arith.addf %206, %205 : vector<2x32xf32>
      %208 = arith.divf %206, %207 : vector<2x32xf32>
      %209 = arith.mulf %200, %183 : vector<2x32xf32>
      %210 = arith.mulf %194, %202 : vector<2x32xf32>
      %211 = arith.addf %209, %210 : vector<2x32xf32>
      %212 = math.tanh %211 : vector<2x32xf32>
      %213 = arith.mulf %208, %212 : vector<2x32xf32>
      %214 = vector.extract_strided_slice %7 {offsets = [16, 0], sizes = [2, 128], strides = [1, 1]} : vector<32x128xf32> to vector<2x128xf32>
      %cst_42 = arith.constant dense<0.000000e+00> : vector<2x128xf32>
      %215 = tpu.matmul %213, %9, %cst_42 {dimension_numbers = #tpu.dot_dimension_numbers<[1], [0], [0], [1], [0, 0, 1, 1], [], []>} : vector<2x32xf32>, vector<32x128xf32>, vector<2x128xf32> -> vector<2x128xf32>
      %216 = arith.addf %214, %215 : vector<2x128xf32>
      %217 = vector.extract_strided_slice %216 {offsets = [0, 0], sizes = [2, 32], strides = [1, 1]} : vector<2x128xf32> to vector<2x32xf32>
      %218 = arith.negf %217 : vector<2x32xf32>
      %219 = math.exp %218 : vector<2x32xf32>
      %cst_43 = arith.constant 1.000000e+00 : f32
      %220 = vector.broadcast %cst_43 : f32 to vector<2x32xf32>
      %221 = arith.addf %220, %219 : vector<2x32xf32>
      %222 = arith.divf %220, %221 : vector<2x32xf32>
      %223 = vector.extract_strided_slice %216 {offsets = [0, 32], sizes = [2, 32], strides = [1, 1]} : vector<2x128xf32> to vector<2x32xf32>
      %224 = arith.negf %223 : vector<2x32xf32>
      %225 = math.exp %224 : vector<2x32xf32>
      %cst_44 = arith.constant 1.000000e+00 : f32
      %226 = vector.broadcast %cst_44 : f32 to vector<2x32xf32>
      %227 = arith.addf %226, %225 : vector<2x32xf32>
      %228 = arith.divf %226, %227 : vector<2x32xf32>
      %229 = vector.extract_strided_slice %216 {offsets = [0, 64], sizes = [2, 32], strides = [1, 1]} : vector<2x128xf32> to vector<2x32xf32>
      %230 = math.tanh %229 : vector<2x32xf32>
      %231 = vector.extract_strided_slice %216 {offsets = [0, 96], sizes = [2, 32], strides = [1, 1]} : vector<2x128xf32> to vector<2x32xf32>
      %232 = arith.negf %231 : vector<2x32xf32>
      %233 = math.exp %232 : vector<2x32xf32>
      %cst_45 = arith.constant 1.000000e+00 : f32
      %234 = vector.broadcast %cst_45 : f32 to vector<2x32xf32>
      %235 = arith.addf %234, %233 : vector<2x32xf32>
      %236 = arith.divf %234, %235 : vector<2x32xf32>
      %237 = arith.mulf %228, %211 : vector<2x32xf32>
      %238 = arith.mulf %222, %230 : vector<2x32xf32>
      %239 = arith.addf %237, %238 : vector<2x32xf32>
      %240 = math.tanh %239 : vector<2x32xf32>
      %241 = arith.mulf %236, %240 : vector<2x32xf32>
      %242 = vector.extract_strided_slice %7 {offsets = [14, 0], sizes = [2, 128], strides = [1, 1]} : vector<32x128xf32> to vector<2x128xf32>
      %cst_46 = arith.constant dense<0.000000e+00> : vector<2x128xf32>
      %243 = tpu.matmul %241, %9, %cst_46 {dimension_numbers = #tpu.dot_dimension_numbers<[1], [0], [0], [1], [0, 0, 1, 1], [], []>} : vector<2x32xf32>, vector<32x128xf32>, vector<2x128xf32> -> vector<2x128xf32>
      %244 = arith.addf %242, %243 : vector<2x128xf32>
      %245 = vector.extract_strided_slice %244 {offsets = [0, 0], sizes = [2, 32], strides = [1, 1]} : vector<2x128xf32> to vector<2x32xf32>
      %246 = arith.negf %245 : vector<2x32xf32>
      %247 = math.exp %246 : vector<2x32xf32>
      %cst_47 = arith.constant 1.000000e+00 : f32
      %248 = vector.broadcast %cst_47 : f32 to vector<2x32xf32>
      %249 = arith.addf %248, %247 : vector<2x32xf32>
      %250 = arith.divf %248, %249 : vector<2x32xf32>
      %251 = vector.extract_strided_slice %244 {offsets = [0, 32], sizes = [2, 32], strides = [1, 1]} : vector<2x128xf32> to vector<2x32xf32>
      %252 = arith.negf %251 : vector<2x32xf32>
      %253 = math.exp %252 : vector<2x32xf32>
      %cst_48 = arith.constant 1.000000e+00 : f32
      %254 = vector.broadcast %cst_48 : f32 to vector<2x32xf32>
      %255 = arith.addf %254, %253 : vector<2x32xf32>
      %256 = arith.divf %254, %255 : vector<2x32xf32>
      %257 = vector.extract_strided_slice %244 {offsets = [0, 64], sizes = [2, 32], strides = [1, 1]} : vector<2x128xf32> to vector<2x32xf32>
      %258 = math.tanh %257 : vector<2x32xf32>
      %259 = vector.extract_strided_slice %244 {offsets = [0, 96], sizes = [2, 32], strides = [1, 1]} : vector<2x128xf32> to vector<2x32xf32>
      %260 = arith.negf %259 : vector<2x32xf32>
      %261 = math.exp %260 : vector<2x32xf32>
      %cst_49 = arith.constant 1.000000e+00 : f32
      %262 = vector.broadcast %cst_49 : f32 to vector<2x32xf32>
      %263 = arith.addf %262, %261 : vector<2x32xf32>
      %264 = arith.divf %262, %263 : vector<2x32xf32>
      %265 = arith.mulf %256, %239 : vector<2x32xf32>
      %266 = arith.mulf %250, %258 : vector<2x32xf32>
      %267 = arith.addf %265, %266 : vector<2x32xf32>
      %268 = math.tanh %267 : vector<2x32xf32>
      %269 = arith.mulf %264, %268 : vector<2x32xf32>
      %270 = vector.extract_strided_slice %7 {offsets = [12, 0], sizes = [2, 128], strides = [1, 1]} : vector<32x128xf32> to vector<2x128xf32>
      %cst_50 = arith.constant dense<0.000000e+00> : vector<2x128xf32>
      %271 = tpu.matmul %269, %9, %cst_50 {dimension_numbers = #tpu.dot_dimension_numbers<[1], [0], [0], [1], [0, 0, 1, 1], [], []>} : vector<2x32xf32>, vector<32x128xf32>, vector<2x128xf32> -> vector<2x128xf32>
      %272 = arith.addf %270, %271 : vector<2x128xf32>
      %273 = vector.extract_strided_slice %272 {offsets = [0, 0], sizes = [2, 32], strides = [1, 1]} : vector<2x128xf32> to vector<2x32xf32>
      %274 = arith.negf %273 : vector<2x32xf32>
      %275 = math.exp %274 : vector<2x32xf32>
      %cst_51 = arith.constant 1.000000e+00 : f32
      %276 = vector.broadcast %cst_51 : f32 to vector<2x32xf32>
      %277 = arith.addf %276, %275 : vector<2x32xf32>
      %278 = arith.divf %276, %277 : vector<2x32xf32>
      %279 = vector.extract_strided_slice %272 {offsets = [0, 32], sizes = [2, 32], strides = [1, 1]} : vector<2x128xf32> to vector<2x32xf32>
      %280 = arith.negf %279 : vector<2x32xf32>
      %281 = math.exp %280 : vector<2x32xf32>
      %cst_52 = arith.constant 1.000000e+00 : f32
      %282 = vector.broadcast %cst_52 : f32 to vector<2x32xf32>
      %283 = arith.addf %282, %281 : vector<2x32xf32>
      %284 = arith.divf %282, %283 : vector<2x32xf32>
      %285 = vector.extract_strided_slice %272 {offsets = [0, 64], sizes = [2, 32], strides = [1, 1]} : vector<2x128xf32> to vector<2x32xf32>
      %286 = math.tanh %285 : vector<2x32xf32>
      %287 = vector.extract_strided_slice %272 {offsets = [0, 96], sizes = [2, 32], strides = [1, 1]} : vector<2x128xf32> to vector<2x32xf32>
      %288 = arith.negf %287 : vector<2x32xf32>
      %289 = math.exp %288 : vector<2x32xf32>
      %cst_53 = arith.constant 1.000000e+00 : f32
      %290 = vector.broadcast %cst_53 : f32 to vector<2x32xf32>
      %291 = arith.addf %290, %289 : vector<2x32xf32>
      %292 = arith.divf %290, %291 : vector<2x32xf32>
      %293 = arith.mulf %284, %267 : vector<2x32xf32>
      %294 = arith.mulf %278, %286 : vector<2x32xf32>
      %295 = arith.addf %293, %294 : vector<2x32xf32>
      %296 = math.tanh %295 : vector<2x32xf32>
      %297 = arith.mulf %292, %296 : vector<2x32xf32>
      %298 = vector.extract_strided_slice %7 {offsets = [10, 0], sizes = [2, 128], strides = [1, 1]} : vector<32x128xf32> to vector<2x128xf32>
      %cst_54 = arith.constant dense<0.000000e+00> : vector<2x128xf32>
      %299 = tpu.matmul %297, %9, %cst_54 {dimension_numbers = #tpu.dot_dimension_numbers<[1], [0], [0], [1], [0, 0, 1, 1], [], []>} : vector<2x32xf32>, vector<32x128xf32>, vector<2x128xf32> -> vector<2x128xf32>
      %300 = arith.addf %298, %299 : vector<2x128xf32>
      %301 = vector.extract_strided_slice %300 {offsets = [0, 0], sizes = [2, 32], strides = [1, 1]} : vector<2x128xf32> to vector<2x32xf32>
      %302 = arith.negf %301 : vector<2x32xf32>
      %303 = math.exp %302 : vector<2x32xf32>
      %cst_55 = arith.constant 1.000000e+00 : f32
      %304 = vector.broadcast %cst_55 : f32 to vector<2x32xf32>
      %305 = arith.addf %304, %303 : vector<2x32xf32>
      %306 = arith.divf %304, %305 : vector<2x32xf32>
      %307 = vector.extract_strided_slice %300 {offsets = [0, 32], sizes = [2, 32], strides = [1, 1]} : vector<2x128xf32> to vector<2x32xf32>
      %308 = arith.negf %307 : vector<2x32xf32>
      %309 = math.exp %308 : vector<2x32xf32>
      %cst_56 = arith.constant 1.000000e+00 : f32
      %310 = vector.broadcast %cst_56 : f32 to vector<2x32xf32>
      %311 = arith.addf %310, %309 : vector<2x32xf32>
      %312 = arith.divf %310, %311 : vector<2x32xf32>
      %313 = vector.extract_strided_slice %300 {offsets = [0, 64], sizes = [2, 32], strides = [1, 1]} : vector<2x128xf32> to vector<2x32xf32>
      %314 = math.tanh %313 : vector<2x32xf32>
      %315 = vector.extract_strided_slice %300 {offsets = [0, 96], sizes = [2, 32], strides = [1, 1]} : vector<2x128xf32> to vector<2x32xf32>
      %316 = arith.negf %315 : vector<2x32xf32>
      %317 = math.exp %316 : vector<2x32xf32>
      %cst_57 = arith.constant 1.000000e+00 : f32
      %318 = vector.broadcast %cst_57 : f32 to vector<2x32xf32>
      %319 = arith.addf %318, %317 : vector<2x32xf32>
      %320 = arith.divf %318, %319 : vector<2x32xf32>
      %321 = arith.mulf %312, %295 : vector<2x32xf32>
      %322 = arith.mulf %306, %314 : vector<2x32xf32>
      %323 = arith.addf %321, %322 : vector<2x32xf32>
      %324 = math.tanh %323 : vector<2x32xf32>
      %325 = arith.mulf %320, %324 : vector<2x32xf32>
      %326 = vector.extract_strided_slice %7 {offsets = [8, 0], sizes = [2, 128], strides = [1, 1]} : vector<32x128xf32> to vector<2x128xf32>
      %cst_58 = arith.constant dense<0.000000e+00> : vector<2x128xf32>
      %327 = tpu.matmul %325, %9, %cst_58 {dimension_numbers = #tpu.dot_dimension_numbers<[1], [0], [0], [1], [0, 0, 1, 1], [], []>} : vector<2x32xf32>, vector<32x128xf32>, vector<2x128xf32> -> vector<2x128xf32>
      %328 = arith.addf %326, %327 : vector<2x128xf32>
      %329 = vector.extract_strided_slice %328 {offsets = [0, 0], sizes = [2, 32], strides = [1, 1]} : vector<2x128xf32> to vector<2x32xf32>
      %330 = arith.negf %329 : vector<2x32xf32>
      %331 = math.exp %330 : vector<2x32xf32>
      %cst_59 = arith.constant 1.000000e+00 : f32
      %332 = vector.broadcast %cst_59 : f32 to vector<2x32xf32>
      %333 = arith.addf %332, %331 : vector<2x32xf32>
      %334 = arith.divf %332, %333 : vector<2x32xf32>
      %335 = vector.extract_strided_slice %328 {offsets = [0, 32], sizes = [2, 32], strides = [1, 1]} : vector<2x128xf32> to vector<2x32xf32>
      %336 = arith.negf %335 : vector<2x32xf32>
      %337 = math.exp %336 : vector<2x32xf32>
      %cst_60 = arith.constant 1.000000e+00 : f32
      %338 = vector.broadcast %cst_60 : f32 to vector<2x32xf32>
      %339 = arith.addf %338, %337 : vector<2x32xf32>
      %340 = arith.divf %338, %339 : vector<2x32xf32>
      %341 = vector.extract_strided_slice %328 {offsets = [0, 64], sizes = [2, 32], strides = [1, 1]} : vector<2x128xf32> to vector<2x32xf32>
      %342 = math.tanh %341 : vector<2x32xf32>
      %343 = vector.extract_strided_slice %328 {offsets = [0, 96], sizes = [2, 32], strides = [1, 1]} : vector<2x128xf32> to vector<2x32xf32>
      %344 = arith.negf %343 : vector<2x32xf32>
      %345 = math.exp %344 : vector<2x32xf32>
      %cst_61 = arith.constant 1.000000e+00 : f32
      %346 = vector.broadcast %cst_61 : f32 to vector<2x32xf32>
      %347 = arith.addf %346, %345 : vector<2x32xf32>
      %348 = arith.divf %346, %347 : vector<2x32xf32>
      %349 = arith.mulf %340, %323 : vector<2x32xf32>
      %350 = arith.mulf %334, %342 : vector<2x32xf32>
      %351 = arith.addf %349, %350 : vector<2x32xf32>
      %352 = math.tanh %351 : vector<2x32xf32>
      %353 = arith.mulf %348, %352 : vector<2x32xf32>
      %354 = vector.extract_strided_slice %7 {offsets = [6, 0], sizes = [2, 128], strides = [1, 1]} : vector<32x128xf32> to vector<2x128xf32>
      %cst_62 = arith.constant dense<0.000000e+00> : vector<2x128xf32>
      %355 = tpu.matmul %353, %9, %cst_62 {dimension_numbers = #tpu.dot_dimension_numbers<[1], [0], [0], [1], [0, 0, 1, 1], [], []>} : vector<2x32xf32>, vector<32x128xf32>, vector<2x128xf32> -> vector<2x128xf32>
      %356 = arith.addf %354, %355 : vector<2x128xf32>
      %357 = vector.extract_strided_slice %356 {offsets = [0, 0], sizes = [2, 32], strides = [1, 1]} : vector<2x128xf32> to vector<2x32xf32>
      %358 = arith.negf %357 : vector<2x32xf32>
      %359 = math.exp %358 : vector<2x32xf32>
      %cst_63 = arith.constant 1.000000e+00 : f32
      %360 = vector.broadcast %cst_63 : f32 to vector<2x32xf32>
      %361 = arith.addf %360, %359 : vector<2x32xf32>
      %362 = arith.divf %360, %361 : vector<2x32xf32>
      %363 = vector.extract_strided_slice %356 {offsets = [0, 32], sizes = [2, 32], strides = [1, 1]} : vector<2x128xf32> to vector<2x32xf32>
      %364 = arith.negf %363 : vector<2x32xf32>
      %365 = math.exp %364 : vector<2x32xf32>
      %cst_64 = arith.constant 1.000000e+00 : f32
      %366 = vector.broadcast %cst_64 : f32 to vector<2x32xf32>
      %367 = arith.addf %366, %365 : vector<2x32xf32>
      %368 = arith.divf %366, %367 : vector<2x32xf32>
      %369 = vector.extract_strided_slice %356 {offsets = [0, 64], sizes = [2, 32], strides = [1, 1]} : vector<2x128xf32> to vector<2x32xf32>
      %370 = math.tanh %369 : vector<2x32xf32>
      %371 = vector.extract_strided_slice %356 {offsets = [0, 96], sizes = [2, 32], strides = [1, 1]} : vector<2x128xf32> to vector<2x32xf32>
      %372 = arith.negf %371 : vector<2x32xf32>
      %373 = math.exp %372 : vector<2x32xf32>
      %cst_65 = arith.constant 1.000000e+00 : f32
      %374 = vector.broadcast %cst_65 : f32 to vector<2x32xf32>
      %375 = arith.addf %374, %373 : vector<2x32xf32>
      %376 = arith.divf %374, %375 : vector<2x32xf32>
      %377 = arith.mulf %368, %351 : vector<2x32xf32>
      %378 = arith.mulf %362, %370 : vector<2x32xf32>
      %379 = arith.addf %377, %378 : vector<2x32xf32>
      %380 = math.tanh %379 : vector<2x32xf32>
      %381 = arith.mulf %376, %380 : vector<2x32xf32>
      %382 = vector.extract_strided_slice %7 {offsets = [4, 0], sizes = [2, 128], strides = [1, 1]} : vector<32x128xf32> to vector<2x128xf32>
      %cst_66 = arith.constant dense<0.000000e+00> : vector<2x128xf32>
      %383 = tpu.matmul %381, %9, %cst_66 {dimension_numbers = #tpu.dot_dimension_numbers<[1], [0], [0], [1], [0, 0, 1, 1], [], []>} : vector<2x32xf32>, vector<32x128xf32>, vector<2x128xf32> -> vector<2x128xf32>
      %384 = arith.addf %382, %383 : vector<2x128xf32>
      %385 = vector.extract_strided_slice %384 {offsets = [0, 0], sizes = [2, 32], strides = [1, 1]} : vector<2x128xf32> to vector<2x32xf32>
      %386 = arith.negf %385 : vector<2x32xf32>
      %387 = math.exp %386 : vector<2x32xf32>
      %cst_67 = arith.constant 1.000000e+00 : f32
      %388 = vector.broadcast %cst_67 : f32 to vector<2x32xf32>
      %389 = arith.addf %388, %387 : vector<2x32xf32>
      %390 = arith.divf %388, %389 : vector<2x32xf32>
      %391 = vector.extract_strided_slice %384 {offsets = [0, 32], sizes = [2, 32], strides = [1, 1]} : vector<2x128xf32> to vector<2x32xf32>
      %392 = arith.negf %391 : vector<2x32xf32>
      %393 = math.exp %392 : vector<2x32xf32>
      %cst_68 = arith.constant 1.000000e+00 : f32
      %394 = vector.broadcast %cst_68 : f32 to vector<2x32xf32>
      %395 = arith.addf %394, %393 : vector<2x32xf32>
      %396 = arith.divf %394, %395 : vector<2x32xf32>
      %397 = vector.extract_strided_slice %384 {offsets = [0, 64], sizes = [2, 32], strides = [1, 1]} : vector<2x128xf32> to vector<2x32xf32>
      %398 = math.tanh %397 : vector<2x32xf32>
      %399 = vector.extract_strided_slice %384 {offsets = [0, 96], sizes = [2, 32], strides = [1, 1]} : vector<2x128xf32> to vector<2x32xf32>
      %400 = arith.negf %399 : vector<2x32xf32>
      %401 = math.exp %400 : vector<2x32xf32>
      %cst_69 = arith.constant 1.000000e+00 : f32
      %402 = vector.broadcast %cst_69 : f32 to vector<2x32xf32>
      %403 = arith.addf %402, %401 : vector<2x32xf32>
      %404 = arith.divf %402, %403 : vector<2x32xf32>
      %405 = arith.mulf %396, %379 : vector<2x32xf32>
      %406 = arith.mulf %390, %398 : vector<2x32xf32>
      %407 = arith.addf %405, %406 : vector<2x32xf32>
      %408 = math.tanh %407 : vector<2x32xf32>
      %409 = arith.mulf %404, %408 : vector<2x32xf32>
      %410 = vector.extract_strided_slice %7 {offsets = [2, 0], sizes = [2, 128], strides = [1, 1]} : vector<32x128xf32> to vector<2x128xf32>
      %cst_70 = arith.constant dense<0.000000e+00> : vector<2x128xf32>
      %411 = tpu.matmul %409, %9, %cst_70 {dimension_numbers = #tpu.dot_dimension_numbers<[1], [0], [0], [1], [0, 0, 1, 1], [], []>} : vector<2x32xf32>, vector<32x128xf32>, vector<2x128xf32> -> vector<2x128xf32>
      %412 = arith.addf %410, %411 : vector<2x128xf32>
      %413 = vector.extract_strided_slice %412 {offsets = [0, 0], sizes = [2, 32], strides = [1, 1]} : vector<2x128xf32> to vector<2x32xf32>
      %414 = arith.negf %413 : vector<2x32xf32>
      %415 = math.exp %414 : vector<2x32xf32>
      %cst_71 = arith.constant 1.000000e+00 : f32
      %416 = vector.broadcast %cst_71 : f32 to vector<2x32xf32>
      %417 = arith.addf %416, %415 : vector<2x32xf32>
      %418 = arith.divf %416, %417 : vector<2x32xf32>
      %419 = vector.extract_strided_slice %412 {offsets = [0, 32], sizes = [2, 32], strides = [1, 1]} : vector<2x128xf32> to vector<2x32xf32>
      %420 = arith.negf %419 : vector<2x32xf32>
      %421 = math.exp %420 : vector<2x32xf32>
      %cst_72 = arith.constant 1.000000e+00 : f32
      %422 = vector.broadcast %cst_72 : f32 to vector<2x32xf32>
      %423 = arith.addf %422, %421 : vector<2x32xf32>
      %424 = arith.divf %422, %423 : vector<2x32xf32>
      %425 = vector.extract_strided_slice %412 {offsets = [0, 64], sizes = [2, 32], strides = [1, 1]} : vector<2x128xf32> to vector<2x32xf32>
      %426 = math.tanh %425 : vector<2x32xf32>
      %427 = vector.extract_strided_slice %412 {offsets = [0, 96], sizes = [2, 32], strides = [1, 1]} : vector<2x128xf32> to vector<2x32xf32>
      %428 = arith.negf %427 : vector<2x32xf32>
      %429 = math.exp %428 : vector<2x32xf32>
      %cst_73 = arith.constant 1.000000e+00 : f32
      %430 = vector.broadcast %cst_73 : f32 to vector<2x32xf32>
      %431 = arith.addf %430, %429 : vector<2x32xf32>
      %432 = arith.divf %430, %431 : vector<2x32xf32>
      %433 = arith.mulf %424, %407 : vector<2x32xf32>
      %434 = arith.mulf %418, %426 : vector<2x32xf32>
      %435 = arith.addf %433, %434 : vector<2x32xf32>
      %436 = math.tanh %435 : vector<2x32xf32>
      %437 = arith.mulf %432, %436 : vector<2x32xf32>
      %438 = vector.extract_strided_slice %7 {offsets = [0, 0], sizes = [2, 128], strides = [1, 1]} : vector<32x128xf32> to vector<2x128xf32>
      %cst_74 = arith.constant dense<0.000000e+00> : vector<2x128xf32>
      %439 = tpu.matmul %437, %9, %cst_74 {dimension_numbers = #tpu.dot_dimension_numbers<[1], [0], [0], [1], [0, 0, 1, 1], [], []>} : vector<2x32xf32>, vector<32x128xf32>, vector<2x128xf32> -> vector<2x128xf32>
      %440 = arith.addf %438, %439 : vector<2x128xf32>
      %441 = vector.extract_strided_slice %440 {offsets = [0, 0], sizes = [2, 32], strides = [1, 1]} : vector<2x128xf32> to vector<2x32xf32>
      %442 = arith.negf %441 : vector<2x32xf32>
      %443 = math.exp %442 : vector<2x32xf32>
      %cst_75 = arith.constant 1.000000e+00 : f32
      %444 = vector.broadcast %cst_75 : f32 to vector<2x32xf32>
      %445 = arith.addf %444, %443 : vector<2x32xf32>
      %446 = arith.divf %444, %445 : vector<2x32xf32>
      %447 = vector.extract_strided_slice %440 {offsets = [0, 32], sizes = [2, 32], strides = [1, 1]} : vector<2x128xf32> to vector<2x32xf32>
      %448 = arith.negf %447 : vector<2x32xf32>
      %449 = math.exp %448 : vector<2x32xf32>
      %cst_76 = arith.constant 1.000000e+00 : f32
      %450 = vector.broadcast %cst_76 : f32 to vector<2x32xf32>
      %451 = arith.addf %450, %449 : vector<2x32xf32>
      %452 = arith.divf %450, %451 : vector<2x32xf32>
      %453 = vector.extract_strided_slice %440 {offsets = [0, 64], sizes = [2, 32], strides = [1, 1]} : vector<2x128xf32> to vector<2x32xf32>
      %454 = math.tanh %453 : vector<2x32xf32>
      %455 = vector.extract_strided_slice %440 {offsets = [0, 96], sizes = [2, 32], strides = [1, 1]} : vector<2x128xf32> to vector<2x32xf32>
      %456 = arith.negf %455 : vector<2x32xf32>
      %457 = math.exp %456 : vector<2x32xf32>
      %cst_77 = arith.constant 1.000000e+00 : f32
      %458 = vector.broadcast %cst_77 : f32 to vector<2x32xf32>
      %459 = arith.addf %458, %457 : vector<2x32xf32>
      %460 = arith.divf %458, %459 : vector<2x32xf32>
      %461 = arith.mulf %452, %435 : vector<2x32xf32>
      %462 = arith.mulf %446, %454 : vector<2x32xf32>
      %463 = arith.addf %461, %462 : vector<2x32xf32>
      %464 = math.tanh %463 : vector<2x32xf32>
      %465 = arith.mulf %460, %464 : vector<2x32xf32>
      %466 = tpu.concatenate %465, %437, %409, %381, %353, %325, %297, %269, %241, %213, %185, %157, %129, %101, %73, %45 in 0 : vector<2x32xf32>, vector<2x32xf32>, vector<2x32xf32>, vector<2x32xf32>, vector<2x32xf32>, vector<2x32xf32>, vector<2x32xf32>, vector<2x32xf32>, vector<2x32xf32>, vector<2x32xf32>, vector<2x32xf32>, vector<2x32xf32>, vector<2x32xf32>, vector<2x32xf32>, vector<2x32xf32>, vector<2x32xf32> -> vector<32x32xf32>
      %c0_78 = arith.constant 0 : index
      %c0_79 = arith.constant 0 : index
      %c0_80 = arith.constant 0 : index
      %467 = vector.load %arg5[%c0_78, %c0_79, %c0_80] : memref<1x32x32xf32, #tpu.memory_space<vmem>>, vector<1x32x32xf32>
      %468 = vector.shape_cast %467 : vector<1x32x32xf32> to vector<32x32xf32>
      %469 = vector.shape_cast %466 : vector<32x32xf32> to vector<1x32x32xf32>
      tpu.vector_store %arg5[%c0_78, %c0_79, %c0_80], %469 {strides = array<i32>} : memref<1x32x32xf32, #tpu.memory_space<vmem>>, vector<1x32x32xf32>,
    } else {
    }
    return
  }
  func.func @transform_0(%arg0: i32) -> (i32, i32) {
    %c0_i32 = arith.constant 0 : i32
    %c0_i32_0 = arith.constant 0 : i32
    %c0_i32_1 = arith.constant 0 : i32
    return %c0_i32, %c0_i32_0 : i32, i32
  }
  func.func @transform_1(%arg0: i32) -> (i32, i32, i32) {
    %c0_i32 = arith.constant 0 : i32
    %c0_i32_0 = arith.constant 0 : i32
    %c0_i32_1 = arith.constant 0 : i32
    return %arg0, %c0_i32, %c0_i32_0 : i32, i32, i32
  }
  func.func @transform_2(%arg0: i32) -> (i32, i32, i32) {
    %c0_i32 = arith.constant 0 : i32
    %c0_i32_0 = arith.constant 0 : i32
    %c0_i32_1 = arith.constant 0 : i32
    return %arg0, %c0_i32, %c0_i32_0 : i32, i32, i32
  }
  func.func @transform_3(%arg0: i32) -> (i32, i32, i32) {
    %c0_i32 = arith.constant 0 : i32
    %c0_i32_0 = arith.constant 0 : i32
    %c0_i32_1 = arith.constant 0 : i32
    return %arg0, %c0_i32, %c0_i32_0 : i32, i32, i32
  }
  func.func @transform_4(%arg0: i32) -> (i32, i32, i32) {
    %c0_i32 = arith.constant 0 : i32
    %c0_i32_0 = arith.constant 0 : i32
    %c0_i32_1 = arith.constant 0 : i32
    return %arg0, %c0_i32, %c0_i32_0 : i32, i32, i32
  }
}

module attributes {stable_mosaic.version = 11 : i64} {
  func.func @_lstm_layer_kernel(%arg0: i32, %arg1: memref<32x64xf32, #tpu.memory_space<vmem>>, %arg2: memref<1x64x128xf32, #tpu.memory_space<vmem>>, %arg3: memref<1x32x128xf32, #tpu.memory_space<vmem>>, %arg4: memref<1x1x128xf32, #tpu.memory_space<vmem>>, %arg5: memref<1x32x32xf32, #tpu.memory_space<vmem>>) attributes {dimension_semantics = [#tpu.dimension_semantics<parallel>], iteration_bounds = array<i64: 2>, scalar_prefetch = 0 : i64, scratch_operands = 0 : i64, tpu.core_type = #tpu.core_type<tc>, window_params = [{pipeline_mode = #tpu.pipeline_mode<synchronous>, transform_indices = @transform_0, window_bounds = array<i64: 32, 64>}, {transform_indices = @transform_1, window_bounds = array<i64: 1, 64, 128>}, {transform_indices = @transform_2, window_bounds = array<i64: 1, 32, 128>}, {transform_indices = @transform_3, window_bounds = array<i64: 1, 1, 128>}, {transform_indices = @transform_4, window_bounds = array<i64: 1, 32, 32>}]} {
    %c0 = arith.constant 0 : index
    %c0_0 = arith.constant 0 : index
    %0 = vector.load %arg1[%c0, %c0_0] : memref<32x64xf32, #tpu.memory_space<vmem>>, vector<32x64xf32>
    %c0_1 = arith.constant 0 : index
    %c0_2 = arith.constant 0 : index
    %c0_3 = arith.constant 0 : index
    %1 = vector.load %arg2[%c0_1, %c0_2, %c0_3] : memref<1x64x128xf32, #tpu.memory_space<vmem>>, vector<1x64x128xf32>
    %2 = vector.shape_cast %1 : vector<1x64x128xf32> to vector<64x128xf32>
    %cst = arith.constant dense<0.000000e+00> : vector<32x128xf32>
    %3 = tpu.matmul %0, %2, %cst {dimension_numbers = #tpu.dot_dimension_numbers<[1], [0], [0], [1], [0, 0, 1, 1], [], []>} : vector<32x64xf32>, vector<64x128xf32>, vector<32x128xf32> -> vector<32x128xf32>
    %c0_4 = arith.constant 0 : index
    %c0_5 = arith.constant 0 : index
    %c0_6 = arith.constant 0 : index
    %4 = vector.load %arg4[%c0_4, %c0_5, %c0_6] : memref<1x1x128xf32, #tpu.memory_space<vmem>>, vector<1x1x128xf32>
    %5 = vector.shape_cast %4 : vector<1x1x128xf32> to vector<1x128xf32>
    %6 = vector.broadcast %5 : vector<1x128xf32> to vector<32x128xf32>
    %7 = arith.addf %3, %6 : vector<32x128xf32>
    %c0_7 = arith.constant 0 : index
    %c0_8 = arith.constant 0 : index
    %c0_9 = arith.constant 0 : index
    %8 = vector.load %arg3[%c0_7, %c0_8, %c0_9] : memref<1x32x128xf32, #tpu.memory_space<vmem>>, vector<1x32x128xf32>
    %9 = vector.shape_cast %8 : vector<1x32x128xf32> to vector<32x128xf32>
    %c0_i32 = arith.constant 0 : i32
    %10 = arith.cmpi eq, %arg0, %c0_i32 : i32
    %11 = arith.extui %10 : i1 to i32
    %c0_i32_10 = arith.constant 0 : i32
    %12 = arith.cmpi ne, %11, %c0_i32_10 : i32
    scf.if %12 {
      %cst_12 = arith.constant 0.000000e+00 : f32
      %16 = vector.broadcast %cst_12 : f32 to vector<2x32xf32>
      %cst_13 = arith.constant 0.000000e+00 : f32
      %17 = vector.broadcast %cst_13 : f32 to vector<2x32xf32>
      %18 = vector.extract_strided_slice %7 {offsets = [0, 0], sizes = [2, 128], strides = [1, 1]} : vector<32x128xf32> to vector<2x128xf32>
      %cst_14 = arith.constant dense<0.000000e+00> : vector<2x128xf32>
      %19 = tpu.matmul %16, %9, %cst_14 {dimension_numbers = #tpu.dot_dimension_numbers<[1], [0], [0], [1], [0, 0, 1, 1], [], []>} : vector<2x32xf32>, vector<32x128xf32>, vector<2x128xf32> -> vector<2x128xf32>
      %20 = arith.addf %18, %19 : vector<2x128xf32>
      %21 = vector.extract_strided_slice %20 {offsets = [0, 0], sizes = [2, 32], strides = [1, 1]} : vector<2x128xf32> to vector<2x32xf32>
      %22 = arith.negf %21 : vector<2x32xf32>
      %23 = math.exp %22 : vector<2x32xf32>
      %cst_15 = arith.constant 1.000000e+00 : f32
      %24 = vector.broadcast %cst_15 : f32 to vector<2x32xf32>
      %25 = arith.addf %24, %23 : vector<2x32xf32>
      %26 = arith.divf %24, %25 : vector<2x32xf32>
      %27 = vector.extract_strided_slice %20 {offsets = [0, 32], sizes = [2, 32], strides = [1, 1]} : vector<2x128xf32> to vector<2x32xf32>
      %28 = arith.negf %27 : vector<2x32xf32>
      %29 = math.exp %28 : vector<2x32xf32>
      %cst_16 = arith.constant 1.000000e+00 : f32
      %30 = vector.broadcast %cst_16 : f32 to vector<2x32xf32>
      %31 = arith.addf %30, %29 : vector<2x32xf32>
      %32 = arith.divf %30, %31 : vector<2x32xf32>
      %33 = vector.extract_strided_slice %20 {offsets = [0, 64], sizes = [2, 32], strides = [1, 1]} : vector<2x128xf32> to vector<2x32xf32>
      %34 = math.tanh %33 : vector<2x32xf32>
      %35 = vector.extract_strided_slice %20 {offsets = [0, 96], sizes = [2, 32], strides = [1, 1]} : vector<2x128xf32> to vector<2x32xf32>
      %36 = arith.negf %35 : vector<2x32xf32>
      %37 = math.exp %36 : vector<2x32xf32>
      %cst_17 = arith.constant 1.000000e+00 : f32
      %38 = vector.broadcast %cst_17 : f32 to vector<2x32xf32>
      %39 = arith.addf %38, %37 : vector<2x32xf32>
      %40 = arith.divf %38, %39 : vector<2x32xf32>
      %41 = arith.mulf %32, %17 : vector<2x32xf32>
      %42 = arith.mulf %26, %34 : vector<2x32xf32>
      %43 = arith.addf %41, %42 : vector<2x32xf32>
      %44 = math.tanh %43 : vector<2x32xf32>
      %45 = arith.mulf %40, %44 : vector<2x32xf32>
      %46 = vector.extract_strided_slice %7 {offsets = [2, 0], sizes = [2, 128], strides = [1, 1]} : vector<32x128xf32> to vector<2x128xf32>
      %cst_18 = arith.constant dense<0.000000e+00> : vector<2x128xf32>
      %47 = tpu.matmul %45, %9, %cst_18 {dimension_numbers = #tpu.dot_dimension_numbers<[1], [0], [0], [1], [0, 0, 1, 1], [], []>} : vector<2x32xf32>, vector<32x128xf32>, vector<2x128xf32> -> vector<2x128xf32>
      %48 = arith.addf %46, %47 : vector<2x128xf32>
      %49 = vector.extract_strided_slice %48 {offsets = [0, 0], sizes = [2, 32], strides = [1, 1]} : vector<2x128xf32> to vector<2x32xf32>
      %50 = arith.negf %49 : vector<2x32xf32>
      %51 = math.exp %50 : vector<2x32xf32>
      %cst_19 = arith.constant 1.000000e+00 : f32
      %52 = vector.broadcast %cst_19 : f32 to vector<2x32xf32>
      %53 = arith.addf %52, %51 : vector<2x32xf32>
      %54 = arith.divf %52, %53 : vector<2x32xf32>
      %55 = vector.extract_strided_slice %48 {offsets = [0, 32], sizes = [2, 32], strides = [1, 1]} : vector<2x128xf32> to vector<2x32xf32>
      %56 = arith.negf %55 : vector<2x32xf32>
      %57 = math.exp %56 : vector<2x32xf32>
      %cst_20 = arith.constant 1.000000e+00 : f32
      %58 = vector.broadcast %cst_20 : f32 to vector<2x32xf32>
      %59 = arith.addf %58, %57 : vector<2x32xf32>
      %60 = arith.divf %58, %59 : vector<2x32xf32>
      %61 = vector.extract_strided_slice %48 {offsets = [0, 64], sizes = [2, 32], strides = [1, 1]} : vector<2x128xf32> to vector<2x32xf32>
      %62 = math.tanh %61 : vector<2x32xf32>
      %63 = vector.extract_strided_slice %48 {offsets = [0, 96], sizes = [2, 32], strides = [1, 1]} : vector<2x128xf32> to vector<2x32xf32>
      %64 = arith.negf %63 : vector<2x32xf32>
      %65 = math.exp %64 : vector<2x32xf32>
      %cst_21 = arith.constant 1.000000e+00 : f32
      %66 = vector.broadcast %cst_21 : f32 to vector<2x32xf32>
      %67 = arith.addf %66, %65 : vector<2x32xf32>
      %68 = arith.divf %66, %67 : vector<2x32xf32>
      %69 = arith.mulf %60, %43 : vector<2x32xf32>
      %70 = arith.mulf %54, %62 : vector<2x32xf32>
      %71 = arith.addf %69, %70 : vector<2x32xf32>
      %72 = math.tanh %71 : vector<2x32xf32>
      %73 = arith.mulf %68, %72 : vector<2x32xf32>
      %74 = vector.extract_strided_slice %7 {offsets = [4, 0], sizes = [2, 128], strides = [1, 1]} : vector<32x128xf32> to vector<2x128xf32>
      %cst_22 = arith.constant dense<0.000000e+00> : vector<2x128xf32>
      %75 = tpu.matmul %73, %9, %cst_22 {dimension_numbers = #tpu.dot_dimension_numbers<[1], [0], [0], [1], [0, 0, 1, 1], [], []>} : vector<2x32xf32>, vector<32x128xf32>, vector<2x128xf32> -> vector<2x128xf32>
      %76 = arith.addf %74, %75 : vector<2x128xf32>
      %77 = vector.extract_strided_slice %76 {offsets = [0, 0], sizes = [2, 32], strides = [1, 1]} : vector<2x128xf32> to vector<2x32xf32>
      %78 = arith.negf %77 : vector<2x32xf32>
      %79 = math.exp %78 : vector<2x32xf32>
      %cst_23 = arith.constant 1.000000e+00 : f32
      %80 = vector.broadcast %cst_23 : f32 to vector<2x32xf32>
      %81 = arith.addf %80, %79 : vector<2x32xf32>
      %82 = arith.divf %80, %81 : vector<2x32xf32>
      %83 = vector.extract_strided_slice %76 {offsets = [0, 32], sizes = [2, 32], strides = [1, 1]} : vector<2x128xf32> to vector<2x32xf32>
      %84 = arith.negf %83 : vector<2x32xf32>
      %85 = math.exp %84 : vector<2x32xf32>
      %cst_24 = arith.constant 1.000000e+00 : f32
      %86 = vector.broadcast %cst_24 : f32 to vector<2x32xf32>
      %87 = arith.addf %86, %85 : vector<2x32xf32>
      %88 = arith.divf %86, %87 : vector<2x32xf32>
      %89 = vector.extract_strided_slice %76 {offsets = [0, 64], sizes = [2, 32], strides = [1, 1]} : vector<2x128xf32> to vector<2x32xf32>
      %90 = math.tanh %89 : vector<2x32xf32>
      %91 = vector.extract_strided_slice %76 {offsets = [0, 96], sizes = [2, 32], strides = [1, 1]} : vector<2x128xf32> to vector<2x32xf32>
      %92 = arith.negf %91 : vector<2x32xf32>
      %93 = math.exp %92 : vector<2x32xf32>
      %cst_25 = arith.constant 1.000000e+00 : f32
      %94 = vector.broadcast %cst_25 : f32 to vector<2x32xf32>
      %95 = arith.addf %94, %93 : vector<2x32xf32>
      %96 = arith.divf %94, %95 : vector<2x32xf32>
      %97 = arith.mulf %88, %71 : vector<2x32xf32>
      %98 = arith.mulf %82, %90 : vector<2x32xf32>
      %99 = arith.addf %97, %98 : vector<2x32xf32>
      %100 = math.tanh %99 : vector<2x32xf32>
      %101 = arith.mulf %96, %100 : vector<2x32xf32>
      %102 = vector.extract_strided_slice %7 {offsets = [6, 0], sizes = [2, 128], strides = [1, 1]} : vector<32x128xf32> to vector<2x128xf32>
      %cst_26 = arith.constant dense<0.000000e+00> : vector<2x128xf32>
      %103 = tpu.matmul %101, %9, %cst_26 {dimension_numbers = #tpu.dot_dimension_numbers<[1], [0], [0], [1], [0, 0, 1, 1], [], []>} : vector<2x32xf32>, vector<32x128xf32>, vector<2x128xf32> -> vector<2x128xf32>
      %104 = arith.addf %102, %103 : vector<2x128xf32>
      %105 = vector.extract_strided_slice %104 {offsets = [0, 0], sizes = [2, 32], strides = [1, 1]} : vector<2x128xf32> to vector<2x32xf32>
      %106 = arith.negf %105 : vector<2x32xf32>
      %107 = math.exp %106 : vector<2x32xf32>
      %cst_27 = arith.constant 1.000000e+00 : f32
      %108 = vector.broadcast %cst_27 : f32 to vector<2x32xf32>
      %109 = arith.addf %108, %107 : vector<2x32xf32>
      %110 = arith.divf %108, %109 : vector<2x32xf32>
      %111 = vector.extract_strided_slice %104 {offsets = [0, 32], sizes = [2, 32], strides = [1, 1]} : vector<2x128xf32> to vector<2x32xf32>
      %112 = arith.negf %111 : vector<2x32xf32>
      %113 = math.exp %112 : vector<2x32xf32>
      %cst_28 = arith.constant 1.000000e+00 : f32
      %114 = vector.broadcast %cst_28 : f32 to vector<2x32xf32>
      %115 = arith.addf %114, %113 : vector<2x32xf32>
      %116 = arith.divf %114, %115 : vector<2x32xf32>
      %117 = vector.extract_strided_slice %104 {offsets = [0, 64], sizes = [2, 32], strides = [1, 1]} : vector<2x128xf32> to vector<2x32xf32>
      %118 = math.tanh %117 : vector<2x32xf32>
      %119 = vector.extract_strided_slice %104 {offsets = [0, 96], sizes = [2, 32], strides = [1, 1]} : vector<2x128xf32> to vector<2x32xf32>
      %120 = arith.negf %119 : vector<2x32xf32>
      %121 = math.exp %120 : vector<2x32xf32>
      %cst_29 = arith.constant 1.000000e+00 : f32
      %122 = vector.broadcast %cst_29 : f32 to vector<2x32xf32>
      %123 = arith.addf %122, %121 : vector<2x32xf32>
      %124 = arith.divf %122, %123 : vector<2x32xf32>
      %125 = arith.mulf %116, %99 : vector<2x32xf32>
      %126 = arith.mulf %110, %118 : vector<2x32xf32>
      %127 = arith.addf %125, %126 : vector<2x32xf32>
      %128 = math.tanh %127 : vector<2x32xf32>
      %129 = arith.mulf %124, %128 : vector<2x32xf32>
      %130 = vector.extract_strided_slice %7 {offsets = [8, 0], sizes = [2, 128], strides = [1, 1]} : vector<32x128xf32> to vector<2x128xf32>
      %cst_30 = arith.constant dense<0.000000e+00> : vector<2x128xf32>
      %131 = tpu.matmul %129, %9, %cst_30 {dimension_numbers = #tpu.dot_dimension_numbers<[1], [0], [0], [1], [0, 0, 1, 1], [], []>} : vector<2x32xf32>, vector<32x128xf32>, vector<2x128xf32> -> vector<2x128xf32>
      %132 = arith.addf %130, %131 : vector<2x128xf32>
      %133 = vector.extract_strided_slice %132 {offsets = [0, 0], sizes = [2, 32], strides = [1, 1]} : vector<2x128xf32> to vector<2x32xf32>
      %134 = arith.negf %133 : vector<2x32xf32>
      %135 = math.exp %134 : vector<2x32xf32>
      %cst_31 = arith.constant 1.000000e+00 : f32
      %136 = vector.broadcast %cst_31 : f32 to vector<2x32xf32>
      %137 = arith.addf %136, %135 : vector<2x32xf32>
      %138 = arith.divf %136, %137 : vector<2x32xf32>
      %139 = vector.extract_strided_slice %132 {offsets = [0, 32], sizes = [2, 32], strides = [1, 1]} : vector<2x128xf32> to vector<2x32xf32>
      %140 = arith.negf %139 : vector<2x32xf32>
      %141 = math.exp %140 : vector<2x32xf32>
      %cst_32 = arith.constant 1.000000e+00 : f32
      %142 = vector.broadcast %cst_32 : f32 to vector<2x32xf32>
      %143 = arith.addf %142, %141 : vector<2x32xf32>
      %144 = arith.divf %142, %143 : vector<2x32xf32>
      %145 = vector.extract_strided_slice %132 {offsets = [0, 64], sizes = [2, 32], strides = [1, 1]} : vector<2x128xf32> to vector<2x32xf32>
      %146 = math.tanh %145 : vector<2x32xf32>
      %147 = vector.extract_strided_slice %132 {offsets = [0, 96], sizes = [2, 32], strides = [1, 1]} : vector<2x128xf32> to vector<2x32xf32>
      %148 = arith.negf %147 : vector<2x32xf32>
      %149 = math.exp %148 : vector<2x32xf32>
      %cst_33 = arith.constant 1.000000e+00 : f32
      %150 = vector.broadcast %cst_33 : f32 to vector<2x32xf32>
      %151 = arith.addf %150, %149 : vector<2x32xf32>
      %152 = arith.divf %150, %151 : vector<2x32xf32>
      %153 = arith.mulf %144, %127 : vector<2x32xf32>
      %154 = arith.mulf %138, %146 : vector<2x32xf32>
      %155 = arith.addf %153, %154 : vector<2x32xf32>
      %156 = math.tanh %155 : vector<2x32xf32>
      %157 = arith.mulf %152, %156 : vector<2x32xf32>
      %158 = vector.extract_strided_slice %7 {offsets = [10, 0], sizes = [2, 128], strides = [1, 1]} : vector<32x128xf32> to vector<2x128xf32>
      %cst_34 = arith.constant dense<0.000000e+00> : vector<2x128xf32>
      %159 = tpu.matmul %157, %9, %cst_34 {dimension_numbers = #tpu.dot_dimension_numbers<[1], [0], [0], [1], [0, 0, 1, 1], [], []>} : vector<2x32xf32>, vector<32x128xf32>, vector<2x128xf32> -> vector<2x128xf32>
      %160 = arith.addf %158, %159 : vector<2x128xf32>
      %161 = vector.extract_strided_slice %160 {offsets = [0, 0], sizes = [2, 32], strides = [1, 1]} : vector<2x128xf32> to vector<2x32xf32>
      %162 = arith.negf %161 : vector<2x32xf32>
      %163 = math.exp %162 : vector<2x32xf32>
      %cst_35 = arith.constant 1.000000e+00 : f32
      %164 = vector.broadcast %cst_35 : f32 to vector<2x32xf32>
      %165 = arith.addf %164, %163 : vector<2x32xf32>
      %166 = arith.divf %164, %165 : vector<2x32xf32>
      %167 = vector.extract_strided_slice %160 {offsets = [0, 32], sizes = [2, 32], strides = [1, 1]} : vector<2x128xf32> to vector<2x32xf32>
      %168 = arith.negf %167 : vector<2x32xf32>
      %169 = math.exp %168 : vector<2x32xf32>
      %cst_36 = arith.constant 1.000000e+00 : f32
      %170 = vector.broadcast %cst_36 : f32 to vector<2x32xf32>
      %171 = arith.addf %170, %169 : vector<2x32xf32>
      %172 = arith.divf %170, %171 : vector<2x32xf32>
      %173 = vector.extract_strided_slice %160 {offsets = [0, 64], sizes = [2, 32], strides = [1, 1]} : vector<2x128xf32> to vector<2x32xf32>
      %174 = math.tanh %173 : vector<2x32xf32>
      %175 = vector.extract_strided_slice %160 {offsets = [0, 96], sizes = [2, 32], strides = [1, 1]} : vector<2x128xf32> to vector<2x32xf32>
      %176 = arith.negf %175 : vector<2x32xf32>
      %177 = math.exp %176 : vector<2x32xf32>
      %cst_37 = arith.constant 1.000000e+00 : f32
      %178 = vector.broadcast %cst_37 : f32 to vector<2x32xf32>
      %179 = arith.addf %178, %177 : vector<2x32xf32>
      %180 = arith.divf %178, %179 : vector<2x32xf32>
      %181 = arith.mulf %172, %155 : vector<2x32xf32>
      %182 = arith.mulf %166, %174 : vector<2x32xf32>
      %183 = arith.addf %181, %182 : vector<2x32xf32>
      %184 = math.tanh %183 : vector<2x32xf32>
      %185 = arith.mulf %180, %184 : vector<2x32xf32>
      %186 = vector.extract_strided_slice %7 {offsets = [12, 0], sizes = [2, 128], strides = [1, 1]} : vector<32x128xf32> to vector<2x128xf32>
      %cst_38 = arith.constant dense<0.000000e+00> : vector<2x128xf32>
      %187 = tpu.matmul %185, %9, %cst_38 {dimension_numbers = #tpu.dot_dimension_numbers<[1], [0], [0], [1], [0, 0, 1, 1], [], []>} : vector<2x32xf32>, vector<32x128xf32>, vector<2x128xf32> -> vector<2x128xf32>
      %188 = arith.addf %186, %187 : vector<2x128xf32>
      %189 = vector.extract_strided_slice %188 {offsets = [0, 0], sizes = [2, 32], strides = [1, 1]} : vector<2x128xf32> to vector<2x32xf32>
      %190 = arith.negf %189 : vector<2x32xf32>
      %191 = math.exp %190 : vector<2x32xf32>
      %cst_39 = arith.constant 1.000000e+00 : f32
      %192 = vector.broadcast %cst_39 : f32 to vector<2x32xf32>
      %193 = arith.addf %192, %191 : vector<2x32xf32>
      %194 = arith.divf %192, %193 : vector<2x32xf32>
      %195 = vector.extract_strided_slice %188 {offsets = [0, 32], sizes = [2, 32], strides = [1, 1]} : vector<2x128xf32> to vector<2x32xf32>
      %196 = arith.negf %195 : vector<2x32xf32>
      %197 = math.exp %196 : vector<2x32xf32>
      %cst_40 = arith.constant 1.000000e+00 : f32
      %198 = vector.broadcast %cst_40 : f32 to vector<2x32xf32>
      %199 = arith.addf %198, %197 : vector<2x32xf32>
      %200 = arith.divf %198, %199 : vector<2x32xf32>
      %201 = vector.extract_strided_slice %188 {offsets = [0, 64], sizes = [2, 32], strides = [1, 1]} : vector<2x128xf32> to vector<2x32xf32>
      %202 = math.tanh %201 : vector<2x32xf32>
      %203 = vector.extract_strided_slice %188 {offsets = [0, 96], sizes = [2, 32], strides = [1, 1]} : vector<2x128xf32> to vector<2x32xf32>
      %204 = arith.negf %203 : vector<2x32xf32>
      %205 = math.exp %204 : vector<2x32xf32>
      %cst_41 = arith.constant 1.000000e+00 : f32
      %206 = vector.broadcast %cst_41 : f32 to vector<2x32xf32>
      %207 = arith.addf %206, %205 : vector<2x32xf32>
      %208 = arith.divf %206, %207 : vector<2x32xf32>
      %209 = arith.mulf %200, %183 : vector<2x32xf32>
      %210 = arith.mulf %194, %202 : vector<2x32xf32>
      %211 = arith.addf %209, %210 : vector<2x32xf32>
      %212 = math.tanh %211 : vector<2x32xf32>
      %213 = arith.mulf %208, %212 : vector<2x32xf32>
      %214 = vector.extract_strided_slice %7 {offsets = [14, 0], sizes = [2, 128], strides = [1, 1]} : vector<32x128xf32> to vector<2x128xf32>
      %cst_42 = arith.constant dense<0.000000e+00> : vector<2x128xf32>
      %215 = tpu.matmul %213, %9, %cst_42 {dimension_numbers = #tpu.dot_dimension_numbers<[1], [0], [0], [1], [0, 0, 1, 1], [], []>} : vector<2x32xf32>, vector<32x128xf32>, vector<2x128xf32> -> vector<2x128xf32>
      %216 = arith.addf %214, %215 : vector<2x128xf32>
      %217 = vector.extract_strided_slice %216 {offsets = [0, 0], sizes = [2, 32], strides = [1, 1]} : vector<2x128xf32> to vector<2x32xf32>
      %218 = arith.negf %217 : vector<2x32xf32>
      %219 = math.exp %218 : vector<2x32xf32>
      %cst_43 = arith.constant 1.000000e+00 : f32
      %220 = vector.broadcast %cst_43 : f32 to vector<2x32xf32>
      %221 = arith.addf %220, %219 : vector<2x32xf32>
      %222 = arith.divf %220, %221 : vector<2x32xf32>
      %223 = vector.extract_strided_slice %216 {offsets = [0, 32], sizes = [2, 32], strides = [1, 1]} : vector<2x128xf32> to vector<2x32xf32>
      %224 = arith.negf %223 : vector<2x32xf32>
      %225 = math.exp %224 : vector<2x32xf32>
      %cst_44 = arith.constant 1.000000e+00 : f32
      %226 = vector.broadcast %cst_44 : f32 to vector<2x32xf32>
      %227 = arith.addf %226, %225 : vector<2x32xf32>
      %228 = arith.divf %226, %227 : vector<2x32xf32>
      %229 = vector.extract_strided_slice %216 {offsets = [0, 64], sizes = [2, 32], strides = [1, 1]} : vector<2x128xf32> to vector<2x32xf32>
      %230 = math.tanh %229 : vector<2x32xf32>
      %231 = vector.extract_strided_slice %216 {offsets = [0, 96], sizes = [2, 32], strides = [1, 1]} : vector<2x128xf32> to vector<2x32xf32>
      %232 = arith.negf %231 : vector<2x32xf32>
      %233 = math.exp %232 : vector<2x32xf32>
      %cst_45 = arith.constant 1.000000e+00 : f32
      %234 = vector.broadcast %cst_45 : f32 to vector<2x32xf32>
      %235 = arith.addf %234, %233 : vector<2x32xf32>
      %236 = arith.divf %234, %235 : vector<2x32xf32>
      %237 = arith.mulf %228, %211 : vector<2x32xf32>
      %238 = arith.mulf %222, %230 : vector<2x32xf32>
      %239 = arith.addf %237, %238 : vector<2x32xf32>
      %240 = math.tanh %239 : vector<2x32xf32>
      %241 = arith.mulf %236, %240 : vector<2x32xf32>
      %242 = vector.extract_strided_slice %7 {offsets = [16, 0], sizes = [2, 128], strides = [1, 1]} : vector<32x128xf32> to vector<2x128xf32>
      %cst_46 = arith.constant dense<0.000000e+00> : vector<2x128xf32>
      %243 = tpu.matmul %241, %9, %cst_46 {dimension_numbers = #tpu.dot_dimension_numbers<[1], [0], [0], [1], [0, 0, 1, 1], [], []>} : vector<2x32xf32>, vector<32x128xf32>, vector<2x128xf32> -> vector<2x128xf32>
      %244 = arith.addf %242, %243 : vector<2x128xf32>
      %245 = vector.extract_strided_slice %244 {offsets = [0, 0], sizes = [2, 32], strides = [1, 1]} : vector<2x128xf32> to vector<2x32xf32>
      %246 = arith.negf %245 : vector<2x32xf32>
      %247 = math.exp %246 : vector<2x32xf32>
      %cst_47 = arith.constant 1.000000e+00 : f32
      %248 = vector.broadcast %cst_47 : f32 to vector<2x32xf32>
      %249 = arith.addf %248, %247 : vector<2x32xf32>
      %250 = arith.divf %248, %249 : vector<2x32xf32>
      %251 = vector.extract_strided_slice %244 {offsets = [0, 32], sizes = [2, 32], strides = [1, 1]} : vector<2x128xf32> to vector<2x32xf32>
      %252 = arith.negf %251 : vector<2x32xf32>
      %253 = math.exp %252 : vector<2x32xf32>
      %cst_48 = arith.constant 1.000000e+00 : f32
      %254 = vector.broadcast %cst_48 : f32 to vector<2x32xf32>
      %255 = arith.addf %254, %253 : vector<2x32xf32>
      %256 = arith.divf %254, %255 : vector<2x32xf32>
      %257 = vector.extract_strided_slice %244 {offsets = [0, 64], sizes = [2, 32], strides = [1, 1]} : vector<2x128xf32> to vector<2x32xf32>
      %258 = math.tanh %257 : vector<2x32xf32>
      %259 = vector.extract_strided_slice %244 {offsets = [0, 96], sizes = [2, 32], strides = [1, 1]} : vector<2x128xf32> to vector<2x32xf32>
      %260 = arith.negf %259 : vector<2x32xf32>
      %261 = math.exp %260 : vector<2x32xf32>
      %cst_49 = arith.constant 1.000000e+00 : f32
      %262 = vector.broadcast %cst_49 : f32 to vector<2x32xf32>
      %263 = arith.addf %262, %261 : vector<2x32xf32>
      %264 = arith.divf %262, %263 : vector<2x32xf32>
      %265 = arith.mulf %256, %239 : vector<2x32xf32>
      %266 = arith.mulf %250, %258 : vector<2x32xf32>
      %267 = arith.addf %265, %266 : vector<2x32xf32>
      %268 = math.tanh %267 : vector<2x32xf32>
      %269 = arith.mulf %264, %268 : vector<2x32xf32>
      %270 = vector.extract_strided_slice %7 {offsets = [18, 0], sizes = [2, 128], strides = [1, 1]} : vector<32x128xf32> to vector<2x128xf32>
      %cst_50 = arith.constant dense<0.000000e+00> : vector<2x128xf32>
      %271 = tpu.matmul %269, %9, %cst_50 {dimension_numbers = #tpu.dot_dimension_numbers<[1], [0], [0], [1], [0, 0, 1, 1], [], []>} : vector<2x32xf32>, vector<32x128xf32>, vector<2x128xf32> -> vector<2x128xf32>
      %272 = arith.addf %270, %271 : vector<2x128xf32>
      %273 = vector.extract_strided_slice %272 {offsets = [0, 0], sizes = [2, 32], strides = [1, 1]} : vector<2x128xf32> to vector<2x32xf32>
      %274 = arith.negf %273 : vector<2x32xf32>
      %275 = math.exp %274 : vector<2x32xf32>
      %cst_51 = arith.constant 1.000000e+00 : f32
      %276 = vector.broadcast %cst_51 : f32 to vector<2x32xf32>
      %277 = arith.addf %276, %275 : vector<2x32xf32>
      %278 = arith.divf %276, %277 : vector<2x32xf32>
      %279 = vector.extract_strided_slice %272 {offsets = [0, 32], sizes = [2, 32], strides = [1, 1]} : vector<2x128xf32> to vector<2x32xf32>
      %280 = arith.negf %279 : vector<2x32xf32>
      %281 = math.exp %280 : vector<2x32xf32>
      %cst_52 = arith.constant 1.000000e+00 : f32
      %282 = vector.broadcast %cst_52 : f32 to vector<2x32xf32>
      %283 = arith.addf %282, %281 : vector<2x32xf32>
      %284 = arith.divf %282, %283 : vector<2x32xf32>
      %285 = vector.extract_strided_slice %272 {offsets = [0, 64], sizes = [2, 32], strides = [1, 1]} : vector<2x128xf32> to vector<2x32xf32>
      %286 = math.tanh %285 : vector<2x32xf32>
      %287 = vector.extract_strided_slice %272 {offsets = [0, 96], sizes = [2, 32], strides = [1, 1]} : vector<2x128xf32> to vector<2x32xf32>
      %288 = arith.negf %287 : vector<2x32xf32>
      %289 = math.exp %288 : vector<2x32xf32>
      %cst_53 = arith.constant 1.000000e+00 : f32
      %290 = vector.broadcast %cst_53 : f32 to vector<2x32xf32>
      %291 = arith.addf %290, %289 : vector<2x32xf32>
      %292 = arith.divf %290, %291 : vector<2x32xf32>
      %293 = arith.mulf %284, %267 : vector<2x32xf32>
      %294 = arith.mulf %278, %286 : vector<2x32xf32>
      %295 = arith.addf %293, %294 : vector<2x32xf32>
      %296 = math.tanh %295 : vector<2x32xf32>
      %297 = arith.mulf %292, %296 : vector<2x32xf32>
      %298 = vector.extract_strided_slice %7 {offsets = [20, 0], sizes = [2, 128], strides = [1, 1]} : vector<32x128xf32> to vector<2x128xf32>
      %cst_54 = arith.constant dense<0.000000e+00> : vector<2x128xf32>
      %299 = tpu.matmul %297, %9, %cst_54 {dimension_numbers = #tpu.dot_dimension_numbers<[1], [0], [0], [1], [0, 0, 1, 1], [], []>} : vector<2x32xf32>, vector<32x128xf32>, vector<2x128xf32> -> vector<2x128xf32>
      %300 = arith.addf %298, %299 : vector<2x128xf32>
      %301 = vector.extract_strided_slice %300 {offsets = [0, 0], sizes = [2, 32], strides = [1, 1]} : vector<2x128xf32> to vector<2x32xf32>
      %302 = arith.negf %301 : vector<2x32xf32>
      %303 = math.exp %302 : vector<2x32xf32>
      %cst_55 = arith.constant 1.000000e+00 : f32
      %304 = vector.broadcast %cst_55 : f32 to vector<2x32xf32>
      %305 = arith.addf %304, %303 : vector<2x32xf32>
      %306 = arith.divf %304, %305 : vector<2x32xf32>
      %307 = vector.extract_strided_slice %300 {offsets = [0, 32], sizes = [2, 32], strides = [1, 1]} : vector<2x128xf32> to vector<2x32xf32>
      %308 = arith.negf %307 : vector<2x32xf32>
      %309 = math.exp %308 : vector<2x32xf32>
      %cst_56 = arith.constant 1.000000e+00 : f32
      %310 = vector.broadcast %cst_56 : f32 to vector<2x32xf32>
      %311 = arith.addf %310, %309 : vector<2x32xf32>
      %312 = arith.divf %310, %311 : vector<2x32xf32>
      %313 = vector.extract_strided_slice %300 {offsets = [0, 64], sizes = [2, 32], strides = [1, 1]} : vector<2x128xf32> to vector<2x32xf32>
      %314 = math.tanh %313 : vector<2x32xf32>
      %315 = vector.extract_strided_slice %300 {offsets = [0, 96], sizes = [2, 32], strides = [1, 1]} : vector<2x128xf32> to vector<2x32xf32>
      %316 = arith.negf %315 : vector<2x32xf32>
      %317 = math.exp %316 : vector<2x32xf32>
      %cst_57 = arith.constant 1.000000e+00 : f32
      %318 = vector.broadcast %cst_57 : f32 to vector<2x32xf32>
      %319 = arith.addf %318, %317 : vector<2x32xf32>
      %320 = arith.divf %318, %319 : vector<2x32xf32>
      %321 = arith.mulf %312, %295 : vector<2x32xf32>
      %322 = arith.mulf %306, %314 : vector<2x32xf32>
      %323 = arith.addf %321, %322 : vector<2x32xf32>
      %324 = math.tanh %323 : vector<2x32xf32>
      %325 = arith.mulf %320, %324 : vector<2x32xf32>
      %326 = vector.extract_strided_slice %7 {offsets = [22, 0], sizes = [2, 128], strides = [1, 1]} : vector<32x128xf32> to vector<2x128xf32>
      %cst_58 = arith.constant dense<0.000000e+00> : vector<2x128xf32>
      %327 = tpu.matmul %325, %9, %cst_58 {dimension_numbers = #tpu.dot_dimension_numbers<[1], [0], [0], [1], [0, 0, 1, 1], [], []>} : vector<2x32xf32>, vector<32x128xf32>, vector<2x128xf32> -> vector<2x128xf32>
      %328 = arith.addf %326, %327 : vector<2x128xf32>
      %329 = vector.extract_strided_slice %328 {offsets = [0, 0], sizes = [2, 32], strides = [1, 1]} : vector<2x128xf32> to vector<2x32xf32>
      %330 = arith.negf %329 : vector<2x32xf32>
      %331 = math.exp %330 : vector<2x32xf32>
      %cst_59 = arith.constant 1.000000e+00 : f32
      %332 = vector.broadcast %cst_59 : f32 to vector<2x32xf32>
      %333 = arith.addf %332, %331 : vector<2x32xf32>
      %334 = arith.divf %332, %333 : vector<2x32xf32>
      %335 = vector.extract_strided_slice %328 {offsets = [0, 32], sizes = [2, 32], strides = [1, 1]} : vector<2x128xf32> to vector<2x32xf32>
      %336 = arith.negf %335 : vector<2x32xf32>
      %337 = math.exp %336 : vector<2x32xf32>
      %cst_60 = arith.constant 1.000000e+00 : f32
      %338 = vector.broadcast %cst_60 : f32 to vector<2x32xf32>
      %339 = arith.addf %338, %337 : vector<2x32xf32>
      %340 = arith.divf %338, %339 : vector<2x32xf32>
      %341 = vector.extract_strided_slice %328 {offsets = [0, 64], sizes = [2, 32], strides = [1, 1]} : vector<2x128xf32> to vector<2x32xf32>
      %342 = math.tanh %341 : vector<2x32xf32>
      %343 = vector.extract_strided_slice %328 {offsets = [0, 96], sizes = [2, 32], strides = [1, 1]} : vector<2x128xf32> to vector<2x32xf32>
      %344 = arith.negf %343 : vector<2x32xf32>
      %345 = math.exp %344 : vector<2x32xf32>
      %cst_61 = arith.constant 1.000000e+00 : f32
      %346 = vector.broadcast %cst_61 : f32 to vector<2x32xf32>
      %347 = arith.addf %346, %345 : vector<2x32xf32>
      %348 = arith.divf %346, %347 : vector<2x32xf32>
      %349 = arith.mulf %340, %323 : vector<2x32xf32>
      %350 = arith.mulf %334, %342 : vector<2x32xf32>
      %351 = arith.addf %349, %350 : vector<2x32xf32>
      %352 = math.tanh %351 : vector<2x32xf32>
      %353 = arith.mulf %348, %352 : vector<2x32xf32>
      %354 = vector.extract_strided_slice %7 {offsets = [24, 0], sizes = [2, 128], strides = [1, 1]} : vector<32x128xf32> to vector<2x128xf32>
      %cst_62 = arith.constant dense<0.000000e+00> : vector<2x128xf32>
      %355 = tpu.matmul %353, %9, %cst_62 {dimension_numbers = #tpu.dot_dimension_numbers<[1], [0], [0], [1], [0, 0, 1, 1], [], []>} : vector<2x32xf32>, vector<32x128xf32>, vector<2x128xf32> -> vector<2x128xf32>
      %356 = arith.addf %354, %355 : vector<2x128xf32>
      %357 = vector.extract_strided_slice %356 {offsets = [0, 0], sizes = [2, 32], strides = [1, 1]} : vector<2x128xf32> to vector<2x32xf32>
      %358 = arith.negf %357 : vector<2x32xf32>
      %359 = math.exp %358 : vector<2x32xf32>
      %cst_63 = arith.constant 1.000000e+00 : f32
      %360 = vector.broadcast %cst_63 : f32 to vector<2x32xf32>
      %361 = arith.addf %360, %359 : vector<2x32xf32>
      %362 = arith.divf %360, %361 : vector<2x32xf32>
      %363 = vector.extract_strided_slice %356 {offsets = [0, 32], sizes = [2, 32], strides = [1, 1]} : vector<2x128xf32> to vector<2x32xf32>
      %364 = arith.negf %363 : vector<2x32xf32>
      %365 = math.exp %364 : vector<2x32xf32>
      %cst_64 = arith.constant 1.000000e+00 : f32
      %366 = vector.broadcast %cst_64 : f32 to vector<2x32xf32>
      %367 = arith.addf %366, %365 : vector<2x32xf32>
      %368 = arith.divf %366, %367 : vector<2x32xf32>
      %369 = vector.extract_strided_slice %356 {offsets = [0, 64], sizes = [2, 32], strides = [1, 1]} : vector<2x128xf32> to vector<2x32xf32>
      %370 = math.tanh %369 : vector<2x32xf32>
      %371 = vector.extract_strided_slice %356 {offsets = [0, 96], sizes = [2, 32], strides = [1, 1]} : vector<2x128xf32> to vector<2x32xf32>
      %372 = arith.negf %371 : vector<2x32xf32>
      %373 = math.exp %372 : vector<2x32xf32>
      %cst_65 = arith.constant 1.000000e+00 : f32
      %374 = vector.broadcast %cst_65 : f32 to vector<2x32xf32>
      %375 = arith.addf %374, %373 : vector<2x32xf32>
      %376 = arith.divf %374, %375 : vector<2x32xf32>
      %377 = arith.mulf %368, %351 : vector<2x32xf32>
      %378 = arith.mulf %362, %370 : vector<2x32xf32>
      %379 = arith.addf %377, %378 : vector<2x32xf32>
      %380 = math.tanh %379 : vector<2x32xf32>
      %381 = arith.mulf %376, %380 : vector<2x32xf32>
      %382 = vector.extract_strided_slice %7 {offsets = [26, 0], sizes = [2, 128], strides = [1, 1]} : vector<32x128xf32> to vector<2x128xf32>
      %cst_66 = arith.constant dense<0.000000e+00> : vector<2x128xf32>
      %383 = tpu.matmul %381, %9, %cst_66 {dimension_numbers = #tpu.dot_dimension_numbers<[1], [0], [0], [1], [0, 0, 1, 1], [], []>} : vector<2x32xf32>, vector<32x128xf32>, vector<2x128xf32> -> vector<2x128xf32>
      %384 = arith.addf %382, %383 : vector<2x128xf32>
      %385 = vector.extract_strided_slice %384 {offsets = [0, 0], sizes = [2, 32], strides = [1, 1]} : vector<2x128xf32> to vector<2x32xf32>
      %386 = arith.negf %385 : vector<2x32xf32>
      %387 = math.exp %386 : vector<2x32xf32>
      %cst_67 = arith.constant 1.000000e+00 : f32
      %388 = vector.broadcast %cst_67 : f32 to vector<2x32xf32>
      %389 = arith.addf %388, %387 : vector<2x32xf32>
      %390 = arith.divf %388, %389 : vector<2x32xf32>
      %391 = vector.extract_strided_slice %384 {offsets = [0, 32], sizes = [2, 32], strides = [1, 1]} : vector<2x128xf32> to vector<2x32xf32>
      %392 = arith.negf %391 : vector<2x32xf32>
      %393 = math.exp %392 : vector<2x32xf32>
      %cst_68 = arith.constant 1.000000e+00 : f32
      %394 = vector.broadcast %cst_68 : f32 to vector<2x32xf32>
      %395 = arith.addf %394, %393 : vector<2x32xf32>
      %396 = arith.divf %394, %395 : vector<2x32xf32>
      %397 = vector.extract_strided_slice %384 {offsets = [0, 64], sizes = [2, 32], strides = [1, 1]} : vector<2x128xf32> to vector<2x32xf32>
      %398 = math.tanh %397 : vector<2x32xf32>
      %399 = vector.extract_strided_slice %384 {offsets = [0, 96], sizes = [2, 32], strides = [1, 1]} : vector<2x128xf32> to vector<2x32xf32>
      %400 = arith.negf %399 : vector<2x32xf32>
      %401 = math.exp %400 : vector<2x32xf32>
      %cst_69 = arith.constant 1.000000e+00 : f32
      %402 = vector.broadcast %cst_69 : f32 to vector<2x32xf32>
      %403 = arith.addf %402, %401 : vector<2x32xf32>
      %404 = arith.divf %402, %403 : vector<2x32xf32>
      %405 = arith.mulf %396, %379 : vector<2x32xf32>
      %406 = arith.mulf %390, %398 : vector<2x32xf32>
      %407 = arith.addf %405, %406 : vector<2x32xf32>
      %408 = math.tanh %407 : vector<2x32xf32>
      %409 = arith.mulf %404, %408 : vector<2x32xf32>
      %410 = vector.extract_strided_slice %7 {offsets = [28, 0], sizes = [2, 128], strides = [1, 1]} : vector<32x128xf32> to vector<2x128xf32>
      %cst_70 = arith.constant dense<0.000000e+00> : vector<2x128xf32>
      %411 = tpu.matmul %409, %9, %cst_70 {dimension_numbers = #tpu.dot_dimension_numbers<[1], [0], [0], [1], [0, 0, 1, 1], [], []>} : vector<2x32xf32>, vector<32x128xf32>, vector<2x128xf32> -> vector<2x128xf32>
      %412 = arith.addf %410, %411 : vector<2x128xf32>
      %413 = vector.extract_strided_slice %412 {offsets = [0, 0], sizes = [2, 32], strides = [1, 1]} : vector<2x128xf32> to vector<2x32xf32>
      %414 = arith.negf %413 : vector<2x32xf32>
      %415 = math.exp %414 : vector<2x32xf32>
      %cst_71 = arith.constant 1.000000e+00 : f32
      %416 = vector.broadcast %cst_71 : f32 to vector<2x32xf32>
      %417 = arith.addf %416, %415 : vector<2x32xf32>
      %418 = arith.divf %416, %417 : vector<2x32xf32>
      %419 = vector.extract_strided_slice %412 {offsets = [0, 32], sizes = [2, 32], strides = [1, 1]} : vector<2x128xf32> to vector<2x32xf32>
      %420 = arith.negf %419 : vector<2x32xf32>
      %421 = math.exp %420 : vector<2x32xf32>
      %cst_72 = arith.constant 1.000000e+00 : f32
      %422 = vector.broadcast %cst_72 : f32 to vector<2x32xf32>
      %423 = arith.addf %422, %421 : vector<2x32xf32>
      %424 = arith.divf %422, %423 : vector<2x32xf32>
      %425 = vector.extract_strided_slice %412 {offsets = [0, 64], sizes = [2, 32], strides = [1, 1]} : vector<2x128xf32> to vector<2x32xf32>
      %426 = math.tanh %425 : vector<2x32xf32>
      %427 = vector.extract_strided_slice %412 {offsets = [0, 96], sizes = [2, 32], strides = [1, 1]} : vector<2x128xf32> to vector<2x32xf32>
      %428 = arith.negf %427 : vector<2x32xf32>
      %429 = math.exp %428 : vector<2x32xf32>
      %cst_73 = arith.constant 1.000000e+00 : f32
      %430 = vector.broadcast %cst_73 : f32 to vector<2x32xf32>
      %431 = arith.addf %430, %429 : vector<2x32xf32>
      %432 = arith.divf %430, %431 : vector<2x32xf32>
      %433 = arith.mulf %424, %407 : vector<2x32xf32>
      %434 = arith.mulf %418, %426 : vector<2x32xf32>
      %435 = arith.addf %433, %434 : vector<2x32xf32>
      %436 = math.tanh %435 : vector<2x32xf32>
      %437 = arith.mulf %432, %436 : vector<2x32xf32>
      %438 = vector.extract_strided_slice %7 {offsets = [30, 0], sizes = [2, 128], strides = [1, 1]} : vector<32x128xf32> to vector<2x128xf32>
      %cst_74 = arith.constant dense<0.000000e+00> : vector<2x128xf32>
      %439 = tpu.matmul %437, %9, %cst_74 {dimension_numbers = #tpu.dot_dimension_numbers<[1], [0], [0], [1], [0, 0, 1, 1], [], []>} : vector<2x32xf32>, vector<32x128xf32>, vector<2x128xf32> -> vector<2x128xf32>
      %440 = arith.addf %438, %439 : vector<2x128xf32>
      %441 = vector.extract_strided_slice %440 {offsets = [0, 0], sizes = [2, 32], strides = [1, 1]} : vector<2x128xf32> to vector<2x32xf32>
      %442 = arith.negf %441 : vector<2x32xf32>
      %443 = math.exp %442 : vector<2x32xf32>
      %cst_75 = arith.constant 1.000000e+00 : f32
      %444 = vector.broadcast %cst_75 : f32 to vector<2x32xf32>
      %445 = arith.addf %444, %443 : vector<2x32xf32>
      %446 = arith.divf %444, %445 : vector<2x32xf32>
      %447 = vector.extract_strided_slice %440 {offsets = [0, 32], sizes = [2, 32], strides = [1, 1]} : vector<2x128xf32> to vector<2x32xf32>
      %448 = arith.negf %447 : vector<2x32xf32>
      %449 = math.exp %448 : vector<2x32xf32>
      %cst_76 = arith.constant 1.000000e+00 : f32
      %450 = vector.broadcast %cst_76 : f32 to vector<2x32xf32>
      %451 = arith.addf %450, %449 : vector<2x32xf32>
      %452 = arith.divf %450, %451 : vector<2x32xf32>
      %453 = vector.extract_strided_slice %440 {offsets = [0, 64], sizes = [2, 32], strides = [1, 1]} : vector<2x128xf32> to vector<2x32xf32>
      %454 = math.tanh %453 : vector<2x32xf32>
      %455 = vector.extract_strided_slice %440 {offsets = [0, 96], sizes = [2, 32], strides = [1, 1]} : vector<2x128xf32> to vector<2x32xf32>
      %456 = arith.negf %455 : vector<2x32xf32>
      %457 = math.exp %456 : vector<2x32xf32>
      %cst_77 = arith.constant 1.000000e+00 : f32
      %458 = vector.broadcast %cst_77 : f32 to vector<2x32xf32>
      %459 = arith.addf %458, %457 : vector<2x32xf32>
      %460 = arith.divf %458, %459 : vector<2x32xf32>
      %461 = arith.mulf %452, %435 : vector<2x32xf32>
      %462 = arith.mulf %446, %454 : vector<2x32xf32>
      %463 = arith.addf %461, %462 : vector<2x32xf32>
      %464 = math.tanh %463 : vector<2x32xf32>
      %465 = arith.mulf %460, %464 : vector<2x32xf32>
      %466 = tpu.concatenate %45, %73, %101, %129, %157, %185, %213, %241, %269, %297, %325, %353, %381, %409, %437, %465 in 0 : vector<2x32xf32>, vector<2x32xf32>, vector<2x32xf32>, vector<2x32xf32>, vector<2x32xf32>, vector<2x32xf32>, vector<2x32xf32>, vector<2x32xf32>, vector<2x32xf32>, vector<2x32xf32>, vector<2x32xf32>, vector<2x32xf32>, vector<2x32xf32>, vector<2x32xf32>, vector<2x32xf32>, vector<2x32xf32> -> vector<32x32xf32>
      %c0_78 = arith.constant 0 : index
      %c0_79 = arith.constant 0 : index
      %c0_80 = arith.constant 0 : index
      %467 = vector.load %arg5[%c0_78, %c0_79, %c0_80] : memref<1x32x32xf32, #tpu.memory_space<vmem>>, vector<1x32x32xf32>
      %468 = vector.shape_cast %467 : vector<1x32x32xf32> to vector<32x32xf32>
      %469 = vector.shape_cast %466 : vector<32x32xf32> to vector<1x32x32xf32>
      tpu.vector_store %arg5[%c0_78, %c0_79, %c0_80], %469 {strides = array<i32>} : memref<1x32x32xf32, #tpu.memory_space<vmem>>, vector<1x32x32xf32>,
    } else {
    }
    %c1_i32 = arith.constant 1 : i32
    %13 = arith.cmpi eq, %arg0, %c1_i32 : i32
    %14 = arith.extui %13 : i1 to i32
    %c0_i32_11 = arith.constant 0 : i32
    %15 = arith.cmpi ne, %14, %c0_i32_11 : i32
    scf.if %15 {
      %cst_12 = arith.constant 0.000000e+00 : f32
      %16 = vector.broadcast %cst_12 : f32 to vector<2x32xf32>
      %cst_13 = arith.constant 0.000000e+00 : f32
      %17 = vector.broadcast %cst_13 : f32 to vector<2x32xf32>
      %18 = vector.extract_strided_slice %7 {offsets = [30, 0], sizes = [2, 128], strides = [1, 1]} : vector<32x128xf32> to vector<2x128xf32>
      %cst_14 = arith.constant dense<0.000000e+00> : vector<2x128xf32>
      %19 = tpu.matmul %16, %9, %cst_14 {dimension_numbers = #tpu.dot_dimension_numbers<[1], [0], [0], [1], [0, 0, 1, 1], [], []>} : vector<2x32xf32>, vector<32x128xf32>, vector<2x128xf32> -> vector<2x128xf32>
      %20 = arith.addf %18, %19 : vector<2x128xf32>
      %21 = vector.extract_strided_slice %20 {offsets = [0, 0], sizes = [2, 32], strides = [1, 1]} : vector<2x128xf32> to vector<2x32xf32>
      %22 = arith.negf %21 : vector<2x32xf32>
      %23 = math.exp %22 : vector<2x32xf32>
      %cst_15 = arith.constant 1.000000e+00 : f32
      %24 = vector.broadcast %cst_15 : f32 to vector<2x32xf32>
      %25 = arith.addf %24, %23 : vector<2x32xf32>
      %26 = arith.divf %24, %25 : vector<2x32xf32>
      %27 = vector.extract_strided_slice %20 {offsets = [0, 32], sizes = [2, 32], strides = [1, 1]} : vector<2x128xf32> to vector<2x32xf32>
      %28 = arith.negf %27 : vector<2x32xf32>
      %29 = math.exp %28 : vector<2x32xf32>
      %cst_16 = arith.constant 1.000000e+00 : f32
      %30 = vector.broadcast %cst_16 : f32 to vector<2x32xf32>
      %31 = arith.addf %30, %29 : vector<2x32xf32>
      %32 = arith.divf %30, %31 : vector<2x32xf32>
      %33 = vector.extract_strided_slice %20 {offsets = [0, 64], sizes = [2, 32], strides = [1, 1]} : vector<2x128xf32> to vector<2x32xf32>
      %34 = math.tanh %33 : vector<2x32xf32>
      %35 = vector.extract_strided_slice %20 {offsets = [0, 96], sizes = [2, 32], strides = [1, 1]} : vector<2x128xf32> to vector<2x32xf32>
      %36 = arith.negf %35 : vector<2x32xf32>
      %37 = math.exp %36 : vector<2x32xf32>
      %cst_17 = arith.constant 1.000000e+00 : f32
      %38 = vector.broadcast %cst_17 : f32 to vector<2x32xf32>
      %39 = arith.addf %38, %37 : vector<2x32xf32>
      %40 = arith.divf %38, %39 : vector<2x32xf32>
      %41 = arith.mulf %32, %17 : vector<2x32xf32>
      %42 = arith.mulf %26, %34 : vector<2x32xf32>
      %43 = arith.addf %41, %42 : vector<2x32xf32>
      %44 = math.tanh %43 : vector<2x32xf32>
      %45 = arith.mulf %40, %44 : vector<2x32xf32>
      %46 = vector.extract_strided_slice %7 {offsets = [28, 0], sizes = [2, 128], strides = [1, 1]} : vector<32x128xf32> to vector<2x128xf32>
      %cst_18 = arith.constant dense<0.000000e+00> : vector<2x128xf32>
      %47 = tpu.matmul %45, %9, %cst_18 {dimension_numbers = #tpu.dot_dimension_numbers<[1], [0], [0], [1], [0, 0, 1, 1], [], []>} : vector<2x32xf32>, vector<32x128xf32>, vector<2x128xf32> -> vector<2x128xf32>
      %48 = arith.addf %46, %47 : vector<2x128xf32>
      %49 = vector.extract_strided_slice %48 {offsets = [0, 0], sizes = [2, 32], strides = [1, 1]} : vector<2x128xf32> to vector<2x32xf32>
      %50 = arith.negf %49 : vector<2x32xf32>
      %51 = math.exp %50 : vector<2x32xf32>
      %cst_19 = arith.constant 1.000000e+00 : f32
      %52 = vector.broadcast %cst_19 : f32 to vector<2x32xf32>
      %53 = arith.addf %52, %51 : vector<2x32xf32>
      %54 = arith.divf %52, %53 : vector<2x32xf32>
      %55 = vector.extract_strided_slice %48 {offsets = [0, 32], sizes = [2, 32], strides = [1, 1]} : vector<2x128xf32> to vector<2x32xf32>
      %56 = arith.negf %55 : vector<2x32xf32>
      %57 = math.exp %56 : vector<2x32xf32>
      %cst_20 = arith.constant 1.000000e+00 : f32
      %58 = vector.broadcast %cst_20 : f32 to vector<2x32xf32>
      %59 = arith.addf %58, %57 : vector<2x32xf32>
      %60 = arith.divf %58, %59 : vector<2x32xf32>
      %61 = vector.extract_strided_slice %48 {offsets = [0, 64], sizes = [2, 32], strides = [1, 1]} : vector<2x128xf32> to vector<2x32xf32>
      %62 = math.tanh %61 : vector<2x32xf32>
      %63 = vector.extract_strided_slice %48 {offsets = [0, 96], sizes = [2, 32], strides = [1, 1]} : vector<2x128xf32> to vector<2x32xf32>
      %64 = arith.negf %63 : vector<2x32xf32>
      %65 = math.exp %64 : vector<2x32xf32>
      %cst_21 = arith.constant 1.000000e+00 : f32
      %66 = vector.broadcast %cst_21 : f32 to vector<2x32xf32>
      %67 = arith.addf %66, %65 : vector<2x32xf32>
      %68 = arith.divf %66, %67 : vector<2x32xf32>
      %69 = arith.mulf %60, %43 : vector<2x32xf32>
      %70 = arith.mulf %54, %62 : vector<2x32xf32>
      %71 = arith.addf %69, %70 : vector<2x32xf32>
      %72 = math.tanh %71 : vector<2x32xf32>
      %73 = arith.mulf %68, %72 : vector<2x32xf32>
      %74 = vector.extract_strided_slice %7 {offsets = [26, 0], sizes = [2, 128], strides = [1, 1]} : vector<32x128xf32> to vector<2x128xf32>
      %cst_22 = arith.constant dense<0.000000e+00> : vector<2x128xf32>
      %75 = tpu.matmul %73, %9, %cst_22 {dimension_numbers = #tpu.dot_dimension_numbers<[1], [0], [0], [1], [0, 0, 1, 1], [], []>} : vector<2x32xf32>, vector<32x128xf32>, vector<2x128xf32> -> vector<2x128xf32>
      %76 = arith.addf %74, %75 : vector<2x128xf32>
      %77 = vector.extract_strided_slice %76 {offsets = [0, 0], sizes = [2, 32], strides = [1, 1]} : vector<2x128xf32> to vector<2x32xf32>
      %78 = arith.negf %77 : vector<2x32xf32>
      %79 = math.exp %78 : vector<2x32xf32>
      %cst_23 = arith.constant 1.000000e+00 : f32
      %80 = vector.broadcast %cst_23 : f32 to vector<2x32xf32>
      %81 = arith.addf %80, %79 : vector<2x32xf32>
      %82 = arith.divf %80, %81 : vector<2x32xf32>
      %83 = vector.extract_strided_slice %76 {offsets = [0, 32], sizes = [2, 32], strides = [1, 1]} : vector<2x128xf32> to vector<2x32xf32>
      %84 = arith.negf %83 : vector<2x32xf32>
      %85 = math.exp %84 : vector<2x32xf32>
      %cst_24 = arith.constant 1.000000e+00 : f32
      %86 = vector.broadcast %cst_24 : f32 to vector<2x32xf32>
      %87 = arith.addf %86, %85 : vector<2x32xf32>
      %88 = arith.divf %86, %87 : vector<2x32xf32>
      %89 = vector.extract_strided_slice %76 {offsets = [0, 64], sizes = [2, 32], strides = [1, 1]} : vector<2x128xf32> to vector<2x32xf32>
      %90 = math.tanh %89 : vector<2x32xf32>
      %91 = vector.extract_strided_slice %76 {offsets = [0, 96], sizes = [2, 32], strides = [1, 1]} : vector<2x128xf32> to vector<2x32xf32>
      %92 = arith.negf %91 : vector<2x32xf32>
      %93 = math.exp %92 : vector<2x32xf32>
      %cst_25 = arith.constant 1.000000e+00 : f32
      %94 = vector.broadcast %cst_25 : f32 to vector<2x32xf32>
      %95 = arith.addf %94, %93 : vector<2x32xf32>
      %96 = arith.divf %94, %95 : vector<2x32xf32>
      %97 = arith.mulf %88, %71 : vector<2x32xf32>
      %98 = arith.mulf %82, %90 : vector<2x32xf32>
      %99 = arith.addf %97, %98 : vector<2x32xf32>
      %100 = math.tanh %99 : vector<2x32xf32>
      %101 = arith.mulf %96, %100 : vector<2x32xf32>
      %102 = vector.extract_strided_slice %7 {offsets = [24, 0], sizes = [2, 128], strides = [1, 1]} : vector<32x128xf32> to vector<2x128xf32>
      %cst_26 = arith.constant dense<0.000000e+00> : vector<2x128xf32>
      %103 = tpu.matmul %101, %9, %cst_26 {dimension_numbers = #tpu.dot_dimension_numbers<[1], [0], [0], [1], [0, 0, 1, 1], [], []>} : vector<2x32xf32>, vector<32x128xf32>, vector<2x128xf32> -> vector<2x128xf32>
      %104 = arith.addf %102, %103 : vector<2x128xf32>
      %105 = vector.extract_strided_slice %104 {offsets = [0, 0], sizes = [2, 32], strides = [1, 1]} : vector<2x128xf32> to vector<2x32xf32>
      %106 = arith.negf %105 : vector<2x32xf32>
      %107 = math.exp %106 : vector<2x32xf32>
      %cst_27 = arith.constant 1.000000e+00 : f32
      %108 = vector.broadcast %cst_27 : f32 to vector<2x32xf32>
      %109 = arith.addf %108, %107 : vector<2x32xf32>
      %110 = arith.divf %108, %109 : vector<2x32xf32>
      %111 = vector.extract_strided_slice %104 {offsets = [0, 32], sizes = [2, 32], strides = [1, 1]} : vector<2x128xf32> to vector<2x32xf32>
      %112 = arith.negf %111 : vector<2x32xf32>
      %113 = math.exp %112 : vector<2x32xf32>
      %cst_28 = arith.constant 1.000000e+00 : f32
      %114 = vector.broadcast %cst_28 : f32 to vector<2x32xf32>
      %115 = arith.addf %114, %113 : vector<2x32xf32>
      %116 = arith.divf %114, %115 : vector<2x32xf32>
      %117 = vector.extract_strided_slice %104 {offsets = [0, 64], sizes = [2, 32], strides = [1, 1]} : vector<2x128xf32> to vector<2x32xf32>
      %118 = math.tanh %117 : vector<2x32xf32>
      %119 = vector.extract_strided_slice %104 {offsets = [0, 96], sizes = [2, 32], strides = [1, 1]} : vector<2x128xf32> to vector<2x32xf32>
      %120 = arith.negf %119 : vector<2x32xf32>
      %121 = math.exp %120 : vector<2x32xf32>
      %cst_29 = arith.constant 1.000000e+00 : f32
      %122 = vector.broadcast %cst_29 : f32 to vector<2x32xf32>
      %123 = arith.addf %122, %121 : vector<2x32xf32>
      %124 = arith.divf %122, %123 : vector<2x32xf32>
      %125 = arith.mulf %116, %99 : vector<2x32xf32>
      %126 = arith.mulf %110, %118 : vector<2x32xf32>
      %127 = arith.addf %125, %126 : vector<2x32xf32>
      %128 = math.tanh %127 : vector<2x32xf32>
      %129 = arith.mulf %124, %128 : vector<2x32xf32>
      %130 = vector.extract_strided_slice %7 {offsets = [22, 0], sizes = [2, 128], strides = [1, 1]} : vector<32x128xf32> to vector<2x128xf32>
      %cst_30 = arith.constant dense<0.000000e+00> : vector<2x128xf32>
      %131 = tpu.matmul %129, %9, %cst_30 {dimension_numbers = #tpu.dot_dimension_numbers<[1], [0], [0], [1], [0, 0, 1, 1], [], []>} : vector<2x32xf32>, vector<32x128xf32>, vector<2x128xf32> -> vector<2x128xf32>
      %132 = arith.addf %130, %131 : vector<2x128xf32>
      %133 = vector.extract_strided_slice %132 {offsets = [0, 0], sizes = [2, 32], strides = [1, 1]} : vector<2x128xf32> to vector<2x32xf32>
      %134 = arith.negf %133 : vector<2x32xf32>
      %135 = math.exp %134 : vector<2x32xf32>
      %cst_31 = arith.constant 1.000000e+00 : f32
      %136 = vector.broadcast %cst_31 : f32 to vector<2x32xf32>
      %137 = arith.addf %136, %135 : vector<2x32xf32>
      %138 = arith.divf %136, %137 : vector<2x32xf32>
      %139 = vector.extract_strided_slice %132 {offsets = [0, 32], sizes = [2, 32], strides = [1, 1]} : vector<2x128xf32> to vector<2x32xf32>
      %140 = arith.negf %139 : vector<2x32xf32>
      %141 = math.exp %140 : vector<2x32xf32>
      %cst_32 = arith.constant 1.000000e+00 : f32
      %142 = vector.broadcast %cst_32 : f32 to vector<2x32xf32>
      %143 = arith.addf %142, %141 : vector<2x32xf32>
      %144 = arith.divf %142, %143 : vector<2x32xf32>
      %145 = vector.extract_strided_slice %132 {offsets = [0, 64], sizes = [2, 32], strides = [1, 1]} : vector<2x128xf32> to vector<2x32xf32>
      %146 = math.tanh %145 : vector<2x32xf32>
      %147 = vector.extract_strided_slice %132 {offsets = [0, 96], sizes = [2, 32], strides = [1, 1]} : vector<2x128xf32> to vector<2x32xf32>
      %148 = arith.negf %147 : vector<2x32xf32>
      %149 = math.exp %148 : vector<2x32xf32>
      %cst_33 = arith.constant 1.000000e+00 : f32
      %150 = vector.broadcast %cst_33 : f32 to vector<2x32xf32>
      %151 = arith.addf %150, %149 : vector<2x32xf32>
      %152 = arith.divf %150, %151 : vector<2x32xf32>
      %153 = arith.mulf %144, %127 : vector<2x32xf32>
      %154 = arith.mulf %138, %146 : vector<2x32xf32>
      %155 = arith.addf %153, %154 : vector<2x32xf32>
      %156 = math.tanh %155 : vector<2x32xf32>
      %157 = arith.mulf %152, %156 : vector<2x32xf32>
      %158 = vector.extract_strided_slice %7 {offsets = [20, 0], sizes = [2, 128], strides = [1, 1]} : vector<32x128xf32> to vector<2x128xf32>
      %cst_34 = arith.constant dense<0.000000e+00> : vector<2x128xf32>
      %159 = tpu.matmul %157, %9, %cst_34 {dimension_numbers = #tpu.dot_dimension_numbers<[1], [0], [0], [1], [0, 0, 1, 1], [], []>} : vector<2x32xf32>, vector<32x128xf32>, vector<2x128xf32> -> vector<2x128xf32>
      %160 = arith.addf %158, %159 : vector<2x128xf32>
      %161 = vector.extract_strided_slice %160 {offsets = [0, 0], sizes = [2, 32], strides = [1, 1]} : vector<2x128xf32> to vector<2x32xf32>
      %162 = arith.negf %161 : vector<2x32xf32>
      %163 = math.exp %162 : vector<2x32xf32>
      %cst_35 = arith.constant 1.000000e+00 : f32
      %164 = vector.broadcast %cst_35 : f32 to vector<2x32xf32>
      %165 = arith.addf %164, %163 : vector<2x32xf32>
      %166 = arith.divf %164, %165 : vector<2x32xf32>
      %167 = vector.extract_strided_slice %160 {offsets = [0, 32], sizes = [2, 32], strides = [1, 1]} : vector<2x128xf32> to vector<2x32xf32>
      %168 = arith.negf %167 : vector<2x32xf32>
      %169 = math.exp %168 : vector<2x32xf32>
      %cst_36 = arith.constant 1.000000e+00 : f32
      %170 = vector.broadcast %cst_36 : f32 to vector<2x32xf32>
      %171 = arith.addf %170, %169 : vector<2x32xf32>
      %172 = arith.divf %170, %171 : vector<2x32xf32>
      %173 = vector.extract_strided_slice %160 {offsets = [0, 64], sizes = [2, 32], strides = [1, 1]} : vector<2x128xf32> to vector<2x32xf32>
      %174 = math.tanh %173 : vector<2x32xf32>
      %175 = vector.extract_strided_slice %160 {offsets = [0, 96], sizes = [2, 32], strides = [1, 1]} : vector<2x128xf32> to vector<2x32xf32>
      %176 = arith.negf %175 : vector<2x32xf32>
      %177 = math.exp %176 : vector<2x32xf32>
      %cst_37 = arith.constant 1.000000e+00 : f32
      %178 = vector.broadcast %cst_37 : f32 to vector<2x32xf32>
      %179 = arith.addf %178, %177 : vector<2x32xf32>
      %180 = arith.divf %178, %179 : vector<2x32xf32>
      %181 = arith.mulf %172, %155 : vector<2x32xf32>
      %182 = arith.mulf %166, %174 : vector<2x32xf32>
      %183 = arith.addf %181, %182 : vector<2x32xf32>
      %184 = math.tanh %183 : vector<2x32xf32>
      %185 = arith.mulf %180, %184 : vector<2x32xf32>
      %186 = vector.extract_strided_slice %7 {offsets = [18, 0], sizes = [2, 128], strides = [1, 1]} : vector<32x128xf32> to vector<2x128xf32>
      %cst_38 = arith.constant dense<0.000000e+00> : vector<2x128xf32>
      %187 = tpu.matmul %185, %9, %cst_38 {dimension_numbers = #tpu.dot_dimension_numbers<[1], [0], [0], [1], [0, 0, 1, 1], [], []>} : vector<2x32xf32>, vector<32x128xf32>, vector<2x128xf32> -> vector<2x128xf32>
      %188 = arith.addf %186, %187 : vector<2x128xf32>
      %189 = vector.extract_strided_slice %188 {offsets = [0, 0], sizes = [2, 32], strides = [1, 1]} : vector<2x128xf32> to vector<2x32xf32>
      %190 = arith.negf %189 : vector<2x32xf32>
      %191 = math.exp %190 : vector<2x32xf32>
      %cst_39 = arith.constant 1.000000e+00 : f32
      %192 = vector.broadcast %cst_39 : f32 to vector<2x32xf32>
      %193 = arith.addf %192, %191 : vector<2x32xf32>
      %194 = arith.divf %192, %193 : vector<2x32xf32>
      %195 = vector.extract_strided_slice %188 {offsets = [0, 32], sizes = [2, 32], strides = [1, 1]} : vector<2x128xf32> to vector<2x32xf32>
      %196 = arith.negf %195 : vector<2x32xf32>
      %197 = math.exp %196 : vector<2x32xf32>
      %cst_40 = arith.constant 1.000000e+00 : f32
      %198 = vector.broadcast %cst_40 : f32 to vector<2x32xf32>
      %199 = arith.addf %198, %197 : vector<2x32xf32>
      %200 = arith.divf %198, %199 : vector<2x32xf32>
      %201 = vector.extract_strided_slice %188 {offsets = [0, 64], sizes = [2, 32], strides = [1, 1]} : vector<2x128xf32> to vector<2x32xf32>
      %202 = math.tanh %201 : vector<2x32xf32>
      %203 = vector.extract_strided_slice %188 {offsets = [0, 96], sizes = [2, 32], strides = [1, 1]} : vector<2x128xf32> to vector<2x32xf32>
      %204 = arith.negf %203 : vector<2x32xf32>
      %205 = math.exp %204 : vector<2x32xf32>
      %cst_41 = arith.constant 1.000000e+00 : f32
      %206 = vector.broadcast %cst_41 : f32 to vector<2x32xf32>
      %207 = arith.addf %206, %205 : vector<2x32xf32>
      %208 = arith.divf %206, %207 : vector<2x32xf32>
      %209 = arith.mulf %200, %183 : vector<2x32xf32>
      %210 = arith.mulf %194, %202 : vector<2x32xf32>
      %211 = arith.addf %209, %210 : vector<2x32xf32>
      %212 = math.tanh %211 : vector<2x32xf32>
      %213 = arith.mulf %208, %212 : vector<2x32xf32>
      %214 = vector.extract_strided_slice %7 {offsets = [16, 0], sizes = [2, 128], strides = [1, 1]} : vector<32x128xf32> to vector<2x128xf32>
      %cst_42 = arith.constant dense<0.000000e+00> : vector<2x128xf32>
      %215 = tpu.matmul %213, %9, %cst_42 {dimension_numbers = #tpu.dot_dimension_numbers<[1], [0], [0], [1], [0, 0, 1, 1], [], []>} : vector<2x32xf32>, vector<32x128xf32>, vector<2x128xf32> -> vector<2x128xf32>
      %216 = arith.addf %214, %215 : vector<2x128xf32>
      %217 = vector.extract_strided_slice %216 {offsets = [0, 0], sizes = [2, 32], strides = [1, 1]} : vector<2x128xf32> to vector<2x32xf32>
      %218 = arith.negf %217 : vector<2x32xf32>
      %219 = math.exp %218 : vector<2x32xf32>
      %cst_43 = arith.constant 1.000000e+00 : f32
      %220 = vector.broadcast %cst_43 : f32 to vector<2x32xf32>
      %221 = arith.addf %220, %219 : vector<2x32xf32>
      %222 = arith.divf %220, %221 : vector<2x32xf32>
      %223 = vector.extract_strided_slice %216 {offsets = [0, 32], sizes = [2, 32], strides = [1, 1]} : vector<2x128xf32> to vector<2x32xf32>
      %224 = arith.negf %223 : vector<2x32xf32>
      %225 = math.exp %224 : vector<2x32xf32>
      %cst_44 = arith.constant 1.000000e+00 : f32
      %226 = vector.broadcast %cst_44 : f32 to vector<2x32xf32>
      %227 = arith.addf %226, %225 : vector<2x32xf32>
      %228 = arith.divf %226, %227 : vector<2x32xf32>
      %229 = vector.extract_strided_slice %216 {offsets = [0, 64], sizes = [2, 32], strides = [1, 1]} : vector<2x128xf32> to vector<2x32xf32>
      %230 = math.tanh %229 : vector<2x32xf32>
      %231 = vector.extract_strided_slice %216 {offsets = [0, 96], sizes = [2, 32], strides = [1, 1]} : vector<2x128xf32> to vector<2x32xf32>
      %232 = arith.negf %231 : vector<2x32xf32>
      %233 = math.exp %232 : vector<2x32xf32>
      %cst_45 = arith.constant 1.000000e+00 : f32
      %234 = vector.broadcast %cst_45 : f32 to vector<2x32xf32>
      %235 = arith.addf %234, %233 : vector<2x32xf32>
      %236 = arith.divf %234, %235 : vector<2x32xf32>
      %237 = arith.mulf %228, %211 : vector<2x32xf32>
      %238 = arith.mulf %222, %230 : vector<2x32xf32>
      %239 = arith.addf %237, %238 : vector<2x32xf32>
      %240 = math.tanh %239 : vector<2x32xf32>
      %241 = arith.mulf %236, %240 : vector<2x32xf32>
      %242 = vector.extract_strided_slice %7 {offsets = [14, 0], sizes = [2, 128], strides = [1, 1]} : vector<32x128xf32> to vector<2x128xf32>
      %cst_46 = arith.constant dense<0.000000e+00> : vector<2x128xf32>
      %243 = tpu.matmul %241, %9, %cst_46 {dimension_numbers = #tpu.dot_dimension_numbers<[1], [0], [0], [1], [0, 0, 1, 1], [], []>} : vector<2x32xf32>, vector<32x128xf32>, vector<2x128xf32> -> vector<2x128xf32>
      %244 = arith.addf %242, %243 : vector<2x128xf32>
      %245 = vector.extract_strided_slice %244 {offsets = [0, 0], sizes = [2, 32], strides = [1, 1]} : vector<2x128xf32> to vector<2x32xf32>
      %246 = arith.negf %245 : vector<2x32xf32>
      %247 = math.exp %246 : vector<2x32xf32>
      %cst_47 = arith.constant 1.000000e+00 : f32
      %248 = vector.broadcast %cst_47 : f32 to vector<2x32xf32>
      %249 = arith.addf %248, %247 : vector<2x32xf32>
      %250 = arith.divf %248, %249 : vector<2x32xf32>
      %251 = vector.extract_strided_slice %244 {offsets = [0, 32], sizes = [2, 32], strides = [1, 1]} : vector<2x128xf32> to vector<2x32xf32>
      %252 = arith.negf %251 : vector<2x32xf32>
      %253 = math.exp %252 : vector<2x32xf32>
      %cst_48 = arith.constant 1.000000e+00 : f32
      %254 = vector.broadcast %cst_48 : f32 to vector<2x32xf32>
      %255 = arith.addf %254, %253 : vector<2x32xf32>
      %256 = arith.divf %254, %255 : vector<2x32xf32>
      %257 = vector.extract_strided_slice %244 {offsets = [0, 64], sizes = [2, 32], strides = [1, 1]} : vector<2x128xf32> to vector<2x32xf32>
      %258 = math.tanh %257 : vector<2x32xf32>
      %259 = vector.extract_strided_slice %244 {offsets = [0, 96], sizes = [2, 32], strides = [1, 1]} : vector<2x128xf32> to vector<2x32xf32>
      %260 = arith.negf %259 : vector<2x32xf32>
      %261 = math.exp %260 : vector<2x32xf32>
      %cst_49 = arith.constant 1.000000e+00 : f32
      %262 = vector.broadcast %cst_49 : f32 to vector<2x32xf32>
      %263 = arith.addf %262, %261 : vector<2x32xf32>
      %264 = arith.divf %262, %263 : vector<2x32xf32>
      %265 = arith.mulf %256, %239 : vector<2x32xf32>
      %266 = arith.mulf %250, %258 : vector<2x32xf32>
      %267 = arith.addf %265, %266 : vector<2x32xf32>
      %268 = math.tanh %267 : vector<2x32xf32>
      %269 = arith.mulf %264, %268 : vector<2x32xf32>
      %270 = vector.extract_strided_slice %7 {offsets = [12, 0], sizes = [2, 128], strides = [1, 1]} : vector<32x128xf32> to vector<2x128xf32>
      %cst_50 = arith.constant dense<0.000000e+00> : vector<2x128xf32>
      %271 = tpu.matmul %269, %9, %cst_50 {dimension_numbers = #tpu.dot_dimension_numbers<[1], [0], [0], [1], [0, 0, 1, 1], [], []>} : vector<2x32xf32>, vector<32x128xf32>, vector<2x128xf32> -> vector<2x128xf32>
      %272 = arith.addf %270, %271 : vector<2x128xf32>
      %273 = vector.extract_strided_slice %272 {offsets = [0, 0], sizes = [2, 32], strides = [1, 1]} : vector<2x128xf32> to vector<2x32xf32>
      %274 = arith.negf %273 : vector<2x32xf32>
      %275 = math.exp %274 : vector<2x32xf32>
      %cst_51 = arith.constant 1.000000e+00 : f32
      %276 = vector.broadcast %cst_51 : f32 to vector<2x32xf32>
      %277 = arith.addf %276, %275 : vector<2x32xf32>
      %278 = arith.divf %276, %277 : vector<2x32xf32>
      %279 = vector.extract_strided_slice %272 {offsets = [0, 32], sizes = [2, 32], strides = [1, 1]} : vector<2x128xf32> to vector<2x32xf32>
      %280 = arith.negf %279 : vector<2x32xf32>
      %281 = math.exp %280 : vector<2x32xf32>
      %cst_52 = arith.constant 1.000000e+00 : f32
      %282 = vector.broadcast %cst_52 : f32 to vector<2x32xf32>
      %283 = arith.addf %282, %281 : vector<2x32xf32>
      %284 = arith.divf %282, %283 : vector<2x32xf32>
      %285 = vector.extract_strided_slice %272 {offsets = [0, 64], sizes = [2, 32], strides = [1, 1]} : vector<2x128xf32> to vector<2x32xf32>
      %286 = math.tanh %285 : vector<2x32xf32>
      %287 = vector.extract_strided_slice %272 {offsets = [0, 96], sizes = [2, 32], strides = [1, 1]} : vector<2x128xf32> to vector<2x32xf32>
      %288 = arith.negf %287 : vector<2x32xf32>
      %289 = math.exp %288 : vector<2x32xf32>
      %cst_53 = arith.constant 1.000000e+00 : f32
      %290 = vector.broadcast %cst_53 : f32 to vector<2x32xf32>
      %291 = arith.addf %290, %289 : vector<2x32xf32>
      %292 = arith.divf %290, %291 : vector<2x32xf32>
      %293 = arith.mulf %284, %267 : vector<2x32xf32>
      %294 = arith.mulf %278, %286 : vector<2x32xf32>
      %295 = arith.addf %293, %294 : vector<2x32xf32>
      %296 = math.tanh %295 : vector<2x32xf32>
      %297 = arith.mulf %292, %296 : vector<2x32xf32>
      %298 = vector.extract_strided_slice %7 {offsets = [10, 0], sizes = [2, 128], strides = [1, 1]} : vector<32x128xf32> to vector<2x128xf32>
      %cst_54 = arith.constant dense<0.000000e+00> : vector<2x128xf32>
      %299 = tpu.matmul %297, %9, %cst_54 {dimension_numbers = #tpu.dot_dimension_numbers<[1], [0], [0], [1], [0, 0, 1, 1], [], []>} : vector<2x32xf32>, vector<32x128xf32>, vector<2x128xf32> -> vector<2x128xf32>
      %300 = arith.addf %298, %299 : vector<2x128xf32>
      %301 = vector.extract_strided_slice %300 {offsets = [0, 0], sizes = [2, 32], strides = [1, 1]} : vector<2x128xf32> to vector<2x32xf32>
      %302 = arith.negf %301 : vector<2x32xf32>
      %303 = math.exp %302 : vector<2x32xf32>
      %cst_55 = arith.constant 1.000000e+00 : f32
      %304 = vector.broadcast %cst_55 : f32 to vector<2x32xf32>
      %305 = arith.addf %304, %303 : vector<2x32xf32>
      %306 = arith.divf %304, %305 : vector<2x32xf32>
      %307 = vector.extract_strided_slice %300 {offsets = [0, 32], sizes = [2, 32], strides = [1, 1]} : vector<2x128xf32> to vector<2x32xf32>
      %308 = arith.negf %307 : vector<2x32xf32>
      %309 = math.exp %308 : vector<2x32xf32>
      %cst_56 = arith.constant 1.000000e+00 : f32
      %310 = vector.broadcast %cst_56 : f32 to vector<2x32xf32>
      %311 = arith.addf %310, %309 : vector<2x32xf32>
      %312 = arith.divf %310, %311 : vector<2x32xf32>
      %313 = vector.extract_strided_slice %300 {offsets = [0, 64], sizes = [2, 32], strides = [1, 1]} : vector<2x128xf32> to vector<2x32xf32>
      %314 = math.tanh %313 : vector<2x32xf32>
      %315 = vector.extract_strided_slice %300 {offsets = [0, 96], sizes = [2, 32], strides = [1, 1]} : vector<2x128xf32> to vector<2x32xf32>
      %316 = arith.negf %315 : vector<2x32xf32>
      %317 = math.exp %316 : vector<2x32xf32>
      %cst_57 = arith.constant 1.000000e+00 : f32
      %318 = vector.broadcast %cst_57 : f32 to vector<2x32xf32>
      %319 = arith.addf %318, %317 : vector<2x32xf32>
      %320 = arith.divf %318, %319 : vector<2x32xf32>
      %321 = arith.mulf %312, %295 : vector<2x32xf32>
      %322 = arith.mulf %306, %314 : vector<2x32xf32>
      %323 = arith.addf %321, %322 : vector<2x32xf32>
      %324 = math.tanh %323 : vector<2x32xf32>
      %325 = arith.mulf %320, %324 : vector<2x32xf32>
      %326 = vector.extract_strided_slice %7 {offsets = [8, 0], sizes = [2, 128], strides = [1, 1]} : vector<32x128xf32> to vector<2x128xf32>
      %cst_58 = arith.constant dense<0.000000e+00> : vector<2x128xf32>
      %327 = tpu.matmul %325, %9, %cst_58 {dimension_numbers = #tpu.dot_dimension_numbers<[1], [0], [0], [1], [0, 0, 1, 1], [], []>} : vector<2x32xf32>, vector<32x128xf32>, vector<2x128xf32> -> vector<2x128xf32>
      %328 = arith.addf %326, %327 : vector<2x128xf32>
      %329 = vector.extract_strided_slice %328 {offsets = [0, 0], sizes = [2, 32], strides = [1, 1]} : vector<2x128xf32> to vector<2x32xf32>
      %330 = arith.negf %329 : vector<2x32xf32>
      %331 = math.exp %330 : vector<2x32xf32>
      %cst_59 = arith.constant 1.000000e+00 : f32
      %332 = vector.broadcast %cst_59 : f32 to vector<2x32xf32>
      %333 = arith.addf %332, %331 : vector<2x32xf32>
      %334 = arith.divf %332, %333 : vector<2x32xf32>
      %335 = vector.extract_strided_slice %328 {offsets = [0, 32], sizes = [2, 32], strides = [1, 1]} : vector<2x128xf32> to vector<2x32xf32>
      %336 = arith.negf %335 : vector<2x32xf32>
      %337 = math.exp %336 : vector<2x32xf32>
      %cst_60 = arith.constant 1.000000e+00 : f32
      %338 = vector.broadcast %cst_60 : f32 to vector<2x32xf32>
      %339 = arith.addf %338, %337 : vector<2x32xf32>
      %340 = arith.divf %338, %339 : vector<2x32xf32>
      %341 = vector.extract_strided_slice %328 {offsets = [0, 64], sizes = [2, 32], strides = [1, 1]} : vector<2x128xf32> to vector<2x32xf32>
      %342 = math.tanh %341 : vector<2x32xf32>
      %343 = vector.extract_strided_slice %328 {offsets = [0, 96], sizes = [2, 32], strides = [1, 1]} : vector<2x128xf32> to vector<2x32xf32>
      %344 = arith.negf %343 : vector<2x32xf32>
      %345 = math.exp %344 : vector<2x32xf32>
      %cst_61 = arith.constant 1.000000e+00 : f32
      %346 = vector.broadcast %cst_61 : f32 to vector<2x32xf32>
      %347 = arith.addf %346, %345 : vector<2x32xf32>
      %348 = arith.divf %346, %347 : vector<2x32xf32>
      %349 = arith.mulf %340, %323 : vector<2x32xf32>
      %350 = arith.mulf %334, %342 : vector<2x32xf32>
      %351 = arith.addf %349, %350 : vector<2x32xf32>
      %352 = math.tanh %351 : vector<2x32xf32>
      %353 = arith.mulf %348, %352 : vector<2x32xf32>
      %354 = vector.extract_strided_slice %7 {offsets = [6, 0], sizes = [2, 128], strides = [1, 1]} : vector<32x128xf32> to vector<2x128xf32>
      %cst_62 = arith.constant dense<0.000000e+00> : vector<2x128xf32>
      %355 = tpu.matmul %353, %9, %cst_62 {dimension_numbers = #tpu.dot_dimension_numbers<[1], [0], [0], [1], [0, 0, 1, 1], [], []>} : vector<2x32xf32>, vector<32x128xf32>, vector<2x128xf32> -> vector<2x128xf32>
      %356 = arith.addf %354, %355 : vector<2x128xf32>
      %357 = vector.extract_strided_slice %356 {offsets = [0, 0], sizes = [2, 32], strides = [1, 1]} : vector<2x128xf32> to vector<2x32xf32>
      %358 = arith.negf %357 : vector<2x32xf32>
      %359 = math.exp %358 : vector<2x32xf32>
      %cst_63 = arith.constant 1.000000e+00 : f32
      %360 = vector.broadcast %cst_63 : f32 to vector<2x32xf32>
      %361 = arith.addf %360, %359 : vector<2x32xf32>
      %362 = arith.divf %360, %361 : vector<2x32xf32>
      %363 = vector.extract_strided_slice %356 {offsets = [0, 32], sizes = [2, 32], strides = [1, 1]} : vector<2x128xf32> to vector<2x32xf32>
      %364 = arith.negf %363 : vector<2x32xf32>
      %365 = math.exp %364 : vector<2x32xf32>
      %cst_64 = arith.constant 1.000000e+00 : f32
      %366 = vector.broadcast %cst_64 : f32 to vector<2x32xf32>
      %367 = arith.addf %366, %365 : vector<2x32xf32>
      %368 = arith.divf %366, %367 : vector<2x32xf32>
      %369 = vector.extract_strided_slice %356 {offsets = [0, 64], sizes = [2, 32], strides = [1, 1]} : vector<2x128xf32> to vector<2x32xf32>
      %370 = math.tanh %369 : vector<2x32xf32>
      %371 = vector.extract_strided_slice %356 {offsets = [0, 96], sizes = [2, 32], strides = [1, 1]} : vector<2x128xf32> to vector<2x32xf32>
      %372 = arith.negf %371 : vector<2x32xf32>
      %373 = math.exp %372 : vector<2x32xf32>
      %cst_65 = arith.constant 1.000000e+00 : f32
      %374 = vector.broadcast %cst_65 : f32 to vector<2x32xf32>
      %375 = arith.addf %374, %373 : vector<2x32xf32>
      %376 = arith.divf %374, %375 : vector<2x32xf32>
      %377 = arith.mulf %368, %351 : vector<2x32xf32>
      %378 = arith.mulf %362, %370 : vector<2x32xf32>
      %379 = arith.addf %377, %378 : vector<2x32xf32>
      %380 = math.tanh %379 : vector<2x32xf32>
      %381 = arith.mulf %376, %380 : vector<2x32xf32>
      %382 = vector.extract_strided_slice %7 {offsets = [4, 0], sizes = [2, 128], strides = [1, 1]} : vector<32x128xf32> to vector<2x128xf32>
      %cst_66 = arith.constant dense<0.000000e+00> : vector<2x128xf32>
      %383 = tpu.matmul %381, %9, %cst_66 {dimension_numbers = #tpu.dot_dimension_numbers<[1], [0], [0], [1], [0, 0, 1, 1], [], []>} : vector<2x32xf32>, vector<32x128xf32>, vector<2x128xf32> -> vector<2x128xf32>
      %384 = arith.addf %382, %383 : vector<2x128xf32>
      %385 = vector.extract_strided_slice %384 {offsets = [0, 0], sizes = [2, 32], strides = [1, 1]} : vector<2x128xf32> to vector<2x32xf32>
      %386 = arith.negf %385 : vector<2x32xf32>
      %387 = math.exp %386 : vector<2x32xf32>
      %cst_67 = arith.constant 1.000000e+00 : f32
      %388 = vector.broadcast %cst_67 : f32 to vector<2x32xf32>
      %389 = arith.addf %388, %387 : vector<2x32xf32>
      %390 = arith.divf %388, %389 : vector<2x32xf32>
      %391 = vector.extract_strided_slice %384 {offsets = [0, 32], sizes = [2, 32], strides = [1, 1]} : vector<2x128xf32> to vector<2x32xf32>
      %392 = arith.negf %391 : vector<2x32xf32>
      %393 = math.exp %392 : vector<2x32xf32>
      %cst_68 = arith.constant 1.000000e+00 : f32
      %394 = vector.broadcast %cst_68 : f32 to vector<2x32xf32>
      %395 = arith.addf %394, %393 : vector<2x32xf32>
      %396 = arith.divf %394, %395 : vector<2x32xf32>
      %397 = vector.extract_strided_slice %384 {offsets = [0, 64], sizes = [2, 32], strides = [1, 1]} : vector<2x128xf32> to vector<2x32xf32>
      %398 = math.tanh %397 : vector<2x32xf32>
      %399 = vector.extract_strided_slice %384 {offsets = [0, 96], sizes = [2, 32], strides = [1, 1]} : vector<2x128xf32> to vector<2x32xf32>
      %400 = arith.negf %399 : vector<2x32xf32>
      %401 = math.exp %400 : vector<2x32xf32>
      %cst_69 = arith.constant 1.000000e+00 : f32
      %402 = vector.broadcast %cst_69 : f32 to vector<2x32xf32>
      %403 = arith.addf %402, %401 : vector<2x32xf32>
      %404 = arith.divf %402, %403 : vector<2x32xf32>
      %405 = arith.mulf %396, %379 : vector<2x32xf32>
      %406 = arith.mulf %390, %398 : vector<2x32xf32>
      %407 = arith.addf %405, %406 : vector<2x32xf32>
      %408 = math.tanh %407 : vector<2x32xf32>
      %409 = arith.mulf %404, %408 : vector<2x32xf32>
      %410 = vector.extract_strided_slice %7 {offsets = [2, 0], sizes = [2, 128], strides = [1, 1]} : vector<32x128xf32> to vector<2x128xf32>
      %cst_70 = arith.constant dense<0.000000e+00> : vector<2x128xf32>
      %411 = tpu.matmul %409, %9, %cst_70 {dimension_numbers = #tpu.dot_dimension_numbers<[1], [0], [0], [1], [0, 0, 1, 1], [], []>} : vector<2x32xf32>, vector<32x128xf32>, vector<2x128xf32> -> vector<2x128xf32>
      %412 = arith.addf %410, %411 : vector<2x128xf32>
      %413 = vector.extract_strided_slice %412 {offsets = [0, 0], sizes = [2, 32], strides = [1, 1]} : vector<2x128xf32> to vector<2x32xf32>
      %414 = arith.negf %413 : vector<2x32xf32>
      %415 = math.exp %414 : vector<2x32xf32>
      %cst_71 = arith.constant 1.000000e+00 : f32
      %416 = vector.broadcast %cst_71 : f32 to vector<2x32xf32>
      %417 = arith.addf %416, %415 : vector<2x32xf32>
      %418 = arith.divf %416, %417 : vector<2x32xf32>
      %419 = vector.extract_strided_slice %412 {offsets = [0, 32], sizes = [2, 32], strides = [1, 1]} : vector<2x128xf32> to vector<2x32xf32>
      %420 = arith.negf %419 : vector<2x32xf32>
      %421 = math.exp %420 : vector<2x32xf32>
      %cst_72 = arith.constant 1.000000e+00 : f32
      %422 = vector.broadcast %cst_72 : f32 to vector<2x32xf32>
      %423 = arith.addf %422, %421 : vector<2x32xf32>
      %424 = arith.divf %422, %423 : vector<2x32xf32>
      %425 = vector.extract_strided_slice %412 {offsets = [0, 64], sizes = [2, 32], strides = [1, 1]} : vector<2x128xf32> to vector<2x32xf32>
      %426 = math.tanh %425 : vector<2x32xf32>
      %427 = vector.extract_strided_slice %412 {offsets = [0, 96], sizes = [2, 32], strides = [1, 1]} : vector<2x128xf32> to vector<2x32xf32>
      %428 = arith.negf %427 : vector<2x32xf32>
      %429 = math.exp %428 : vector<2x32xf32>
      %cst_73 = arith.constant 1.000000e+00 : f32
      %430 = vector.broadcast %cst_73 : f32 to vector<2x32xf32>
      %431 = arith.addf %430, %429 : vector<2x32xf32>
      %432 = arith.divf %430, %431 : vector<2x32xf32>
      %433 = arith.mulf %424, %407 : vector<2x32xf32>
      %434 = arith.mulf %418, %426 : vector<2x32xf32>
      %435 = arith.addf %433, %434 : vector<2x32xf32>
      %436 = math.tanh %435 : vector<2x32xf32>
      %437 = arith.mulf %432, %436 : vector<2x32xf32>
      %438 = vector.extract_strided_slice %7 {offsets = [0, 0], sizes = [2, 128], strides = [1, 1]} : vector<32x128xf32> to vector<2x128xf32>
      %cst_74 = arith.constant dense<0.000000e+00> : vector<2x128xf32>
      %439 = tpu.matmul %437, %9, %cst_74 {dimension_numbers = #tpu.dot_dimension_numbers<[1], [0], [0], [1], [0, 0, 1, 1], [], []>} : vector<2x32xf32>, vector<32x128xf32>, vector<2x128xf32> -> vector<2x128xf32>
      %440 = arith.addf %438, %439 : vector<2x128xf32>
      %441 = vector.extract_strided_slice %440 {offsets = [0, 0], sizes = [2, 32], strides = [1, 1]} : vector<2x128xf32> to vector<2x32xf32>
      %442 = arith.negf %441 : vector<2x32xf32>
      %443 = math.exp %442 : vector<2x32xf32>
      %cst_75 = arith.constant 1.000000e+00 : f32
      %444 = vector.broadcast %cst_75 : f32 to vector<2x32xf32>
      %445 = arith.addf %444, %443 : vector<2x32xf32>
      %446 = arith.divf %444, %445 : vector<2x32xf32>
      %447 = vector.extract_strided_slice %440 {offsets = [0, 32], sizes = [2, 32], strides = [1, 1]} : vector<2x128xf32> to vector<2x32xf32>
      %448 = arith.negf %447 : vector<2x32xf32>
      %449 = math.exp %448 : vector<2x32xf32>
      %cst_76 = arith.constant 1.000000e+00 : f32
      %450 = vector.broadcast %cst_76 : f32 to vector<2x32xf32>
      %451 = arith.addf %450, %449 : vector<2x32xf32>
      %452 = arith.divf %450, %451 : vector<2x32xf32>
      %453 = vector.extract_strided_slice %440 {offsets = [0, 64], sizes = [2, 32], strides = [1, 1]} : vector<2x128xf32> to vector<2x32xf32>
      %454 = math.tanh %453 : vector<2x32xf32>
      %455 = vector.extract_strided_slice %440 {offsets = [0, 96], sizes = [2, 32], strides = [1, 1]} : vector<2x128xf32> to vector<2x32xf32>
      %456 = arith.negf %455 : vector<2x32xf32>
      %457 = math.exp %456 : vector<2x32xf32>
      %cst_77 = arith.constant 1.000000e+00 : f32
      %458 = vector.broadcast %cst_77 : f32 to vector<2x32xf32>
      %459 = arith.addf %458, %457 : vector<2x32xf32>
      %460 = arith.divf %458, %459 : vector<2x32xf32>
      %461 = arith.mulf %452, %435 : vector<2x32xf32>
      %462 = arith.mulf %446, %454 : vector<2x32xf32>
      %463 = arith.addf %461, %462 : vector<2x32xf32>
      %464 = math.tanh %463 : vector<2x32xf32>
      %465 = arith.mulf %460, %464 : vector<2x32xf32>
      %466 = tpu.concatenate %465, %437, %409, %381, %353, %325, %297, %269, %241, %213, %185, %157, %129, %101, %73, %45 in 0 : vector<2x32xf32>, vector<2x32xf32>, vector<2x32xf32>, vector<2x32xf32>, vector<2x32xf32>, vector<2x32xf32>, vector<2x32xf32>, vector<2x32xf32>, vector<2x32xf32>, vector<2x32xf32>, vector<2x32xf32>, vector<2x32xf32>, vector<2x32xf32>, vector<2x32xf32>, vector<2x32xf32>, vector<2x32xf32> -> vector<32x32xf32>
      %c0_78 = arith.constant 0 : index
      %c0_79 = arith.constant 0 : index
      %c0_80 = arith.constant 0 : index
      %467 = vector.load %arg5[%c0_78, %c0_79, %c0_80] : memref<1x32x32xf32, #tpu.memory_space<vmem>>, vector<1x32x32xf32>
      %468 = vector.shape_cast %467 : vector<1x32x32xf32> to vector<32x32xf32>
      %469 = vector.shape_cast %466 : vector<32x32xf32> to vector<1x32x32xf32>
      tpu.vector_store %arg5[%c0_78, %c0_79, %c0_80], %469 {strides = array<i32>} : memref<1x32x32xf32, #tpu.memory_space<vmem>>, vector<1x32x32xf32>,
    } else {
    }
    return
  }
  func.func @transform_0(%arg0: i32) -> (i32, i32) {
    %c0_i32 = arith.constant 0 : i32
    %c0_i32_0 = arith.constant 0 : i32
    %c0_i32_1 = arith.constant 0 : i32
    return %c0_i32, %c0_i32_0 : i32, i32
  }
  func.func @transform_1(%arg0: i32) -> (i32, i32, i32) {
    %c0_i32 = arith.constant 0 : i32
    %c0_i32_0 = arith.constant 0 : i32
    %c0_i32_1 = arith.constant 0 : i32
    return %arg0, %c0_i32, %c0_i32_0 : i32, i32, i32
  }
  func.func @transform_2(%arg0: i32) -> (i32, i32, i32) {
    %c0_i32 = arith.constant 0 : i32
    %c0_i32_0 = arith.constant 0 : i32
    %c0_i32_1 = arith.constant 0 : i32
    return %arg0, %c0_i32, %c0_i32_0 : i32, i32, i32
  }
  func.func @transform_3(%arg0: i32) -> (i32, i32, i32) {
    %c0_i32 = arith.constant 0 : i32
    %c0_i32_0 = arith.constant 0 : i32
    %c0_i32_1 = arith.constant 0 : i32
    return %arg0, %c0_i32, %c0_i32_0 : i32, i32, i32
  }
  func.func @transform_4(%arg0: i32) -> (i32, i32, i32) {
    %c0_i32 = arith.constant 0 : i32
    %c0_i32_0 = arith.constant 0 : i32
    %c0_i32_1 = arith.constant 0 : i32
    return %arg0, %c0_i32, %c0_i32_0 : i32, i32, i32
  }
}

module attributes {stable_mosaic.version = 11 : i64} {
  func.func @_attn_head_kernel(%arg0: i32, %arg1: memref<2x16x64xf32, #tpu.memory_space<vmem>>, %arg2: memref<1x64xf32, #tpu.memory_space<vmem>>, %arg3: memref<1x1xf32, #tpu.memory_space<vmem>>, %arg4: memref<64x128xf32, #tpu.memory_space<vmem>>, %arg5: memref<1x128xf32, #tpu.memory_space<vmem>>, %arg6: memref<128x64xf32, #tpu.memory_space<vmem>>, %arg7: memref<1x64xf32, #tpu.memory_space<vmem>>, %arg8: memref<64x32xf32, #tpu.memory_space<vmem>>, %arg9: memref<1x32xf32, #tpu.memory_space<vmem>>, %arg10: memref<32x3xf32, #tpu.memory_space<vmem>>, %arg11: memref<1x3xf32, #tpu.memory_space<vmem>>, %arg12: memref<2x3xf32, #tpu.memory_space<vmem>>, %arg13: memref<2x16xf32, #tpu.memory_space<vmem>>) attributes {dimension_semantics = [#tpu.dimension_semantics<arbitrary>], iteration_bounds = array<i64: 1>, scalar_prefetch = 0 : i64, scratch_operands = 0 : i64, tpu.core_type = #tpu.core_type<tc>, window_params = [{pipeline_mode = #tpu.pipeline_mode<synchronous>, transform_indices = @transform_0, window_bounds = array<i64: 2, 16, 64>}, {pipeline_mode = #tpu.pipeline_mode<synchronous>, transform_indices = @transform_1, window_bounds = array<i64: 1, 64>}, {pipeline_mode = #tpu.pipeline_mode<synchronous>, transform_indices = @transform_2, window_bounds = array<i64: 1, 1>}, {pipeline_mode = #tpu.pipeline_mode<synchronous>, transform_indices = @transform_3, window_bounds = array<i64: 64, 128>}, {pipeline_mode = #tpu.pipeline_mode<synchronous>, transform_indices = @transform_4, window_bounds = array<i64: 1, 128>}, {pipeline_mode = #tpu.pipeline_mode<synchronous>, transform_indices = @transform_5, window_bounds = array<i64: 128, 64>}, {pipeline_mode = #tpu.pipeline_mode<synchronous>, transform_indices = @transform_6, window_bounds = array<i64: 1, 64>}, {pipeline_mode = #tpu.pipeline_mode<synchronous>, transform_indices = @transform_7, window_bounds = array<i64: 64, 32>}, {pipeline_mode = #tpu.pipeline_mode<synchronous>, transform_indices = @transform_8, window_bounds = array<i64: 1, 32>}, {pipeline_mode = #tpu.pipeline_mode<synchronous>, transform_indices = @transform_9, window_bounds = array<i64: 32, 3>}, {pipeline_mode = #tpu.pipeline_mode<synchronous>, transform_indices = @transform_10, window_bounds = array<i64: 1, 3>}, {pipeline_mode = #tpu.pipeline_mode<synchronous>, transform_indices = @transform_11, window_bounds = array<i64: 2, 3>}, {pipeline_mode = #tpu.pipeline_mode<synchronous>, transform_indices = @transform_12, window_bounds = array<i64: 2, 16>}]} {
    %c0 = arith.constant 0 : index
    %c0_0 = arith.constant 0 : index
    %c0_1 = arith.constant 0 : index
    %0 = vector.load %arg1[%c0, %c0_0, %c0_1] : memref<2x16x64xf32, #tpu.memory_space<vmem>>, vector<2x16x64xf32>
    %c0_2 = arith.constant 0 : index
    %c0_3 = arith.constant 0 : index
    %1 = vector.load %arg2[%c0_2, %c0_3] : memref<1x64xf32, #tpu.memory_space<vmem>>, vector<1x64xf32>
    %2 = vector.shape_cast %1 : vector<1x64xf32> to vector<1x1x64xf32>
    %3 = vector.broadcast %2 : vector<1x1x64xf32> to vector<2x16x64xf32>
    %4 = arith.mulf %0, %3 : vector<2x16x64xf32>
    %cst = arith.constant dense<0.000000e+00> : vector<2x16xf32>
    %5 = vector.multi_reduction <add>, %4, %cst [2] : vector<2x16x64xf32> to vector<2x16xf32>
    %c0_4 = arith.constant 0 : index
    %c0_5 = arith.constant 0 : index
    %6 = vector.load %arg3[%c0_4, %c0_5] : memref<1x1xf32, #tpu.memory_space<vmem>>, vector<1x1xf32>
    %7 = vector.broadcast %6 : vector<1x1xf32> to vector<2x16xf32>
    %8 = arith.addf %5, %7 : vector<2x16xf32>
    %cst_6 = arith.constant dense<0xFF800000> : vector<2xf32>
    %9 = vector.multi_reduction <maximumf>, %8, %cst_6 [1] : vector<2x16xf32> to vector<2xf32>
    %10 = vector.shape_cast %9 : vector<2xf32> to vector<2x1xf32>
    %11 = vector.broadcast %10 : vector<2x1xf32> to vector<2x16xf32>
    %12 = arith.subf %8, %11 : vector<2x16xf32>
    %13 = math.exp %12 : vector<2x16xf32>
    %cst_7 = arith.constant dense<0.000000e+00> : vector<2xf32>
    %14 = vector.multi_reduction <add>, %13, %cst_7 [1] : vector<2x16xf32> to vector<2xf32>
    %15 = vector.shape_cast %14 : vector<2xf32> to vector<2x1xf32>
    %16 = tpu.reciprocal %15 {approx = true} : vector<2x1xf32> -> vector<2x1xf32>
    %17 = vector.broadcast %16 : vector<2x1xf32> to vector<2x16xf32>
    %18 = arith.mulf %13, %17 : vector<2x16xf32>
    %c0_8 = arith.constant 0 : index
    %c0_9 = arith.constant 0 : index
    %19 = vector.load %arg13[%c0_8, %c0_9] : memref<2x16xf32, #tpu.memory_space<vmem>>, vector<2x16xf32>
    tpu.vector_store %arg13[%c0_8, %c0_9], %18 {strides = array<i32>} : memref<2x16xf32, #tpu.memory_space<vmem>>, vector<2x16xf32>,
    %20 = vector.shape_cast %18 : vector<2x16xf32> to vector<2x16x1xf32>
    %21 = vector.broadcast %20 : vector<2x16x1xf32> to vector<2x16x64xf32>
    %22 = arith.mulf %21, %0 : vector<2x16x64xf32>
    %cst_10 = arith.constant dense<0.000000e+00> : vector<2x64xf32>
    %23 = vector.multi_reduction <add>, %22, %cst_10 [1] : vector<2x16x64xf32> to vector<2x64xf32>
    %c0_11 = arith.constant 0 : index
    %c0_12 = arith.constant 0 : index
    %24 = vector.load %arg4[%c0_11, %c0_12] : memref<64x128xf32, #tpu.memory_space<vmem>>, vector<64x128xf32>
    %cst_13 = arith.constant dense<0.000000e+00> : vector<2x128xf32>
    %25 = tpu.matmul %23, %24, %cst_13 {dimension_numbers = #tpu.dot_dimension_numbers<[1], [0], [0], [1], [0, 0, 1, 1], [], []>} : vector<2x64xf32>, vector<64x128xf32>, vector<2x128xf32> -> vector<2x128xf32>
    %c0_14 = arith.constant 0 : index
    %c0_15 = arith.constant 0 : index
    %26 = vector.load %arg5[%c0_14, %c0_15] : memref<1x128xf32, #tpu.memory_space<vmem>>, vector<1x128xf32>
    %27 = vector.broadcast %26 : vector<1x128xf32> to vector<2x128xf32>
    %28 = arith.addf %25, %27 : vector<2x128xf32>
    %cst_16 = arith.constant 0.000000e+00 : f32
    %29 = vector.broadcast %cst_16 : f32 to vector<2x128xf32>
    %30 = arith.maximumf %28, %29 : vector<2x128xf32>
    %c0_17 = arith.constant 0 : index
    %c0_18 = arith.constant 0 : index
    %31 = vector.load %arg6[%c0_17, %c0_18] : memref<128x64xf32, #tpu.memory_space<vmem>>, vector<128x64xf32>
    %cst_19 = arith.constant dense<0.000000e+00> : vector<2x64xf32>
    %32 = tpu.matmul %30, %31, %cst_19 {dimension_numbers = #tpu.dot_dimension_numbers<[1], [0], [0], [1], [0, 0, 1, 1], [], []>} : vector<2x128xf32>, vector<128x64xf32>, vector<2x64xf32> -> vector<2x64xf32>
    %c0_20 = arith.constant 0 : index
    %c0_21 = arith.constant 0 : index
    %33 = vector.load %arg7[%c0_20, %c0_21] : memref<1x64xf32, #tpu.memory_space<vmem>>, vector<1x64xf32>
    %34 = vector.broadcast %33 : vector<1x64xf32> to vector<2x64xf32>
    %35 = arith.addf %32, %34 : vector<2x64xf32>
    %cst_22 = arith.constant 0.000000e+00 : f32
    %36 = vector.broadcast %cst_22 : f32 to vector<2x64xf32>
    %37 = arith.maximumf %35, %36 : vector<2x64xf32>
    %c0_23 = arith.constant 0 : index
    %c0_24 = arith.constant 0 : index
    %38 = vector.load %arg8[%c0_23, %c0_24] : memref<64x32xf32, #tpu.memory_space<vmem>>, vector<64x32xf32>
    %cst_25 = arith.constant dense<0.000000e+00> : vector<2x32xf32>
    %39 = tpu.matmul %37, %38, %cst_25 {dimension_numbers = #tpu.dot_dimension_numbers<[1], [0], [0], [1], [0, 0, 1, 1], [], []>} : vector<2x64xf32>, vector<64x32xf32>, vector<2x32xf32> -> vector<2x32xf32>
    %c0_26 = arith.constant 0 : index
    %c0_27 = arith.constant 0 : index
    %40 = vector.load %arg9[%c0_26, %c0_27] : memref<1x32xf32, #tpu.memory_space<vmem>>, vector<1x32xf32>
    %41 = vector.broadcast %40 : vector<1x32xf32> to vector<2x32xf32>
    %42 = arith.addf %39, %41 : vector<2x32xf32>
    %cst_28 = arith.constant 0.000000e+00 : f32
    %43 = vector.broadcast %cst_28 : f32 to vector<2x32xf32>
    %44 = arith.maximumf %42, %43 : vector<2x32xf32>
    %c0_29 = arith.constant 0 : index
    %c0_30 = arith.constant 0 : index
    %45 = vector.load %arg10[%c0_29, %c0_30] : memref<32x3xf32, #tpu.memory_space<vmem>>, vector<32x3xf32>
    %cst_31 = arith.constant dense<0.000000e+00> : vector<2x3xf32>
    %46 = tpu.matmul %44, %45, %cst_31 {dimension_numbers = #tpu.dot_dimension_numbers<[1], [0], [0], [1], [0, 0, 1, 1], [], []>} : vector<2x32xf32>, vector<32x3xf32>, vector<2x3xf32> -> vector<2x3xf32>
    %c0_32 = arith.constant 0 : index
    %c0_33 = arith.constant 0 : index
    %47 = vector.load %arg11[%c0_32, %c0_33] : memref<1x3xf32, #tpu.memory_space<vmem>>, vector<1x3xf32>
    %48 = vector.broadcast %47 : vector<1x3xf32> to vector<2x3xf32>
    %49 = arith.addf %46, %48 : vector<2x3xf32>
    %c0_34 = arith.constant 0 : index
    %c0_35 = arith.constant 0 : index
    %50 = vector.load %arg12[%c0_34, %c0_35] : memref<2x3xf32, #tpu.memory_space<vmem>>, vector<2x3xf32>
    tpu.vector_store %arg12[%c0_34, %c0_35], %49 {strides = array<i32>} : memref<2x3xf32, #tpu.memory_space<vmem>>, vector<2x3xf32>,
    return
  }
  func.func @transform_0(%arg0: i32) -> (i32, i32, i32) {
    %c0_i32 = arith.constant 0 : i32
    %c0_i32_0 = arith.constant 0 : i32
    %c0_i32_1 = arith.constant 0 : i32
    %c0_i32_2 = arith.constant 0 : i32
    return %c0_i32, %c0_i32_0, %c0_i32_1 : i32, i32, i32
  }
  func.func @transform_1(%arg0: i32) -> (i32, i32) {
    %c0_i32 = arith.constant 0 : i32
    %c0_i32_0 = arith.constant 0 : i32
    %c0_i32_1 = arith.constant 0 : i32
    return %c0_i32, %c0_i32_0 : i32, i32
  }
  func.func @transform_2(%arg0: i32) -> (i32, i32) {
    %c0_i32 = arith.constant 0 : i32
    %c0_i32_0 = arith.constant 0 : i32
    %c0_i32_1 = arith.constant 0 : i32
    return %c0_i32, %c0_i32_0 : i32, i32
  }
  func.func @transform_3(%arg0: i32) -> (i32, i32) {
    %c0_i32 = arith.constant 0 : i32
    %c0_i32_0 = arith.constant 0 : i32
    %c0_i32_1 = arith.constant 0 : i32
    return %c0_i32, %c0_i32_0 : i32, i32
  }
  func.func @transform_4(%arg0: i32) -> (i32, i32) {
    %c0_i32 = arith.constant 0 : i32
    %c0_i32_0 = arith.constant 0 : i32
    %c0_i32_1 = arith.constant 0 : i32
    return %c0_i32, %c0_i32_0 : i32, i32
  }
  func.func @transform_5(%arg0: i32) -> (i32, i32) {
    %c0_i32 = arith.constant 0 : i32
    %c0_i32_0 = arith.constant 0 : i32
    %c0_i32_1 = arith.constant 0 : i32
    return %c0_i32, %c0_i32_0 : i32, i32
  }
  func.func @transform_6(%arg0: i32) -> (i32, i32) {
    %c0_i32 = arith.constant 0 : i32
    %c0_i32_0 = arith.constant 0 : i32
    %c0_i32_1 = arith.constant 0 : i32
    return %c0_i32, %c0_i32_0 : i32, i32
  }
  func.func @transform_7(%arg0: i32) -> (i32, i32) {
    %c0_i32 = arith.constant 0 : i32
    %c0_i32_0 = arith.constant 0 : i32
    %c0_i32_1 = arith.constant 0 : i32
    return %c0_i32, %c0_i32_0 : i32, i32
  }
  func.func @transform_8(%arg0: i32) -> (i32, i32) {
    %c0_i32 = arith.constant 0 : i32
    %c0_i32_0 = arith.constant 0 : i32
    %c0_i32_1 = arith.constant 0 : i32
    return %c0_i32, %c0_i32_0 : i32, i32
  }
  func.func @transform_9(%arg0: i32) -> (i32, i32) {
    %c0_i32 = arith.constant 0 : i32
    %c0_i32_0 = arith.constant 0 : i32
    %c0_i32_1 = arith.constant 0 : i32
    return %c0_i32, %c0_i32_0 : i32, i32
  }
  func.func @transform_10(%arg0: i32) -> (i32, i32) {
    %c0_i32 = arith.constant 0 : i32
    %c0_i32_0 = arith.constant 0 : i32
    %c0_i32_1 = arith.constant 0 : i32
    return %c0_i32, %c0_i32_0 : i32, i32
  }
  func.func @transform_11(%arg0: i32) -> (i32, i32) {
    %c0_i32 = arith.constant 0 : i32
    %c0_i32_0 = arith.constant 0 : i32
    %c0_i32_1 = arith.constant 0 : i32
    return %c0_i32, %c0_i32_0 : i32, i32
  }
  func.func @transform_12(%arg0: i32) -> (i32, i32) {
    %c0_i32 = arith.constant 0 : i32
    %c0_i32_0 = arith.constant 0 : i32
    %c0_i32_1 = arith.constant 0 : i32
    return %c0_i32, %c0_i32_0 : i32, i32
  }
}

</mosaic_0001>

<bundles_post_ra>
// kernel: cnn_lstm_attention_forward.4
= control target key start
LH: loop header
LB: loop body
LE: loop exit
PB: predicated region body
PF: predicated region fallthrough
CT: control target
= control target key end

     0   :  { %18 = vsyncpa [#allocation3], 0  ;;  %s2192_s0 = inlined_call_operand.vmem [shape: f32[32,8], index: 0, kind: input, shape index: {}]   ;;  %s2193_s1 = inlined_call_operand.vmem [shape: f32[8,64], index: 1, kind: input, shape index: {}]   ;;  %s2194_s2 = inlined_call_operand.vmem [shape: f32[8,64], index: 2, kind: input, shape index: {}]   ;;  %s2195_s3 = inlined_call_operand.hbm [shape: f32[8,64], index: 3, kind: input, shape index: {}]   ;;  %s2196_s4 = inlined_call_operand.hbm [shape: f32[1,64], index: 4, kind: input, shape index: {}]   ;;  %s2197_s5 = inlined_call_operand.vmem [shape: f32[64,128], index: 5, kind: input, shape index: {}]   ;;  %s2198_s6 = inlined_call_operand.hbm [shape: f32[64,128], index: 6, kind: input, shape index: {}]   ;;  %s2199_s7 = inlined_call_operand.hbm [shape: f32[64,128], index: 7, kind: input, shape index: {}]   ;;  %s2200_s8 = inlined_call_operand.vmem [shape: f32[1,128], index: 8, kind: input, shape index: {}]   ;;  %s2201_s9 = inlined_call_operand.hbm [shape: f32[128,256], index: 9, kind: input, shape index: {}]   ;;  %s2202_s10 = inlined_call_operand.hbm [shape: f32[128,256], index: 10, kind: input, shape index: {}]   ;;  %s2203_s11 = inlined_call_operand.hbm [shape: f32[128,256], index: 11, kind: input, shape index: {}]   ;;  %s2204_s12 = inlined_call_operand.vmem [shape: f32[1,256], index: 12, kind: input, shape index: {}]   ;;  %s2205_s13 = inlined_call_operand.vmem [shape: f32[32,256], index: 13, kind: output, shape index: {}]  }
   0x1   :  { %19 = vsyncpa [#allocation5], 0 }
   0x2   :  { %20 = vsyncpa [#allocation8], 0 }
   0x3   :  { %21 = vsyncpa [#allocation11], 0  ;;  %s1810_s25 = smov [#allocation4]   ;;  %s1648_s29 = scalar_lea.hbm %s2196_s4, 16 }
   0x4   :  { %s44_s26 = sshll.u32 %s1810_s25, 4  ;;  %p1649_p0 = scmp.ne.s32.totalorder %s2196_s4, %s1648_s29  ;;  %s45_s26 = int_to_ptr.vmem [resolvable:$true] %s44_s26 }
   0x5   :  { %p1652_p1 = scmp.lt.u32.totalorder %s1648_s29, %s2196_s4 }
   0x7   :  { %p1654_p2 = pnand %p1652_p1, %p1649_p0 }
   0x9   :  { %1657 = shalt.err (!%p1654_p2)
}
   0xa   :  { %s1658_s17 = scalar_lea.vmem %s45_s26, 16  ;;  %s1662_s18 = scalar_lea.vmem %s45_s26, 32 }
   0xb   :  { %p1659_p3 = scmp.ne.s32.totalorder %s45_s26, %s1658_s17  ;;  %p1663_p4 = scmp.lt.s32.totalorder %s45_s26, %s45_s26 }
   0xc   :  { %p1664_p5 = scmp.lt.s32.totalorder %s1662_s18, %s1658_s17 }
   0xe   :  { %p1665_p6 = por %p1664_p5, %p1663_p4 }
  0x10   :  { %p1666_p7 = pnand %p1665_p6, %p1659_p3 }
  0x12   :  { %1669 = shalt.err (!%p1666_p7)
}
  0x13   :  { %47 = dma.hbm_to_vmem [thread:$0]  %s2196_s4, 16, %s45_s26, [#allocation5]  }
  0x14   :  { %s1811_s21 = smov [#allocation7]   ;;  %s1670_s25 = scalar_lea.hbm %s2199_s7, 1024 }
  0x15   :  { %s67_s22 = sshll.u32 %s1811_s21, 4  ;;  %p1671_p8 = scmp.ne.s32.totalorder %s2199_s7, %s1670_s25  ;;  %s68_s22 = int_to_ptr.vmem [resolvable:$true] %s67_s22 }
  0x16   :  { %p1674_p9 = scmp.lt.u32.totalorder %s1670_s25, %s2199_s7 }
  0x18   :  { %p1676_p10 = pnand %p1674_p9, %p1671_p8 }
  0x1a   :  { %1679 = shalt.err (!%p1676_p10)
}
  0x1b   :  { %s1680_s14 = scalar_lea.vmem %s68_s22, 1024  ;;  %p1685_p12 = scmp.lt.s32.totalorder %s68_s22, %s68_s22 }
  0x1c   :  { %p1681_p11 = scmp.ne.s32.totalorder %s68_s22, %s1680_s14  ;;  %p1686_p13 = scmp.lt.s32.totalorder %s1680_s14, %s1680_s14 }
  0x1e   :  { %p1687_p0 = por %p1686_p13, %p1685_p12 }
  0x20   :  { %p1688_p1 = pnand %p1687_p0, %p1681_p11 }
  0x22   :  { %1691 = shalt.err (!%p1688_p1)
}
  0x23   :  { %s1812_s4 = smov 128   ;;  %s1813_s26 = smov 8  }
  0x24   :  { %73 = dma.hbm_to_vmem [thread:$0]  %s2199_s7, 1024, %s68_s22, [#allocation8], %s1812_s4, %s1812_s4, %s1813_s26  }
  0x25   :  { %s1814_s17 = smov [#allocation10]   ;;  %s1815_s19 = smov [#allocation2]  }
  0x26   :  { %s93_s18 = sshll.u32 %s1814_s17, 4  ;;  %s34_s20 = sshll.u32 %s1815_s19, 4  ;;  %s94_s18 = int_to_ptr.vmem [resolvable:$true] %s93_s18  ;;  %s35_s20 = int_to_ptr.vmem [resolvable:$true] %s34_s20 }
  0x27   :  { %s1692_s24 = scalar_lea.hbm %s2202_s10, 4096 }
  0x28   :  { %p1693_p2 = scmp.ne.s32.totalorder %s2202_s10, %s1692_s24  ;;  %p1696_p3 = scmp.lt.u32.totalorder %s1692_s24, %s2202_s10 }
  0x2a   :  { %p1698_p4 = pnand %p1696_p3, %p1693_p2 }
  0x2c   :  { %1701 = shalt.err (!%p1698_p4)
}
  0x2d   :  { %s1702_s7 = scalar_lea.vmem %s94_s18, 4096  ;;  %p1707_p6 = scmp.lt.s32.totalorder %s94_s18, %s94_s18 }
  0x2e   :  { %p1703_p5 = scmp.ne.s32.totalorder %s94_s18, %s1702_s7  ;;  %p1708_p7 = scmp.lt.s32.totalorder %s1702_s7, %s1702_s7 }
  0x30   :  { %p1709_p8 = por %p1708_p7, %p1707_p6 }
  0x32   :  { %p1710_p9 = pnand %p1709_p8, %p1703_p5 }
  0x34   :  { %1713 = shalt.err (!%p1710_p9)
}
  0x35   :  { %s1816_s22 = smov 256   ;;  %s1817_s30 = smov 16  }
  0x36   :  { %99 = dma.hbm_to_vmem [thread:$0]  %s2202_s10, 4096, %s94_s18, [#allocation11], %s1816_s22, %s1816_s22, %s1817_s30  }
  0x37   :  { %s1714_s19 = scalar_lea.hbm %s2195_s3, 128 }
  0x38   :  { %p1715_p10 = scmp.ne.s32.totalorder %s2195_s3, %s1714_s19  ;;  %p1718_p11 = scmp.lt.u32.totalorder %s1714_s19, %s2195_s3 }
  0x3a   :  { %p1720_p12 = pnand %p1718_p11, %p1715_p10 }
  0x3c   :  { %1723 = shalt.err (!%p1720_p12)
}
  0x3d   :  { %s1724_s27 = scalar_lea.vmem %s35_s20, 128  ;;  %p1729_p0 = scmp.lt.s32.totalorder %s35_s20, %s35_s20 }
  0x3e   :  { %p1725_p13 = scmp.ne.s32.totalorder %s35_s20, %s1724_s27  ;;  %p1730_p1 = scmp.lt.s32.totalorder %s1724_s27, %s1724_s27 }
  0x40   :  { %p1731_p2 = por %p1730_p1, %p1729_p0 }
  0x42   :  { %p1732_p3 = pnand %p1731_p2, %p1725_p13 }
  0x44   :  { %1735 = shalt.err (!%p1732_p3)
}
  0x45   :  { %37 = dma.hbm_to_vmem [thread:$0]  %s2195_s3, 128, %s35_s20, [#allocation3]  }
  0x46   :  { %s1818_s28 = smov [#allocation6]   ;;  %s1819_s7 = smov [#allocation9]  }
  0x47   :  { %s55_s29 = sshll.u32 %s1818_s28, 4  ;;  %s81_s14 = sshll.u32 %s1819_s7, 4  ;;  %s56_s29 = int_to_ptr.vmem [resolvable:$true] %s55_s29  ;;  %s1946_s14 = int_to_ptr.vmem [resolvable:$true] %s81_s14 }
  0x48   :  { %s1736_s17 = scalar_lea.hbm %s2198_s6, 1024 }
  0x49   :  { %p1737_p4 = scmp.ne.s32.totalorder %s2198_s6, %s1736_s17  ;;  %p1740_p5 = scmp.lt.u32.totalorder %s1736_s17, %s2198_s6 }
  0x4b   :  { %p1742_p6 = pnand %p1740_p5, %p1737_p4 }
  0x4d   :  { %1745 = shalt.err (!%p1742_p6)
}
  0x4e   :  { %s1746_s3 = scalar_lea.vmem %s56_s29, 1024  ;;  %p1751_p8 = scmp.lt.s32.totalorder %s56_s29, %s56_s29 }
  0x4f   :  { %p1747_p7 = scmp.ne.s32.totalorder %s56_s29, %s1746_s3  ;;  %p1752_p9 = scmp.lt.s32.totalorder %s1746_s3, %s1746_s3 }
  0x51   :  { %p1753_p10 = por %p1752_p9, %p1751_p8 }
  0x53   :  { %p1754_p11 = pnand %p1753_p10, %p1747_p7 }
  0x55   :  { %1757 = shalt.err (!%p1754_p11)
}
  0x56   :  { %61 = dma.hbm_to_vmem [thread:$0]  %s2198_s6, 1024, %s56_s29, [#allocation5], %s1812_s4, %s1812_s4, %s1813_s26  }
  0x57   :  { %s1758_s18 = scalar_lea.hbm %s2201_s9, 4096 }
  0x58   :  { %p1759_p12 = scmp.ne.s32.totalorder %s2201_s9, %s1758_s18  ;;  %p1762_p13 = scmp.lt.u32.totalorder %s1758_s18, %s2201_s9 }
  0x5a   :  { %p1764_p0 = pnand %p1762_p13, %p1759_p12 }
  0x5c   :  { %1767 = shalt.err (!%p1764_p0)
}
  0x5d   :  { %s1768_s17 = scalar_lea.vmem %s1946_s14, 4096  ;;  %p1773_p2 = scmp.lt.s32.totalorder %s1946_s14, %s1946_s14 }
  0x5e   :  { %p1769_p1 = scmp.ne.s32.totalorder %s1946_s14, %s1768_s17  ;;  %p1774_p3 = scmp.lt.s32.totalorder %s1768_s17, %s1768_s17 }
  0x60   :  { %p1775_p4 = por %p1774_p3, %p1773_p2 }
  0x62   :  { %p1776_p5 = pnand %p1775_p4, %p1769_p1 }
  0x64   :  { %1779 = shalt.err (!%p1776_p5)
}
  0x65   :  { %87 = dma.hbm_to_vmem [thread:$0]  %s2201_s9, 4096, %s1946_s14, [#allocation8], %s1816_s22, %s1816_s22, %s1817_s30  }
  0x66   :  { %s1820_s26 = smov [#allocation12]   ;;  %s1780_s23 = scalar_lea.hbm %s2203_s11, 4096 }
  0x67   :  { %s105_s29 = sshll.u32 %s1820_s26, 4  ;;  %p1781_p6 = scmp.ne.s32.totalorder %s2203_s11, %s1780_s23  ;;  %s106_s29 = int_to_ptr.vmem [resolvable:$true] %s105_s29 }
  0x68   :  { %p1784_p7 = scmp.lt.u32.totalorder %s1780_s23, %s2203_s11 }
  0x6a   :  { %p1786_p8 = pnand %p1784_p7, %p1781_p6 }
  0x6c   :  { %1789 = shalt.err (!%p1786_p8)
}
  0x6d   :  { %s1790_s27 = scalar_lea.vmem %s106_s29, 4096  ;;  %p1795_p10 = scmp.lt.s32.totalorder %s106_s29, %s106_s29 }
  0x6e   :  { %p1791_p9 = scmp.ne.s32.totalorder %s106_s29, %s1790_s27  ;;  %p1796_p11 = scmp.lt.s32.totalorder %s1790_s27, %s1790_s27 }
  0x70   :  { %p1797_p12 = por %p1796_p11, %p1795_p10 }
  0x72   :  { %p1798_p13 = pnand %p1797_p12, %p1791_p9 }
  0x74   :  { %1801 = shalt.err (!%p1798_p13)
}
  0x75   :  { %111 = dma.hbm_to_vmem [thread:$0]  %s2203_s11, 4096, %s106_s29, [#allocation11], %s1816_s22, %s1816_s22, %s1817_s30  }
  0x76   :  { %1802 = dma.done.wait [#allocation3], 128  }
  0x77   :  { %1803 = vsyncadd [#allocation3], 4294967168 }
  0x78   :  { %1804 = dma.done.wait [#allocation5], 1040  }
  0x79   :  { %1805 = vsyncadd [#allocation5], 4294966256 }
  0x7a   :  { %1806 = dma.done.wait [#allocation8], 5120  }
  0x7b   :  { %1807 = vsyncadd [#allocation8], 4294962176 }
  0x7c   :  { %1808 = dma.done.wait [#allocation11], 8192  }
  0x7d   :  { %1809 = vsyncadd [#allocation11], 4294959104  ;;  %v139_v0 = vlaneseq  ;;  %vm179_vm0 = vcmask 64512   ;;  %v178_v2 = vld [vmem:[%s2194_s2] sm:$0xff]  ;;  %v136_v4 = vld [vmem:[%s2192_s0 + $0x8] sm:$0xff]  ;;  %vm531_vm4 = vcmask 523264  }
  0x7e   :  { %v135_v3 = vld [vmem:[%s2192_s0] sm:$0xff]  ;;  %1370 = vmatprep.subr.mxu0 %v178_v2  ;;  %v137_v7 = vld [vmem:[%s2192_s0 + $0x10] sm:$0xff]  ;;  %v138_v8 = vld [vmem:[%s2192_s0 + $0x18] sm:$0xff]  ;;  %v149_v15 = vrot.slane %v136_v4, 6  ;;  %v165_v25 = vrot.slane %v136_v4, 2 }
  0x7f   :  { %v1998_v1 = vshrl.u32 %v139_v0, 7  ;;  %v148_v5 = vrot.slane %v135_v3, 6  ;;  %1372 = vmatprep.mubr.msk.f32.mxu0 %vm179_vm0, %v135_v3  ;;  %v177_v6 = vld [vmem:[%s2193_s1] sm:$0xff]  ;;  %1371 = vmatpush3.msra.mxu0 %v178_v2  ;;  %v523_v10 = vld [vmem:[#allocation6] sm:$0xff]  ;;  %v151_v11 = vrot.slane %v138_v8, 6  ;;  %v524_v12 = vld [vmem:[#allocation6 + $0x8] sm:$0xff] }
  0x80   :  { %v374_v9 = vld [vmem:[#allocation2] sm:$0xff]  ;;  %1373 = vmatmul.mubr.msk.f32.vlgmr.msra.gmra.mrb[0].mxu0 %vm179_vm0, %v136_v4  ;;  %1378 = vmatprep.subr.mxu0 %v177_v6  ;;  %v1460_v16 = vpack.c.bf16 %v524_v12, %v523_v10  ;;  %v150_v17 = vrot.slane %v137_v7, 6  ;;  %v527_v21 = vld [vmem:[#allocation6 + $0x20] sm:$0xff]  ;;  %v528_v22 = vld [vmem:[#allocation6 + $0x28] sm:$0xff]  ;;  %v164_v24 = vrot.slane %v135_v3, 2  ;;  %v166_v28 = vrot.slane %v137_v7, 2 }
  0x81   :  { %vm144_vm1 = vcmp.lt.s32.totalorder %v1998_v1, 2  ;;  %v525_v13 = vld [vmem:[#allocation6 + $0x10] sm:$0xff]  ;;  %v526_v14 = vld [vmem:[#allocation6 + $0x18] sm:$0xff]  ;;  %1379 = vmatpush3.msra.mxu0 %v177_v6  ;;  %1375 = vmatprep.mubr.msk.f32.mxu0 %vm179_vm0, %v137_v7  ;;  %v1468_v27 = vpack.c.bf16 %v528_v22, %v527_v21  ;;  %vm168_vm2 = vcmp.lt.s32.totalorder %v1998_v1, 6  ;;  %v167_v30 = vrot.slane %v138_v8, 2  ;;  %v875_v43 = vld [vmem:[#allocation9 + $0x8] sm:$0xff] }
  0x82   :  { %v155_v18 = vsel %vm144_vm1, %v151_v11, %v148_v5  ;;  %1386 = vmatprep.subr.mxu0 %v374_v9  ;;  %1461 = vmatprep.subr.bf16.mxu1 %v1460_v16  ;;  %v1464_v20 = vpack.c.bf16 %v526_v14, %v525_v13  ;;  %v154_v23 = vsel %vm144_vm1, %v148_v5, %v149_v15  ;;  %v2040_v32 = vadd.s32 24, %v1998_v1  ;;  %v529_v37 = vld [vmem:[#allocation6 + $0x30] sm:$0xff]  ;;  %v530_v38 = vld [vmem:[#allocation6 + $0x38] sm:$0xff]  ;;  %v874_v45 = vld [vmem:[#allocation9] sm:$0xff] }
  0x83   :  { %v156_v19 = vsel %vm144_vm1, 0.0, %v155_v18  ;;  %1463 = vmatpush3.bf16.msra.mxu1 %v1460_v16  ;;  %v153_v26 = vsel %vm144_vm1, %v149_v15, %v150_v17  ;;  %v152_v29 = vsel %vm144_vm1, %v150_v17, %v151_v11  ;;  %v171_v31 = vsel %vm168_vm2, %v164_v24, %v165_v25  ;;  %v515_v40 = vld [vmem:[%s2197_s5] sm:$0xff]  ;;  %v516_v41 = vld [vmem:[%s2197_s5 + $0x8] sm:$0xff]  ;;  %v879_v49 = vld [vmem:[#allocation9 + $0x28] sm:$0xff] }
  0x84   :  { %1376 = vmatmul.mubr.msk.f32.gmra.mrb[2].mxu0 %vm179_vm0, %v138_v8  ;;  %1465 = vmatprep.subr.bf16.mxu1 %v1464_v20  ;;  %v170_v33 = vsel %vm168_vm2, %v165_v25, %v166_v28  ;;  %v169_v34 = vsel %vm168_vm2, %v166_v28, %v167_v30  ;;  %vm163_vm3 = vcmp.ge.s32.totalorder %v2040_v32, 30  ;;  %v172_v35 = vsel %vm168_vm2, %v167_v30, %v164_v24  ;;  %v877_v44 = vld [vmem:[#allocation9 + $0x18] sm:$0xff]  ;;  %v876_v46 = vld [vmem:[#allocation9 + $0x10] sm:$0xff]  ;;  %v878_v52 = vld [vmem:[#allocation9 + $0x20] sm:$0xff] }
  0x85   :  { %1380 = vmatprep.mubr.msk.f32.mxu0 %vm179_vm0, %v156_v19  ;;  %v176_v36 = vsel %vm163_vm3, 0.0, %v172_v35  ;;  %v1472_v39 = vpack.c.bf16 %v530_v38, %v529_v37  ;;  %v2062_v42 = vpack.c.bf16 %v516_v41, %v515_v40  ;;  %v1540_v47 = vpack.c.bf16 %v877_v44, %v875_v43  ;;  %v881_v50 = vld [vmem:[#allocation9 + $0x38] sm:$0xff]  ;;  %v880_v53 = vld [vmem:[#allocation9 + $0x30] sm:$0xff]  ;;  %v883_v55 = vld [vmem:[#allocation9 + $0x48] sm:$0xff] }
  0x86   :  { %v1542_v48 = vpack.c.bf16 %v876_v46, %v874_v45  ;;  %v1544_v51 = vpack.c.bf16 %v881_v50, %v879_v49  ;;  %v1546_v54 = vpack.c.bf16 %v880_v53, %v878_v52  ;;  %v885_v56 = vld [vmem:[#allocation9 + $0x58] sm:$0xff]  ;;  %v882_v57 = vld [vmem:[#allocation9 + $0x40] sm:$0xff]  ;;  %v884_v59 = vld [vmem:[#allocation9 + $0x50] sm:$0xff] }
  0x87   :  { %1467 = vmatpush3.bf16.msra.mxu1 %v1464_v20  ;;  %v1548_v58 = vpack.c.bf16 %v885_v56, %v883_v55  ;;  %v1550_v60 = vpack.c.bf16 %v884_v59, %v882_v57  ;;  %v887_v61 = vld [vmem:[#allocation9 + $0x68] sm:$0xff]  ;;  %v889_v62 = vld [vmem:[#allocation9 + $0x78] sm:$0xff]  ;;  %v886_v63 = vld [vmem:[#allocation9 + $0x60] sm:$0xff] }
  0x88   :  { %1381 = vmatmul.mubr.msk.f32.vlgmr.msra.gmra.mrb[0].mxu0 %vm179_vm0, %v154_v23  ;;  %1469 = vmatprep.subr.bf16.mxu1 %v1468_v27  ;;  %v1552_v0 = vpack.c.bf16 %v889_v62, %v887_v61  ;;  %v888_v2 = vld [vmem:[#allocation9 + $0x70] sm:$0xff]  ;;  %v891_v4 = vld [vmem:[#allocation9 + $0x88] sm:$0xff]  ;;  %v893_v5 = vld [vmem:[#allocation9 + $0x98] sm:$0xff] }
  0x89   :  { %1387 = vmatpush3.msra.mxu0 %v374_v9  ;;  %1383 = vmatprep.mubr.msk.f32.mxu0 %vm179_vm0, %v153_v26  ;;  %v1554_v3 = vpack.c.bf16 %v888_v2, %v886_v63  ;;  %v890_v6 = vld [vmem:[#allocation9 + $0x80] sm:$0xff]  ;;  %v1556_v7 = vpack.c.bf16 %v893_v5, %v891_v4  ;;  %v892_v8 = vld [vmem:[#allocation9 + $0x90] sm:$0xff]  ;;  %v895_v10 = vld [vmem:[#allocation9 + $0xa8] sm:$0xff] }
  0x8a   :  { %1541 = vmatprep.subr.bf16.mxu0 %v1540_v47  ;;  %v1558_v9 = vpack.c.bf16 %v892_v8, %v890_v6  ;;  %v897_v11 = vld [vmem:[#allocation9 + $0xb8] sm:$0xff]  ;;  %v517_v18 = vld [vmem:[%s2197_s5 + $0x10] sm:$0xff]  ;;  %v518_v19 = vld [vmem:[%s2197_s5 + $0x18] sm:$0xff] }
  0x8b   :  { %1471 = vmatpush3.bf16.msra.mxu1 %v1468_v27  ;;  %v1560_v12 = vpack.c.bf16 %v897_v11, %v895_v10  ;;  %v1301_v13 = vld [vmem:[#allocation4] ss:$0 sm:$0xff]  ;;  %v1480_v27 = vpack.c.bf16 %v518_v19, %v517_v18  ;;  %v521_v44 = vld [vmem:[%s2197_s5 + $0x30] sm:$0xff]  ;;  %v728_v56 = vld [vmem:[#allocation7 + $0x10] sm:$0xff] }
  0x8c   :  { %1384 = vmatmul.mubr.msk.f32.gmra.mrb[2].mxu0 %vm179_vm0, %v152_v29  ;;  %1473 = vmatprep.subr.bf16.mxu1 %v1472_v39  ;;  %v726_v53 = vld [vmem:[#allocation7] sm:$0xff]  ;;  %v729_v57 = vld [vmem:[#allocation7 + $0x18] sm:$0xff]  ;;  %v732_v62 = vld [vmem:[#allocation7 + $0x30] sm:$0xff] }
  0x8d   :  { %1388 = vmatprep.mubr.msk.f32.mxu0 %vm179_vm0, %v171_v31  ;;  %v519_v31 = vld [vmem:[%s2197_s5 + $0x20] sm:$0xff]  ;;  %v730_v59 = vld [vmem:[#allocation7 + $0x20] sm:$0xff]  ;;  %v907_v2 = vld [vmem:[#allocation10 + $0x8] sm:$0xff] }
  0x8e   :  { %v733_v63 = vld [vmem:[#allocation7 + $0x38] sm:$0xff]  ;;  %v906_v5 = vld [vmem:[#allocation10] sm:$0xff]  ;;  %v908_v6 = vld [vmem:[#allocation10 + $0x10] sm:$0xff] }
  0x8f   :  { %1475 = vmatpush3.bf16.msra.mxu1 %v1472_v39  ;;  %v913_v8 = vld [vmem:[#allocation10 + $0x38] sm:$0xff]  ;;  %v910_v11 = vld [vmem:[#allocation10 + $0x20] sm:$0xff]  ;;  %v916_v18 = vld [vmem:[#allocation10 + $0x50] sm:$0xff] }
  0x90   :  { %1389 = vmatmul.mubr.msk.f32.vlgmr.msra.gmra.mrb[0].mxu0 %vm179_vm0, %v170_v33  ;;  %1477 = vmatprep.subr.bf16.mxu1 %v2062_v42  ;;  %v520_v33 = vld [vmem:[%s2197_s5 + $0x28] sm:$0xff]  ;;  %vm1315_vm5 = vmneg %vm144_vm1 }
  0x91   :  { %1391 = vmatprep.mubr.msk.f32.mxu0 %vm179_vm0, %v169_v34  ;;  %1543 = vmatpush1.bf16.msra.mxu0 %v1542_v48  ;;  %v1484_v40 = vpack.c.bf16 %v520_v33, %v519_v31  ;;  %v924_v31 = vld [vmem:[#allocation10 + $0x90] sm:$0xff]  ;;  %v927_v33 = vld [vmem:[#allocation10 + $0xa8] sm:$0xff]  ;;  %vm1317_vm6 = vmneg %vm163_vm3 }
  0x92   :  { %1545 = vmatprep.subr.bf16.mxu0 %v1544_v51 }
  0x94   :  { %1392 = vmatmul.mubr.msk.f32.gmra.mrb[2].mxu0 %vm179_vm0, %v176_v36 }
  0x95   :  { %1547 = vmatpush1.bf16.msra.mxu0 %v1546_v54  ;;  %v727_v54 = vld [vmem:[#allocation7 + $0x8] sm:$0xff] }
  0x96   :  { %1549 = vmatprep.subr.bf16.mxu0 %v1548_v58  ;;  %v1492_v55 = vpack.c.bf16 %v727_v54, %v726_v53  ;;  %v1496_v58 = vpack.c.bf16 %v729_v57, %v728_v56  ;;  %v936_v53 = vld [vmem:[#allocation10 + $0xf0] sm:$0xff]  ;;  %v901_v56 = vld [vmem:[#allocation9 + $0xd8] sm:$0xff]  ;;  %v898_v57 = vld [vmem:[#allocation9 + $0xc0] sm:$0xff] }
  0x99   :  { %1551 = vmatpush1.bf16.msra.mxu0 %v1550_v60  ;;  %v731_v60 = vld [vmem:[#allocation7 + $0x28] sm:$0xff] }
  0x9a   :  { %1553 = vmatprep.subr.bf16.mxu0 %v1552_v0  ;;  %v1500_v61 = vpack.c.bf16 %v731_v60, %v730_v59  ;;  %v1504_v0 = vpack.c.bf16 %v733_v63, %v732_v62  ;;  %v900_v59 = vld [vmem:[#allocation9 + $0xd0] sm:$0xff]  ;;  %v905_v62 = vld [vmem:[#allocation9 + $0xf8] sm:$0xff]  ;;  %v1821_v63 = vmov 0.0  }
  0x9b   :  { %v1566_v60 = vpack.c.bf16 %v900_v59, %v898_v57  ;;  %1091 = vmatprep.mubr.f32.mxu0 %v1821_v63  ;;  %v1130_v57 = vld [vmem:[#allocation12 + $0x70] sm:$0xff]  ;;  %v1135_v59 = vld [vmem:[#allocation12 + $0x98] sm:$0xff] }
  0x9d   :  { %1555 = vmatpush1.bf16.msra.mxu0 %v1554_v3  ;;  %v909_v3 = vld [vmem:[#allocation10 + $0x18] sm:$0xff] }
  0x9e   :  { %1557 = vmatprep.subr.bf16.mxu0 %v1556_v7  ;;  %v1508_v4 = vpack.c.bf16 %v909_v3, %v907_v2  ;;  %v911_v7 = vld [vmem:[#allocation10 + $0x28] sm:$0xff]  ;;  %v902_v2 = vld [vmem:[#allocation9 + $0xe0] sm:$0xff]  ;;  %v904_v3 = vld [vmem:[#allocation9 + $0xf0] sm:$0xff] }
  0x9f   :  { %v1512_v10 = vpack.c.bf16 %v913_v8, %v911_v7  ;;  %v1314_v8 = vld [vmem:[%s2200_s8] ss:$0 sm:$0xff] }
  0xa1   :  { %1559 = vmatpush1.bf16.msra.mxu0 %v1558_v9  ;;  %v1510_v9 = vpack.c.bf16 %v908_v6, %v906_v5  ;;  %v1117_v5 = vld [vmem:[#allocation12 + $0x8] sm:$0xff]  ;;  %v1119_v6 = vld [vmem:[#allocation12 + $0x18] sm:$0xff] }
  0xa2   :  { %1561 = vmatprep.subr.bf16.mxu0 %v1560_v12  ;;  %v912_v12 = vld [vmem:[#allocation10 + $0x30] sm:$0xff]  ;;  %v1572_v7 = vpack.c.bf16 %v1119_v6, %v1117_v5  ;;  %v1136_v6 = vld [vmem:[#allocation12 + $0xa0] sm:$0xff] }
 0x163   :  { %v1390_v14 = vpop.f32.mrb[0].mxu0 }
 0x164   :  { %v484_v15 = vadd.f32 %v1390_v14, %v1301_v13  ;;  %v453_v16 = vpop.f32.mrb[1].mxu0  ;;  %v917_v14 = vld [vmem:[#allocation10 + $0x58] sm:$0xff] }
 0x165   :  { %v483_v17 = vadd.f32 %v1301_v13, %v453_v16 }
 0x166   :  { %v488_v20 = vmax.f32 %v484_v15, 0.0  ;;  %v1514_v15 = vpack.c.bf16 %v912_v12, %v910_v11 }
 0x167   :  { %v487_v21 = vmax.f32 %v483_v17, 0.0  ;;  %v1393_v22 = vpop.f32.mrb[2].mxu0  ;;  %v914_v17 = vld [vmem:[#allocation10 + $0x40] sm:$0xff] }
 0x168   :  { %v492_v23 = vrot.slane %v488_v20, 6  ;;  %v504_v24 = vrot.slane %v488_v20, 2  ;;  %v486_v25 = vadd.f32 %v1393_v22, %v1301_v13  ;;  %v463_v26 = vpop.f32.mrb[3].mxu0  ;;  %v1518_v22 = vpack.c.bf16 %v916_v18, %v914_v17 }
 0x169   :  { %v491_v28 = vrot.slane %v487_v21, 6  ;;  %v503_v29 = vrot.slane %v487_v21, 2  ;;  %v485_v30 = vadd.f32 %v1301_v13, %v463_v26  ;;  %1410 = vmatprep.mubr.msk.f32.mxu1 %vm531_vm4, %v487_v21  ;;  %v915_v13 = vld [vmem:[#allocation10 + $0x48] sm:$0xff]  ;;  %v921_v21 = vld [vmem:[#allocation10 + $0x78] sm:$0xff] }
 0x16a   :  { %v490_v34 = vmax.f32 %v486_v25, 0.0  ;;  %1411 = vmatmul.mubr.msk.f32.vlgmr.msra.gmra.mrb[0].mxu1 %vm531_vm4, %v488_v20  ;;  %v1516_v16 = vpack.c.bf16 %v917_v14, %v915_v13  ;;  %v919_v20 = vld [vmem:[#allocation10 + $0x68] sm:$0xff]  ;;  %v920_v25 = vld [vmem:[#allocation10 + $0x70] sm:$0xff] }
 0x16b   :  { %v489_v35 = vmax.f32 %v485_v30, 0.0  ;;  %1479 = vmatpush3.bf16.msra.mxu1 %v2062_v42  ;;  %v497_v36 = vsel %vm144_vm1, %v491_v28, %v492_v23  ;;  %v509_v37 = vsel %vm168_vm2, %v503_v29, %v504_v24  ;;  %v522_v42 = vld [vmem:[%s2197_s5 + $0x38] sm:$0xff]  ;;  %v922_v30 = vld [vmem:[#allocation10 + $0x80] sm:$0xff] }
 0x16c   :  { %v494_v38 = vrot.slane %v490_v34, 6  ;;  %v506_v39 = vrot.slane %v490_v34, 2  ;;  %1481 = vmatprep.subr.bf16.mxu1 %v1480_v27  ;;  %v1488_v51 = vpack.c.bf16 %v522_v42, %v521_v44  ;;  %v923_v26 = vld [vmem:[#allocation10 + $0x88] sm:$0xff]  ;;  %v930_v44 = vld [vmem:[#allocation10 + $0xc0] sm:$0xff]  ;;  %v932_v42 = vld [vmem:[#allocation10 + $0xd0] sm:$0xff] }
 0x16d   :  { %v493_v41 = vrot.slane %v489_v35, 6  ;;  %v505_v43 = vrot.slane %v489_v35, 2  ;;  %1413 = vmatprep.mubr.msk.f32.mxu1 %vm531_vm4, %v489_v35  ;;  %v1526_v35 = vpack.c.bf16 %v924_v31, %v922_v30 }
 0x16e   :  { %1414 = vmatmul.mubr.msk.f32.gmra.mrb[2].mxu1 %vm531_vm4, %v490_v34  ;;  %v498_v45 = vsel %vm144_vm1, %v494_v38, %v491_v28  ;;  %v510_v46 = vsel %vm168_vm2, %v506_v39, %v503_v29  ;;  %v929_v34 = vld [vmem:[#allocation10 + $0xb8] sm:$0xff] }
 0x16f   :  { %1483 = vmatpush3.bf16.msra.mxu1 %v1480_v27  ;;  %v499_v47 = vsel %vm144_vm1, 0.0, %v498_v45  ;;  %v496_v48 = vsel %vm144_vm1, %v492_v23, %v493_v41  ;;  %v495_v49 = vsel %vm144_vm1, %v493_v41, %v494_v38  ;;  %v508_v50 = vsel %vm168_vm2, %v504_v24, %v505_v43  ;;  %v918_v24 = vld [vmem:[#allocation10 + $0x60] sm:$0xff]  ;;  %v925_v27 = vld [vmem:[#allocation10 + $0x98] sm:$0xff]  ;;  %v928_v38 = vld [vmem:[#allocation10 + $0xb0] sm:$0xff] }
 0x170   :  { %1432 = vmatprep.mubr.msk.f32.mxu1 %vm531_vm4, %v499_v47  ;;  %1485 = vmatprep.subr.bf16.mxu1 %v1484_v40  ;;  %v507_v52 = vsel %vm168_vm2, %v505_v43, %v506_v39  ;;  %v514_v19 = vsel %vm163_vm3, 0.0, %v510_v46  ;;  %v1520_v23 = vpack.c.bf16 %v921_v21, %v919_v20  ;;  %v1522_v28 = vpack.c.bf16 %v920_v25, %v918_v24  ;;  %v931_v39 = vld [vmem:[#allocation10 + $0xc8] sm:$0xff]  ;;  %v894_v46 = vld [vmem:[#allocation9 + $0xa0] sm:$0xff]  ;;  %v896_v47 = vld [vmem:[#allocation9 + $0xb0] sm:$0xff] }
 0x171   :  { %v1524_v29 = vpack.c.bf16 %v925_v27, %v923_v26  ;;  %v1534_v45 = vpack.c.bf16 %v932_v42, %v930_v44  ;;  %v1118_v24 = vld [vmem:[#allocation12 + $0x10] sm:$0xff]  ;;  %v1121_v26 = vld [vmem:[#allocation12 + $0x28] sm:$0xff]  ;;  %v1123_v27 = vld [vmem:[#allocation12 + $0x38] sm:$0xff] }
 0x173   :  { %1487 = vmatpush3.bf16.msra.mxu1 %v1484_v40  ;;  %v933_v40 = vld [vmem:[#allocation10 + $0xd8] sm:$0xff] }
 0x174   :  { %1489 = vmatprep.subr.bf16.mxu1 %v1488_v51  ;;  %v1532_v43 = vpack.c.bf16 %v933_v40, %v931_v39  ;;  %v1122_v39 = vld [vmem:[#allocation12 + $0x30] sm:$0xff] }
 0x177   :  { %1491 = vmatpush3.bf16.msra.mxu1 %v1488_v51 }
 0x178   :  { %1493 = vmatprep.subr.bf16.mxu1 %v1492_v55 }
 0x17a   :  { %1433 = vmatmul.mubr.msk.f32.vlgmr.msra.gmra.mrb[0].mxu1 %vm531_vm4, %v497_v36  ;;  %v1528_v36 = vpack.c.bf16 %v929_v34, %v927_v33 }
 0x17b   :  { %1435 = vmatprep.mubr.msk.f32.mxu1 %vm531_vm4, %v496_v48  ;;  %1495 = vmatpush3.bf16.msra.mxu1 %v1492_v55  ;;  %v1562_v48 = vpack.c.bf16 %v896_v47, %v894_v46  ;;  %v899_v55 = vld [vmem:[#allocation9 + $0xc8] sm:$0xff] }
 0x17c   :  { %1497 = vmatprep.subr.bf16.mxu1 %v1496_v58 }
 0x17d   :  { %1563 = vmatpush1.bf16.msra.mxu0 %v1562_v48 }
 0x17e   :  { %1436 = vmatmul.mubr.msk.f32.gmra.mrb[2].mxu1 %vm531_vm4, %v495_v49  ;;  %v935_v49 = vld [vmem:[#allocation10 + $0xe8] sm:$0xff] }
 0x17f   :  { %1499 = vmatpush3.bf16.msra.mxu1 %v1496_v58  ;;  %1454 = vmatprep.mubr.msk.f32.mxu1 %vm531_vm4, %v509_v37  ;;  %v926_v37 = vld [vmem:[#allocation10 + $0xa0] sm:$0xff]  ;;  %v1564_v58 = vpack.c.bf16 %v901_v56, %v899_v55 }
 0x180   :  { %1501 = vmatprep.subr.bf16.mxu1 %v1500_v61  ;;  %v1530_v41 = vpack.c.bf16 %v928_v38, %v926_v37  ;;  %v1576_v37 = vpack.c.bf16 %v1123_v27, %v1121_v26  ;;  %v1120_v38 = vld [vmem:[#allocation12 + $0x20] sm:$0xff] }
 0x181   :  { %1565 = vmatprep.subr.bf16.mxu0 %v1564_v58  ;;  %v1578_v48 = vpack.c.bf16 %v1122_v39, %v1120_v38  ;;  %v1128_v56 = vld [vmem:[#allocation12 + $0x60] sm:$0xff]  ;;  %v1133_v58 = vld [vmem:[#allocation12 + $0x88] sm:$0xff] }
 0x182   :  { %1567 = vmatpush1.bf16.msra.mxu0 %v1566_v60  ;;  %v1586_v60 = vpack.c.bf16 %v1130_v57, %v1128_v56 }
 0x183   :  { %1503 = vmatpush3.bf16.msra.mxu1 %v1500_v61  ;;  %v903_v61 = vld [vmem:[#allocation9 + $0xe8] sm:$0xff] }
 0x184   :  { %1505 = vmatprep.subr.bf16.mxu1 %v1504_v0 }
 0x187   :  { %1507 = vmatpush3.bf16.msra.mxu1 %v1504_v0  ;;  %v1568_v0 = vpack.c.bf16 %v905_v62, %v903_v61  ;;  %v1588_v61 = vpack.c.bf16 %v1135_v59, %v1133_v58  ;;  %v1132_v62 = vld [vmem:[#allocation12 + $0x80] sm:$0xff] }
 0x188   :  { %1509 = vmatprep.subr.bf16.mxu1 %v1508_v4  ;;  %v1570_v4 = vpack.c.bf16 %v904_v3, %v902_v2  ;;  %v1137_v2 = vld [vmem:[#allocation12 + $0xa8] sm:$0xff]  ;;  %v1139_v3 = vld [vmem:[#allocation12 + $0xb8] sm:$0xff] }
 0x189   :  { %1569 = vmatprep.subr.bf16.mxu0 %v1568_v0  ;;  %v1134_v0 = vld [vmem:[#allocation12 + $0x90] sm:$0xff]  ;;  %v1592_v5 = vpack.c.bf16 %v1139_v3, %v1137_v2 }
 0x18a   :  { %1455 = vmatmul.mubr.msk.f32.vlgmr.msra.gmra.mrb[0].mxu1 %vm531_vm4, %v508_v50  ;;  %v937_v50 = vld [vmem:[#allocation10 + $0xf8] sm:$0xff]  ;;  %1571 = vmatpush1.bf16.msra.mxu0 %v1570_v4  ;;  %v1590_v4 = vpack.c.bf16 %v1134_v0, %v1132_v62 }
 0x18b   :  { %1457 = vmatprep.mubr.msk.f32.mxu1 %vm531_vm4, %v507_v52  ;;  %1511 = vmatpush1.bf16.msra.mxu1 %v1510_v9  ;;  %v1536_v51 = vpack.c.bf16 %v937_v50, %v935_v49  ;;  %v934_v52 = vld [vmem:[#allocation10 + $0xe0] sm:$0xff] }
 0x18c   :  { %1513 = vmatprep.subr.bf16.mxu1 %v1512_v10  ;;  %v1538_v54 = vpack.c.bf16 %v936_v53, %v934_v52  ;;  %1573 = vmatprep.subr.bf16.mxu0 %v1572_v7  ;;  %v1124_v50 = vld [vmem:[#allocation12 + $0x40] sm:$0xff]  ;;  %v1129_v52 = vld [vmem:[#allocation12 + $0x68] sm:$0xff]  ;;  %v1131_v53 = vld [vmem:[#allocation12 + $0x78] sm:$0xff] }
 0x18d   :  { %v1584_v55 = vpack.c.bf16 %v1131_v53, %v1129_v52  ;;  %v1138_v7 = vld [vmem:[#allocation12 + $0xb0] sm:$0xff] }
 0x18e   :  { %1458 = vmatmul.mubr.msk.f32.gmra.mrb[2].mxu1 %vm531_vm4, %v514_v19 }
 0x18f   :  { %1515 = vmatpush1.bf16.msra.mxu1 %v1514_v15  ;;  %1002 = vmatprep.mubr.f32.mxu1 %v1821_v63 }
 0x190   :  { %1517 = vmatprep.subr.bf16.mxu1 %v1516_v16 }
 0x193   :  { %1519 = vmatpush1.bf16.msra.mxu1 %v1518_v22 }
 0x194   :  { %1521 = vmatprep.subr.bf16.mxu1 %v1520_v23  ;;  %v1116_v23 = vld [vmem:[#allocation12] sm:$0xff] }
 0x195   :  { %v1574_v34 = vpack.c.bf16 %v1118_v24, %v1116_v23 }
 0x197   :  { %1523 = vmatpush1.bf16.msra.mxu1 %v1522_v28 }
 0x198   :  { %1525 = vmatprep.subr.bf16.mxu1 %v1524_v29 }
 0x19b   :  { %1527 = vmatpush1.bf16.msra.mxu1 %v1526_v35 }
 0x19c   :  { %1529 = vmatprep.subr.bf16.mxu1 %v1528_v36 }
 0x19f   :  { %1531 = vmatpush1.bf16.msra.mxu1 %v1530_v41  ;;  %v1125_v41 = vld [vmem:[#allocation12 + $0x48] sm:$0xff] }
 0x1a0   :  { %1533 = vmatprep.subr.bf16.mxu1 %v1532_v43  ;;  %v1127_v43 = vld [vmem:[#allocation12 + $0x58] sm:$0xff] }
 0x1a1   :  { %v1580_v49 = vpack.c.bf16 %v1127_v43, %v1125_v41 }
 0x1a3   :  { %1535 = vmatpush1.bf16.msra.mxu1 %v1534_v45 }
 0x1a4   :  { %1537 = vmatprep.subr.bf16.mxu1 %v1536_v51  ;;  %v1126_v51 = vld [vmem:[#allocation12 + $0x50] sm:$0xff] }
 0x1a7   :  { %1539 = vmatpush1.bf16.msra.mxu1 %v1538_v54  ;;  %v1582_v54 = vpack.c.bf16 %v1126_v51, %v1124_v50 }
 0x25d   :  { %v1456_v9 = vpop.f32.mrb[0].mxu1 }
 0x25e   :  { %v843_v10 = vadd.f32 %v1456_v9, %v1314_v8  ;;  %v812_v11 = vpop.f32.mrb[1].mxu1  ;;  %v1143_v9 = vld [vmem:[#allocation12 + $0xd8] sm:$0xff] }
 0x25f   :  { %v842_v12 = vadd.f32 %v1314_v8, %v812_v11 }
 0x260   :  { %v847_v13 = vmax.f32 %v843_v10, 0.0  ;;  %v1594_v10 = vpack.c.bf16 %v1138_v7, %v1136_v6 }
 0x261   :  { %v846_v14 = vmax.f32 %v842_v12, 0.0  ;;  %v1459_v15 = vpop.f32.mrb[2].mxu1  ;;  %v1140_v12 = vld [vmem:[#allocation12 + $0xc0] sm:$0xff] }
 0x262   :  { %v851_v16 = vrot.slane %v847_v13, 6  ;;  %v863_v17 = vrot.slane %v847_v13, 2  ;;  %v845_v18 = vadd.f32 %v1459_v15, %v1314_v8  ;;  %v822_v19 = vpop.f32.mrb[3].mxu1  ;;  %v1147_v15 = vld [vmem:[#allocation12 + $0xf8] sm:$0xff] }
 0x263   :  { %v850_v20 = vrot.slane %v846_v14, 6  ;;  %v862_v21 = vrot.slane %v846_v14, 2  ;;  %v844_v22 = vadd.f32 %v1314_v8, %v822_v19  ;;  %1003 = vmatmul.mubr.f32.vlgmr.msra.gmra.mrb[4].mxu1 %v846_v14  ;;  %v1141_v8 = vld [vmem:[#allocation12 + $0xc8] sm:$0xff]  ;;  %v1146_v19 = vld [vmem:[#allocation12 + $0xf0] sm:$0xff] }
 0x264   :  { %v849_v25 = vmax.f32 %v845_v18, 0.0  ;;  %1008 = vmatprep.mubr.f32.mxu1 %v1821_v63  ;;  %v1596_v11 = vpack.c.bf16 %v1143_v9, %v1141_v8  ;;  %v1145_v14 = vld [vmem:[#allocation12 + $0xe8] sm:$0xff]  ;;  %v1144_v18 = vld [vmem:[#allocation12 + $0xe0] sm:$0xff] }
 0x265   :  { %v848_v28 = vmax.f32 %v844_v22, 0.0  ;;  %v856_v29 = vsel %vm144_vm1, %v850_v20, %v851_v16  ;;  %v2126_v30 = vsel %vm168_vm2, %v862_v21, %v863_v17 }
 0x266   :  { %v853_v31 = vrot.slane %v849_v25, 6  ;;  %v865_v33 = vrot.slane %v849_v25, 2 }
 0x267   :  { %v852_v35 = vrot.slane %v848_v28, 6  ;;  %v864_v36 = vrot.slane %v848_v28, 2  ;;  %1009 = vmatmul.mubr.f32.gmra.mrb[6].mxu1 %v847_v13  ;;  %v1142_v13 = vld [vmem:[#allocation12 + $0xd0] sm:$0xff] }
 0x268   :  { %v857_v40 = vsel %vm144_vm1, %v853_v31, %v850_v20  ;;  %1014 = vmatprep.mubr.f32.mxu1 %v1821_v63  ;;  %v2135_v44 = vsel %vm168_vm2, %v865_v33, %v862_v21  ;;  %v1602_v20 = vpack.c.bf16 %v1146_v19, %v1144_v18 }
 0x269   :  { %1316 = vmatmul.mubr.msk.f32.vlgmr.msra.gmra.mrb[4].mxu0 %vm1315_vm5, %v857_v40  ;;  %v855_v42 = vsel %vm144_vm1, %v851_v16, %v852_v35  ;;  %v854_v45 = vsel %vm144_vm1, %v852_v35, %v853_v31  ;;  %v2143_v46 = vsel %vm168_vm2, %v863_v17, %v864_v36  ;;  %v2147_v47 = vsel %vm168_vm2, %v864_v36, %v865_v33 }
 0x26a   :  { %1575 = vmatpush1.bf16.msra.mxu0 %v1574_v34  ;;  %1097 = vmatprep.mubr.f32.mxu0 %v1821_v63  ;;  %v1598_v16 = vpack.c.bf16 %v1142_v13, %v1140_v12  ;;  %v1600_v17 = vpack.c.bf16 %v1147_v15, %v1145_v14 }
 0x26b   :  { %1015 = vmatmul.mubr.f32.gmra.mrb[8].mxu1 %v848_v28  ;;  %1577 = vmatprep.subr.bf16.mxu0 %v1576_v37 }
 0x26c   :  { %1020 = vmatprep.mubr.f32.mxu1 %v1821_v63 }
 0x26d   :  { %1098 = vmatmul.mubr.f32.gmra.mrb[6].mxu0 %v856_v29  ;;  %v1249_v29 = vsub.s32 0, %v1998_v1 }
 0x26e   :  { %1579 = vmatpush1.bf16.msra.mxu0 %v1578_v48  ;;  %1103 = vmatprep.mubr.f32.mxu0 %v1821_v63 }
 0x26f   :  { %1021 = vmatmul.mubr.f32.gmra.mrb[10].mxu1 %v849_v25  ;;  %1581 = vmatprep.subr.bf16.mxu0 %v1580_v49 }
 0x271   :  { %1104 = vmatmul.mubr.f32.gmra.mrb[8].mxu0 %v855_v42 }
 0x272   :  { %1583 = vmatpush1.bf16.msra.mxu0 %v1582_v54  ;;  %1109 = vmatprep.mubr.f32.mxu0 %v1821_v63 }
 0x273   :  { %1585 = vmatprep.subr.bf16.mxu0 %v1584_v55 }
 0x275   :  { %1110 = vmatmul.mubr.f32.gmra.mrb[10].mxu0 %v854_v45 }
 0x276   :  { %1587 = vmatpush1.bf16.msra.mxu0 %v1586_v60  ;;  %1212 = vmatprep.mubr.f32.mxu0 %v1821_v63 }
 0x277   :  { %1589 = vmatprep.subr.bf16.mxu0 %v1588_v61 }
 0x27a   :  { %1591 = vmatpush1.bf16.msra.mxu0 %v1590_v4 }
 0x27b   :  { %1593 = vmatprep.subr.bf16.mxu0 %v1592_v5 }
 0x27e   :  { %1595 = vmatpush1.bf16.msra.mxu0 %v1594_v10 }
 0x27f   :  { %1597 = vmatprep.subr.bf16.mxu0 %v1596_v11 }
 0x282   :  { %1599 = vmatpush1.bf16.msra.mxu0 %v1598_v16 }
 0x283   :  { %1601 = vmatprep.subr.bf16.mxu0 %v1600_v17 }
 0x286   :  { %1603 = vmatpush1.bf16.msra.mxu0 %v1602_v20 }
 0x289   :  { %1213 = vmatmul.mubr.f32.vlgmr.msra.gmra.mrb[4].mxu0 %v2126_v30  ;;  %v1245_v30 = vld [vmem:[%s2204_s12] sm:$0x3] }
 0x28a   :  { %1218 = vmatprep.mubr.f32.mxu0 %v1821_v63  ;;  %v1250_v32 = vrot.slane %v1245_v30, %v1249_v29 }
 0x28d   :  { %1219 = vmatmul.mubr.f32.gmra.mrb[6].mxu0 %v2143_v46 }
 0x28e   :  { %1224 = vmatprep.mubr.f32.mxu0 %v1821_v63 }
 0x291   :  { %1225 = vmatmul.mubr.f32.gmra.mrb[8].mxu0 %v2147_v47 }
 0x292   :  { %1230 = vmatprep.mubr.f32.mxu0 %v1821_v63  ;;  %v1253_v63 = vsub.s32 1, %v1998_v1 }
 0x294   :  { %v1254_v33 = vrot.slane %v1245_v30, %v1253_v63 }
 0x295   :  { %1318 = vmatmul.mubr.msk.f32.gmra.mrb[10].mxu0 %vm1317_vm6, %v2135_v44 }
 0x336   :  { %v1004_v21 = vpop.f32.mrb[4].mxu1 }
 0x337   :  { %v1006_v22 = vpop.f32.mrb[5].mxu1 }
 0x33a   :  { %v1010_v23 = vpop.f32.mrb[6].mxu1 }
 0x33b   :  { %v1012_v24 = vpop.f32.mrb[7].mxu1 }
 0x33e   :  { %v1016_v25 = vpop.f32.mrb[8].mxu1 }
 0x33f   :  { %v1018_v26 = vpop.f32.mrb[9].mxu1 }
 0x342   :  { %v1022_v27 = vpop.f32.mrb[10].mxu1 }
 0x343   :  { %v1024_v28 = vpop.f32.mrb[11].mxu1 }
 0x35c   :  { %v1214_v31 = vpop.f32.mrb[4].mxu0 }
 0x35d   :  { %v1604_v34 = vadd.f32 %v1214_v31, %v1004_v21  ;;  %v1216_v35 = vpop.f32.mrb[5].mxu0 }
 0x35e   :  { %v1605_v36 = vadd.f32 %v1216_v35, %v1006_v22 }
 0x35f   :  { %v1257_v37 = vadd.f32 %v1604_v34, %v1250_v32 }
 0x360   :  { %v1258_v38 = vadd.f32 %v1605_v36, %v1254_v33  ;;  %v1220_v39 = vpop.f32.mrb[6].mxu0 }
 0x361   :  { %v1265_v40 = vmax.f32 %v1257_v37, 0.0  ;;  %v1606_v41 = vadd.f32 %v1220_v39, %v1010_v23  ;;  %v1222_v43 = vpop.f32.mrb[7].mxu0 }
 0x362   :  { %v1266_v44 = vmax.f32 %v1258_v38, 0.0  ;;  %v1607_v42 = vadd.f32 %v1222_v43, %v1012_v24 }
 0x363   :  { %1273 = vst [vmem:[%s2205_s13] sm:$0xff] %v1265_v40  ;;  %v1259_v45 = vadd.f32 %v1606_v41, %v1250_v32 }
 0x364   :  { %1274 = vst [vmem:[%s2205_s13 + $0x8] sm:$0xff] %v1266_v44  ;;  %v1260_v1 = vadd.f32 %v1607_v42, %v1254_v33  ;;  %v1226_v46 = vpop.f32.mrb[8].mxu0 }
 0x365   :  { %v1267_v47 = vmax.f32 %v1259_v45, 0.0  ;;  %v1608_v48 = vadd.f32 %v1226_v46, %v1016_v25  ;;  %v1228_v49 = vpop.f32.mrb[9].mxu0 }
 0x366   :  { %v1268_v50 = vmax.f32 %v1260_v1, 0.0  ;;  %v1609_v51 = vadd.f32 %v1228_v49, %v1018_v26 }
 0x367   :  { %1275 = vst [vmem:[%s2205_s13 + $0x10] sm:$0xff] %v1267_v47  ;;  %v1261_v52 = vadd.f32 %v1608_v48, %v1250_v32 }
 0x368   :  { %1276 = vst [vmem:[%s2205_s13 + $0x18] sm:$0xff] %v1268_v50  ;;  %v1262_v53 = vadd.f32 %v1609_v51, %v1254_v33  ;;  %v1232_v54 = vpop.f32.mrb[10].mxu0 }
 0x369   :  { %v1269_v55 = vmax.f32 %v1261_v52, 0.0  ;;  %v1610_v56 = vadd.f32 %v1232_v54, %v1022_v27  ;;  %v1234_v57 = vpop.f32.mrb[11].mxu0 }
 0x36a   :  { %v1270_v58 = vmax.f32 %v1262_v53, 0.0  ;;  %v1611_v59 = vadd.f32 %v1234_v57, %v1024_v28 }
 0x36b   :  { %1277 = vst [vmem:[%s2205_s13 + $0x20] sm:$0xff] %v1269_v55  ;;  %v1263_v60 = vadd.f32 %v1610_v56, %v1250_v32 }
 0x36c   :  { %1278 = vst [vmem:[%s2205_s13 + $0x28] sm:$0xff] %v1270_v58  ;;  %v1264_v61 = vadd.f32 %v1611_v59, %v1254_v33 }
 0x36d   :  { %v1271_v62 = vmax.f32 %v1263_v60, 0.0 }
 0x36e   :  { %v1272_v0 = vmax.f32 %v1264_v61, 0.0 }
 0x36f   :  { %1279 = vst [vmem:[%s2205_s13 + $0x30] sm:$0xff] %v1271_v62 }
 0x370   :  { %1280 = vst [vmem:[%s2205_s13 + $0x38] sm:$0xff] %v1272_v0 }
 0x371   :  { %1285 = vsyncpa [#allocation3], 1 }
 0x372   :  { %1286 = vsyncpa [#allocation5], 1 }
 0x373   :  { %1287 = vsyncpa [#allocation8], 1 }
 0x374   :  { %1288 = vsyncpa [#allocation11], 1 }

// kernel: cnn_lstm_attention_forward.7
= control target key start
LH: loop header
LB: loop body
LE: loop exit
PB: predicated region body
PF: predicated region fallthrough
CT: control target
= control target key end

     0   :  { %s1222_s0 = inlined_call_operand.vmem [shape: f32[2,16,64], index: 0, kind: input, shape index: {}]   ;;  %s1223_s1 = inlined_call_operand.vmem [shape: f32[1,64], index: 1, kind: input, shape index: {}]   ;;  %s1224_s2 = inlined_call_operand.<no memory space> [shape: f32[1,1], index: 2, kind: input, shape index: {}]   ;;  %s1225_s3 = inlined_call_operand.vmem [shape: f32[64,128], index: 3, kind: input, shape index: {}]   ;;  %s1226_s4 = inlined_call_operand.vmem [shape: f32[1,128], index: 4, kind: input, shape index: {}]   ;;  %s1227_s5 = inlined_call_operand.vmem [shape: f32[128,64], index: 5, kind: input, shape index: {}]   ;;  %s1228_s6 = inlined_call_operand.vmem [shape: f32[1,64], index: 6, kind: input, shape index: {}]   ;;  %s1229_s7 = inlined_call_operand.vmem [shape: f32[64,32], index: 7, kind: input, shape index: {}]   ;;  %s1230_s8 = inlined_call_operand.vmem [shape: f32[1,32], index: 8, kind: input, shape index: {}]   ;;  %s1231_s9 = inlined_call_operand.vmem [shape: f32[32,3], index: 9, kind: input, shape index: {}]   ;;  %s1232_s10 = inlined_call_operand.vmem [shape: f32[1,3], index: 10, kind: input, shape index: {}]   ;;  %s1233_s11 = inlined_call_operand.hbm [shape: f32[2,3], index: 11, kind: output, shape index: {0}]   ;;  %s1234_s12 = inlined_call_operand.hbm [shape: f32[2,16], index: 12, kind: output, shape index: {1}]  }
   0x1   :  { %v18_v0 = vstv %s1224_s2 }
   0x2   :  { %19 = vst [vmem:[#allocation2] sm:$0x1] %v18_v0 }
   0x3   :  { %20 = vsyncpa [#allocation4], 0  ;;  %v979_v1 = vld [vmem:[%s1222_s0] sm:$0xff]  ;;  %vm59_vm0 = vcmask 523264   ;;  %v987_v3 = vld [vmem:[%s1222_s0 + $0x8] sm:$0xff]  ;;  %v902_v8 = vmov 0  }
   0x4   :  { %v649_v2 = vld [vmem:[%s1223_s1] ss:$0 sm:$0xff]  ;;  %v994_v6 = vld [vmem:[%s1222_s0 + $0x10] sm:$0xff]  ;;  %v999_v7 = vld [vmem:[%s1222_s0 + $0x18] sm:$0xff]  ;;  %842 = vset.pattern.permute.xlu0 %v902_v8  ;;  %843 = vset.pattern.permute.xlu1 %v902_v8 }
   0x5   :  { %v55_v4 = vmul.f32 %v649_v2, %v979_v1  ;;  %v56_v5 = vmul.f32 %v649_v2, %v987_v3  ;;  %v57_v9 = vmul.f32 %v649_v2, %v994_v6  ;;  %v58_v10 = vmul.f32 %v649_v2, %v999_v7 }
   0x6   :  { %21 = vsyncpa [#allocation6], 0  ;;  %v90_v16 = vlaneseq  ;;  %vm101_vm1 = vcmask 130112   ;;  %vm112_vm2 = vcmask 1041409   ;;  %vm115_vm3 = vcmask 123904   ;;  %s906_s20 = smov [#allocation5]  }
   0x7   :  { %v60_v11 = vsel %vm59_vm0, %v55_v4, 0.0  ;;  %v66_v12 = vsel %vm59_vm0, %v57_v9, 0.0  ;;  %v63_v13 = vsel %vm59_vm0, %v56_v5, 0.0  ;;  %v69_v14 = vsel %vm59_vm0, %v58_v10, 0.0  ;;  %s637_s21 = sshll.u32 %s906_s20, 4  ;;  %s638_s21 = int_to_ptr.vmem [resolvable:$true] %s637_s21 }
   0x8   :  { %61 = vadd.xlane.f32.xlu0 %v60_v11  ;;  %67 = vadd.xlane.f32.xlu1 %v66_v12  ;;  %v91_v18 = vand.u32 127, %v90_v16  ;;  %v1007_v20 = vshrl.u32 %v90_v16, 7  ;;  %v260_v16 = vld [vmem:[%s1225_s3] sm:$0xff]  ;;  %vm904_vm4 = vmmov 0   ;;  %vm545_vm5 = vcmask 261120   ;;  %s854_s22 = scalar_lea.vmem %s638_s21, 32  ;;  %p859_p1 = scmp.lt.s32.totalorder %s638_s21, %s638_s21 }
   0x9   :  { %v650_v15 = vld [vmem:[#allocation2] ss:$0 sm:$0xff]  ;;  %p855_p0 = scmp.ne.s32.totalorder %s638_s21, %s854_s22  ;;  %p860_p2 = scmp.lt.s32.totalorder %s854_s22, %s854_s22 }
   0xa   :  { %v96_v21 = vadd.s32 4294967288, %v91_v18  ;;  %v1010_v24 = vsub.s32 %v91_v18, %v1007_v20  ;;  %v122_v39 = vsub.s32 0, %v1007_v20  ;;  %v126_v40 = vsub.s32 1, %v1007_v20 }
   0xb   :  { %p861_p3 = por %p860_p2, %p859_p1 }
   0xc   :  { %64 = vadd.xlane.f32.xlu0 %v63_v13  ;;  %70 = vadd.xlane.f32.xlu1 %v69_v14  ;;  %v1013_v25 = vsub.s32 %v96_v21, %v1007_v20  ;;  %v262_v20 = vld [vmem:[%s1225_s3 + $0x10] sm:$0xff]  ;;  %v263_v21 = vld [vmem:[%s1225_s3 + $0x18] sm:$0xff] }
   0xd   :  { %p862_p4 = pnand %p861_p3, %p855_p0 }
  0x22   :  { %79 = vperm.xlu0 %842, %v650_v15  }
  0x95   :  { %v62_v17 = vpop.xlane.xlu0 %61  ;;  %v68_v19 = vpop.xlane.xlu1 %67 }
  0x99   :  { %v65_v22 = vpop.xlane.xlu0 %64  ;;  %v71_v23 = vpop.xlane.xlu1 %70 }
  0xa1   :  { %v80_v26 = vpop.permute.xlu0 %79 }
  0xa2   :  { %v82_v27 = vadd.f32 %v80_v26, %v62_v17  ;;  %v83_v28 = vadd.f32 %v80_v26, %v65_v22  ;;  %v84_v29 = vadd.f32 %v80_v26, %v68_v19  ;;  %v85_v30 = vadd.f32 %v80_v26, %v71_v23  ;;  %v261_v17 = vld [vmem:[%s1225_s3 + $0x8] sm:$0xff]  ;;  %v264_v23 = vld [vmem:[%s1225_s3 + $0x20] sm:$0xff] }
  0xa3   :  { %v783_v18 = vpack.c.bf16 %v261_v17, %v260_v16  ;;  %v903_v19 = vmov 0.0|0.0   ;;  %v786_v22 = vpack.c.bf16 %v263_v21, %v262_v20  ;;  %v265_v26 = vld [vmem:[%s1225_s3 + $0x28] sm:$0xff] }
  0xa4   :  { %v95_v31 = vrot.slane %v82_v27, %v1010_v24  ;;  %v100_v32 = vrot.slane %v83_v28, %v1013_v25  ;;  %v106_v33 = vrot.slane %v84_v29, %v1010_v24  ;;  %v110_v34 = vrot.slane %v85_v30, %v1013_v25  ;;  %782 = vmatprep.subr.bf16.mxu0 %v903_v19 }
  0xa5   :  { %794 = vmatprep.subr.bf16.mxu1 %v903_v19  ;;  %784 = vmatpush3.bf16.msra.mxu0 %v783_v18 }
  0xa6   :  { %v102_v35 = vsel %vm101_vm1, %v100_v32, %v95_v31  ;;  %v111_v36 = vsel %vm101_vm1, %v110_v34, %v106_v33  ;;  %785 = vmatprep.subr.bf16.mxu0 %v903_v19  ;;  %v905_v31 = vmov 0.0   ;;  %v351_v32 = vld [vmem:[%s1227_s5] sm:$0xff]  ;;  %v352_v33 = vld [vmem:[%s1227_s5 + $0x8] sm:$0xff]  ;;  %v353_v34 = vld [vmem:[%s1227_s5 + $0x10] sm:$0xff] }
  0xa7   :  { %v113_v37 = vsel %vm112_vm2, %v111_v36, %v102_v35  ;;  %714 = vmatprep.mubr.msk.f32.mxu0 %vm904_vm4, %v905_v31  ;;  %749 = vmatprep.mubr.msk.f32.mxu1 %vm904_vm4, %v905_v31  ;;  %v795_v35 = vpack.c.bf16 %v352_v33, %v351_v32  ;;  %v354_v36 = vld [vmem:[%s1227_s5 + $0x18] sm:$0xff] }
  0xa8   :  { %v116_v38 = vsel %vm115_vm3, %v113_v37, -inf  ;;  %v798_v37 = vpack.c.bf16 %v354_v36, %v353_v34  ;;  %v448_v32 = vld [vmem:[%s1229_s7 + $0x18] sm:$0xff]  ;;  %v449_v34 = vld [vmem:[%s1229_s7 + $0x20] sm:$0xff] }
  0xa9   :  { %117 = vmax.xlane.f32.xlu1 %v116_v38  ;;  %787 = vmatpush3.bf16.msra.mxu0 %v786_v22  ;;  %v355_v38 = vld [vmem:[%s1227_s5 + $0x20] sm:$0xff]  ;;  %v365_v22 = vld [vmem:[%s1227_s5 + $0x70] sm:$0xff] }
  0xaa   :  { %788 = vmatprep.subr.bf16.mxu0 %v903_v19  ;;  %796 = vmatpush3.bf16.msra.mxu1 %v795_v35  ;;  %v450_v35 = vld [vmem:[%s1229_s7 + $0x28] sm:$0xff] }
  0xab   :  { %797 = vmatprep.subr.bf16.mxu1 %v903_v19  ;;  %v825_v36 = vpack.c.bf16 %v450_v35, %v449_v34 }
  0xae   :  { %799 = vmatpush3.bf16.msra.mxu1 %v798_v37  ;;  %v651_v37 = vld [vmem:[%s1226_s4] ss:$0 sm:$0xff] }
  0xaf   :  { %800 = vmatprep.subr.bf16.mxu1 %v903_v19 }
 0x136   :  { %v118_v41 = vpop.xlane.xlu1 %117 }
 0x137   :  { %v123_v42 = vrot.slane %v118_v41, %v122_v39  ;;  %v127_v43 = vrot.slane %v118_v41, %v126_v40  ;;  %v357_v41 = vld [vmem:[%s1227_s5 + $0x30] sm:$0xff] }
 0x139   :  { %v130_v44 = vsub.f32 %v82_v27, %v123_v42  ;;  %v131_v45 = vsub.f32 %v83_v28, %v123_v42  ;;  %v132_v47 = vsub.f32 %v84_v29, %v127_v43  ;;  %v133_v49 = vsub.f32 %v85_v30, %v127_v43  ;;  %v266_v28 = vld [vmem:[%s1225_s3 + $0x30] sm:$0xff]  ;;  %v267_v29 = vld [vmem:[%s1225_s3 + $0x38] sm:$0xff] }
 0x13a   :  { %v789_v27 = vpack.c.bf16 %v265_v26, %v264_v23  ;;  %v792_v30 = vpack.c.bf16 %v267_v29, %v266_v28  ;;  %v358_v42 = vld [vmem:[%s1227_s5 + $0x38] sm:$0xff]  ;;  %v446_v28 = vld [vmem:[%s1229_s7 + $0x8] sm:$0xff]  ;;  %v447_v29 = vld [vmem:[%s1229_s7 + $0x10] sm:$0xff] }
 0x13b   :  { %v134_v46 = vmul.f32 1.442695, %v130_v44  ;;  %v136_v48 = vmul.f32 1.442695, %v131_v45  ;;  %v138_v50 = vmul.f32 1.442695, %v132_v47  ;;  %v804_v43 = vpack.c.bf16 %v358_v42, %v357_v41 }
 0x13c   :  { %v140_v51 = vmul.f32 1.442695, %v133_v49  ;;  %790 = vmatpush3.bf16.msra.mxu0 %v789_v27  ;;  %v359_v44 = vld [vmem:[%s1227_s5 + $0x40] sm:$0xff]  ;;  %v360_v45 = vld [vmem:[%s1227_s5 + $0x48] sm:$0xff]  ;;  %v361_v47 = vld [vmem:[%s1227_s5 + $0x50] sm:$0xff]  ;;  %v822_v33 = vpack.c.bf16 %v448_v32, %v447_v29 }
 0x13d   :  { %844 = vpow2.f32 %v134_v46  ;;  %791 = vmatprep.subr.bf16.mxu0 %v903_v19  ;;  %v807_v46 = vpack.c.bf16 %v360_v45, %v359_v44  ;;  %v366_v23 = vld [vmem:[%s1227_s5 + $0x78] sm:$0xff]  ;;  %v445_v27 = vld [vmem:[%s1229_s7] sm:$0xff]  ;;  %v451_v42 = vld [vmem:[%s1229_s7 + $0x30] sm:$0xff] }
 0x13e   :  { %846 = vpow2.f32 %v136_v48  ;;  %v362_v48 = vld [vmem:[%s1227_s5 + $0x58] sm:$0xff]  ;;  %v816_v26 = vpack.c.bf16 %v366_v23, %v365_v22  ;;  %v653_v45 = vld [vmem:[%s1228_s6] ss:$0 sm:$0xff] }
 0x13f   :  { %848 = vpow2.f32 %v138_v50  ;;  %v810_v49 = vpack.c.bf16 %v362_v48, %v361_v47  ;;  %v363_v50 = vld [vmem:[%s1227_s5 + $0x60] sm:$0xff]  ;;  %v535_v47 = vld [vmem:[%s1231_s9 + $0x8] sm:$0xff] }
 0x140   :  { %850 = vpow2.f32 %v140_v51  ;;  %793 = vmatpush3.bf16.msra.mxu0 %v792_v30  ;;  %v364_v51 = vld [vmem:[%s1227_s5 + $0x68] sm:$0xff]  ;;  %v819_v30 = vpack.c.bf16 %v446_v28, %v445_v27 }
 0x141   :  { %818 = vmatprep.subr.bf16.mxu0 %v903_v19 }
 0x147   :  { %v845_v52 = vpop.eup %844 }
 0x148   :  { %147 = vperm.xlu1 %843, %v845_v52   ;;  %v847_v53 = vpop.eup %846 }
 0x149   :  { %v849_v54 = vpop.eup %848 }
 0x14a   :  { %v851_v55 = vpop.eup %850 }
 0x14c   :  { %150 = vperm.xlu1 %843, %v847_v53  }
 0x150   :  { %153 = vperm.xlu1 %843, %v849_v54  }
 0x154   :  { %156 = vperm.xlu1 %843, %v851_v55  }
 0x1c7   :  { %v148_v56 = vpop.permute.xlu1 %147 }
 0x1c8   :  { %v161_v61 = vrot.slane %v148_v56, %v1010_v24 }
 0x1cb   :  { %v151_v57 = vpop.permute.xlu1 %150 }
 0x1cc   :  { %v165_v59 = vrot.slane %v151_v57, %v1013_v25 }
 0x1ce   :  { %v166_v0 = vsel %vm101_vm1, %v165_v59, %v161_v61 }
 0x1cf   :  { %v154_v58 = vpop.permute.xlu1 %153 }
 0x1d0   :  { %v170_v62 = vrot.slane %v154_v58, %v1010_v24 }
 0x1d3   :  { %v157_v60 = vpop.permute.xlu1 %156 }
 0x1d4   :  { %v174_v63 = vrot.slane %v157_v60, %v1013_v25 }
 0x1d6   :  { %v175_v2 = vsel %vm101_vm1, %v174_v63, %v170_v62 }
 0x1d7   :  { %v176_v4 = vsel %vm112_vm2, %v175_v2, %v166_v0 }
 0x1d8   :  { %v178_v5 = vsel %vm115_vm3, %v176_v4, 0.0 }
 0x1d9   :  { %179 = vadd.xlane.f32.xlu1 %v178_v5 }
 0x266   :  { %v180_v8 = vpop.xlane.xlu1 %179 }
 0x267   :  { %852 = vrcp.f32 %v180_v8 }
 0x271   :  { %v853_v9 = vpop.eup %852 }
 0x272   :  { %v186_v10 = vrot.slane %v853_v9, %v122_v39  ;;  %v190_v13 = vrot.slane %v853_v9, %v126_v40  ;;  %v356_v39 = vld [vmem:[%s1227_s5 + $0x28] sm:$0xff] }
 0x273   :  { %v801_v40 = vpack.c.bf16 %v356_v39, %v355_v38 }
 0x274   :  { %v193_v11 = vmul.f32 %v845_v52, %v186_v10  ;;  %v194_v12 = vmul.f32 %v847_v53, %v186_v10  ;;  %v195_v14 = vmul.f32 %v849_v54, %v190_v13  ;;  %v196_v15 = vmul.f32 %v851_v55, %v190_v13 }
 0x275   :  { %802 = vmatpush3.bf16.msra.mxu1 %v801_v40  ;;  %v813_v52 = vpack.c.bf16 %v364_v51, %v363_v50 }
 0x276   :  { %202 = vperm.xlu0 %842, %v193_v11   ;;  %803 = vmatprep.subr.bf16.mxu1 %v903_v19 }
 0x279   :  { %805 = vmatpush3.bf16.msra.mxu1 %v804_v43  ;;  %v452_v43 = vld [vmem:[%s1229_s7 + $0x38] sm:$0xff] }
 0x27a   :  { %205 = vperm.xlu0 %842, %v194_v12   ;;  %806 = vmatprep.subr.bf16.mxu1 %v903_v19  ;;  %v828_v44 = vpack.c.bf16 %v452_v43, %v451_v42 }
 0x27d   :  { %808 = vmatpush3.bf16.msra.mxu1 %v807_v46  ;;  %v534_v46 = vld [vmem:[%s1231_s9] sm:$0xff] }
 0x27e   :  { %208 = vperm.xlu0 %842, %v195_v14   ;;  %809 = vmatprep.subr.bf16.mxu1 %v903_v19  ;;  %v831_v51 = vpack.c.bf16 %v535_v47, %v534_v46 }
 0x281   :  { %811 = vmatpush3.bf16.msra.mxu1 %v810_v49 }
 0x282   :  { %211 = vperm.xlu0 %842, %v196_v15   ;;  %812 = vmatprep.subr.bf16.mxu1 %v903_v19 }
 0x285   :  { %814 = vmatpush3.bf16.msra.mxu1 %v813_v52 }
 0x286   :  { %815 = vmatprep.subr.bf16.mxu1 %v903_v19 }
 0x289   :  { %817 = vmatpush3.bf16.msra.mxu1 %v816_v26 }
 0x2f5   :  { %v203_v53 = vpop.permute.xlu0 %202 }
 0x2f6   :  { %v238_v54 = vmul.f32 %v203_v53, %v979_v1  ;;  %v216_v4 = vrot.slane %v203_v53, %v1010_v24  ;;  %v536_v53 = vld [vmem:[%s1231_s9 + $0x10] sm:$0xff] }
 0x2f8   :  { %v242_v57 = vsel %vm59_vm0, %v238_v54, 0.0  ;;  %v537_v54 = vld [vmem:[%s1231_s9 + $0x18] sm:$0xff] }
 0x2f9   :  { %v206_v55 = vpop.permute.xlu0 %205 }
 0x2fa   :  { %v239_v56 = vmul.f32 %v206_v55, %v987_v3  ;;  %v220_v62 = vrot.slane %v206_v55, %v1013_v25  ;;  %v834_v55 = vpack.c.bf16 %v537_v54, %v536_v53 }
 0x2fc   :  { %v243_v58 = vsel %vm59_vm0, %v239_v56, 0.0  ;;  %v221_v10 = vsel %vm101_vm1, %v220_v62, %v216_v4  ;;  %v654_v56 = vld [vmem:[%s1230_s8] ss:$0 sm:$0xff] }
 0x2fd   :  { %v244_v59 = vadd.f32 %v243_v58, %v242_v57  ;;  %v209_v60 = vpop.permute.xlu0 %208 }
 0x2fe   :  { %v240_v63 = vmul.f32 %v209_v60, %v994_v6  ;;  %v225_v1 = vrot.slane %v209_v60, %v1010_v24 }
 0x2ff   :  { %v245_v61 = vrot.slane %v244_v59, 4 }
 0x300   :  { %v251_v8 = vsel %vm59_vm0, %v240_v63, 0.0 }
 0x301   :  { %v246_v0 = vadd.f32 %v245_v61, %v244_v59  ;;  %v212_v2 = vpop.permute.xlu0 %211 }
 0x302   :  { %v229_v5 = vrot.slane %v212_v2, %v1013_v25  ;;  %v241_v3 = vmul.f32 %v212_v2, %v999_v7 }
 0x303   :  { %v247_v12 = vrot.slane %v246_v0, 2 }
 0x304   :  { %v252_v9 = vsel %vm59_vm0, %v241_v3, 0.0  ;;  %v230_v11 = vsel %vm101_vm1, %v229_v5, %v225_v1 }
 0x305   :  { %v253_v6 = vadd.f32 %v252_v9, %v251_v8  ;;  %v231_v13 = vsel %vm112_vm2, %v230_v11, %v221_v10  ;;  %v248_v24 = vadd.f32 %v247_v12, %v246_v0 }
 0x306   :  { %233 = vst.msk [vmem:[#allocation5] sm:$0x3] %vm115_vm3, %v231_v13 }
 0x307   :  { %v254_v14 = vrot.slane %v253_v6, 4  ;;  %v249_v7 = vrot.slane %v248_v24, 1 }
 0x309   :  { %v255_v15 = vadd.f32 %v254_v14, %v253_v6  ;;  %v250_v18 = vadd.f32 %v249_v7, %v248_v24 }
 0x30b   :  { %v256_v25 = vrot.slane %v255_v15, 2 }
 0x30d   :  { %v257_v16 = vadd.f32 %v256_v25, %v255_v15 }
 0x30f   :  { %v258_v17 = vrot.slane %v257_v16, 1 }
 0x311   :  { %v259_v20 = vadd.f32 %v258_v17, %v257_v16 }
 0x313   :  { %v277_v21 = vsel %vm112_vm2, %v259_v20, %v250_v18 }
 0x314   :  { %715 = vmatmul.mubr.msk.f32.vlgmr.msra.gmra.mrb[0].mxu0 %vm59_vm0, %v277_v21 }
 0x315   :  { %768 = vmatprep.mubr.msk.f32.mxu0 %vm904_vm4, %v905_v31  ;;  %820 = vmatpush3.bf16.msra.mxu0 %v819_v30 }
 0x316   :  { %821 = vmatprep.subr.bf16.mxu0 %v903_v19 }
 0x319   :  { %823 = vmatpush3.bf16.msra.mxu0 %v822_v33 }
 0x31a   :  { %824 = vmatprep.subr.bf16.mxu0 %v903_v19 }
 0x31d   :  { %826 = vmatpush3.bf16.msra.mxu0 %v825_v36 }
 0x31e   :  { %827 = vmatprep.subr.bf16.mxu0 %v903_v19 }
 0x321   :  { %829 = vmatpush3.bf16.msra.mxu0 %v828_v44 }
 0x322   :  { %830 = vmatprep.subr.bf16.mxu0 %v903_v19 }
 0x3e7   :  { %v346_v38 = vpop.f32.mrb[0].mxu0 }
 0x3e8   :  { %v347_v39 = vadd.f32 %v651_v37, %v346_v38  ;;  %v716_v40 = vpop.f32.mrb[1].mxu0 }
 0x3ea   :  { %v350_v41 = vmax.f32 %v347_v39, 0.0 }
 0x3ec   :  { %750 = vmatmul.mubr.f32.vlgmr.msra.gmra.mrb[0].mxu1 %v350_v41 }
 0x4bf   :  { %v440_v48 = vpop.f32.mrb[0].mxu1 }
 0x4c0   :  { %v441_v49 = vadd.f32 %v653_v45, %v440_v48  ;;  %v751_v50 = vpop.f32.mrb[1].mxu1 }
 0x4c2   :  { %v444_v52 = vmax.f32 %v441_v49, 0.0 }
 0x4c4   :  { %769 = vmatmul.mubr.msk.f32.vlgmr.msra.gmra.mrb[2].mxu0 %vm59_vm0, %v444_v52 }
 0x4c5   :  { %832 = vmatpush3.bf16.msra.mxu0 %v831_v51  ;;  %779 = vmatprep.mubr.msk.f32.mxu0 %vm904_vm4, %v905_v31 }
 0x4c6   :  { %833 = vmatprep.subr.bf16.mxu0 %v903_v19 }
 0x4c9   :  { %835 = vmatpush3.bf16.msra.mxu0 %v834_v55 }
 0x597   :  { %v529_v57 = vpop.f32.mrb[2].mxu0 }
 0x598   :  { %v530_v58 = vadd.f32 %v654_v56, %v529_v57  ;;  %v770_v59 = vpop.f32.mrb[3].mxu0 }
 0x59a   :  { %v533_v31 = vmax.f32 %v530_v58, 0.0 }
 0x59c   :  { %780 = vmatmul.mubr.msk.f32.vlgmr.msra.gmra.mrb[4].mxu0 %vm545_vm5, %v533_v31 }
 0x59d   :  { %865 = shalt.err (!%p862_p4)
}
 0x59e   :  { %s866_s8 = scalar_lea.hbm %s1234_s12, 32 }
 0x59f   :  { %p867_p5 = scmp.ne.s32.totalorder %s1234_s12, %s866_s8  ;;  %p870_p6 = scmp.lt.u32.totalorder %s866_s8, %s1234_s12 }
 0x5a1   :  { %p872_p7 = pnand %p870_p6, %p867_p5 }
 0x5a3   :  { %875 = shalt.err (!%p872_p7)
}
 0x5a4   :  { %640 = dma.vmem_to_hbm [thread:$0]  %s638_s21, 32, %s1234_s12, [#allocation6]   ;;  %v656_v19 = vld [vmem:[%s1232_s10] ss:$0 sm:$0xff]  ;;  %vm619_vm6 = vcmask 17408  }
 0x5a5   :  { %s907_s30 = smov [#allocation3]  }
 0x5a6   :  { %s627_s3 = sshll.u32 %s907_s30, 4  ;;  %s628_s3 = int_to_ptr.vmem [resolvable:$true] %s627_s3 }
 0x5a7   :  { %s876_s13 = scalar_lea.vmem %s628_s3, 32  ;;  %p881_p9 = scmp.lt.s32.totalorder %s628_s3, %s628_s3 }
 0x5a8   :  { %p877_p8 = scmp.ne.s32.totalorder %s628_s3, %s876_s13  ;;  %p882_p10 = scmp.lt.s32.totalorder %s876_s13, %s876_s13 }
 0x5aa   :  { %p883_p11 = por %p882_p10, %p881_p9 }
 0x5ac   :  { %p884_p12 = pnand %p883_p11, %p877_p8 }
 0x66f   :  { %v615_v60 = vpop.f32.mrb[4].mxu0 }
 0x670   :  { %v616_v61 = vadd.f32 %v656_v19, %v615_v60  ;;  %v781_v62 = vpop.f32.mrb[5].mxu0 }
 0x672   :  { %620 = vst.msk [vmem:[#allocation3] sm:$0x3] %vm619_vm6, %v616_v61 }
 0x673   :  { %887 = shalt.err (!%p884_p12)
}
 0x674   :  { %s888_s4 = scalar_lea.hbm %s1233_s11, 32 }
 0x675   :  { %p889_p13 = scmp.ne.s32.totalorder %s1233_s11, %s888_s4  ;;  %p892_p0 = scmp.lt.u32.totalorder %s888_s4, %s1233_s11 }
 0x677   :  { %p894_p1 = pnand %p892_p0, %p889_p13 }
 0x679   :  { %897 = shalt.err (!%p894_p1)
}
 0x67a   :  { %630 = dma.vmem_to_hbm [thread:$0]  %s628_s3, 32, %s1233_s11, [#allocation4]  }
 0x67b   :  { %898 = dma.done.wait [#allocation4], 32  }
 0x67c   :  { %899 = vsyncadd [#allocation4], 4294967264 }
 0x67d   :  { %900 = dma.done.wait [#allocation6], 32  }
 0x67e   :  { %901 = vsyncadd [#allocation6], 4294967264 }
 0x67f   :  { %647 = vsyncpa [#allocation4], 1 }
 0x680   :  { %648 = vsyncpa [#allocation6], 1 }

// kernel: cnn_lstm_attention_forward.6
= control target key start
LH: loop header
LB: loop body
LE: loop exit
PB: predicated region body
PF: predicated region fallthrough
CT: control target
= control target key end

     0   :  { %s5054_s15 = smov 0   ;;  %s5649_s0 = inlined_call_operand.vmem [shape: f32[32,64], index: 0, kind: input, shape index: {}]   ;;  %s5650_s1 = inlined_call_operand.vmem [shape: f32[2,64,128], index: 1, kind: input, shape index: {}]   ;;  %s5651_s2 = inlined_call_operand.vmem [shape: f32[2,32,128], index: 2, kind: input, shape index: {}]   ;;  %s5652_s3 = inlined_call_operand.vmem [shape: f32[2,1,128], index: 3, kind: input, shape index: {}]   ;;  %s5653_s4 = inlined_call_operand.vmem [shape: f32[2,32,32], index: 4, kind: output, shape index: {}]  }
   0x1 LB: > { %s5060_s16 = sadd.s32 4294967295, %s5017_s15   ;;  %p3894_p0 = scmp.ge.s32.totalorder %s5017_s15, 1  ;;  %s5017_s15 = sphi %s5054_s15, %s14_s15  }
   0x2   : > { %p180_p1 = scmp.lt.s32.totalorder %s5017_s15, 3 }
   0x4   : > { %p181_p2 = pnand %p3894_p0, %p180_p1 }
   0x5   : > { %p214_p3 = scmp.lt.s32.totalorder (!%p181_p2), %s5060_s16, 1  ;;  %v232_v0 = vld [vmem:[%s5649_s0] sm:$0xff] (!%p181_p2)  ;;  %vm251_vm0 = vcmask (!%p181_p2), 523264   ;;  %v234_v1 = vld [vmem:[%s5649_s0 + $0x10] sm:$0xff] (!%p181_p2)  ;;  %v233_v18 = vld [vmem:[%s5649_s0 + $0x8] sm:$0xff] (!%p181_p2)  ;;  %p3906_p4 = scmp.ne.s32.totalorder (!%p181_p2), %s5060_s16, 0 }
   0x6   : > { %184 = sbr.rel (%p181_p2) target bundleno = 22826 (0x592a), region = 36  ;;  %4163 = vmatprep.mubr.msk.f32.mxu0 (!%p181_p2), %vm251_vm0, %v232_v0  ;;  %4166 = vmatprep.mubr.msk.f32.mxu1 (!%p181_p2), %vm251_vm0, %v234_v1  ;;  %v235_v19 = vld [vmem:[%s5649_s0 + $0x18] sm:$0xff] (!%p181_p2) }
   0xd   : > { %s5074_s21 = scalar_select %p214_p3, %s5060_s16, 1 }
   0xe   : > { %v5019_v30 = vmov (!%p3906_p4), 0.0|0.0   ;;  %vm5020_vm1 = vmmov (!%p3906_p4), 0   ;;  %v5021_v32 = vmov (!%p3906_p4), 0.0   ;;  %s5022_s14 = smov (!%p3906_p4), 64   ;;  %s5023_s17 = smov (!%p3906_p4), 32   ;;  %vm357_vm2 = vcmask (!%p3906_p4), 261120  }
   0xf   : > { %s3972_s22 = sshll.u32 %s5074_s21, 6  ;;  %s3973_s23 = sshll.u32 %s5074_s21, 5  ;;  %vm2048_vm3 = vcmask (!%p3906_p4), 1041408   ;;  %vm2050_vm4 = vcmask (!%p3906_p4), 1043456   ;;  %vm2052_vm5 = vcmask (!%p3906_p4), 1045504  }
  0x10   : > { %s218_s26 = scalar_lea.vmem %s5650_s1, %s3972_s22  ;;  %s223_s29 = scalar_lea.vmem %s5651_s2, %s3973_s23 }
  0x11   : > { %s5087_s6 = scalar_lea.vmem %s5653_s4, %s3973_s23  ;;  %v236_v2 = vld [vmem:[%s218_s26] sm:$0xff]  ;;  %v237_v3 = vld [vmem:[%s218_s26 + $0x8] sm:$0xff]  ;;  %v5093_v7 = vld [vmem:[%s223_s29 + $0x10] sm:$0xff]  ;;  %s226_s13 = scalar_lea.vmem %s5652_s3, %s5074_s21 }
  0x12   : > { %v5089_v4 = vld [vmem:[%s223_s29] sm:$0xff]  ;;  %v4521_v5 = vpack.c.bf16 %v237_v3, %v236_v2  ;;  %v5091_v6 = vld [vmem:[%s223_s29 + $0x8] sm:$0xff]  ;;  %v5095_v8 = vld [vmem:[%s223_s29 + $0x18] sm:$0xff] }
  0x13   : > { %v238_v9 = vld [vmem:[%s218_s26 + $0x10] sm:$0xff]  ;;  %v239_v10 = vld [vmem:[%s218_s26 + $0x18] sm:$0xff]  ;;  %v240_v11 = vld [vmem:[%s218_s26 + $0x20] sm:$0xff]  ;;  %v5120_v29 = vpack.c.bf16 (!%p3906_p4), %v5091_v6, %v5089_v4  ;;  %v5127_v31 = vpack.c.bf16 (!%p3906_p4), %v5095_v8, %v5093_v7 }
  0x14   : > { %4522 = vmatprep.subr.bf16.mxu0 %v4521_v5  ;;  %4729 = vmatprep.subr.bf16.mxu1 %v4521_v5  ;;  %v4525_v12 = vpack.c.bf16 %v239_v10, %v238_v9  ;;  %v241_v13 = vld [vmem:[%s218_s26 + $0x28] sm:$0xff]  ;;  %v242_v15 = vld [vmem:[%s218_s26 + $0x30] sm:$0xff]  ;;  %v243_v16 = vld [vmem:[%s218_s26 + $0x38] sm:$0xff] }
  0x15   : > { %4524 = vmatpush3.bf16.msra.mxu0 %v4521_v5  ;;  %4733 = vmatpush3.bf16.msra.mxu1 %v4521_v5  ;;  %v4529_v14 = vpack.c.bf16 %v241_v13, %v240_v11  ;;  %v4533_v17 = vpack.c.bf16 %v243_v16, %v242_v15  ;;  %v3901_v20 = vld [vmem:[%s226_s13] ss:$0 sm:$0xff] }
  0x16   : > { %4526 = vmatprep.subr.bf16.mxu0 %v4525_v12  ;;  %4730 = vmatprep.subr.bf16.mxu1 %v4525_v12 }
  0x19   : > { %4528 = vmatpush3.bf16.msra.mxu0 %v4525_v12  ;;  %4734 = vmatpush3.bf16.msra.mxu1 %v4525_v12 }
  0x1a   : > { %4530 = vmatprep.subr.bf16.mxu0 %v4529_v14  ;;  %4731 = vmatprep.subr.bf16.mxu1 %v4529_v14 }
  0x1d   : > { %4532 = vmatpush3.bf16.msra.mxu0 %v4529_v14  ;;  %4735 = vmatpush3.bf16.msra.mxu1 %v4529_v14 }
  0x1e   : > { %4534 = vmatprep.subr.bf16.mxu0 %v4533_v17  ;;  %4732 = vmatprep.subr.bf16.mxu1 %v4533_v17 }
  0x21   : > { %4536 = vmatpush3.bf16.msra.mxu0 %v4533_v17  ;;  %4736 = vmatpush3.bf16.msra.mxu1 %v4533_v17 }
  0x22   : > { %4537 = vmatprep.subr.bf16.mxu0 (!%p3906_p4), %v5019_v30  ;;  %4543 = vmatprep.subr.bf16.mxu1 (!%p3906_p4), %v5019_v30 }
  0x24   : > { %4164 = vmatmul.mubr.msk.f32.vlgmr.msra.gmra.mrb[0].mxu0 %vm251_vm0, %v233_v18  ;;  %4167 = vmatmul.mubr.msk.f32.vlgmr.msra.gmra.mrb[0].mxu1 %vm251_vm0, %v235_v19 }
  0x25   : > { %4539 = vmatpush3.bf16.msra.mxu0 (!%p3906_p4), %v5120_v29  ;;  %4177 = vmatprep.mubr.msk.f32.mxu0 (!%p3906_p4), %vm5020_vm1, %v5021_v32 }
  0x26   : > { %4540 = vmatprep.subr.bf16.mxu0 (!%p3906_p4), %v5019_v30  ;;  %4545 = vmatpush3.bf16.msra.mxu1 (!%p3906_p4), %v5120_v29 }
  0x27   : > { %4546 = vmatprep.subr.bf16.mxu1 (!%p3906_p4), %v5019_v30  ;;  %4188 = vmatprep.mubr.msk.f32.mxu1 (!%p3906_p4), %vm5020_vm1, %v5021_v32 }
  0x29   : > { %4542 = vmatpush3.bf16.msra.mxu0 (!%p3906_p4), %v5127_v31 }
  0x2a   : > { %4548 = vmatpush3.bf16.msra.mxu1 (!%p3906_p4), %v5127_v31  ;;  %4549 = vmatprep.subr.bf16.mxu0 (!%p3906_p4), %v5019_v30 }
  0x2b   : > { %4555 = vmatprep.subr.bf16.mxu1 (!%p3906_p4), %v5019_v30 }
  0xf3   : > { %356 = sbr.rel (%p3906_p4) target bundleno = 11528 (0x2d08), region = 40 }
  0xf7   : > { %v4165_v21 = vpop.f32.mrb[0].mxu0  ;;  %v4168_v22 = vpop.f32.mrb[0].mxu1 }
  0xf8   : > { %v5109_v23 = vadd.f32 %v4165_v21, %v3901_v20  ;;  %v5111_v24 = vadd.f32 %v4168_v22, %v3901_v20  ;;  %v330_v25 = vpop.f32.mrb[1].mxu0  ;;  %v340_v26 = vpop.f32.mrb[1].mxu1  ;;  %4178 = vmatmul.mubr.f32.vlgmr.msra.gmra.mrb[0].mxu0 (!%p3906_p4), %v5021_v32 }
  0xf9   : > { %v5113_v27 = vadd.f32 %v3901_v20, %v330_v25  ;;  %v5115_v28 = vadd.f32 %v3901_v20, %v340_v26  ;;  %4551 = vmatpush3.bf16.msra.mxu0 (!%p3906_p4), %v5120_v29  ;;  %4199 = vmatprep.mubr.msk.f32.mxu0 (!%p3906_p4), %vm5020_vm1, %v5021_v32 }
  0xfa   : > { %4552 = vmatprep.subr.bf16.mxu0 %v5019_v30 }
  0xfd   : > { %4554 = vmatpush3.bf16.msra.mxu0 %v5127_v31 }
  0xfe   : > { %4561 = vmatprep.subr.bf16.mxu0 %v5019_v30 }
 0x1cb   : > { %v427_v33 = vpop.f32.mrb[0].mxu0 }
 0x1cc   : > { %v431_v34 = vadd.f32 %v427_v33, %v5113_v27  ;;  %v4179_v35 = vpop.f32.mrb[1].mxu0 }
 0x1ce   : > { %4755 = vtanh.f32 %v431_v34  ;;  %v3907_v37 = vmul.f32 -1.442695, %v431_v34 }
 0x1d0   : > { %4757 = vpow2.f32 %v3907_v37 }
 0x1d8   : > { %v4756_v36 = vpop.eup %4755 }
 0x1d9   : > { %441 = vrot.lane.b32.xlu0 %v4756_v36, %s5022_s14 }
 0x1da   : > { %v4758_v38 = vpop.eup %4757 }
 0x1db   : > { %v435_v39 = vadd.f32 1.0, %v4758_v38 }
 0x1dd   : > { %4759 = vrcp.f32 %v435_v39 }
 0x1e7   : > { %v4760_v40 = vpop.eup %4759 }
 0x1e8   : > { %v439_v43 = vmul.f32 0.0, %v4760_v40 }
 0x24b   : > { %v442_v41 = vpop.permute.xlu0 %441 }
 0x24c   : > { %v444_v42 = vmul.f32 %v4760_v40, %v442_v41 }
 0x24e   : > { %446 = vrot.lane.b32.xlu0 %v444_v42, %s5023_s17 }
 0x2c0   : > { %v447_v44 = vpop.permute.xlu0 %446 }
 0x2c1   : > { %v449_v45 = vadd.f32 %v447_v44, %v439_v43 }
 0x2c3   : > { %4761 = vtanh.f32 %v449_v45  ;;  %v543_v61 = vrot.slane %v449_v45, 6 }
 0x2cd   : > { %v4762_v46 = vpop.eup %4761 }
 0x2ce   : > { %452 = vrot.lane.b32.xlu1 %v4762_v46, %s5022_s14 }
 0x340   : > { %v453_v47 = vpop.permute.xlu1 %452 }
 0x341   : > { %v5151_v48 = vmul.f32 %v4760_v40, %v453_v47 }
 0x343   : > { %457 = vrot.lane.b32.xlu1 %v5151_v48, %s5023_s17 }
 0x3b5   : > { %v458_v49 = vpop.permute.xlu1 %457 }
 0x3b6   : > { %4189 = vmatmul.mubr.msk.f32.vlgmr.msra.gmra.mrb[0].mxu1 %vm357_vm2, %v458_v49 }
 0x3b7   : > { %4557 = vmatpush3.bf16.msra.mxu1 %v5120_v29  ;;  %4210 = vmatprep.mubr.msk.f32.mxu1 %vm5020_vm1, %v5021_v32 }
 0x3b8   : > { %4558 = vmatprep.subr.bf16.mxu1 %v5019_v30 }
 0x3bb   : > { %4560 = vmatpush3.bf16.msra.mxu1 %v5127_v31 }
 0x3bc   : > { %4567 = vmatprep.subr.bf16.mxu1 %v5019_v30 }
 0x489   : > { %v527_v50 = vpop.f32.mrb[0].mxu1 }
 0x48a   : > { %v532_v51 = vrot.slane %v527_v50, 6  ;;  %v4190_v52 = vpop.f32.mrb[1].mxu1 }
 0x48c   : > { %v534_v53 = vadd.f32 %v532_v51, %v5113_v27 }
 0x48e   : > { %4763 = vtanh.f32 %v534_v53  ;;  %v3909_v55 = vmul.f32 -1.442695, %v534_v53 }
 0x490   : > { %4765 = vpow2.f32 %v3909_v55 }
 0x498   : > { %v4764_v54 = vpop.eup %4763 }
 0x499   : > { %547 = vrot.lane.b32.xlu0 %v4764_v54, %s5022_s14 }
 0x49a   : > { %v4766_v56 = vpop.eup %4765 }
 0x49b   : > { %v538_v57 = vadd.f32 1.0, %v4766_v56 }
 0x49d   : > { %4767 = vrcp.f32 %v538_v57 }
 0x4a7   : > { %v4768_v58 = vpop.eup %4767 }
 0x4a8   : > { %v545_v62 = vmul.f32 %v4768_v58, %v543_v61 }
 0x50b   : > { %v548_v59 = vpop.permute.xlu0 %547 }
 0x50c   : > { %v550_v60 = vmul.f32 %v4768_v58, %v548_v59 }
 0x50e   : > { %552 = vrot.lane.b32.xlu1 %v550_v60, %s5023_s17 }
 0x580   : > { %v553_v63 = vpop.permute.xlu1 %552 }
 0x581   : > { %v555_v0 = vadd.f32 %v553_v63, %v545_v62 }
 0x583   : > { %4769 = vtanh.f32 %v555_v0  ;;  %v650_v21 = vrot.slane %v555_v0, 6 }
 0x58d   : > { %v4770_v1 = vpop.eup %4769 }
 0x58e   : > { %558 = vrot.lane.b32.xlu0 %v4770_v1, %s5022_s14 }
 0x600   : > { %v559_v2 = vpop.permute.xlu0 %558 }
 0x601   : > { %v561_v3 = vmul.f32 %v4768_v58, %v559_v2 }
 0x603   : > { %v563_v5 = vrot.slane %v561_v3, 2  ;;  %v2049_v36 = vsel %vm2048_vm3, %v5151_v48, %v561_v3 }
 0x605   : > { %564 = vrot.lane.b32.xlu1 %v563_v5, %s5023_s17 }
 0x677   : > { %v565_v9 = vpop.permute.xlu1 %564 }
 0x678   : > { %4200 = vmatmul.mubr.msk.f32.vlgmr.msra.gmra.mrb[2].mxu0 %vm357_vm2, %v565_v9 }
 0x679   : > { %4563 = vmatpush3.bf16.msra.mxu0 %v5120_v29  ;;  %4221 = vmatprep.mubr.msk.f32.mxu0 %vm5020_vm1, %v5021_v32 }
 0x67a   : > { %4564 = vmatprep.subr.bf16.mxu0 %v5019_v30 }
 0x67d   : > { %4566 = vmatpush3.bf16.msra.mxu0 %v5127_v31 }
 0x67e   : > { %4573 = vmatprep.subr.bf16.mxu0 %v5019_v30 }
 0x74b   : > { %v634_v10 = vpop.f32.mrb[2].mxu0 }
 0x74c   : > { %v639_v11 = vrot.slane %v634_v10, 4  ;;  %v4201_v12 = vpop.f32.mrb[3].mxu0 }
 0x74e   : > { %v641_v13 = vadd.f32 %v639_v11, %v5113_v27 }
 0x750   : > { %4771 = vtanh.f32 %v641_v13  ;;  %v3911_v15 = vmul.f32 -1.442695, %v641_v13 }
 0x752   : > { %4773 = vpow2.f32 %v3911_v15 }
 0x75a   : > { %v4772_v14 = vpop.eup %4771 }
 0x75b   : > { %654 = vrot.lane.b32.xlu0 %v4772_v14, %s5022_s14 }
 0x75c   : > { %v4774_v16 = vpop.eup %4773 }
 0x75d   : > { %v645_v17 = vadd.f32 1.0, %v4774_v16 }
 0x75f   : > { %4775 = vrcp.f32 %v645_v17 }
 0x769   : > { %v4776_v18 = vpop.eup %4775 }
 0x76a   : > { %v652_v22 = vmul.f32 %v4776_v18, %v650_v21 }
 0x7cd   : > { %v655_v19 = vpop.permute.xlu0 %654 }
 0x7ce   : > { %v657_v20 = vmul.f32 %v4776_v18, %v655_v19 }
 0x7d0   : > { %659 = vrot.lane.b32.xlu1 %v657_v20, %s5023_s17 }
 0x842   : > { %v660_v25 = vpop.permute.xlu1 %659 }
 0x843   : > { %v662_v26 = vadd.f32 %v660_v25, %v652_v22 }
 0x845   : > { %4777 = vtanh.f32 %v662_v26  ;;  %v757_v51 = vrot.slane %v662_v26, 6 }
 0x84f   : > { %v4778_v33 = vpop.eup %4777 }
 0x850   : > { %665 = vrot.lane.b32.xlu0 %v4778_v33, %s5022_s14 }
 0x8c2   : > { %v666_v34 = vpop.permute.xlu0 %665 }
 0x8c3   : > { %v668_v35 = vmul.f32 %v4776_v18, %v666_v34 }
 0x8c5   : > { %v670_v37 = vrot.slane %v668_v35, 4  ;;  %v2051_v38 = vsel %vm2050_vm4, %v2049_v36, %v668_v35 }
 0x8c7   : > { %671 = vrot.lane.b32.xlu1 %v670_v37, %s5023_s17 }
 0x939   : > { %v672_v39 = vpop.permute.xlu1 %671 }
 0x93a   : > { %4211 = vmatmul.mubr.msk.f32.vlgmr.msra.gmra.mrb[2].mxu1 %vm357_vm2, %v672_v39 }
 0x93b   : > { %4569 = vmatpush3.bf16.msra.mxu1 %v5120_v29  ;;  %4232 = vmatprep.mubr.msk.f32.mxu1 %vm5020_vm1, %v5021_v32 }
 0x93c   : > { %4570 = vmatprep.subr.bf16.mxu1 %v5019_v30 }
 0x93f   : > { %4572 = vmatpush3.bf16.msra.mxu1 %v5127_v31 }
 0x940   : > { %4579 = vmatprep.subr.bf16.mxu1 %v5019_v30 }
 0xa0d   : > { %v741_v40 = vpop.f32.mrb[2].mxu1 }
 0xa0e   : > { %v746_v41 = vrot.slane %v741_v40, 2  ;;  %v4212_v42 = vpop.f32.mrb[3].mxu1 }
 0xa10   : > { %v748_v43 = vadd.f32 %v746_v41, %v5113_v27 }
 0xa12   : > { %4779 = vtanh.f32 %v748_v43  ;;  %v3913_v45 = vmul.f32 -1.442695, %v748_v43 }
 0xa14   : > { %4781 = vpow2.f32 %v3913_v45 }
 0xa1c   : > { %v4780_v44 = vpop.eup %4779 }
 0xa1d   : > { %761 = vrot.lane.b32.xlu0 %v4780_v44, %s5022_s14 }
 0xa1e   : > { %v4782_v46 = vpop.eup %4781 }
 0xa1f   : > { %v752_v47 = vadd.f32 1.0, %v4782_v46 }
 0xa21   : > { %4783 = vrcp.f32 %v752_v47 }
 0xa2b   : > { %v4784_v48 = vpop.eup %4783 }
 0xa2c   : > { %v759_v52 = vmul.f32 %v4784_v48, %v757_v51 }
 0xa8f   : > { %v762_v49 = vpop.permute.xlu0 %761 }
 0xa90   : > { %v764_v50 = vmul.f32 %v4784_v48, %v762_v49 }
 0xa92   : > { %766 = vrot.lane.b32.xlu1 %v764_v50, %s5023_s17 }
 0xb04   : > { %v767_v53 = vpop.permute.xlu1 %766 }
 0xb05   : > { %v769_v54 = vadd.f32 %v767_v53, %v759_v52 }
 0xb07   : > { %4785 = vtanh.f32 %v769_v54  ;;  %v861_v11 = vrot.slane %v769_v54, 6 }
 0xb11   : > { %v4786_v55 = vpop.eup %4785 }
 0xb12   : > { %772 = vrot.lane.b32.xlu0 %v4786_v55, %s5022_s14 }
 0xb84   : > { %v773_v56 = vpop.permute.xlu0 %772 }
 0xb85   : > { %v775_v57 = vmul.f32 %v4784_v48, %v773_v56 }
 0xb87   : > { %v777_v58 = vrot.slane %v775_v57, 6  ;;  %v5194_v59 = vsel %vm2052_vm5, %v2051_v38, %v775_v57 }
 0xb89   : > { %778 = vrot.lane.b32.xlu1 %v777_v58, %s5023_s17 }
 0xbfb   : > { %v779_v60 = vpop.permute.xlu1 %778 }
 0xbfc   : > { %4222 = vmatmul.mubr.msk.f32.vlgmr.msra.gmra.mrb[4].mxu0 %vm357_vm2, %v779_v60 }
 0xbfd   : > { %4575 = vmatpush3.bf16.msra.mxu0 %v5120_v29  ;;  %4243 = vmatprep.mubr.msk.f32.mxu0 %vm5020_vm1, %v5021_v32 }
 0xbfe   : > { %4576 = vmatprep.subr.bf16.mxu0 %v5019_v30 }
 0xc01   : > { %4578 = vmatpush3.bf16.msra.mxu0 %v5127_v31 }
 0xc02   : > { %4585 = vmatprep.subr.bf16.mxu0 %v5019_v30 }
 0xccf   : > { %v848_v61 = vpop.f32.mrb[4].mxu0 }
 0xcd0   : > { %v852_v62 = vadd.f32 %v848_v61, %v5109_v23  ;;  %v4223_v63 = vpop.f32.mrb[5].mxu0 }
 0xcd2   : > { %4787 = vtanh.f32 %v852_v62  ;;  %v3915_v1 = vmul.f32 -1.442695, %v852_v62 }
 0xcd4   : > { %4789 = vpow2.f32 %v3915_v1 }
 0xcdc   : > { %v4788_v0 = vpop.eup %4787 }
 0xcdd   : > { %865 = vrot.lane.b32.xlu0 %v4788_v0, %s5022_s14 }
 0xcde   : > { %v4790_v2 = vpop.eup %4789 }
 0xcdf   : > { %v856_v3 = vadd.f32 1.0, %v4790_v2 }
 0xce1   : > { %4791 = vrcp.f32 %v856_v3 }
 0xceb   : > { %v4792_v5 = vpop.eup %4791 }
 0xcec   : > { %v863_v12 = vmul.f32 %v4792_v5, %v861_v11 }
 0xd4f   : > { %v866_v9 = vpop.permute.xlu0 %865 }
 0xd50   : > { %v868_v10 = vmul.f32 %v4792_v5, %v866_v9 }
 0xd52   : > { %870 = vrot.lane.b32.xlu1 %v868_v10, %s5023_s17 }
 0xdc4   : > { %v871_v13 = vpop.permute.xlu1 %870 }
 0xdc5   : > { %v873_v14 = vadd.f32 %v871_v13, %v863_v12 }
 0xdc7   : > { %4793 = vtanh.f32 %v873_v14  ;;  %v967_v38 = vrot.slane %v873_v14, 6 }
 0xdd1   : > { %v4794_v15 = vpop.eup %4793 }
 0xdd2   : > { %876 = vrot.lane.b32.xlu0 %v4794_v15, %s5022_s14 }
 0xe44   : > { %v877_v16 = vpop.permute.xlu0 %876 }
 0xe45   : > { %v5208_v17 = vmul.f32 %v4792_v5, %v877_v16 }
 0xe47   : > { %881 = vrot.lane.b32.xlu1 %v5208_v17, %s5023_s17 }
 0xeb9   : > { %v882_v18 = vpop.permute.xlu1 %881 }
 0xeba   : > { %4233 = vmatmul.mubr.msk.f32.vlgmr.msra.gmra.mrb[4].mxu1 %vm357_vm2, %v882_v18 }
 0xebb   : > { %4581 = vmatpush3.bf16.msra.mxu1 %v5120_v29  ;;  %4254 = vmatprep.mubr.msk.f32.mxu1 %vm5020_vm1, %v5021_v32 }
 0xebc   : > { %4582 = vmatprep.subr.bf16.mxu1 %v5019_v30 }
 0xebf   : > { %4584 = vmatpush3.bf16.msra.mxu1 %v5127_v31 }
 0xec0   : > { %4591 = vmatprep.subr.bf16.mxu1 %v5019_v30 }
 0xf8d   : > { %v951_v19 = vpop.f32.mrb[4].mxu1 }
 0xf8e   : > { %v956_v20 = vrot.slane %v951_v19, 6  ;;  %v4234_v21 = vpop.f32.mrb[5].mxu1 }
 0xf90   : > { %v958_v22 = vadd.f32 %v956_v20, %v5109_v23 }
 0xf92   : > { %4795 = vtanh.f32 %v958_v22  ;;  %v3917_v26 = vmul.f32 -1.442695, %v958_v22 }
 0xf94   : > { %4797 = vpow2.f32 %v3917_v26 }
 0xf9c   : > { %v4796_v25 = vpop.eup %4795 }
 0xf9d   : > { %971 = vrot.lane.b32.xlu0 %v4796_v25, %s5022_s14 }
 0xf9e   : > { %v4798_v33 = vpop.eup %4797 }
 0xf9f   : > { %v962_v34 = vadd.f32 1.0, %v4798_v33 }
 0xfa1   : > { %4799 = vrcp.f32 %v962_v34 }
 0xfab   : > { %v4800_v35 = vpop.eup %4799 }
 0xfac   : > { %v969_v39 = vmul.f32 %v4800_v35, %v967_v38 }
0x100f   : > { %v972_v36 = vpop.permute.xlu0 %971 }
0x1010   : > { %v974_v37 = vmul.f32 %v4800_v35, %v972_v36 }
0x1012   : > { %976 = vrot.lane.b32.xlu1 %v974_v37, %s5023_s17 }
0x1084   : > { %v977_v40 = vpop.permute.xlu1 %976 }
0x1085   : > { %v979_v41 = vadd.f32 %v977_v40, %v969_v39 }
0x1087   : > { %4801 = vtanh.f32 %v979_v41  ;;  %v1074_v58 = vrot.slane %v979_v41, 6 }
0x1091   : > { %v4802_v42 = vpop.eup %4801 }
0x1092   : > { %982 = vrot.lane.b32.xlu0 %v4802_v42, %s5022_s14 }
0x1104   : > { %v983_v43 = vpop.permute.xlu0 %982 }
0x1105   : > { %v985_v44 = vmul.f32 %v4800_v35, %v983_v43 }
0x1107   : > { %v987_v45 = vrot.slane %v985_v44, 2  ;;  %v2054_v2 = vsel %vm2048_vm3, %v5208_v17, %v985_v44 }
0x1109   : > { %988 = vrot.lane.b32.xlu1 %v987_v45, %s5023_s17 }
0x117b   : > { %v989_v46 = vpop.permute.xlu1 %988 }
0x117c   : > { %4244 = vmatmul.mubr.msk.f32.vlgmr.msra.gmra.mrb[6].mxu0 %vm357_vm2, %v989_v46 }
0x117d   : > { %4587 = vmatpush3.bf16.msra.mxu0 %v5120_v29  ;;  %4265 = vmatprep.mubr.msk.f32.mxu0 %vm5020_vm1, %v5021_v32 }
0x117e   : > { %4588 = vmatprep.subr.bf16.mxu0 %v5019_v30 }
0x1181   : > { %4590 = vmatpush3.bf16.msra.mxu0 %v5127_v31 }
0x1182   : > { %4597 = vmatprep.subr.bf16.mxu0 %v5019_v30 }
0x124f   : > { %v1058_v47 = vpop.f32.mrb[6].mxu0 }
0x1250   : > { %v1063_v48 = vrot.slane %v1058_v47, 4  ;;  %v4245_v49 = vpop.f32.mrb[7].mxu0 }
0x1252   : > { %v1065_v50 = vadd.f32 %v1063_v48, %v5109_v23 }
0x1254   : > { %4803 = vtanh.f32 %v1065_v50  ;;  %v3919_v52 = vmul.f32 -1.442695, %v1065_v50 }
0x1256   : > { %4805 = vpow2.f32 %v3919_v52 }
0x125e   : > { %v4804_v51 = vpop.eup %4803 }
0x125f   : > { %1078 = vrot.lane.b32.xlu0 %v4804_v51, %s5022_s14 }
0x1260   : > { %v4806_v53 = vpop.eup %4805 }
0x1261   : > { %v1069_v54 = vadd.f32 1.0, %v4806_v53 }
0x1263   : > { %4807 = vrcp.f32 %v1069_v54 }
0x126d   : > { %v4808_v55 = vpop.eup %4807 }
0x126e   : > { %v1076_v60 = vmul.f32 %v4808_v55, %v1074_v58 }
0x12d1   : > { %v1079_v56 = vpop.permute.xlu0 %1078 }
0x12d2   : > { %v1081_v57 = vmul.f32 %v4808_v55, %v1079_v56 }
0x12d4   : > { %1083 = vrot.lane.b32.xlu1 %v1081_v57, %s5023_s17 }
0x1346   : > { %v1084_v61 = vpop.permute.xlu1 %1083 }
0x1347   : > { %v1086_v62 = vadd.f32 %v1084_v61, %v1076_v60 }
0x1349   : > { %4809 = vtanh.f32 %v1086_v62  ;;  %v1181_v21 = vrot.slane %v1086_v62, 6 }
0x1353   : > { %v4810_v63 = vpop.eup %4809 }
0x1354   : > { %1089 = vrot.lane.b32.xlu0 %v4810_v63, %s5022_s14 }
0x13c6   : > { %v1090_v0 = vpop.permute.xlu0 %1089 }
0x13c7   : > { %v1092_v1 = vmul.f32 %v4808_v55, %v1090_v0 }
0x13c9   : > { %v1094_v3 = vrot.slane %v1092_v1, 4  ;;  %v2055_v5 = vsel %vm2050_vm4, %v2054_v2, %v1092_v1 }
0x13cb   : > { %1095 = vrot.lane.b32.xlu1 %v1094_v3, %s5023_s17 }
0x143d   : > { %v1096_v9 = vpop.permute.xlu1 %1095 }
0x143e   : > { %4255 = vmatmul.mubr.msk.f32.vlgmr.msra.gmra.mrb[6].mxu1 %vm357_vm2, %v1096_v9 }
0x143f   : > { %4593 = vmatpush3.bf16.msra.mxu1 %v5120_v29  ;;  %4276 = vmatprep.mubr.msk.f32.mxu1 %vm5020_vm1, %v5021_v32 }
0x1440   : > { %4594 = vmatprep.subr.bf16.mxu1 %v5019_v30 }
0x1443   : > { %4596 = vmatpush3.bf16.msra.mxu1 %v5127_v31 }
0x1444   : > { %4603 = vmatprep.subr.bf16.mxu1 %v5019_v30 }
0x1511   : > { %v1165_v10 = vpop.f32.mrb[6].mxu1 }
0x1512   : > { %v1170_v11 = vrot.slane %v1165_v10, 2  ;;  %v4256_v12 = vpop.f32.mrb[7].mxu1 }
0x1514   : > { %v1172_v13 = vadd.f32 %v1170_v11, %v5109_v23 }
0x1516   : > { %4811 = vtanh.f32 %v1172_v13  ;;  %v3921_v15 = vmul.f32 -1.442695, %v1172_v13 }
0x1518   : > { %4813 = vpow2.f32 %v3921_v15 }
0x1520   : > { %v4812_v14 = vpop.eup %4811 }
0x1521   : > { %1185 = vrot.lane.b32.xlu0 %v4812_v14, %s5022_s14 }
0x1522   : > { %v4814_v16 = vpop.eup %4813 }
0x1523   : > { %v1176_v17 = vadd.f32 1.0, %v4814_v16 }
0x1525   : > { %4815 = vrcp.f32 %v1176_v17 }
0x152f   : > { %v4816_v18 = vpop.eup %4815 }
0x1530   : > { %v1183_v22 = vmul.f32 %v4816_v18, %v1181_v21 }
0x1593   : > { %v1186_v19 = vpop.permute.xlu0 %1185 }
0x1594   : > { %v1188_v20 = vmul.f32 %v4816_v18, %v1186_v19 }
0x1596   : > { %1190 = vrot.lane.b32.xlu1 %v1188_v20, %s5023_s17 }
0x1608   : > { %v1191_v25 = vpop.permute.xlu1 %1190 }
0x1609   : > { %v1193_v26 = vadd.f32 %v1191_v25, %v1183_v22 }
0x160b   : > { %4817 = vtanh.f32 %v1193_v26  ;;  %v1285_v49 = vrot.slane %v1193_v26, 6 }
0x1615   : > { %v4818_v33 = vpop.eup %4817 }
0x1616   : > { %1196 = vrot.lane.b32.xlu0 %v4818_v33, %s5022_s14 }
0x1688   : > { %v1197_v34 = vpop.permute.xlu0 %1196 }
0x1689   : > { %v1199_v35 = vmul.f32 %v4816_v18, %v1197_v34 }
0x168b   : > { %v1201_v36 = vrot.slane %v1199_v35, 6  ;;  %v5251_v37 = vsel %vm2052_vm5, %v2055_v5, %v1199_v35 }
0x168d   : > { %1202 = vrot.lane.b32.xlu1 %v1201_v36, %s5023_s17 }
0x16ff   : > { %v1203_v38 = vpop.permute.xlu1 %1202 }
0x1700   : > { %4266 = vmatmul.mubr.msk.f32.vlgmr.msra.gmra.mrb[8].mxu0 %vm357_vm2, %v1203_v38 }
0x1701   : > { %4599 = vmatpush3.bf16.msra.mxu0 %v5120_v29  ;;  %4287 = vmatprep.mubr.msk.f32.mxu0 %vm5020_vm1, %v5021_v32 }
0x1702   : > { %4600 = vmatprep.subr.bf16.mxu0 %v5019_v30 }
0x1705   : > { %4602 = vmatpush3.bf16.msra.mxu0 %v5127_v31 }
0x1706   : > { %4609 = vmatprep.subr.bf16.mxu0 %v5019_v30 }
0x17d3   : > { %v1272_v39 = vpop.f32.mrb[8].mxu0 }
0x17d4   : > { %v1276_v40 = vadd.f32 %v1272_v39, %v5115_v28  ;;  %v4267_v41 = vpop.f32.mrb[9].mxu0 }
0x17d6   : > { %4819 = vtanh.f32 %v1276_v40  ;;  %v3923_v43 = vmul.f32 -1.442695, %v1276_v40 }
0x17d8   : > { %4821 = vpow2.f32 %v3923_v43 }
0x17e0   : > { %v4820_v42 = vpop.eup %4819 }
0x17e1   : > { %1289 = vrot.lane.b32.xlu0 %v4820_v42, %s5022_s14 }
0x17e2   : > { %v4822_v44 = vpop.eup %4821 }
0x17e3   : > { %v1280_v45 = vadd.f32 1.0, %v4822_v44 }
0x17e5   : > { %4823 = vrcp.f32 %v1280_v45 }
0x17ef   : > { %v4824_v46 = vpop.eup %4823 }
0x17f0   : > { %v1287_v50 = vmul.f32 %v4824_v46, %v1285_v49 }
0x1853   : > { %v1290_v47 = vpop.permute.xlu0 %1289 }
0x1854   : > { %v1292_v48 = vmul.f32 %v4824_v46, %v1290_v47 }
0x1856   : > { %1294 = vrot.lane.b32.xlu1 %v1292_v48, %s5023_s17 }
0x18c8   : > { %v1295_v51 = vpop.permute.xlu1 %1294 }
0x18c9   : > { %v1297_v52 = vadd.f32 %v1295_v51, %v1287_v50 }
0x18cb   : > { %4825 = vtanh.f32 %v1297_v52  ;;  %v1391_v9 = vrot.slane %v1297_v52, 6 }
0x18d5   : > { %v4826_v53 = vpop.eup %4825 }
0x18d6   : > { %1300 = vrot.lane.b32.xlu0 %v4826_v53, %s5022_s14 }
0x1948   : > { %v1301_v54 = vpop.permute.xlu0 %1300 }
0x1949   : > { %v5265_v55 = vmul.f32 %v4824_v46, %v1301_v54 }
0x194b   : > { %1305 = vrot.lane.b32.xlu1 %v5265_v55, %s5023_s17 }
0x19bd   : > { %v1306_v56 = vpop.permute.xlu1 %1305 }
0x19be   : > { %4277 = vmatmul.mubr.msk.f32.vlgmr.msra.gmra.mrb[8].mxu1 %vm357_vm2, %v1306_v56 }
0x19bf   : > { %4605 = vmatpush3.bf16.msra.mxu1 %v5120_v29  ;;  %4298 = vmatprep.mubr.msk.f32.mxu1 %vm5020_vm1, %v5021_v32 }
0x19c0   : > { %4606 = vmatprep.subr.bf16.mxu1 %v5019_v30 }
0x19c3   : > { %4608 = vmatpush3.bf16.msra.mxu1 %v5127_v31 }
0x19c4   : > { %4615 = vmatprep.subr.bf16.mxu1 %v5019_v30 }
0x1a91   : > { %v1375_v57 = vpop.f32.mrb[8].mxu1 }
0x1a92   : > { %v1380_v58 = vrot.slane %v1375_v57, 6  ;;  %v4278_v60 = vpop.f32.mrb[9].mxu1 }
0x1a94   : > { %v1382_v61 = vadd.f32 %v1380_v58, %v5115_v28 }
0x1a96   : > { %4827 = vtanh.f32 %v1382_v61  ;;  %v3925_v63 = vmul.f32 -1.442695, %v1382_v61 }
0x1a98   : > { %4829 = vpow2.f32 %v3925_v63 }
0x1aa0   : > { %v4828_v62 = vpop.eup %4827 }
0x1aa1   : > { %1395 = vrot.lane.b32.xlu0 %v4828_v62, %s5022_s14 }
0x1aa2   : > { %v4830_v0 = vpop.eup %4829 }
0x1aa3   : > { %v1386_v1 = vadd.f32 1.0, %v4830_v0 }
0x1aa5   : > { %4831 = vrcp.f32 %v1386_v1 }
0x1aaf   : > { %v4832_v2 = vpop.eup %4831 }
0x1ab0   : > { %v1393_v10 = vmul.f32 %v4832_v2, %v1391_v9 }
0x1b13   : > { %v1396_v3 = vpop.permute.xlu0 %1395 }
0x1b14   : > { %v1398_v5 = vmul.f32 %v4832_v2, %v1396_v3 }
0x1b16   : > { %1400 = vrot.lane.b32.xlu1 %v1398_v5, %s5023_s17 }
0x1b88   : > { %v1401_v11 = vpop.permute.xlu1 %1400 }
0x1b89   : > { %v1403_v12 = vadd.f32 %v1401_v11, %v1393_v10 }
0x1b8b   : > { %4833 = vtanh.f32 %v1403_v12  ;;  %v1498_v38 = vrot.slane %v1403_v12, 6 }
0x1b95   : > { %v4834_v13 = vpop.eup %4833 }
0x1b96   : > { %1406 = vrot.lane.b32.xlu0 %v4834_v13, %s5022_s14 }
0x1c08   : > { %v1407_v14 = vpop.permute.xlu0 %1406 }
0x1c09   : > { %v1409_v15 = vmul.f32 %v4832_v2, %v1407_v14 }
0x1c0b   : > { %v1411_v16 = vrot.slane %v1409_v15, 2  ;;  %v2057_v45 = vsel %vm2048_vm3, %v5265_v55, %v1409_v15 }
0x1c0d   : > { %1412 = vrot.lane.b32.xlu1 %v1411_v16, %s5023_s17 }
0x1c7f   : > { %v1413_v17 = vpop.permute.xlu1 %1412 }
0x1c80   : > { %4288 = vmatmul.mubr.msk.f32.vlgmr.msra.gmra.mrb[10].mxu0 %vm357_vm2, %v1413_v17 }
0x1c81   : > { %4611 = vmatpush3.bf16.msra.mxu0 %v5120_v29  ;;  %4309 = vmatprep.mubr.msk.f32.mxu0 %vm5020_vm1, %v5021_v32 }
0x1c82   : > { %4612 = vmatprep.subr.bf16.mxu0 %v5019_v30 }
0x1c85   : > { %4614 = vmatpush3.bf16.msra.mxu0 %v5127_v31 }
0x1c86   : > { %4621 = vmatprep.subr.bf16.mxu0 %v5019_v30 }
0x1d53   : > { %v1482_v18 = vpop.f32.mrb[10].mxu0 }
0x1d54   : > { %v1487_v19 = vrot.slane %v1482_v18, 4  ;;  %v4289_v20 = vpop.f32.mrb[11].mxu0 }
0x1d56   : > { %v1489_v21 = vadd.f32 %v1487_v19, %v5115_v28 }
0x1d58   : > { %4835 = vtanh.f32 %v1489_v21  ;;  %v3927_v25 = vmul.f32 -1.442695, %v1489_v21 }
0x1d5a   : > { %4837 = vpow2.f32 %v3927_v25 }
0x1d62   : > { %v4836_v22 = vpop.eup %4835 }
0x1d63   : > { %1502 = vrot.lane.b32.xlu0 %v4836_v22, %s5022_s14 }
0x1d64   : > { %v4838_v26 = vpop.eup %4837 }
0x1d65   : > { %v1493_v33 = vadd.f32 1.0, %v4838_v26 }
0x1d67   : > { %4839 = vrcp.f32 %v1493_v33 }
0x1d71   : > { %v4840_v34 = vpop.eup %4839 }
0x1d72   : > { %v1500_v39 = vmul.f32 %v4840_v34, %v1498_v38 }
0x1dd5   : > { %v1503_v35 = vpop.permute.xlu0 %1502 }
0x1dd6   : > { %v1505_v36 = vmul.f32 %v4840_v34, %v1503_v35 }
0x1dd8   : > { %1507 = vrot.lane.b32.xlu1 %v1505_v36, %s5023_s17 }
0x1e4a   : > { %v1508_v40 = vpop.permute.xlu1 %1507 }
0x1e4b   : > { %v1510_v41 = vadd.f32 %v1508_v40, %v1500_v39 }
0x1e4d   : > { %4841 = vtanh.f32 %v1510_v41  ;;  %v1605_v61 = vrot.slane %v1510_v41, 6 }
0x1e57   : > { %v4842_v42 = vpop.eup %4841 }
0x1e58   : > { %1513 = vrot.lane.b32.xlu0 %v4842_v42, %s5022_s14 }
0x1eca   : > { %v1514_v43 = vpop.permute.xlu0 %1513 }
0x1ecb   : > { %v1516_v44 = vmul.f32 %v4840_v34, %v1514_v43 }
0x1ecd   : > { %v1518_v46 = vrot.slane %v1516_v44, 4  ;;  %v2058_v47 = vsel %vm2050_vm4, %v2057_v45, %v1516_v44 }
0x1ecf   : > { %1519 = vrot.lane.b32.xlu1 %v1518_v46, %s5023_s17 }
0x1f41   : > { %v1520_v48 = vpop.permute.xlu1 %1519 }
0x1f42   : > { %4299 = vmatmul.mubr.msk.f32.vlgmr.msra.gmra.mrb[10].mxu1 %vm357_vm2, %v1520_v48 }
0x1f43   : > { %4617 = vmatpush3.bf16.msra.mxu1 %v5120_v29  ;;  %4320 = vmatprep.mubr.msk.f32.mxu1 %vm5020_vm1, %v5021_v32 }
0x1f44   : > { %4618 = vmatprep.subr.bf16.mxu1 %v5019_v30 }
0x1f47   : > { %4620 = vmatpush3.bf16.msra.mxu1 %v5127_v31 }
0x1f48   : > { %4627 = vmatprep.subr.bf16.mxu1 %v5019_v30 }
0x2015   : > { %v1589_v49 = vpop.f32.mrb[10].mxu1 }
0x2016   : > { %v1594_v50 = vrot.slane %v1589_v49, 2  ;;  %v4300_v51 = vpop.f32.mrb[11].mxu1 }
0x2018   : > { %v1596_v52 = vadd.f32 %v1594_v50, %v5115_v28 }
0x201a   : > { %4843 = vtanh.f32 %v1596_v52  ;;  %v3929_v54 = vmul.f32 -1.442695, %v1596_v52 }
0x201c   : > { %4845 = vpow2.f32 %v3929_v54 }
0x2024   : > { %v4844_v53 = vpop.eup %4843 }
0x2025   : > { %1609 = vrot.lane.b32.xlu0 %v4844_v53, %s5022_s14 }
0x2026   : > { %v4846_v55 = vpop.eup %4845 }
0x2027   : > { %v1600_v56 = vadd.f32 1.0, %v4846_v55 }
0x2029   : > { %4847 = vrcp.f32 %v1600_v56 }
0x2033   : > { %v4848_v57 = vpop.eup %4847 }
0x2034   : > { %v1607_v62 = vmul.f32 %v4848_v57, %v1605_v61 }
0x2097   : > { %v1610_v58 = vpop.permute.xlu0 %1609 }
0x2098   : > { %v1612_v60 = vmul.f32 %v4848_v57, %v1610_v58 }
0x209a   : > { %1614 = vrot.lane.b32.xlu1 %v1612_v60, %s5023_s17 }
0x210c   : > { %v1615_v63 = vpop.permute.xlu1 %1614 }
0x210d   : > { %v1617_v0 = vadd.f32 %v1615_v63, %v1607_v62 }
0x210f   : > { %4849 = vtanh.f32 %v1617_v0  ;;  %v1709_v21 = vrot.slane %v1617_v0, 6 }
0x2119   : > { %v4850_v1 = vpop.eup %4849 }
0x211a   : > { %1620 = vrot.lane.b32.xlu0 %v4850_v1, %s5022_s14 }
0x218c   : > { %v1621_v2 = vpop.permute.xlu0 %1620 }
0x218d   : > { %v1623_v3 = vmul.f32 %v4848_v57, %v1621_v2 }
0x218f   : > { %v1625_v5 = vrot.slane %v1623_v3, 6  ;;  %v5308_v9 = vsel %vm2052_vm5, %v2058_v47, %v1623_v3 }
0x2191   : > { %1626 = vrot.lane.b32.xlu1 %v1625_v5, %s5023_s17 }
0x2203   : > { %v1627_v10 = vpop.permute.xlu1 %1626 }
0x2204   : > { %4310 = vmatmul.mubr.msk.f32.vlgmr.msra.gmra.mrb[12].mxu0 %vm357_vm2, %v1627_v10 }
0x2205   : > { %4623 = vmatpush3.bf16.msra.mxu0 %v5120_v29  ;;  %4331 = vmatprep.mubr.msk.f32.mxu0 %vm5020_vm1, %v5021_v32 }
0x2206   : > { %4624 = vmatprep.subr.bf16.mxu0 %v5019_v30 }
0x2209   : > { %4626 = vmatpush3.bf16.msra.mxu0 %v5127_v31 }
0x22d7   : > { %v1696_v11 = vpop.f32.mrb[12].mxu0 }
0x22d8   : > { %v1700_v12 = vadd.f32 %v1696_v11, %v5111_v24  ;;  %v4311_v13 = vpop.f32.mrb[13].mxu0 }
0x22da   : > { %4851 = vtanh.f32 %v1700_v12  ;;  %v3931_v15 = vmul.f32 -1.442695, %v1700_v12 }
0x22dc   : > { %4853 = vpow2.f32 %v3931_v15 }
0x22e4   : > { %v4852_v14 = vpop.eup %4851 }
0x22e5   : > { %1713 = vrot.lane.b32.xlu0 %v4852_v14, %s5022_s14 }
0x22e6   : > { %v4854_v16 = vpop.eup %4853 }
0x22e7   : > { %v1704_v17 = vadd.f32 1.0, %v4854_v16 }
0x22e9   : > { %4855 = vrcp.f32 %v1704_v17 }
0x22f3   : > { %v4856_v18 = vpop.eup %4855 }
0x22f4   : > { %v1711_v22 = vmul.f32 %v4856_v18, %v1709_v21 }
0x2357   : > { %v1714_v19 = vpop.permute.xlu0 %1713 }
0x2358   : > { %v1716_v20 = vmul.f32 %v4856_v18, %v1714_v19 }
0x235a   : > { %1718 = vrot.lane.b32.xlu1 %v1716_v20, %s5023_s17 }
0x23cc   : > { %v1719_v25 = vpop.permute.xlu1 %1718 }
0x23cd   : > { %v1721_v26 = vadd.f32 %v1719_v25, %v1711_v22 }
0x23cf   : > { %4857 = vtanh.f32 %v1721_v26 }
0x23d9   : > { %v4858_v33 = vpop.eup %4857 }
0x23da   : > { %1724 = vrot.lane.b32.xlu0 %v4858_v33, %s5022_s14 }
0x244c   : > { %v1725_v34 = vpop.permute.xlu0 %1724 }
0x244d   : > { %v5321_v35 = vmul.f32 %v4856_v18, %v1725_v34 }
0x244f   : > { %1729 = vrot.lane.b32.xlu1 %v5321_v35, %s5023_s17 }
0x24c1   : > { %v1730_v36 = vpop.permute.xlu1 %1729 }
0x24c2   : > { %4321 = vmatmul.mubr.msk.f32.vlgmr.msra.gmra.mrb[12].mxu1 %vm357_vm2, %v1730_v36 }
0x24c3   : > { %4629 = vmatpush3.bf16.msra.mxu1 %v5120_v29  ;;  %4342 = vmatprep.mubr.msk.f32.mxu1 %vm5020_vm1, %v5021_v32 }
0x24c4   : > { %4630 = vmatprep.subr.bf16.mxu1 %v5019_v30  ;;  %v1815_v30 = vrot.slane %v1721_v26, 6 }
0x24c7   : > { %4632 = vmatpush3.bf16.msra.mxu1 %v5127_v31 }
0x2595   : > { %v1799_v38 = vpop.f32.mrb[12].mxu1 }
0x2596   : > { %v1804_v39 = vrot.slane %v1799_v38, 6  ;;  %v4322_v40 = vpop.f32.mrb[13].mxu1 }
0x2598   : > { %v1806_v41 = vadd.f32 %v1804_v39, %v5111_v24 }
0x259a   : > { %4859 = vtanh.f32 %v1806_v41  ;;  %v3933_v43 = vmul.f32 -1.442695, %v1806_v41 }
0x259c   : > { %4861 = vpow2.f32 %v3933_v43 }
0x25a4   : > { %v4860_v42 = vpop.eup %4859 }
0x25a5   : > { %1819 = vrot.lane.b32.xlu0 %v4860_v42, %s5022_s14 }
0x25a6   : > { %v4862_v44 = vpop.eup %4861 }
0x25a7   : > { %v1810_v29 = vadd.f32 1.0, %v4862_v44 }
0x25a9   : > { %4863 = vrcp.f32 %v1810_v29 }
0x25b3   : > { %v4864_v45 = vpop.eup %4863 }
0x25b4   : > { %v1817_v31 = vmul.f32 %v4864_v45, %v1815_v30 }
0x2617   : > { %v1820_v32 = vpop.permute.xlu0 %1819 }
0x2618   : > { %v1822_v46 = vmul.f32 %v4864_v45, %v1820_v32 }
0x261a   : > { %1824 = vrot.lane.b32.xlu1 %v1822_v46, %s5023_s17 }
0x268c   : > { %v1825_v47 = vpop.permute.xlu1 %1824 }
0x268d   : > { %v1827_v48 = vadd.f32 %v1825_v47, %v1817_v31 }
0x268f   : > { %4865 = vtanh.f32 %v1827_v48  ;;  %v1922_v2 = vrot.slane %v1827_v48, 6 }
0x2699   : > { %v4866_v49 = vpop.eup %4865 }
0x269a   : > { %1830 = vrot.lane.b32.xlu0 %v4866_v49, %s5022_s14 }
0x270c   : > { %v1831_v50 = vpop.permute.xlu0 %1830 }
0x270d   : > { %v1833_v51 = vmul.f32 %v4864_v45, %v1831_v50 }
0x270f   : > { %v1835_v52 = vrot.slane %v1833_v51, 2  ;;  %v2060_v14 = vsel %vm2048_vm3, %v5321_v35, %v1833_v51 }
0x2711   : > { %1836 = vrot.lane.b32.xlu1 %v1835_v52, %s5023_s17 }
0x2783   : > { %v1837_v53 = vpop.permute.xlu1 %1836 }
0x2784   : > { %4332 = vmatmul.mubr.msk.f32.vlgmr.msra.gmra.mrb[14].mxu0 %vm357_vm2, %v1837_v53 }
0x2857   : > { %v1906_v54 = vpop.f32.mrb[14].mxu0 }
0x2858   : > { %v1911_v55 = vrot.slane %v1906_v54, 4  ;;  %v4333_v56 = vpop.f32.mrb[15].mxu0 }
0x285a   : > { %v1913_v57 = vadd.f32 %v1911_v55, %v5111_v24 }
0x285c   : > { %4867 = vtanh.f32 %v1913_v57  ;;  %v3935_v60 = vmul.f32 -1.442695, %v1913_v57 }
0x285e   : > { %4869 = vpow2.f32 %v3935_v60 }
0x2866   : > { %v4868_v58 = vpop.eup %4867 }
0x2867   : > { %1926 = vrot.lane.b32.xlu0 %v4868_v58, %s5022_s14 }
0x2868   : > { %v4870_v61 = vpop.eup %4869 }
0x2869   : > { %v1917_v62 = vadd.f32 1.0, %v4870_v61 }
0x286b   : > { %4871 = vrcp.f32 %v1917_v62 }
0x2875   : > { %v4872_v63 = vpop.eup %4871 }
0x2876   : > { %v1924_v3 = vmul.f32 %v4872_v63, %v1922_v2 }
0x28d9   : > { %v1927_v0 = vpop.permute.xlu0 %1926 }
0x28da   : > { %v1929_v1 = vmul.f32 %v4872_v63, %v1927_v0 }
0x28dc   : > { %1931 = vrot.lane.b32.xlu1 %v1929_v1, %s5023_s17 }
0x294e   : > { %v1932_v5 = vpop.permute.xlu1 %1931 }
0x294f   : > { %v1934_v10 = vadd.f32 %v1932_v5, %v1924_v3 }
0x2951   : > { %4873 = vtanh.f32 %v1934_v10  ;;  %v2029_v38 = vrot.slane %v1934_v10, 6 }
0x295b   : > { %v4874_v11 = vpop.eup %4873 }
0x295c   : > { %1937 = vrot.lane.b32.xlu0 %v4874_v11, %s5022_s14 }
0x29ce   : > { %v1938_v12 = vpop.permute.xlu0 %1937 }
0x29cf   : > { %v1940_v13 = vmul.f32 %v4872_v63, %v1938_v12 }
0x29d1   : > { %v1942_v15 = vrot.slane %v1940_v13, 4  ;;  %v2061_v16 = vsel %vm2050_vm4, %v2060_v14, %v1940_v13 }
0x29d3   : > { %1943 = vrot.lane.b32.xlu1 %v1942_v15, %s5023_s17 }
0x2a45   : > { %v1944_v17 = vpop.permute.xlu1 %1943 }
0x2a46   : > { %4343 = vmatmul.mubr.msk.f32.vlgmr.msra.gmra.mrb[14].mxu1 %vm357_vm2, %v1944_v17 }
0x2b19   : > { %v2013_v18 = vpop.f32.mrb[14].mxu1 }
0x2b1a   : > { %v2018_v19 = vrot.slane %v2013_v18, 2  ;;  %v4344_v20 = vpop.f32.mrb[15].mxu1 }
0x2b1c   : > { %v2020_v21 = vadd.f32 %v2018_v19, %v5111_v24 }
0x2b1e   : > { %4875 = vtanh.f32 %v2020_v21  ;;  %v3937_v25 = vmul.f32 -1.442695, %v2020_v21 }
0x2b20   : > { %4877 = vpow2.f32 %v3937_v25 }
0x2b28   : > { %v4876_v22 = vpop.eup %4875 }
0x2b29   : > { %2033 = vrot.lane.b32.xlu0 %v4876_v22, %s5022_s14 }
0x2b2a   : > { %v4878_v26 = vpop.eup %4877 }
0x2b2b   : > { %v2024_v33 = vadd.f32 1.0, %v4878_v26 }
0x2b2d   : > { %4879 = vrcp.f32 %v2024_v33 }
0x2b37   : > { %v4880_v34 = vpop.eup %4879 }
0x2b38   : > { %v2031_v39 = vmul.f32 %v4880_v34, %v2029_v38 }
0x2b9b   : > { %v2034_v35 = vpop.permute.xlu0 %2033 }
0x2b9c   : > { %v2036_v36 = vmul.f32 %v4880_v34, %v2034_v35 }
0x2b9e   : > { %2038 = vrot.lane.b32.xlu1 %v2036_v36, %s5023_s17 }
0x2ba2   : > { %2067 = vrot.lane.b32.xlu1 %v5194_v59, %s5023_s17 }
0x2ba6   : > { %2071 = vrot.lane.b32.xlu1 %v5308_v9, %s5023_s17 }
0x2c10   : > { %v2039_v40 = vpop.permute.xlu1 %2038 }
0x2c11   : > { %v2041_v41 = vadd.f32 %v2039_v40, %v2031_v39 }
0x2c13   : > { %4881 = vtanh.f32 %v2041_v41 }
0x2c14   : > { %v2068_v42 = vpop.permute.xlu1 %2067 }
0x2c15   : > { %2079 = vst.msk [vmem:[%s5087_s6] sm:$0xff] %vm357_vm2, %v2068_v42 }
0x2c18   : > { %v2072_v43 = vpop.permute.xlu1 %2071 }
0x2c19   : > { %2081 = vst.msk [vmem:[%s5087_s6 + $0x10] sm:$0xff] %vm357_vm2, %v2072_v43 }
0x2c1d   : > { %v4882_v44 = vpop.eup %4881 }
0x2c1e   : > { %2044 = vrot.lane.b32.xlu0 %v4882_v44, %s5022_s14 }
0x2c22   : > { %2069 = vrot.lane.b32.xlu0 %v5251_v37, %s5023_s17 }
0x2c90   : > { %v2045_v59 = vpop.permute.xlu0 %2044 }
0x2c91   : > { %v2047_v9 = vmul.f32 %v4880_v34, %v2045_v59 }
0x2c93   : > { %v2062_v29 = vsel %vm2052_vm5, %v2061_v16, %v2047_v9 }
0x2c94   : > { %2073 = vrot.lane.b32.xlu0 %v2062_v29, %s5023_s17  ;;  %v2070_v45 = vpop.permute.xlu0 %2069 }
0x2c95   : > { %2080 = vst.msk [vmem:[%s5087_s6 + $0x8] sm:$0xff] %vm357_vm2, %v2070_v45 }
0x2d06   : > { %v2074_v32 = vpop.permute.xlu0 %2073 }
0x2d07   : > { %2082 = vst.msk [vmem:[%s5087_s6 + $0x18] sm:$0xff] %vm357_vm2, %v2074_v32 }
0x2d08 PF: > { %p3938_p5 = scmp.ne.s32.totalorder %s5060_s16, 1 }
0x2d09   : > { %v5369_v46 = vpack.c.bf16 (!%p3938_p5), %v5091_v6, %v5089_v4  ;;  %v5024_v37 = vmov (!%p3938_p5), 0.0|0.0   ;;  %v5376_v30 = vpack.c.bf16 (!%p3938_p5), %v5095_v8, %v5093_v7  ;;  %vm5025_vm6 = vmmov (!%p3938_p5), 0   ;;  %s5027_s16 = smov (!%p3938_p5), 64   ;;  %s5028_s18 = smov (!%p3938_p5), 32  }
0x2d0a   : > { %2086 = sbr.rel (%p3938_p5) target bundleno = 22826 (0x592a), region = 44  ;;  %4633 = vmatprep.subr.bf16.mxu0 (!%p3938_p5), %v5024_v37  ;;  %4639 = vmatprep.subr.bf16.mxu1 (!%p3938_p5), %v5024_v37  ;;  %v5026_v31 = vmov (!%p3938_p5), 0.0   ;;  %vm2087_vm7 = vcmask (!%p3938_p5), 261120   ;;  %vm3779_vm8 = vcmask (!%p3938_p5), 1041408   ;;  %vm3781_vm9 = vcmask (!%p3938_p5), 1043456  }
0x2d0b   : > { %4635 = vmatpush3.bf16.msra.mxu0 (!%p3938_p5), %v5369_v46  ;;  %4353 = vmatprep.mubr.msk.f32.mxu0 (!%p3938_p5), %vm5025_vm6, %v5026_v31  ;;  %vm3783_vm10 = vcmask (!%p3938_p5), 1045504  }
0x2d0c   : > { %4636 = vmatprep.subr.bf16.mxu0 (!%p3938_p5), %v5024_v37  ;;  %4641 = vmatpush3.bf16.msra.mxu1 (!%p3938_p5), %v5369_v46 }
0x2d0d   : > { %4642 = vmatprep.subr.bf16.mxu1 (!%p3938_p5), %v5024_v37  ;;  %4364 = vmatprep.mubr.msk.f32.mxu1 (!%p3938_p5), %vm5025_vm6, %v5026_v31 }
0x2d0f   : > { %4638 = vmatpush3.bf16.msra.mxu0 (!%p3938_p5), %v5376_v30 }
0x2d10   : > { %4644 = vmatpush3.bf16.msra.mxu1 (!%p3938_p5), %v5376_v30  ;;  %4645 = vmatprep.subr.bf16.mxu0 (!%p3938_p5), %v5024_v37 }
0x2d11   : > { %4651 = vmatprep.subr.bf16.mxu1 %v5024_v37 }
0x2d12   : > { %4354 = vmatmul.mubr.f32.vlgmr.msra.gmra.mrb[0].mxu0 %v5026_v31 }
0x2d13   : > { %4647 = vmatpush3.bf16.msra.mxu0 %v5369_v46  ;;  %4375 = vmatprep.mubr.msk.f32.mxu0 %vm5025_vm6, %v5026_v31 }
0x2d14   : > { %4648 = vmatprep.subr.bf16.mxu0 %v5024_v37 }
0x2d17   : > { %4650 = vmatpush3.bf16.msra.mxu0 %v5376_v30 }
0x2d18   : > { %4657 = vmatprep.subr.bf16.mxu0 %v5024_v37 }
0x2de5   : > { %v2157_v4 = vpop.f32.mrb[0].mxu0 }
0x2de6   : > { %v2162_v6 = vrot.slane %v2157_v4, 2  ;;  %v4355_v7 = vpop.f32.mrb[1].mxu0 }
0x2de8   : > { %v2164_v8 = vadd.f32 %v2162_v6, %v5111_v24 }
0x2dea   : > { %4883 = vtanh.f32 %v2164_v8  ;;  %v3939_v48 = vmul.f32 -1.442695, %v2164_v8 }
0x2dec   : > { %4885 = vpow2.f32 %v3939_v48 }
0x2df4   : > { %v4884_v47 = vpop.eup %4883 }
0x2df5   : > { %2174 = vrot.lane.b32.xlu0 %v4884_v47, %s5027_s16 }
0x2df6   : > { %v4886_v49 = vpop.eup %4885 }
0x2df7   : > { %v2168_v50 = vadd.f32 1.0, %v4886_v49 }
0x2df9   : > { %4887 = vrcp.f32 %v2168_v50 }
0x2e03   : > { %v4888_v51 = vpop.eup %4887 }
0x2e04   : > { %v2172_v54 = vmul.f32 0.0, %v4888_v51 }
0x2e67   : > { %v2175_v52 = vpop.permute.xlu0 %2174 }
0x2e68   : > { %v2177_v53 = vmul.f32 %v4888_v51, %v2175_v52 }
0x2e6a   : > { %2179 = vrot.lane.b32.xlu0 %v2177_v53, %s5028_s18 }
0x2edc   : > { %v2180_v55 = vpop.permute.xlu0 %2179 }
0x2edd   : > { %v2182_v56 = vadd.f32 %v2180_v55, %v2172_v54 }
0x2edf   : > { %4889 = vtanh.f32 %v2182_v56  ;;  %v2277_v15 = vrot.slane %v2182_v56, 2 }
0x2ee9   : > { %v4890_v57 = vpop.eup %4889 }
0x2eea   : > { %2185 = vrot.lane.b32.xlu1 %v4890_v57, %s5027_s16 }
0x2f5c   : > { %v2186_v58 = vpop.permute.xlu1 %2185 }
0x2f5d   : > { %v5400_v60 = vmul.f32 %v4888_v51, %v2186_v58 }
0x2f5f   : > { %v2190_v61 = vrot.slane %v5400_v60, 6 }
0x2f61   : > { %2191 = vrot.lane.b32.xlu1 %v2190_v61, %s5028_s18 }
0x2fd3   : > { %v2192_v62 = vpop.permute.xlu1 %2191 }
0x2fd4   : > { %4365 = vmatmul.mubr.msk.f32.vlgmr.msra.gmra.mrb[0].mxu1 %vm2087_vm7, %v2192_v62 }
0x2fd5   : > { %4653 = vmatpush3.bf16.msra.mxu1 %v5369_v46  ;;  %4386 = vmatprep.mubr.msk.f32.mxu1 %vm5025_vm6, %v5026_v31 }
0x2fd6   : > { %4654 = vmatprep.subr.bf16.mxu1 %v5024_v37 }
0x2fd9   : > { %4656 = vmatpush3.bf16.msra.mxu1 %v5376_v30 }
0x2fda   : > { %4663 = vmatprep.subr.bf16.mxu1 %v5024_v37 }
0x30a7   : > { %v2261_v63 = vpop.f32.mrb[0].mxu1 }
0x30a8   : > { %v2266_v0 = vrot.slane %v2261_v63, 4  ;;  %v4366_v1 = vpop.f32.mrb[1].mxu1 }
0x30aa   : > { %v2268_v2 = vadd.f32 %v2266_v0, %v5111_v24 }
0x30ac   : > { %4891 = vtanh.f32 %v2268_v2  ;;  %v3941_v5 = vmul.f32 -1.442695, %v2268_v2 }
0x30ae   : > { %4893 = vpow2.f32 %v3941_v5 }
0x30b6   : > { %v4892_v3 = vpop.eup %4891 }
0x30b7   : > { %2281 = vrot.lane.b32.xlu0 %v4892_v3, %s5027_s16 }
0x30b8   : > { %v4894_v10 = vpop.eup %4893 }
0x30b9   : > { %v2272_v11 = vadd.f32 1.0, %v4894_v10 }
0x30bb   : > { %4895 = vrcp.f32 %v2272_v11 }
0x30c5   : > { %v4896_v12 = vpop.eup %4895 }
0x30c6   : > { %v2279_v16 = vmul.f32 %v4896_v12, %v2277_v15 }
0x3129   : > { %v2282_v13 = vpop.permute.xlu0 %2281 }
0x312a   : > { %v2284_v14 = vmul.f32 %v4896_v12, %v2282_v13 }
0x312c   : > { %2286 = vrot.lane.b32.xlu1 %v2284_v14, %s5028_s18 }
0x319e   : > { %v2287_v17 = vpop.permute.xlu1 %2286 }
0x319f   : > { %v2289_v18 = vadd.f32 %v2287_v17, %v2279_v16 }
0x31a1   : > { %4897 = vtanh.f32 %v2289_v18  ;;  %v2384_v44 = vrot.slane %v2289_v18, 2 }
0x31ab   : > { %v4898_v19 = vpop.eup %4897 }
0x31ac   : > { %2292 = vrot.lane.b32.xlu0 %v4898_v19, %s5027_s16 }
0x321e   : > { %v2293_v20 = vpop.permute.xlu0 %2292 }
0x321f   : > { %v5415_v21 = vmul.f32 %v4896_v12, %v2293_v20 }
0x3221   : > { %v2297_v22 = vrot.slane %v5415_v21, 4 }
0x3223   : > { %2298 = vrot.lane.b32.xlu1 %v2297_v22, %s5028_s18 }
0x3295   : > { %v2299_v25 = vpop.permute.xlu1 %2298 }
0x3296   : > { %4376 = vmatmul.mubr.msk.f32.vlgmr.msra.gmra.mrb[2].mxu0 %vm2087_vm7, %v2299_v25 }
0x3297   : > { %4659 = vmatpush3.bf16.msra.mxu0 %v5369_v46  ;;  %4397 = vmatprep.mubr.msk.f32.mxu0 %vm5025_vm6, %v5026_v31 }
0x3298   : > { %4660 = vmatprep.subr.bf16.mxu0 %v5024_v37 }
0x329b   : > { %4662 = vmatpush3.bf16.msra.mxu0 %v5376_v30 }
0x329c   : > { %4669 = vmatprep.subr.bf16.mxu0 %v5024_v37 }
0x3369   : > { %v2368_v26 = vpop.f32.mrb[2].mxu0 }
0x336a   : > { %v2373_v33 = vrot.slane %v2368_v26, 6  ;;  %v4377_v34 = vpop.f32.mrb[3].mxu0 }
0x336c   : > { %v2375_v35 = vadd.f32 %v2373_v33, %v5111_v24 }
0x336e   : > { %4899 = vtanh.f32 %v2375_v35  ;;  %v3943_v38 = vmul.f32 -1.442695, %v2375_v35 }
0x3370   : > { %4901 = vpow2.f32 %v3943_v38 }
0x3378   : > { %v4900_v36 = vpop.eup %4899 }
0x3379   : > { %2388 = vrot.lane.b32.xlu0 %v4900_v36, %s5027_s16 }
0x337a   : > { %v4902_v39 = vpop.eup %4901 }
0x337b   : > { %v2379_v40 = vadd.f32 1.0, %v4902_v39 }
0x337d   : > { %4903 = vrcp.f32 %v2379_v40 }
0x3387   : > { %v4904_v41 = vpop.eup %4903 }
0x3388   : > { %v2386_v59 = vmul.f32 %v4904_v41, %v2384_v44 }
0x33eb   : > { %v2389_v42 = vpop.permute.xlu0 %2388 }
0x33ec   : > { %v2391_v43 = vmul.f32 %v4904_v41, %v2389_v42 }
0x33ee   : > { %2393 = vrot.lane.b32.xlu1 %v2391_v43, %s5028_s18 }
0x3460   : > { %v2394_v9 = vpop.permute.xlu1 %2393 }
0x3461   : > { %v2396_v29 = vadd.f32 %v2394_v9, %v2386_v59 }
0x3463   : > { %4905 = vtanh.f32 %v2396_v29  ;;  %v2488_v56 = vrot.slane %v2396_v29, 2 }
0x346d   : > { %v4906_v45 = vpop.eup %4905 }
0x346e   : > { %2399 = vrot.lane.b32.xlu0 %v4906_v45, %s5027_s16 }
0x34e0   : > { %v2400_v32 = vpop.permute.xlu0 %2399 }
0x34e1   : > { %v5430_v4 = vmul.f32 %v4904_v41, %v2400_v32 }
0x34e3   : > { %v2404_v6 = vrot.slane %v5430_v4, 2 }
0x34e5   : > { %2405 = vrot.lane.b32.xlu1 %v2404_v6, %s5028_s18 }
0x3557   : > { %v2406_v7 = vpop.permute.xlu1 %2405 }
0x3558   : > { %4387 = vmatmul.mubr.msk.f32.vlgmr.msra.gmra.mrb[2].mxu1 %vm2087_vm7, %v2406_v7 }
0x3559   : > { %4665 = vmatpush3.bf16.msra.mxu1 %v5369_v46  ;;  %4408 = vmatprep.mubr.msk.f32.mxu1 %vm5025_vm6, %v5026_v31 }
0x355a   : > { %4666 = vmatprep.subr.bf16.mxu1 %v5024_v37 }
0x355d   : > { %4668 = vmatpush3.bf16.msra.mxu1 %v5376_v30 }
0x355e   : > { %4675 = vmatprep.subr.bf16.mxu1 %v5024_v37 }
0x362b   : > { %v2475_v8 = vpop.f32.mrb[2].mxu1 }
0x362c   : > { %v2479_v47 = vadd.f32 %v2475_v8, %v5111_v24  ;;  %v4388_v48 = vpop.f32.mrb[3].mxu1 }
0x362e   : > { %4907 = vtanh.f32 %v2479_v47  ;;  %v3945_v50 = vmul.f32 -1.442695, %v2479_v47 }
0x3630   : > { %4909 = vpow2.f32 %v3945_v50 }
0x3638   : > { %v4908_v49 = vpop.eup %4907 }
0x3639   : > { %2492 = vrot.lane.b32.xlu0 %v4908_v49, %s5027_s16 }
0x363a   : > { %v4910_v51 = vpop.eup %4909 }
0x363b   : > { %v2483_v52 = vadd.f32 1.0, %v4910_v51 }
0x363d   : > { %4911 = vrcp.f32 %v2483_v52 }
0x3647   : > { %v4912_v53 = vpop.eup %4911 }
0x3648   : > { %v2490_v57 = vmul.f32 %v4912_v53, %v2488_v56 }
0x36ab   : > { %v2493_v54 = vpop.permute.xlu0 %2492 }
0x36ac   : > { %v2495_v55 = vmul.f32 %v4912_v53, %v2493_v54 }
0x36ae   : > { %2497 = vrot.lane.b32.xlu1 %v2495_v55, %s5028_s18 }
0x3720   : > { %v2498_v58 = vpop.permute.xlu1 %2497 }
0x3721   : > { %v2500_v61 = vadd.f32 %v2498_v58, %v2490_v57 }
0x3723   : > { %4913 = vtanh.f32 %v2500_v61  ;;  %v2594_v17 = vrot.slane %v2500_v61, 2 }
0x372d   : > { %v4914_v24 = vpop.eup %4913 }
0x372e   : > { %2503 = vrot.lane.b32.xlu0 %v4914_v24, %s5027_s16 }
0x37a0   : > { %v2504_v62 = vpop.permute.xlu0 %2503 }
0x37a1   : > { %v5445_v63 = vmul.f32 %v4912_v53, %v2504_v62 }
0x37a3   : > { %2508 = vrot.lane.b32.xlu1 %v5445_v63, %s5028_s18 }
0x3815   : > { %v2509_v0 = vpop.permute.xlu1 %2508 }
0x3816   : > { %4398 = vmatmul.mubr.msk.f32.vlgmr.msra.gmra.mrb[4].mxu0 %vm2087_vm7, %v2509_v0 }
0x3817   : > { %4671 = vmatpush3.bf16.msra.mxu0 %v5369_v46  ;;  %4419 = vmatprep.mubr.msk.f32.mxu0 %vm5025_vm6, %v5026_v31 }
0x3818   : > { %4672 = vmatprep.subr.bf16.mxu0 %v5024_v37 }
0x381b   : > { %4674 = vmatpush3.bf16.msra.mxu0 %v5376_v30 }
0x381c   : > { %4681 = vmatprep.subr.bf16.mxu0 %v5024_v37 }
0x38e9   : > { %v2578_v1 = vpop.f32.mrb[4].mxu0 }
0x38ea   : > { %v2583_v2 = vrot.slane %v2578_v1, 2  ;;  %v4399_v3 = vpop.f32.mrb[5].mxu0 }
0x38ec   : > { %v2585_v5 = vadd.f32 %v2583_v2, %v5115_v28 }
0x38ee   : > { %4915 = vtanh.f32 %v2585_v5  ;;  %v3947_v11 = vmul.f32 -1.442695, %v2585_v5 }
0x38f0   : > { %4917 = vpow2.f32 %v3947_v11 }
0x38f8   : > { %v4916_v10 = vpop.eup %4915 }
0x38f9   : > { %2598 = vrot.lane.b32.xlu0 %v4916_v10, %s5027_s16 }
0x38fa   : > { %v4918_v12 = vpop.eup %4917 }
0x38fb   : > { %v2589_v13 = vadd.f32 1.0, %v4918_v12 }
0x38fd   : > { %4919 = vrcp.f32 %v2589_v13 }
0x3907   : > { %v4920_v14 = vpop.eup %4919 }
0x3908   : > { %v2596_v18 = vmul.f32 %v4920_v14, %v2594_v17 }
0x396b   : > { %v2599_v15 = vpop.permute.xlu0 %2598 }
0x396c   : > { %v2601_v16 = vmul.f32 %v4920_v14, %v2599_v15 }
0x396e   : > { %2603 = vrot.lane.b32.xlu1 %v2601_v16, %s5028_s18 }
0x39e0   : > { %v2604_v19 = vpop.permute.xlu1 %2603 }
0x39e1   : > { %v2606_v20 = vadd.f32 %v2604_v19, %v2596_v18 }
0x39e3   : > { %4921 = vtanh.f32 %v2606_v20  ;;  %v2701_v29 = vrot.slane %v2606_v20, 2 }
0x39ed   : > { %v4922_v22 = vpop.eup %4921 }
0x39ee   : > { %2609 = vrot.lane.b32.xlu0 %v4922_v22, %s5027_s16 }
0x3a60   : > { %v2610_v25 = vpop.permute.xlu0 %2609 }
0x3a61   : > { %v5460_v26 = vmul.f32 %v4920_v14, %v2610_v25 }
0x3a63   : > { %v2614_v33 = vrot.slane %v5460_v26, 6 }
0x3a65   : > { %2615 = vrot.lane.b32.xlu1 %v2614_v33, %s5028_s18 }
0x3ad7   : > { %v2616_v34 = vpop.permute.xlu1 %2615 }
0x3ad8   : > { %4409 = vmatmul.mubr.msk.f32.vlgmr.msra.gmra.mrb[4].mxu1 %vm2087_vm7, %v2616_v34 }
0x3ad9   : > { %4677 = vmatpush3.bf16.msra.mxu1 %v5369_v46  ;;  %4430 = vmatprep.mubr.msk.f32.mxu1 %vm5025_vm6, %v5026_v31 }
0x3ada   : > { %4678 = vmatprep.subr.bf16.mxu1 %v5024_v37 }
0x3add   : > { %4680 = vmatpush3.bf16.msra.mxu1 %v5376_v30 }
0x3ade   : > { %4687 = vmatprep.subr.bf16.mxu1 %v5024_v37 }
0x3bab   : > { %v2685_v35 = vpop.f32.mrb[4].mxu1 }
0x3bac   : > { %v2690_v36 = vrot.slane %v2685_v35, 4  ;;  %v4410_v38 = vpop.f32.mrb[5].mxu1 }
0x3bae   : > { %v2692_v39 = vadd.f32 %v2690_v36, %v5115_v28 }
0x3bb0   : > { %4923 = vtanh.f32 %v2692_v39  ;;  %v3949_v41 = vmul.f32 -1.442695, %v2692_v39 }
0x3bb2   : > { %4925 = vpow2.f32 %v3949_v41 }
0x3bba   : > { %v4924_v40 = vpop.eup %4923 }
0x3bbb   : > { %2705 = vrot.lane.b32.xlu0 %v4924_v40, %s5027_s16 }
0x3bbc   : > { %v4926_v42 = vpop.eup %4925 }
0x3bbd   : > { %v2696_v43 = vadd.f32 1.0, %v4926_v42 }
0x3bbf   : > { %4927 = vrcp.f32 %v2696_v43 }
0x3bc9   : > { %v4928_v44 = vpop.eup %4927 }
0x3bca   : > { %v2703_v45 = vmul.f32 %v4928_v44, %v2701_v29 }
0x3c2d   : > { %v2706_v59 = vpop.permute.xlu0 %2705 }
0x3c2e   : > { %v2708_v9 = vmul.f32 %v4928_v44, %v2706_v59 }
0x3c30   : > { %2710 = vrot.lane.b32.xlu1 %v2708_v9, %s5028_s18 }
0x3ca2   : > { %v2711_v32 = vpop.permute.xlu1 %2710 }
0x3ca3   : > { %v2713_v6 = vadd.f32 %v2711_v32, %v2703_v45 }
0x3ca5   : > { %4929 = vtanh.f32 %v2713_v6  ;;  %v2808_v62 = vrot.slane %v2713_v6, 2 }
0x3caf   : > { %v4930_v7 = vpop.eup %4929 }
0x3cb0   : > { %2716 = vrot.lane.b32.xlu0 %v4930_v7, %s5027_s16 }
0x3d22   : > { %v2717_v8 = vpop.permute.xlu0 %2716 }
0x3d23   : > { %v5475_v47 = vmul.f32 %v4928_v44, %v2717_v8 }
0x3d25   : > { %v2721_v48 = vrot.slane %v5475_v47, 4 }
0x3d27   : > { %2722 = vrot.lane.b32.xlu1 %v2721_v48, %s5028_s18 }
0x3d99   : > { %v2723_v49 = vpop.permute.xlu1 %2722 }
0x3d9a   : > { %4420 = vmatmul.mubr.msk.f32.vlgmr.msra.gmra.mrb[6].mxu0 %vm2087_vm7, %v2723_v49 }
0x3d9b   : > { %4683 = vmatpush3.bf16.msra.mxu0 %v5369_v46  ;;  %4441 = vmatprep.mubr.msk.f32.mxu0 %vm5025_vm6, %v5026_v31 }
0x3d9c   : > { %4684 = vmatprep.subr.bf16.mxu0 %v5024_v37 }
0x3d9f   : > { %4686 = vmatpush3.bf16.msra.mxu0 %v5376_v30 }
0x3da0   : > { %4693 = vmatprep.subr.bf16.mxu0 %v5024_v37 }
0x3e6d   : > { %v2792_v50 = vpop.f32.mrb[6].mxu0 }
0x3e6e   : > { %v2797_v51 = vrot.slane %v2792_v50, 6  ;;  %v4421_v52 = vpop.f32.mrb[7].mxu0 }
0x3e70   : > { %v2799_v53 = vadd.f32 %v2797_v51, %v5115_v28 }
0x3e72   : > { %4931 = vtanh.f32 %v2799_v53  ;;  %v3951_v55 = vmul.f32 -1.442695, %v2799_v53 }
0x3e74   : > { %4933 = vpow2.f32 %v3951_v55 }
0x3e7c   : > { %v4932_v54 = vpop.eup %4931 }
0x3e7d   : > { %2812 = vrot.lane.b32.xlu0 %v4932_v54, %s5027_s16 }
0x3e7e   : > { %v4934_v56 = vpop.eup %4933 }
0x3e7f   : > { %v2803_v57 = vadd.f32 1.0, %v4934_v56 }
0x3e81   : > { %4935 = vrcp.f32 %v2803_v57 }
0x3e8b   : > { %v4936_v58 = vpop.eup %4935 }
0x3e8c   : > { %v2810_v0 = vmul.f32 %v4936_v58, %v2808_v62 }
0x3eef   : > { %v2813_v61 = vpop.permute.xlu0 %2812 }
0x3ef0   : > { %v2815_v24 = vmul.f32 %v4936_v58, %v2813_v61 }
0x3ef2   : > { %2817 = vrot.lane.b32.xlu1 %v2815_v24, %s5028_s18 }
0x3f64   : > { %v2818_v1 = vpop.permute.xlu1 %2817 }
0x3f65   : > { %v2820_v2 = vadd.f32 %v2818_v1, %v2810_v0 }
0x3f67   : > { %4937 = vtanh.f32 %v2820_v2  ;;  %v2912_v33 = vrot.slane %v2820_v2, 2 }
0x3f71   : > { %v4938_v3 = vpop.eup %4937 }
0x3f72   : > { %2823 = vrot.lane.b32.xlu0 %v4938_v3, %s5027_s16 }
0x3fe4   : > { %v2824_v5 = vpop.permute.xlu0 %2823 }
0x3fe5   : > { %v5490_v10 = vmul.f32 %v4936_v58, %v2824_v5 }
0x3fe7   : > { %v2828_v11 = vrot.slane %v5490_v10, 2 }
0x3fe9   : > { %2829 = vrot.lane.b32.xlu1 %v2828_v11, %s5028_s18 }
0x405b   : > { %v2830_v12 = vpop.permute.xlu1 %2829 }
0x405c   : > { %4431 = vmatmul.mubr.msk.f32.vlgmr.msra.gmra.mrb[6].mxu1 %vm2087_vm7, %v2830_v12 }
0x405d   : > { %4689 = vmatpush3.bf16.msra.mxu1 %v5369_v46  ;;  %4452 = vmatprep.mubr.msk.f32.mxu1 %vm5025_vm6, %v5026_v31 }
0x405e   : > { %4690 = vmatprep.subr.bf16.mxu1 %v5024_v37 }
0x4061   : > { %4692 = vmatpush3.bf16.msra.mxu1 %v5376_v30 }
0x4062   : > { %4699 = vmatprep.subr.bf16.mxu1 %v5024_v37 }
0x412f   : > { %v2899_v13 = vpop.f32.mrb[6].mxu1 }
0x4130   : > { %v2903_v14 = vadd.f32 %v2899_v13, %v5115_v28  ;;  %v4432_v15 = vpop.f32.mrb[7].mxu1 }
0x4132   : > { %4939 = vtanh.f32 %v2903_v14  ;;  %v3953_v17 = vmul.f32 -1.442695, %v2903_v14 }
0x4134   : > { %4941 = vpow2.f32 %v3953_v17 }
0x413c   : > { %v4940_v16 = vpop.eup %4939 }
0x413d   : > { %2916 = vrot.lane.b32.xlu0 %v4940_v16, %s5027_s16 }
0x413e   : > { %v4942_v18 = vpop.eup %4941 }
0x413f   : > { %v2907_v19 = vadd.f32 1.0, %v4942_v18 }
0x4141   : > { %4943 = vrcp.f32 %v2907_v19 }
0x414b   : > { %v4944_v20 = vpop.eup %4943 }
0x414c   : > { %v2914_v34 = vmul.f32 %v4944_v20, %v2912_v33 }
0x41af   : > { %v2917_v22 = vpop.permute.xlu0 %2916 }
0x41b0   : > { %v2919_v25 = vmul.f32 %v4944_v20, %v2917_v22 }
0x41b2   : > { %2921 = vrot.lane.b32.xlu1 %v2919_v25, %s5028_s18 }
0x4224   : > { %v2922_v35 = vpop.permute.xlu1 %2921 }
0x4225   : > { %v2924_v36 = vadd.f32 %v2922_v35, %v2914_v34 }
0x4227   : > { %4945 = vtanh.f32 %v2924_v36  ;;  %v3018_v8 = vrot.slane %v2924_v36, 2 }
0x4231   : > { %v4946_v28 = vpop.eup %4945 }
0x4232   : > { %2927 = vrot.lane.b32.xlu0 %v4946_v28, %s5027_s16 }
0x42a4   : > { %v2928_v38 = vpop.permute.xlu0 %2927 }
0x42a5   : > { %v5505_v39 = vmul.f32 %v4944_v20, %v2928_v38 }
0x42a7   : > { %2932 = vrot.lane.b32.xlu1 %v5505_v39, %s5028_s18 }
0x4319   : > { %v2933_v40 = vpop.permute.xlu1 %2932 }
0x431a   : > { %4442 = vmatmul.mubr.msk.f32.vlgmr.msra.gmra.mrb[8].mxu0 %vm2087_vm7, %v2933_v40 }
0x431b   : > { %4695 = vmatpush3.bf16.msra.mxu0 %v5369_v46  ;;  %4463 = vmatprep.mubr.msk.f32.mxu0 %vm5025_vm6, %v5026_v31 }
0x431c   : > { %4696 = vmatprep.subr.bf16.mxu0 %v5024_v37 }
0x431f   : > { %4698 = vmatpush3.bf16.msra.mxu0 %v5376_v30 }
0x4320   : > { %4705 = vmatprep.subr.bf16.mxu0 %v5024_v37 }
0x43ed   : > { %v3002_v41 = vpop.f32.mrb[8].mxu0 }
0x43ee   : > { %v3007_v42 = vrot.slane %v3002_v41, 2  ;;  %v4443_v43 = vpop.f32.mrb[9].mxu0 }
0x43f0   : > { %v3009_v44 = vadd.f32 %v3007_v42, %v5109_v23 }
0x43f2   : > { %4947 = vtanh.f32 %v3009_v44  ;;  %v3955_v9 = vmul.f32 -1.442695, %v3009_v44 }
0x43f4   : > { %4949 = vpow2.f32 %v3955_v9 }
0x43fc   : > { %v4948_v59 = vpop.eup %4947 }
0x43fd   : > { %3022 = vrot.lane.b32.xlu0 %v4948_v59, %s5027_s16 }
0x43fe   : > { %v4950_v29 = vpop.eup %4949 }
0x43ff   : > { %v3013_v45 = vadd.f32 1.0, %v4950_v29 }
0x4401   : > { %4951 = vrcp.f32 %v3013_v45 }
0x440b   : > { %v4952_v32 = vpop.eup %4951 }
0x440c   : > { %v3020_v48 = vmul.f32 %v4952_v32, %v3018_v8 }
0x446f   : > { %v3023_v6 = vpop.permute.xlu0 %3022 }
0x4470   : > { %v3025_v7 = vmul.f32 %v4952_v32, %v3023_v6 }
0x4472   : > { %3027 = vrot.lane.b32.xlu1 %v3025_v7, %s5028_s18 }
0x44e4   : > { %v3028_v49 = vpop.permute.xlu1 %3027 }
0x44e5   : > { %v3030_v50 = vadd.f32 %v3028_v49, %v3020_v48 }
0x44e7   : > { %4953 = vtanh.f32 %v3030_v50  ;;  %v3125_v11 = vrot.slane %v3030_v50, 2 }
0x44f1   : > { %v4954_v51 = vpop.eup %4953 }
0x44f2   : > { %3033 = vrot.lane.b32.xlu0 %v4954_v51, %s5027_s16 }
0x4564   : > { %v3034_v52 = vpop.permute.xlu0 %3033 }
0x4565   : > { %v5520_v53 = vmul.f32 %v4952_v32, %v3034_v52 }
0x4567   : > { %v3038_v54 = vrot.slane %v5520_v53, 6 }
0x4569   : > { %3039 = vrot.lane.b32.xlu1 %v3038_v54, %s5028_s18 }
0x45db   : > { %v3040_v55 = vpop.permute.xlu1 %3039 }
0x45dc   : > { %4453 = vmatmul.mubr.msk.f32.vlgmr.msra.gmra.mrb[8].mxu1 %vm2087_vm7, %v3040_v55 }
0x45dd   : > { %4701 = vmatpush3.bf16.msra.mxu1 %v5369_v46  ;;  %4474 = vmatprep.mubr.msk.f32.mxu1 %vm5025_vm6, %v5026_v31 }
0x45de   : > { %4702 = vmatprep.subr.bf16.mxu1 %v5024_v37 }
0x45e1   : > { %4704 = vmatpush3.bf16.msra.mxu1 %v5376_v30 }
0x45e2   : > { %4711 = vmatprep.subr.bf16.mxu1 %v5024_v37 }
0x46af   : > { %v3109_v56 = vpop.f32.mrb[8].mxu1 }
0x46b0   : > { %v3114_v57 = vrot.slane %v3109_v56, 4  ;;  %v4454_v58 = vpop.f32.mrb[9].mxu1 }
0x46b2   : > { %v3116_v61 = vadd.f32 %v3114_v57, %v5109_v23 }
0x46b4   : > { %4955 = vtanh.f32 %v3116_v61  ;;  %v3957_v62 = vmul.f32 -1.442695, %v3116_v61 }
0x46b6   : > { %4957 = vpow2.f32 %v3957_v62 }
0x46be   : > { %v4956_v24 = vpop.eup %4955 }
0x46bf   : > { %3129 = vrot.lane.b32.xlu0 %v4956_v24, %s5027_s16 }
0x46c0   : > { %v4958_v0 = vpop.eup %4957 }
0x46c1   : > { %v3120_v1 = vadd.f32 1.0, %v4958_v0 }
0x46c3   : > { %4959 = vrcp.f32 %v3120_v1 }
0x46cd   : > { %v4960_v2 = vpop.eup %4959 }
0x46ce   : > { %v3127_v12 = vmul.f32 %v4960_v2, %v3125_v11 }
0x4731   : > { %v3130_v3 = vpop.permute.xlu0 %3129 }
0x4732   : > { %v3132_v5 = vmul.f32 %v4960_v2, %v3130_v3 }
0x4734   : > { %3134 = vrot.lane.b32.xlu1 %v3132_v5, %s5028_s18 }
0x47a6   : > { %v3135_v13 = vpop.permute.xlu1 %3134 }
0x47a7   : > { %v3137_v14 = vadd.f32 %v3135_v13, %v3127_v12 }
0x47a9   : > { %4961 = vtanh.f32 %v3137_v14  ;;  %v3232_v42 = vrot.slane %v3137_v14, 2 }
0x47b3   : > { %v4962_v15 = vpop.eup %4961 }
0x47b4   : > { %3140 = vrot.lane.b32.xlu0 %v4962_v15, %s5027_s16 }
0x4826   : > { %v3141_v16 = vpop.permute.xlu0 %3140 }
0x4827   : > { %v5535_v17 = vmul.f32 %v4960_v2, %v3141_v16 }
0x4829   : > { %v3145_v18 = vrot.slane %v5535_v17, 4 }
0x482b   : > { %3146 = vrot.lane.b32.xlu1 %v3145_v18, %s5028_s18 }
0x489d   : > { %v3147_v19 = vpop.permute.xlu1 %3146 }
0x489e   : > { %4464 = vmatmul.mubr.msk.f32.vlgmr.msra.gmra.mrb[10].mxu0 %vm2087_vm7, %v3147_v19 }
0x489f   : > { %4707 = vmatpush3.bf16.msra.mxu0 %v5369_v46  ;;  %4485 = vmatprep.mubr.msk.f32.mxu0 %vm5025_vm6, %v5026_v31 }
0x48a0   : > { %4708 = vmatprep.subr.bf16.mxu0 %v5024_v37 }
0x48a3   : > { %4710 = vmatpush3.bf16.msra.mxu0 %v5376_v30 }
0x48a4   : > { %4717 = vmatprep.subr.bf16.mxu0 %v5024_v37 }
0x4971   : > { %v3216_v20 = vpop.f32.mrb[10].mxu0 }
0x4972   : > { %v3221_v22 = vrot.slane %v3216_v20, 6  ;;  %v4465_v25 = vpop.f32.mrb[11].mxu0 }
0x4974   : > { %v3223_v33 = vadd.f32 %v3221_v22, %v5109_v23 }
0x4976   : > { %4963 = vtanh.f32 %v3223_v33  ;;  %v3959_v35 = vmul.f32 -1.442695, %v3223_v33 }
0x4978   : > { %4965 = vpow2.f32 %v3959_v35 }
0x4980   : > { %v4964_v34 = vpop.eup %4963 }
0x4981   : > { %3236 = vrot.lane.b32.xlu0 %v4964_v34, %s5027_s16 }
0x4982   : > { %v4966_v36 = vpop.eup %4965 }
0x4983   : > { %v3227_v28 = vadd.f32 1.0, %v4966_v36 }
0x4985   : > { %4967 = vrcp.f32 %v3227_v28 }
0x498f   : > { %v4968_v38 = vpop.eup %4967 }
0x4990   : > { %v3234_v43 = vmul.f32 %v4968_v38, %v3232_v42 }
0x49f3   : > { %v3237_v40 = vpop.permute.xlu0 %3236 }
0x49f4   : > { %v3239_v41 = vmul.f32 %v4968_v38, %v3237_v40 }
0x49f6   : > { %3241 = vrot.lane.b32.xlu1 %v3239_v41, %s5028_s18 }
0x4a68   : > { %v3242_v44 = vpop.permute.xlu1 %3241 }
0x4a69   : > { %v3244_v59 = vadd.f32 %v3242_v44, %v3234_v43 }
0x4a6b   : > { %4969 = vtanh.f32 %v3244_v59  ;;  %v3336_v57 = vrot.slane %v3244_v59, 2 }
0x4a75   : > { %v4970_v9 = vpop.eup %4969 }
0x4a76   : > { %3247 = vrot.lane.b32.xlu0 %v4970_v9, %s5027_s16 }
0x4ae8   : > { %v3248_v29 = vpop.permute.xlu0 %3247 }
0x4ae9   : > { %v5550_v45 = vmul.f32 %v4968_v38, %v3248_v29 }
0x4aeb   : > { %v3252_v32 = vrot.slane %v5550_v45, 2 }
0x4aed   : > { %3253 = vrot.lane.b32.xlu1 %v3252_v32, %s5028_s18 }
0x4b5f   : > { %v3254_v6 = vpop.permute.xlu1 %3253 }
0x4b60   : > { %4475 = vmatmul.mubr.msk.f32.vlgmr.msra.gmra.mrb[10].mxu1 %vm2087_vm7, %v3254_v6 }
0x4b61   : > { %4713 = vmatpush3.bf16.msra.mxu1 %v5369_v46  ;;  %4496 = vmatprep.mubr.msk.f32.mxu1 %vm5025_vm6, %v5026_v31 }
0x4b62   : > { %4714 = vmatprep.subr.bf16.mxu1 %v5024_v37 }
0x4b65   : > { %4716 = vmatpush3.bf16.msra.mxu1 %v5376_v30 }
0x4b66   : > { %4723 = vmatprep.subr.bf16.mxu1 %v5024_v37 }
0x4c33   : > { %v3323_v7 = vpop.f32.mrb[10].mxu1 }
0x4c34   : > { %v3327_v8 = vadd.f32 %v3323_v7, %v5109_v23  ;;  %v4476_v48 = vpop.f32.mrb[11].mxu1 }
0x4c36   : > { %4971 = vtanh.f32 %v3327_v8  ;;  %v3961_v50 = vmul.f32 -1.442695, %v3327_v8 }
0x4c38   : > { %4973 = vpow2.f32 %v3961_v50 }
0x4c40   : > { %v4972_v49 = vpop.eup %4971 }
0x4c41   : > { %3340 = vrot.lane.b32.xlu0 %v4972_v49, %s5027_s16 }
0x4c42   : > { %v4974_v51 = vpop.eup %4973 }
0x4c43   : > { %v3331_v52 = vadd.f32 1.0, %v4974_v51 }
0x4c45   : > { %4975 = vrcp.f32 %v3331_v52 }
0x4c4f   : > { %v4976_v54 = vpop.eup %4975 }
0x4c50   : > { %v3338_v58 = vmul.f32 %v4976_v54, %v3336_v57 }
0x4cb3   : > { %v3341_v55 = vpop.permute.xlu0 %3340 }
0x4cb4   : > { %v3343_v56 = vmul.f32 %v4976_v54, %v3341_v55 }
0x4cb6   : > { %3345 = vrot.lane.b32.xlu1 %v3343_v56, %s5028_s18 }
0x4d28   : > { %v3346_v61 = vpop.permute.xlu1 %3345 }
0x4d29   : > { %v3348_v24 = vadd.f32 %v3346_v61, %v3338_v58 }
0x4d2b   : > { %4977 = vtanh.f32 %v3348_v24  ;;  %v3442_v20 = vrot.slane %v3348_v24, 2 }
0x4d35   : > { %v4978_v23 = vpop.eup %4977 }
0x4d36   : > { %3351 = vrot.lane.b32.xlu0 %v4978_v23, %s5027_s16 }
0x4da8   : > { %v3352_v62 = vpop.permute.xlu0 %3351 }
0x4da9   : > { %v5565_v0 = vmul.f32 %v4976_v54, %v3352_v62 }
0x4dab   : > { %3356 = vrot.lane.b32.xlu1 %v5565_v0, %s5028_s18 }
0x4e1d   : > { %v3357_v1 = vpop.permute.xlu1 %3356 }
0x4e1e   : > { %4486 = vmatmul.mubr.msk.f32.vlgmr.msra.gmra.mrb[12].mxu0 %vm2087_vm7, %v3357_v1 }
0x4e1f   : > { %4719 = vmatpush3.bf16.msra.mxu0 %v5369_v46  ;;  %4507 = vmatprep.mubr.msk.f32.mxu0 %vm5025_vm6, %v5026_v31 }
0x4e20   : > { %4720 = vmatprep.subr.bf16.mxu0 %v5024_v37 }
0x4e23   : > { %4722 = vmatpush3.bf16.msra.mxu0 %v5376_v30 }
0x4ef1   : > { %v3426_v2 = vpop.f32.mrb[12].mxu0 }
0x4ef2   : > { %v3431_v3 = vrot.slane %v3426_v2, 2  ;;  %v4487_v5 = vpop.f32.mrb[13].mxu0 }
0x4ef4   : > { %v3433_v11 = vadd.f32 %v3431_v3, %v5113_v27 }
0x4ef6   : > { %4979 = vtanh.f32 %v3433_v11  ;;  %v3963_v13 = vmul.f32 -1.442695, %v3433_v11 }
0x4ef8   : > { %4981 = vpow2.f32 %v3963_v13 }
0x4f00   : > { %v4980_v12 = vpop.eup %4979 }
0x4f01   : > { %3446 = vrot.lane.b32.xlu0 %v4980_v12, %s5027_s16 }
0x4f02   : > { %v4982_v14 = vpop.eup %4981 }
0x4f03   : > { %v3437_v15 = vadd.f32 1.0, %v4982_v14 }
0x4f05   : > { %4983 = vrcp.f32 %v3437_v15 }
0x4f0f   : > { %v4984_v16 = vpop.eup %4983 }
0x4f10   : > { %v3444_v22 = vmul.f32 %v4984_v16, %v3442_v20 }
0x4f73   : > { %v3447_v18 = vpop.permute.xlu0 %3446 }
0x4f74   : > { %v3449_v19 = vmul.f32 %v4984_v16, %v3447_v18 }
0x4f76   : > { %3451 = vrot.lane.b32.xlu1 %v3449_v19, %s5028_s18 }
0x4fe8   : > { %v3452_v25 = vpop.permute.xlu1 %3451 }
0x4fe9   : > { %v3454_v33 = vadd.f32 %v3452_v25, %v3444_v22 }
0x4feb   : > { %4985 = vtanh.f32 %v3454_v33 }
0x4ff5   : > { %v4986_v34 = vpop.eup %4985 }
0x4ff6   : > { %3457 = vrot.lane.b32.xlu0 %v4986_v34, %s5027_s16 }
0x5068   : > { %v3458_v35 = vpop.permute.xlu0 %3457 }
0x5069   : > { %v5579_v36 = vmul.f32 %v4984_v16, %v3458_v35 }
0x506b   : > { %v3462_v28 = vrot.slane %v5579_v36, 6 }
0x506d   : > { %3463 = vrot.lane.b32.xlu1 %v3462_v28, %s5028_s18 }
0x50df   : > { %v3464_v38 = vpop.permute.xlu1 %3463 }
0x50e0   : > { %4497 = vmatmul.mubr.msk.f32.vlgmr.msra.gmra.mrb[12].mxu1 %vm2087_vm7, %v3464_v38 }
0x50e1   : > { %4725 = vmatpush3.bf16.msra.mxu1 %v5369_v46  ;;  %4518 = vmatprep.mubr.msk.f32.mxu1 %vm5025_vm6, %v5026_v31 }
0x50e2   : > { %4726 = vmatprep.subr.bf16.mxu1 %v5024_v37  ;;  %v3549_v37 = vrot.slane %v3454_v33, 2 }
0x50e5   : > { %4728 = vmatpush3.bf16.msra.mxu1 %v5376_v30 }
0x51b3   : > { %v3533_v40 = vpop.f32.mrb[12].mxu1 }
0x51b4   : > { %v3538_v41 = vrot.slane %v3533_v40, 4  ;;  %v4498_v42 = vpop.f32.mrb[13].mxu1 }
0x51b6   : > { %v3540_v43 = vadd.f32 %v3538_v41, %v5113_v27 }
0x51b8   : > { %4987 = vtanh.f32 %v3540_v43  ;;  %v3965_v59 = vmul.f32 -1.442695, %v3540_v43 }
0x51ba   : > { %4989 = vpow2.f32 %v3965_v59 }
0x51c2   : > { %v4988_v44 = vpop.eup %4987 }
0x51c3   : > { %3553 = vrot.lane.b32.xlu0 %v4988_v44, %s5027_s16 }
0x51c4   : > { %v4990_v9 = vpop.eup %4989 }
0x51c5   : > { %v3544_v46 = vadd.f32 1.0, %v4990_v9  ;;  %v3791_v9 = vsel %vm3779_vm8, %v5445_v63, %v5430_v4  ;;  %v3788_v4 = vsel %vm3779_vm8, %v5505_v39, %v5490_v10 }
0x51c7   : > { %4991 = vrcp.f32 %v3544_v46 }
0x51d1   : > { %v4992_v29 = vpop.eup %4991 }
0x51d2   : > { %v3551_v30 = vmul.f32 %v4992_v29, %v3549_v37 }
0x5235   : > { %v3554_v31 = vpop.permute.xlu0 %3553 }
0x5236   : > { %v3556_v32 = vmul.f32 %v4992_v29, %v3554_v31 }
0x5238   : > { %3558 = vrot.lane.b32.xlu1 %v3556_v32, %s5028_s18 }
0x52aa   : > { %v3559_v6 = vpop.permute.xlu1 %3558 }
0x52ab   : > { %v3561_v7 = vadd.f32 %v3559_v6, %v3551_v30 }
0x52ad   : > { %4993 = vtanh.f32 %v3561_v7  ;;  %v3656_v2 = vrot.slane %v3561_v7, 2 }
0x52b7   : > { %v4994_v8 = vpop.eup %4993 }
0x52b8   : > { %3564 = vrot.lane.b32.xlu0 %v4994_v8, %s5027_s16 }
0x532a   : > { %v3565_v48 = vpop.permute.xlu0 %3564 }
0x532b   : > { %v5593_v49 = vmul.f32 %v4992_v29, %v3565_v48 }
0x532d   : > { %v3569_v50 = vrot.slane %v5593_v49, 4 }
0x532f   : > { %3570 = vrot.lane.b32.xlu1 %v3569_v50, %s5028_s18 }
0x53a1   : > { %v3571_v51 = vpop.permute.xlu1 %3570 }
0x53a2   : > { %4508 = vmatmul.mubr.msk.f32.vlgmr.msra.gmra.mrb[14].mxu0 %vm2087_vm7, %v3571_v51 }
0x5475   : > { %v3640_v52 = vpop.f32.mrb[14].mxu0 }
0x5476   : > { %v3645_v54 = vrot.slane %v3640_v52, 6  ;;  %v4509_v55 = vpop.f32.mrb[15].mxu0 }
0x5478   : > { %v3647_v56 = vadd.f32 %v3645_v54, %v5113_v27 }
0x547a   : > { %4995 = vtanh.f32 %v3647_v56  ;;  %v3967_v58 = vmul.f32 -1.442695, %v3647_v56 }
0x547c   : > { %4997 = vpow2.f32 %v3967_v58 }
0x5484   : > { %v4996_v57 = vpop.eup %4995 }
0x5485   : > { %3660 = vrot.lane.b32.xlu0 %v4996_v57, %s5027_s16 }
0x5486   : > { %v4998_v61 = vpop.eup %4997 }
0x5487   : > { %v3651_v24 = vadd.f32 1.0, %v4998_v61 }
0x5489   : > { %4999 = vrcp.f32 %v3651_v24 }
0x5493   : > { %v5000_v23 = vpop.eup %4999 }
0x5494   : > { %v3658_v3 = vmul.f32 %v5000_v23, %v3656_v2 }
0x54f7   : > { %v3661_v62 = vpop.permute.xlu0 %3660 }
0x54f8   : > { %v3663_v1 = vmul.f32 %v5000_v23, %v3661_v62 }
0x54fa   : > { %3665 = vrot.lane.b32.xlu1 %v3663_v1, %s5028_s18 }
0x556c   : > { %v3666_v5 = vpop.permute.xlu1 %3665 }
0x556d   : > { %v3668_v11 = vadd.f32 %v3666_v5, %v3658_v3 }
0x556f   : > { %5001 = vtanh.f32 %v3668_v11  ;;  %v3760_v40 = vrot.slane %v3668_v11, 2 }
0x5579   : > { %v5002_v12 = vpop.eup %5001 }
0x557a   : > { %3671 = vrot.lane.b32.xlu0 %v5002_v12, %s5027_s16 }
0x55ec   : > { %v3672_v13 = vpop.permute.xlu0 %3671 }
0x55ed   : > { %v3674_v14 = vmul.f32 %v5000_v23, %v3672_v13 }
0x55ef   : > { %v3676_v15 = vrot.slane %v3674_v14, 2 }
0x55f1   : > { %3677 = vrot.lane.b32.xlu1 %v3676_v15, %s5028_s18 }
0x5663   : > { %v3678_v16 = vpop.permute.xlu1 %3677 }
0x5664   : > { %4519 = vmatmul.mubr.msk.f32.vlgmr.msra.gmra.mrb[14].mxu1 %vm2087_vm7, %v3678_v16 }
0x5737   : > { %v3747_v18 = vpop.f32.mrb[14].mxu1 }
0x5738   : > { %v3751_v19 = vadd.f32 %v3747_v18, %v5113_v27  ;;  %v4520_v20 = vpop.f32.mrb[15].mxu1  ;;  %v3785_v27 = vsel %vm3779_vm8, %v5565_v0, %v5550_v45  ;;  %v3792_v45 = vsel %vm3781_vm9, %v3791_v9, %v5415_v21  ;;  %v3789_v21 = vsel %vm3781_vm9, %v3788_v4, %v5475_v47 }
0x5739   : > { %v3786_v59 = vsel %vm3781_vm9, %v3785_v27, %v5535_v17  ;;  %v3793_v0 = vsel %vm3783_vm10, %v3792_v45, %v5400_v60  ;;  %v3790_v10 = vsel %vm3783_vm10, %v3789_v21, %v5460_v26 }
0x573a   : > { %5003 = vtanh.f32 %v3751_v19  ;;  %v3969_v25 = vmul.f32 -1.442695, %v3751_v19  ;;  %v3787_v46 = vsel %vm3783_vm10, %v3786_v59, %v5520_v53 }
0x573c   : > { %5005 = vpow2.f32 %v3969_v25 }
0x5744   : > { %v5004_v22 = vpop.eup %5003 }
0x5745   : > { %3764 = vrot.lane.b32.xlu0 %v5004_v22, %s5027_s16 }
0x5746   : > { %v5006_v33 = vpop.eup %5005 }
0x5747   : > { %v3755_v34 = vadd.f32 1.0, %v5006_v33 }
0x5749   : > { %5007 = vrcp.f32 %v3755_v34 }
0x5753   : > { %v5008_v35 = vpop.eup %5007 }
0x5754   : > { %v3762_v41 = vmul.f32 %v5008_v35, %v3760_v40 }
0x57b7   : > { %v3765_v28 = vpop.permute.xlu0 %3764 }
0x57b8   : > { %v3767_v38 = vmul.f32 %v5008_v35, %v3765_v28 }
0x57ba   : > { %3769 = vrot.lane.b32.xlu1 %v3767_v38, %s5028_s18 }
0x582c   : > { %v3770_v42 = vpop.permute.xlu1 %3769 }
0x582d   : > { %v3772_v43 = vadd.f32 %v3770_v42, %v3762_v41 }
0x582f   : > { %5009 = vtanh.f32 %v3772_v43 }
0x5839   : > { %v5010_v44 = vpop.eup %5009 }
0x583a   : > { %3775 = vrot.lane.b32.xlu0 %v5010_v44, %s5027_s16 }
0x583e   : > { %3800 = vrot.lane.b32.xlu0 %v3787_v46, %s5028_s18 }
0x5842   : > { %3804 = vrot.lane.b32.xlu0 %v3793_v0, %s5028_s18 }
0x58ac   : > { %v3776_v17 = vpop.permute.xlu0 %3775 }
0x58ad   : > { %v3778_v29 = vmul.f32 %v5008_v35, %v3776_v17 }
0x58af   : > { %v3780_v63 = vsel %vm3779_vm8, %v3778_v29, %v3674_v14 }
0x58b0   : > { %v3801_v53 = vpop.permute.xlu0 %3800  ;;  %v3782_v31 = vsel %vm3781_vm9, %v3780_v63, %v5593_v49 }
0x58b1   : > { %3811 = vst.msk [vmem:[%s5087_s6 + $0x8] sm:$0xff] %vm2087_vm7, %v3801_v53  ;;  %v3784_v60 = vsel %vm3783_vm10, %v3782_v31, %v5579_v36 }
0x58b2   : > { %3798 = vrot.lane.b32.xlu1 %v3784_v60, %s5028_s18 }
0x58b4   : > { %v3805_v32 = vpop.permute.xlu0 %3804 }
0x58b5   : > { %3813 = vst.msk [vmem:[%s5087_s6 + $0x18] sm:$0xff] %vm2087_vm7, %v3805_v32 }
0x58b6   : > { %3802 = vrot.lane.b32.xlu1 %v3790_v10, %s5028_s18 }
0x5924   : > { %v3799_v39 = vpop.permute.xlu1 %3798 }
0x5925   : > { %3810 = vst.msk [vmem:[%s5087_s6] sm:$0xff] %vm2087_vm7, %v3799_v39 }
0x5928   : > { %v3803_v37 = vpop.permute.xlu1 %3802 }
0x5929   : > { %3812 = vst.msk [vmem:[%s5087_s6 + $0x10] sm:$0xff] %vm2087_vm7, %v3803_v37 }
0x592a PF: > { %s14_s15 = sadd.s32 1, %s5017_s15  }
0x592b   : > { %p11_p6 = scmp.ge.s32.totalorder %s14_s15, 4  }
0x592d   :  { %13 = sbr.rel (!%p11_p6) target bundleno = 1 (0x1), region = 80 }

// kernel: cnn_lstm_attention_forward.5
= control target key start
LH: loop header
LB: loop body
LE: loop exit
PB: predicated region body
PF: predicated region fallthrough
CT: control target
= control target key end

     0   :  { %s5099_s15 = smov 0   ;;  %s5736_s0 = inlined_call_operand.vmem [shape: f32[32,256], index: 0, kind: input, shape index: {}]   ;;  %s5737_s1 = inlined_call_operand.vmem [shape: f32[2,256,128], index: 1, kind: input, shape index: {}]   ;;  %s5738_s2 = inlined_call_operand.vmem [shape: f32[2,32,128], index: 2, kind: input, shape index: {}]   ;;  %s5739_s3 = inlined_call_operand.vmem [shape: f32[2,1,128], index: 3, kind: input, shape index: {}]   ;;  %s5740_s4 = inlined_call_operand.vmem [shape: f32[2,32,32], index: 4, kind: output, shape index: {}]  }
   0x1 LB: > { %s5105_s16 = sadd.s32 4294967295, %s5062_s15   ;;  %p3909_p0 = scmp.ge.s32.totalorder %s5062_s15, 1  ;;  %s5062_s15 = sphi %s5099_s15, %s14_s15  }
   0x2   : > { %p180_p1 = scmp.lt.s32.totalorder %s5062_s15, 3 }
   0x4   : > { %p181_p2 = pnand %p3909_p0, %p180_p1 }
   0x5   : > { %p214_p3 = scmp.lt.s32.totalorder (!%p181_p2), %s5105_s16, 1  ;;  %v233_v0 = vld [vmem:[%s5736_s0 + $0x8] sm:$0xff] (!%p181_p2)  ;;  %v232_v54 = vld [vmem:[%s5736_s0] sm:$0xff] (!%p181_p2)  ;;  %v235_v56 = vld [vmem:[%s5736_s0 + $0x18] sm:$0xff] (!%p181_p2)  ;;  %p3917_p4 = scmp.ne.s32.totalorder (!%p181_p2), %s5105_s16, 0 }
   0x6   : > { %184 = sbr.rel (%p181_p2) target bundleno = 22843 (0x593b), region = 36  ;;  %v237_v1 = vld [vmem:[%s5736_s0 + $0x28] sm:$0xff] (!%p181_p2)  ;;  %343 = vmatprep.mubr.f32.mxu0 (!%p181_p2), %v233_v0  ;;  %v236_v55 = vld [vmem:[%s5736_s0 + $0x20] sm:$0xff] (!%p181_p2)  ;;  %v239_v57 = vld [vmem:[%s5736_s0 + $0x38] sm:$0xff] (!%p181_p2) }
   0x7   : > { %353 = vmatprep.mubr.f32.mxu1 (!%p181_p2), %v237_v1  ;;  %v234_v58 = vld [vmem:[%s5736_s0 + $0x10] sm:$0xff] (!%p181_p2) }
   0x8   : > { %v238_v59 = vld [vmem:[%s5736_s0 + $0x30] sm:$0xff] (!%p181_p2) }
   0xd   : > { %s5117_s21 = scalar_select %p214_p3, %s5105_s16, 1 }
   0xe   : > { %vm5065_vm0 = vmmov (!%p3917_p4), 0   ;;  %s5068_s25 = smov (!%p3917_p4), 32   ;;  %vm372_vm1 = vcmask (!%p3917_p4), 261120   ;;  %vm2063_vm2 = vcmask (!%p3917_p4), 1041408   ;;  %vm2065_vm3 = vcmask (!%p3917_p4), 1043456  }
   0xf   : > { %s3983_s22 = sshll.u32 %s5117_s21, 8  ;;  %s3984_s23 = sshll.u32 %s5117_s21, 5  ;;  %vm2067_vm4 = vcmask (!%p3917_p4), 1045504  }
  0x10   : > { %s5124_s26 = scalar_lea.vmem %s5737_s1, %s3983_s22  ;;  %s223_s29 = scalar_lea.vmem %s5738_s2, %s3984_s23 }
  0x11   : > { %s5132_s6 = scalar_lea.vmem %s5740_s4, %s3984_s23  ;;  %v256_v2 = vld [vmem:[%s5124_s26 + $0x80] sm:$0xff]  ;;  %v257_v3 = vld [vmem:[%s5124_s26 + $0x88] sm:$0xff]  ;;  %v5140_v7 = vld [vmem:[%s223_s29 + $0x10] sm:$0xff]  ;;  %s226_s24 = scalar_lea.vmem %s5739_s3, %s5117_s21 }
  0x12   : > { %v5136_v4 = vld [vmem:[%s223_s29] sm:$0xff]  ;;  %v4542_v5 = vpack.c.bf16 %v257_v3, %v256_v2  ;;  %v5138_v6 = vld [vmem:[%s223_s29 + $0x8] sm:$0xff]  ;;  %v5142_v8 = vld [vmem:[%s223_s29 + $0x18] sm:$0xff]  ;;  %s5067_s21 = smov (!%p3917_p4), 64  }
  0x13   : > { %v240_v9 = vld [vmem:[%s5124_s26] sm:$0xff]  ;;  %v241_v10 = vld [vmem:[%s5124_s26 + $0x8] sm:$0xff]  ;;  %v258_v11 = vld [vmem:[%s5124_s26 + $0x90] sm:$0xff] }
  0x14   : > { %4543 = vmatprep.subr.bf16.mxu0 %v4542_v5  ;;  %4766 = vmatprep.subr.bf16.mxu1 %v4542_v5  ;;  %v4544_v12 = vpack.c.bf16 %v241_v10, %v240_v9  ;;  %v259_v13 = vld [vmem:[%s5124_s26 + $0x98] sm:$0xff]  ;;  %v242_v14 = vld [vmem:[%s5124_s26 + $0x10] sm:$0xff]  ;;  %v260_v17 = vld [vmem:[%s5124_s26 + $0xa0] sm:$0xff] }
  0x15   : > { %v243_v15 = vld [vmem:[%s5124_s26 + $0x18] sm:$0xff]  ;;  %v4546_v16 = vpack.c.bf16 %v259_v13, %v258_v11  ;;  %v261_v18 = vld [vmem:[%s5124_s26 + $0xa8] sm:$0xff]  ;;  %v244_v21 = vld [vmem:[%s5124_s26 + $0x20] sm:$0xff] }
  0x16   : > { %4545 = vmatpush3.bf16.msra.mxu0 %v4544_v12  ;;  %4774 = vmatpush3.bf16.msra.mxu1 %v4544_v12  ;;  %v4548_v19 = vpack.c.bf16 %v243_v15, %v242_v14  ;;  %v4550_v20 = vpack.c.bf16 %v261_v18, %v260_v17  ;;  %v245_v22 = vld [vmem:[%s5124_s26 + $0x28] sm:$0xff]  ;;  %v262_v23 = vld [vmem:[%s5124_s26 + $0xb0] sm:$0xff]  ;;  %v263_v24 = vld [vmem:[%s5124_s26 + $0xb8] sm:$0xff]  ;;  %v5207_v17 = vpack.c.bf16 (!%p3917_p4), %v5138_v6, %v5136_v4  ;;  %v5064_v18 = vmov (!%p3917_p4), 0.0|0.0  }
  0x17   : > { %4547 = vmatprep.subr.bf16.mxu0 %v4546_v16  ;;  %4767 = vmatprep.subr.bf16.mxu1 %v4546_v16  ;;  %v4552_v25 = vpack.c.bf16 %v245_v22, %v244_v21  ;;  %v4554_v26 = vpack.c.bf16 %v263_v24, %v262_v23  ;;  %v246_v27 = vld [vmem:[%s5124_s26 + $0x30] sm:$0xff]  ;;  %v247_v28 = vld [vmem:[%s5124_s26 + $0x38] sm:$0xff]  ;;  %v264_v29 = vld [vmem:[%s5124_s26 + $0xc0] sm:$0xff] }
  0x18   : > { %v265_v30 = vld [vmem:[%s5124_s26 + $0xc8] sm:$0xff]  ;;  %v4556_v31 = vpack.c.bf16 %v247_v28, %v246_v27  ;;  %v248_v33 = vld [vmem:[%s5124_s26 + $0x40] sm:$0xff]  ;;  %v266_v35 = vld [vmem:[%s5124_s26 + $0xd0] sm:$0xff] }
  0x19   : > { %v4558_v32 = vpack.c.bf16 %v265_v30, %v264_v29  ;;  %v249_v34 = vld [vmem:[%s5124_s26 + $0x48] sm:$0xff]  ;;  %v267_v36 = vld [vmem:[%s5124_s26 + $0xd8] sm:$0xff]  ;;  %v250_v39 = vld [vmem:[%s5124_s26 + $0x50] sm:$0xff] }
  0x1a   : > { %4549 = vmatpush3.bf16.msra.mxu0 %v4548_v19  ;;  %4775 = vmatpush3.bf16.msra.mxu1 %v4548_v19  ;;  %v4560_v37 = vpack.c.bf16 %v249_v34, %v248_v33  ;;  %v4562_v38 = vpack.c.bf16 %v267_v36, %v266_v35  ;;  %v251_v40 = vld [vmem:[%s5124_s26 + $0x58] sm:$0xff]  ;;  %v268_v41 = vld [vmem:[%s5124_s26 + $0xe0] sm:$0xff]  ;;  %v269_v42 = vld [vmem:[%s5124_s26 + $0xe8] sm:$0xff]  ;;  %v5214_v19 = vpack.c.bf16 (!%p3917_p4), %v5142_v8, %v5140_v7 }
  0x1b   : > { %4551 = vmatprep.subr.bf16.mxu0 %v4550_v20  ;;  %4768 = vmatprep.subr.bf16.mxu1 %v4550_v20  ;;  %v4564_v43 = vpack.c.bf16 %v251_v40, %v250_v39  ;;  %v4566_v44 = vpack.c.bf16 %v269_v42, %v268_v41  ;;  %v252_v45 = vld [vmem:[%s5124_s26 + $0x60] sm:$0xff]  ;;  %v253_v46 = vld [vmem:[%s5124_s26 + $0x68] sm:$0xff]  ;;  %v270_v47 = vld [vmem:[%s5124_s26 + $0xf0] sm:$0xff]  ;;  %v5066_v20 = vmov (!%p3917_p4), 0.0  }
  0x1c   : > { %v271_v48 = vld [vmem:[%s5124_s26 + $0xf8] sm:$0xff]  ;;  %v4568_v49 = vpack.c.bf16 %v253_v46, %v252_v45  ;;  %v254_v51 = vld [vmem:[%s5124_s26 + $0x70] sm:$0xff]  ;;  %v3916_v62 = vld [vmem:[%s226_s24] ss:$0 sm:$0xff] }
  0x1d   : > { %v4570_v50 = vpack.c.bf16 %v271_v48, %v270_v47  ;;  %v255_v52 = vld [vmem:[%s5124_s26 + $0x78] sm:$0xff] }
  0x1e   : > { %4553 = vmatpush3.bf16.msra.mxu0 %v4552_v25  ;;  %4776 = vmatpush3.bf16.msra.mxu1 %v4552_v25  ;;  %v4572_v53 = vpack.c.bf16 %v255_v52, %v254_v51 }
  0x1f   : > { %4555 = vmatprep.subr.bf16.mxu0 %v4554_v26  ;;  %4769 = vmatprep.subr.bf16.mxu1 %v4554_v26 }
  0x22   : > { %4557 = vmatpush3.bf16.msra.mxu0 %v4556_v31  ;;  %4777 = vmatpush3.bf16.msra.mxu1 %v4556_v31 }
  0x23   : > { %4559 = vmatprep.subr.bf16.mxu0 %v4558_v32  ;;  %4770 = vmatprep.subr.bf16.mxu1 %v4558_v32 }
  0x26   : > { %4561 = vmatpush3.bf16.msra.mxu0 %v4560_v37  ;;  %4778 = vmatpush3.bf16.msra.mxu1 %v4560_v37 }
  0x27   : > { %4563 = vmatprep.subr.bf16.mxu0 %v4562_v38  ;;  %4771 = vmatprep.subr.bf16.mxu1 %v4562_v38 }
  0x2a   : > { %4565 = vmatpush3.bf16.msra.mxu0 %v4564_v43  ;;  %4779 = vmatpush3.bf16.msra.mxu1 %v4564_v43 }
  0x2b   : > { %4567 = vmatprep.subr.bf16.mxu0 %v4566_v44  ;;  %4772 = vmatprep.subr.bf16.mxu1 %v4566_v44 }
  0x2e   : > { %4569 = vmatpush3.bf16.msra.mxu0 %v4568_v49  ;;  %4780 = vmatpush3.bf16.msra.mxu1 %v4568_v49 }
  0x2f   : > { %4571 = vmatprep.subr.bf16.mxu0 %v4570_v50  ;;  %4773 = vmatprep.subr.bf16.mxu1 %v4570_v50 }
  0x32   : > { %4573 = vmatpush3.bf16.msra.mxu0 %v4572_v53  ;;  %4781 = vmatpush3.bf16.msra.mxu1 %v4572_v53 }
  0x33   : > { %4574 = vmatprep.subr.bf16.mxu0 (!%p3917_p4), %v5064_v18  ;;  %4580 = vmatprep.subr.bf16.mxu1 (!%p3917_p4), %v5064_v18 }
  0x35   : > { %344 = vmatmul.mubr.f32.vlgmr.msra.gmra.mrb[0].mxu0 %v232_v54  ;;  %354 = vmatmul.mubr.f32.vlgmr.msra.gmra.mrb[0].mxu1 %v236_v55 }
  0x36   : > { %348 = vmatprep.mubr.f32.mxu0 %v235_v56  ;;  %358 = vmatprep.mubr.f32.mxu1 %v239_v57 }
  0x37   : > { %4576 = vmatpush3.bf16.msra.mxu0 (!%p3917_p4), %v5207_v17  ;;  %4582 = vmatpush3.bf16.msra.mxu1 (!%p3917_p4), %v5207_v17 }
  0x38   : > { %4577 = vmatprep.subr.bf16.mxu0 (!%p3917_p4), %v5064_v18  ;;  %4583 = vmatprep.subr.bf16.mxu1 (!%p3917_p4), %v5064_v18 }
  0x39   : > { %349 = vmatmul.mubr.f32.gmra.mrb[2].mxu0 %v234_v58  ;;  %359 = vmatmul.mubr.f32.gmra.mrb[2].mxu1 %v238_v59 }
  0x3a   : > { %4198 = vmatprep.mubr.msk.f32.mxu0 (!%p3917_p4), %vm5065_vm0, %v5066_v20  ;;  %4209 = vmatprep.mubr.msk.f32.mxu1 (!%p3917_p4), %vm5065_vm0, %v5066_v20 }
  0x3b   : > { %4579 = vmatpush3.bf16.msra.mxu0 (!%p3917_p4), %v5214_v19  ;;  %4585 = vmatpush3.bf16.msra.mxu1 (!%p3917_p4), %v5214_v19 }
  0x3c   : > { %4586 = vmatprep.subr.bf16.mxu0 (!%p3917_p4), %v5064_v18  ;;  %4592 = vmatprep.subr.bf16.mxu1 (!%p3917_p4), %v5064_v18 }
 0x108   : > { %v4018_v60 = vpop.f32.mrb[0].mxu0  ;;  %v4024_v61 = vpop.f32.mrb[0].mxu1 }
 0x109   : > { %v4019_v63 = vpop.f32.mrb[1].mxu0  ;;  %v4025_v0 = vpop.f32.mrb[1].mxu1  ;;  %4199 = vmatmul.mubr.f32.vlgmr.msra.gmra.mrb[0].mxu0 (!%p3917_p4), %v5066_v20 }
 0x10a   : > { %v4020_v1 = vadd.f32 %v4019_v63, %v4018_v60  ;;  %v4026_v2 = vadd.f32 %v4025_v0, %v4024_v61  ;;  %371 = sbr.rel (%p3917_p4) target bundleno = 11545 (0x2d19), region = 40  ;;  %4588 = vmatpush3.bf16.msra.mxu0 (!%p3917_p4), %v5207_v17  ;;  %4220 = vmatprep.mubr.msk.f32.mxu0 (!%p3917_p4), %vm5065_vm0, %v5066_v20 }
 0x10b   : > { %4589 = vmatprep.subr.bf16.mxu0 (!%p3917_p4), %v5064_v18 }
 0x10c   : > { %v5196_v3 = vadd.f32 %v4020_v1, %v3916_v62  ;;  %v5198_v5 = vadd.f32 %v4026_v2, %v3916_v62  ;;  %v4021_v9 = vpop.f32.mrb[2].mxu0  ;;  %v4027_v10 = vpop.f32.mrb[2].mxu1 }
 0x10d   : > { %v4022_v11 = vpop.f32.mrb[3].mxu0  ;;  %v4028_v12 = vpop.f32.mrb[3].mxu1 }
 0x10e   : > { %v4023_v13 = vadd.f32 %v4022_v11, %v4021_v9  ;;  %v4029_v14 = vadd.f32 %v4028_v12, %v4027_v10  ;;  %4591 = vmatpush3.bf16.msra.mxu0 (!%p3917_p4), %v5214_v19 }
 0x10f   : > { %4598 = vmatprep.subr.bf16.mxu0 (!%p3917_p4), %v5064_v18 }
 0x110   : > { %v5200_v15 = vadd.f32 %v4023_v13, %v3916_v62  ;;  %v5202_v16 = vadd.f32 %v4029_v14, %v3916_v62 }
 0x1dc   : > { %v442_v21 = vpop.f32.mrb[0].mxu0 }
 0x1dd   : > { %v446_v22 = vadd.f32 %v442_v21, %v5196_v3  ;;  %v4200_v23 = vpop.f32.mrb[1].mxu0 }
 0x1df   : > { %4800 = vtanh.f32 %v446_v22  ;;  %v3918_v25 = vmul.f32 -1.442695, %v446_v22 }
 0x1e1   : > { %4802 = vpow2.f32 %v3918_v25 }
 0x1e9   : > { %v4801_v24 = vpop.eup %4800 }
 0x1ea   : > { %456 = vrot.lane.b32.xlu0 %v4801_v24, %s5067_s21 }
 0x1eb   : > { %v4803_v26 = vpop.eup %4802 }
 0x1ec   : > { %v450_v27 = vadd.f32 1.0, %v4803_v26 }
 0x1ee   : > { %4804 = vrcp.f32 %v450_v27 }
 0x1f8   : > { %v4805_v28 = vpop.eup %4804 }
 0x1f9   : > { %v454_v31 = vmul.f32 0.0, %v4805_v28 }
 0x25c   : > { %v457_v29 = vpop.permute.xlu0 %456 }
 0x25d   : > { %v459_v30 = vmul.f32 %v4805_v28, %v457_v29 }
 0x25f   : > { %461 = vrot.lane.b32.xlu0 %v459_v30, %s5068_s25 }
 0x2d1   : > { %v462_v32 = vpop.permute.xlu0 %461 }
 0x2d2   : > { %v464_v33 = vadd.f32 %v462_v32, %v454_v31 }
 0x2d4   : > { %4806 = vtanh.f32 %v464_v33  ;;  %v558_v49 = vrot.slane %v464_v33, 6 }
 0x2de   : > { %v4807_v34 = vpop.eup %4806 }
 0x2df   : > { %467 = vrot.lane.b32.xlu1 %v4807_v34, %s5067_s21 }
 0x351   : > { %v468_v35 = vpop.permute.xlu1 %467 }
 0x352   : > { %v5238_v36 = vmul.f32 %v4805_v28, %v468_v35 }
 0x354   : > { %472 = vrot.lane.b32.xlu1 %v5238_v36, %s5068_s25 }
 0x3c6   : > { %v473_v37 = vpop.permute.xlu1 %472 }
 0x3c7   : > { %4210 = vmatmul.mubr.msk.f32.vlgmr.msra.gmra.mrb[0].mxu1 %vm372_vm1, %v473_v37 }
 0x3c8   : > { %4594 = vmatpush3.bf16.msra.mxu1 %v5207_v17  ;;  %4231 = vmatprep.mubr.msk.f32.mxu1 %vm5065_vm0, %v5066_v20 }
 0x3c9   : > { %4595 = vmatprep.subr.bf16.mxu1 %v5064_v18 }
 0x3cc   : > { %4597 = vmatpush3.bf16.msra.mxu1 %v5214_v19 }
 0x3cd   : > { %4604 = vmatprep.subr.bf16.mxu1 %v5064_v18 }
 0x49a   : > { %v542_v38 = vpop.f32.mrb[0].mxu1 }
 0x49b   : > { %v547_v39 = vrot.slane %v542_v38, 6  ;;  %v4211_v40 = vpop.f32.mrb[1].mxu1 }
 0x49d   : > { %v549_v41 = vadd.f32 %v547_v39, %v5196_v3 }
 0x49f   : > { %4808 = vtanh.f32 %v549_v41  ;;  %v3920_v43 = vmul.f32 -1.442695, %v549_v41 }
 0x4a1   : > { %4810 = vpow2.f32 %v3920_v43 }
 0x4a9   : > { %v4809_v42 = vpop.eup %4808 }
 0x4aa   : > { %562 = vrot.lane.b32.xlu0 %v4809_v42, %s5067_s21 }
 0x4ab   : > { %v4811_v44 = vpop.eup %4810 }
 0x4ac   : > { %v553_v45 = vadd.f32 1.0, %v4811_v44 }
 0x4ae   : > { %4812 = vrcp.f32 %v553_v45 }
 0x4b8   : > { %v4813_v46 = vpop.eup %4812 }
 0x4b9   : > { %v560_v50 = vmul.f32 %v4813_v46, %v558_v49 }
 0x51c   : > { %v563_v47 = vpop.permute.xlu0 %562 }
 0x51d   : > { %v565_v48 = vmul.f32 %v4813_v46, %v563_v47 }
 0x51f   : > { %567 = vrot.lane.b32.xlu1 %v565_v48, %s5068_s25 }
 0x591   : > { %v568_v51 = vpop.permute.xlu1 %567 }
 0x592   : > { %v570_v52 = vadd.f32 %v568_v51, %v560_v50 }
 0x594   : > { %4814 = vtanh.f32 %v570_v52  ;;  %v665_v11 = vrot.slane %v570_v52, 6 }
 0x59e   : > { %v4815_v53 = vpop.eup %4814 }
 0x59f   : > { %573 = vrot.lane.b32.xlu0 %v4815_v53, %s5067_s21 }
 0x611   : > { %v574_v54 = vpop.permute.xlu0 %573 }
 0x612   : > { %v576_v55 = vmul.f32 %v4813_v46, %v574_v54 }
 0x614   : > { %v578_v56 = vrot.slane %v576_v55, 2  ;;  %v2064_v24 = vsel %vm2063_vm2, %v5238_v36, %v576_v55 }
 0x616   : > { %579 = vrot.lane.b32.xlu1 %v578_v56, %s5068_s25 }
 0x688   : > { %v580_v57 = vpop.permute.xlu1 %579 }
 0x689   : > { %4221 = vmatmul.mubr.msk.f32.vlgmr.msra.gmra.mrb[2].mxu0 %vm372_vm1, %v580_v57 }
 0x68a   : > { %4600 = vmatpush3.bf16.msra.mxu0 %v5207_v17  ;;  %4242 = vmatprep.mubr.msk.f32.mxu0 %vm5065_vm0, %v5066_v20 }
 0x68b   : > { %4601 = vmatprep.subr.bf16.mxu0 %v5064_v18 }
 0x68e   : > { %4603 = vmatpush3.bf16.msra.mxu0 %v5214_v19 }
 0x68f   : > { %4610 = vmatprep.subr.bf16.mxu0 %v5064_v18 }
 0x75c   : > { %v649_v58 = vpop.f32.mrb[2].mxu0 }
 0x75d   : > { %v654_v59 = vrot.slane %v649_v58, 4  ;;  %v4222_v60 = vpop.f32.mrb[3].mxu0 }
 0x75f   : > { %v656_v61 = vadd.f32 %v654_v59, %v5196_v3 }
 0x761   : > { %4816 = vtanh.f32 %v656_v61  ;;  %v3922_v63 = vmul.f32 -1.442695, %v656_v61 }
 0x763   : > { %4818 = vpow2.f32 %v3922_v63 }
 0x76b   : > { %v4817_v62 = vpop.eup %4816 }
 0x76c   : > { %669 = vrot.lane.b32.xlu0 %v4817_v62, %s5067_s21 }
 0x76d   : > { %v4819_v0 = vpop.eup %4818 }
 0x76e   : > { %v660_v1 = vadd.f32 1.0, %v4819_v0 }
 0x770   : > { %4820 = vrcp.f32 %v660_v1 }
 0x77a   : > { %v4821_v2 = vpop.eup %4820 }
 0x77b   : > { %v667_v12 = vmul.f32 %v4821_v2, %v665_v11 }
 0x7de   : > { %v670_v9 = vpop.permute.xlu0 %669 }
 0x7df   : > { %v672_v10 = vmul.f32 %v4821_v2, %v670_v9 }
 0x7e1   : > { %674 = vrot.lane.b32.xlu1 %v672_v10, %s5068_s25 }
 0x853   : > { %v675_v13 = vpop.permute.xlu1 %674 }
 0x854   : > { %v677_v14 = vadd.f32 %v675_v13, %v667_v12 }
 0x856   : > { %4822 = vtanh.f32 %v677_v14  ;;  %v772_v39 = vrot.slane %v677_v14, 6 }
 0x860   : > { %v4823_v21 = vpop.eup %4822 }
 0x861   : > { %680 = vrot.lane.b32.xlu0 %v4823_v21, %s5067_s21 }
 0x8d3   : > { %v681_v22 = vpop.permute.xlu0 %680 }
 0x8d4   : > { %v683_v23 = vmul.f32 %v4821_v2, %v681_v22 }
 0x8d6   : > { %v685_v25 = vrot.slane %v683_v23, 4  ;;  %v2066_v26 = vsel %vm2065_vm3, %v2064_v24, %v683_v23 }
 0x8d8   : > { %686 = vrot.lane.b32.xlu1 %v685_v25, %s5068_s25 }
 0x94a   : > { %v687_v27 = vpop.permute.xlu1 %686 }
 0x94b   : > { %4232 = vmatmul.mubr.msk.f32.vlgmr.msra.gmra.mrb[2].mxu1 %vm372_vm1, %v687_v27 }
 0x94c   : > { %4606 = vmatpush3.bf16.msra.mxu1 %v5207_v17  ;;  %4253 = vmatprep.mubr.msk.f32.mxu1 %vm5065_vm0, %v5066_v20 }
 0x94d   : > { %4607 = vmatprep.subr.bf16.mxu1 %v5064_v18 }
 0x950   : > { %4609 = vmatpush3.bf16.msra.mxu1 %v5214_v19 }
 0x951   : > { %4616 = vmatprep.subr.bf16.mxu1 %v5064_v18 }
 0xa1e   : > { %v756_v28 = vpop.f32.mrb[2].mxu1 }
 0xa1f   : > { %v761_v29 = vrot.slane %v756_v28, 2  ;;  %v4233_v30 = vpop.f32.mrb[3].mxu1 }
 0xa21   : > { %v763_v31 = vadd.f32 %v761_v29, %v5196_v3 }
 0xa23   : > { %4824 = vtanh.f32 %v763_v31  ;;  %v3924_v33 = vmul.f32 -1.442695, %v763_v31 }
 0xa25   : > { %4826 = vpow2.f32 %v3924_v33 }
 0xa2d   : > { %v4825_v32 = vpop.eup %4824 }
 0xa2e   : > { %776 = vrot.lane.b32.xlu0 %v4825_v32, %s5067_s21 }
 0xa2f   : > { %v4827_v34 = vpop.eup %4826 }
 0xa30   : > { %v767_v35 = vadd.f32 1.0, %v4827_v34 }
 0xa32   : > { %4828 = vrcp.f32 %v767_v35 }
 0xa3c   : > { %v4829_v36 = vpop.eup %4828 }
 0xa3d   : > { %v774_v40 = vmul.f32 %v4829_v36, %v772_v39 }
 0xaa0   : > { %v777_v37 = vpop.permute.xlu0 %776 }
 0xaa1   : > { %v779_v38 = vmul.f32 %v4829_v36, %v777_v37 }
 0xaa3   : > { %781 = vrot.lane.b32.xlu1 %v779_v38, %s5068_s25 }
 0xb15   : > { %v782_v41 = vpop.permute.xlu1 %781 }
 0xb16   : > { %v784_v42 = vadd.f32 %v782_v41, %v774_v40 }
 0xb18   : > { %4830 = vtanh.f32 %v784_v42  ;;  %v876_v59 = vrot.slane %v784_v42, 6 }
 0xb22   : > { %v4831_v43 = vpop.eup %4830 }
 0xb23   : > { %787 = vrot.lane.b32.xlu0 %v4831_v43, %s5067_s21 }
 0xb95   : > { %v788_v44 = vpop.permute.xlu0 %787 }
 0xb96   : > { %v790_v45 = vmul.f32 %v4829_v36, %v788_v44 }
 0xb98   : > { %v792_v46 = vrot.slane %v790_v45, 6  ;;  %v5281_v47 = vsel %vm2067_vm4, %v2066_v26, %v790_v45 }
 0xb9a   : > { %793 = vrot.lane.b32.xlu1 %v792_v46, %s5068_s25 }
 0xc0c   : > { %v794_v48 = vpop.permute.xlu1 %793 }
 0xc0d   : > { %4243 = vmatmul.mubr.msk.f32.vlgmr.msra.gmra.mrb[4].mxu0 %vm372_vm1, %v794_v48 }
 0xc0e   : > { %4612 = vmatpush3.bf16.msra.mxu0 %v5207_v17  ;;  %4264 = vmatprep.mubr.msk.f32.mxu0 %vm5065_vm0, %v5066_v20 }
 0xc0f   : > { %4613 = vmatprep.subr.bf16.mxu0 %v5064_v18 }
 0xc12   : > { %4615 = vmatpush3.bf16.msra.mxu0 %v5214_v19 }
 0xc13   : > { %4622 = vmatprep.subr.bf16.mxu0 %v5064_v18 }
 0xce0   : > { %v863_v49 = vpop.f32.mrb[4].mxu0 }
 0xce1   : > { %v867_v50 = vadd.f32 %v863_v49, %v5200_v15  ;;  %v4244_v51 = vpop.f32.mrb[5].mxu0 }
 0xce3   : > { %4832 = vtanh.f32 %v867_v50  ;;  %v3926_v53 = vmul.f32 -1.442695, %v867_v50 }
 0xce5   : > { %4834 = vpow2.f32 %v3926_v53 }
 0xced   : > { %v4833_v52 = vpop.eup %4832 }
 0xcee   : > { %880 = vrot.lane.b32.xlu0 %v4833_v52, %s5067_s21 }
 0xcef   : > { %v4835_v54 = vpop.eup %4834 }
 0xcf0   : > { %v871_v55 = vadd.f32 1.0, %v4835_v54 }
 0xcf2   : > { %4836 = vrcp.f32 %v871_v55 }
 0xcfc   : > { %v4837_v56 = vpop.eup %4836 }
 0xcfd   : > { %v878_v60 = vmul.f32 %v4837_v56, %v876_v59 }
 0xd60   : > { %v881_v57 = vpop.permute.xlu0 %880 }
 0xd61   : > { %v883_v58 = vmul.f32 %v4837_v56, %v881_v57 }
 0xd63   : > { %885 = vrot.lane.b32.xlu1 %v883_v58, %s5068_s25 }
 0xdd5   : > { %v886_v61 = vpop.permute.xlu1 %885 }
 0xdd6   : > { %v888_v62 = vadd.f32 %v886_v61, %v878_v60 }
 0xdd8   : > { %4838 = vtanh.f32 %v888_v62  ;;  %v982_v26 = vrot.slane %v888_v62, 6 }
 0xde2   : > { %v4839_v63 = vpop.eup %4838 }
 0xde3   : > { %891 = vrot.lane.b32.xlu0 %v4839_v63, %s5067_s21 }
 0xe55   : > { %v892_v0 = vpop.permute.xlu0 %891 }
 0xe56   : > { %v5295_v1 = vmul.f32 %v4837_v56, %v892_v0 }
 0xe58   : > { %896 = vrot.lane.b32.xlu1 %v5295_v1, %s5068_s25 }
 0xeca   : > { %v897_v2 = vpop.permute.xlu1 %896 }
 0xecb   : > { %4254 = vmatmul.mubr.msk.f32.vlgmr.msra.gmra.mrb[4].mxu1 %vm372_vm1, %v897_v2 }
 0xecc   : > { %4618 = vmatpush3.bf16.msra.mxu1 %v5207_v17  ;;  %4275 = vmatprep.mubr.msk.f32.mxu1 %vm5065_vm0, %v5066_v20 }
 0xecd   : > { %4619 = vmatprep.subr.bf16.mxu1 %v5064_v18 }
 0xed0   : > { %4621 = vmatpush3.bf16.msra.mxu1 %v5214_v19 }
 0xed1   : > { %4628 = vmatprep.subr.bf16.mxu1 %v5064_v18 }
 0xf9e   : > { %v966_v9 = vpop.f32.mrb[4].mxu1 }
 0xf9f   : > { %v971_v10 = vrot.slane %v966_v9, 6  ;;  %v4255_v11 = vpop.f32.mrb[5].mxu1 }
 0xfa1   : > { %v973_v12 = vadd.f32 %v971_v10, %v5200_v15 }
 0xfa3   : > { %4840 = vtanh.f32 %v973_v12  ;;  %v3928_v14 = vmul.f32 -1.442695, %v973_v12 }
 0xfa5   : > { %4842 = vpow2.f32 %v3928_v14 }
 0xfad   : > { %v4841_v13 = vpop.eup %4840 }
 0xfae   : > { %986 = vrot.lane.b32.xlu0 %v4841_v13, %s5067_s21 }
 0xfaf   : > { %v4843_v21 = vpop.eup %4842 }
 0xfb0   : > { %v977_v22 = vadd.f32 1.0, %v4843_v21 }
 0xfb2   : > { %4844 = vrcp.f32 %v977_v22 }
 0xfbc   : > { %v4845_v23 = vpop.eup %4844 }
 0xfbd   : > { %v984_v27 = vmul.f32 %v4845_v23, %v982_v26 }
0x1020   : > { %v987_v24 = vpop.permute.xlu0 %986 }
0x1021   : > { %v989_v25 = vmul.f32 %v4845_v23, %v987_v24 }
0x1023   : > { %991 = vrot.lane.b32.xlu1 %v989_v25, %s5068_s25 }
0x1095   : > { %v992_v28 = vpop.permute.xlu1 %991 }
0x1096   : > { %v994_v29 = vadd.f32 %v992_v28, %v984_v27 }
0x1098   : > { %4846 = vtanh.f32 %v994_v29  ;;  %v1089_v46 = vrot.slane %v994_v29, 6 }
0x10a2   : > { %v4847_v30 = vpop.eup %4846 }
0x10a3   : > { %997 = vrot.lane.b32.xlu0 %v4847_v30, %s5067_s21 }
0x1115   : > { %v998_v31 = vpop.permute.xlu0 %997 }
0x1116   : > { %v1000_v32 = vmul.f32 %v4845_v23, %v998_v31 }
0x1118   : > { %v1002_v33 = vrot.slane %v1000_v32, 2  ;;  %v2069_v54 = vsel %vm2063_vm2, %v5295_v1, %v1000_v32 }
0x111a   : > { %1003 = vrot.lane.b32.xlu1 %v1002_v33, %s5068_s25 }
0x118c   : > { %v1004_v34 = vpop.permute.xlu1 %1003 }
0x118d   : > { %4265 = vmatmul.mubr.msk.f32.vlgmr.msra.gmra.mrb[6].mxu0 %vm372_vm1, %v1004_v34 }
0x118e   : > { %4624 = vmatpush3.bf16.msra.mxu0 %v5207_v17  ;;  %4286 = vmatprep.mubr.msk.f32.mxu0 %vm5065_vm0, %v5066_v20 }
0x118f   : > { %4625 = vmatprep.subr.bf16.mxu0 %v5064_v18 }
0x1192   : > { %4627 = vmatpush3.bf16.msra.mxu0 %v5214_v19 }
0x1193   : > { %4634 = vmatprep.subr.bf16.mxu0 %v5064_v18 }
0x1260   : > { %v1073_v35 = vpop.f32.mrb[6].mxu0 }
0x1261   : > { %v1078_v36 = vrot.slane %v1073_v35, 4  ;;  %v4266_v37 = vpop.f32.mrb[7].mxu0 }
0x1263   : > { %v1080_v38 = vadd.f32 %v1078_v36, %v5200_v15 }
0x1265   : > { %4848 = vtanh.f32 %v1080_v38  ;;  %v3930_v40 = vmul.f32 -1.442695, %v1080_v38 }
0x1267   : > { %4850 = vpow2.f32 %v3930_v40 }
0x126f   : > { %v4849_v39 = vpop.eup %4848 }
0x1270   : > { %1093 = vrot.lane.b32.xlu0 %v4849_v39, %s5067_s21 }
0x1271   : > { %v4851_v41 = vpop.eup %4850 }
0x1272   : > { %v1084_v42 = vadd.f32 1.0, %v4851_v41 }
0x1274   : > { %4852 = vrcp.f32 %v1084_v42 }
0x127e   : > { %v4853_v43 = vpop.eup %4852 }
0x127f   : > { %v1091_v48 = vmul.f32 %v4853_v43, %v1089_v46 }
0x12e2   : > { %v1094_v44 = vpop.permute.xlu0 %1093 }
0x12e3   : > { %v1096_v45 = vmul.f32 %v4853_v43, %v1094_v44 }
0x12e5   : > { %1098 = vrot.lane.b32.xlu1 %v1096_v45, %s5068_s25 }
0x1357   : > { %v1099_v49 = vpop.permute.xlu1 %1098 }
0x1358   : > { %v1101_v50 = vadd.f32 %v1099_v49, %v1091_v48 }
0x135a   : > { %4854 = vtanh.f32 %v1101_v50  ;;  %v1196_v11 = vrot.slane %v1101_v50, 6 }
0x1364   : > { %v4855_v51 = vpop.eup %4854 }
0x1365   : > { %1104 = vrot.lane.b32.xlu0 %v4855_v51, %s5067_s21 }
0x13d7   : > { %v1105_v52 = vpop.permute.xlu0 %1104 }
0x13d8   : > { %v1107_v53 = vmul.f32 %v4853_v43, %v1105_v52 }
0x13da   : > { %v1109_v55 = vrot.slane %v1107_v53, 4  ;;  %v2070_v56 = vsel %vm2065_vm3, %v2069_v54, %v1107_v53 }
0x13dc   : > { %1110 = vrot.lane.b32.xlu1 %v1109_v55, %s5068_s25 }
0x144e   : > { %v1111_v57 = vpop.permute.xlu1 %1110 }
0x144f   : > { %4276 = vmatmul.mubr.msk.f32.vlgmr.msra.gmra.mrb[6].mxu1 %vm372_vm1, %v1111_v57 }
0x1450   : > { %4630 = vmatpush3.bf16.msra.mxu1 %v5207_v17  ;;  %4297 = vmatprep.mubr.msk.f32.mxu1 %vm5065_vm0, %v5066_v20 }
0x1451   : > { %4631 = vmatprep.subr.bf16.mxu1 %v5064_v18 }
0x1454   : > { %4633 = vmatpush3.bf16.msra.mxu1 %v5214_v19 }
0x1455   : > { %4640 = vmatprep.subr.bf16.mxu1 %v5064_v18 }
0x1522   : > { %v1180_v58 = vpop.f32.mrb[6].mxu1 }
0x1523   : > { %v1185_v59 = vrot.slane %v1180_v58, 2  ;;  %v4277_v60 = vpop.f32.mrb[7].mxu1 }
0x1525   : > { %v1187_v61 = vadd.f32 %v1185_v59, %v5200_v15 }
0x1527   : > { %4856 = vtanh.f32 %v1187_v61  ;;  %v3932_v63 = vmul.f32 -1.442695, %v1187_v61 }
0x1529   : > { %4858 = vpow2.f32 %v3932_v63 }
0x1531   : > { %v4857_v62 = vpop.eup %4856 }
0x1532   : > { %1200 = vrot.lane.b32.xlu0 %v4857_v62, %s5067_s21 }
0x1533   : > { %v4859_v0 = vpop.eup %4858 }
0x1534   : > { %v1191_v1 = vadd.f32 1.0, %v4859_v0 }
0x1536   : > { %4860 = vrcp.f32 %v1191_v1 }
0x1540   : > { %v4861_v2 = vpop.eup %4860 }
0x1541   : > { %v1198_v12 = vmul.f32 %v4861_v2, %v1196_v11 }
0x15a4   : > { %v1201_v9 = vpop.permute.xlu0 %1200 }
0x15a5   : > { %v1203_v10 = vmul.f32 %v4861_v2, %v1201_v9 }
0x15a7   : > { %1205 = vrot.lane.b32.xlu1 %v1203_v10, %s5068_s25 }
0x1619   : > { %v1206_v13 = vpop.permute.xlu1 %1205 }
0x161a   : > { %v1208_v14 = vadd.f32 %v1206_v13, %v1198_v12 }
0x161c   : > { %4862 = vtanh.f32 %v1208_v14  ;;  %v1300_v37 = vrot.slane %v1208_v14, 6 }
0x1626   : > { %v4863_v21 = vpop.eup %4862 }
0x1627   : > { %1211 = vrot.lane.b32.xlu0 %v4863_v21, %s5067_s21 }
0x1699   : > { %v1212_v22 = vpop.permute.xlu0 %1211 }
0x169a   : > { %v1214_v23 = vmul.f32 %v4861_v2, %v1212_v22 }
0x169c   : > { %v1216_v24 = vrot.slane %v1214_v23, 6  ;;  %v5338_v25 = vsel %vm2067_vm4, %v2070_v56, %v1214_v23 }
0x169e   : > { %1217 = vrot.lane.b32.xlu1 %v1216_v24, %s5068_s25 }
0x1710   : > { %v1218_v26 = vpop.permute.xlu1 %1217 }
0x1711   : > { %4287 = vmatmul.mubr.msk.f32.vlgmr.msra.gmra.mrb[8].mxu0 %vm372_vm1, %v1218_v26 }
0x1712   : > { %4636 = vmatpush3.bf16.msra.mxu0 %v5207_v17  ;;  %4308 = vmatprep.mubr.msk.f32.mxu0 %vm5065_vm0, %v5066_v20 }
0x1713   : > { %4637 = vmatprep.subr.bf16.mxu0 %v5064_v18 }
0x1716   : > { %4639 = vmatpush3.bf16.msra.mxu0 %v5214_v19 }
0x1717   : > { %4646 = vmatprep.subr.bf16.mxu0 %v5064_v18 }
0x17e4   : > { %v1287_v27 = vpop.f32.mrb[8].mxu0 }
0x17e5   : > { %v1291_v28 = vadd.f32 %v1287_v27, %v5198_v5  ;;  %v4288_v29 = vpop.f32.mrb[9].mxu0 }
0x17e7   : > { %4864 = vtanh.f32 %v1291_v28  ;;  %v3934_v31 = vmul.f32 -1.442695, %v1291_v28 }
0x17e9   : > { %4866 = vpow2.f32 %v3934_v31 }
0x17f1   : > { %v4865_v30 = vpop.eup %4864 }
0x17f2   : > { %1304 = vrot.lane.b32.xlu0 %v4865_v30, %s5067_s21 }
0x17f3   : > { %v4867_v32 = vpop.eup %4866 }
0x17f4   : > { %v1295_v33 = vadd.f32 1.0, %v4867_v32 }
0x17f6   : > { %4868 = vrcp.f32 %v1295_v33 }
0x1800   : > { %v4869_v34 = vpop.eup %4868 }
0x1801   : > { %v1302_v38 = vmul.f32 %v4869_v34, %v1300_v37 }
0x1864   : > { %v1305_v35 = vpop.permute.xlu0 %1304 }
0x1865   : > { %v1307_v36 = vmul.f32 %v4869_v34, %v1305_v35 }
0x1867   : > { %1309 = vrot.lane.b32.xlu1 %v1307_v36, %s5068_s25 }
0x18d9   : > { %v1310_v39 = vpop.permute.xlu1 %1309 }
0x18da   : > { %v1312_v40 = vadd.f32 %v1310_v39, %v1302_v38 }
0x18dc   : > { %4870 = vtanh.f32 %v1312_v40  ;;  %v1406_v57 = vrot.slane %v1312_v40, 6 }
0x18e6   : > { %v4871_v41 = vpop.eup %4870 }
0x18e7   : > { %1315 = vrot.lane.b32.xlu0 %v4871_v41, %s5067_s21 }
0x1959   : > { %v1316_v42 = vpop.permute.xlu0 %1315 }
0x195a   : > { %v5352_v43 = vmul.f32 %v4869_v34, %v1316_v42 }
0x195c   : > { %1320 = vrot.lane.b32.xlu1 %v5352_v43, %s5068_s25 }
0x19ce   : > { %v1321_v44 = vpop.permute.xlu1 %1320 }
0x19cf   : > { %4298 = vmatmul.mubr.msk.f32.vlgmr.msra.gmra.mrb[8].mxu1 %vm372_vm1, %v1321_v44 }
0x19d0   : > { %4642 = vmatpush3.bf16.msra.mxu1 %v5207_v17  ;;  %4319 = vmatprep.mubr.msk.f32.mxu1 %vm5065_vm0, %v5066_v20 }
0x19d1   : > { %4643 = vmatprep.subr.bf16.mxu1 %v5064_v18 }
0x19d4   : > { %4645 = vmatpush3.bf16.msra.mxu1 %v5214_v19 }
0x19d5   : > { %4652 = vmatprep.subr.bf16.mxu1 %v5064_v18 }
0x1aa2   : > { %v1390_v45 = vpop.f32.mrb[8].mxu1 }
0x1aa3   : > { %v1395_v46 = vrot.slane %v1390_v45, 6  ;;  %v4299_v48 = vpop.f32.mrb[9].mxu1 }
0x1aa5   : > { %v1397_v49 = vadd.f32 %v1395_v46, %v5198_v5 }
0x1aa7   : > { %4872 = vtanh.f32 %v1397_v49  ;;  %v3936_v51 = vmul.f32 -1.442695, %v1397_v49 }
0x1aa9   : > { %4874 = vpow2.f32 %v3936_v51 }
0x1ab1   : > { %v4873_v50 = vpop.eup %4872 }
0x1ab2   : > { %1410 = vrot.lane.b32.xlu0 %v4873_v50, %s5067_s21 }
0x1ab3   : > { %v4875_v52 = vpop.eup %4874 }
0x1ab4   : > { %v1401_v53 = vadd.f32 1.0, %v4875_v52 }
0x1ab6   : > { %4876 = vrcp.f32 %v1401_v53 }
0x1ac0   : > { %v4877_v54 = vpop.eup %4876 }
0x1ac1   : > { %v1408_v58 = vmul.f32 %v4877_v54, %v1406_v57 }
0x1b24   : > { %v1411_v55 = vpop.permute.xlu0 %1410 }
0x1b25   : > { %v1413_v56 = vmul.f32 %v4877_v54, %v1411_v55 }
0x1b27   : > { %1415 = vrot.lane.b32.xlu1 %v1413_v56, %s5068_s25 }
0x1b99   : > { %v1416_v59 = vpop.permute.xlu1 %1415 }
0x1b9a   : > { %v1418_v60 = vadd.f32 %v1416_v59, %v1408_v58 }
0x1b9c   : > { %4878 = vtanh.f32 %v1418_v60  ;;  %v1513_v26 = vrot.slane %v1418_v60, 6 }
0x1ba6   : > { %v4879_v61 = vpop.eup %4878 }
0x1ba7   : > { %1421 = vrot.lane.b32.xlu0 %v4879_v61, %s5067_s21 }
0x1c19   : > { %v1422_v62 = vpop.permute.xlu0 %1421 }
0x1c1a   : > { %v1424_v63 = vmul.f32 %v4877_v54, %v1422_v62 }
0x1c1c   : > { %v1426_v0 = vrot.slane %v1424_v63, 2  ;;  %v2072_v33 = vsel %vm2063_vm2, %v5352_v43, %v1424_v63 }
0x1c1e   : > { %1427 = vrot.lane.b32.xlu1 %v1426_v0, %s5068_s25 }
0x1c90   : > { %v1428_v1 = vpop.permute.xlu1 %1427 }
0x1c91   : > { %4309 = vmatmul.mubr.msk.f32.vlgmr.msra.gmra.mrb[10].mxu0 %vm372_vm1, %v1428_v1 }
0x1c92   : > { %4648 = vmatpush3.bf16.msra.mxu0 %v5207_v17  ;;  %4330 = vmatprep.mubr.msk.f32.mxu0 %vm5065_vm0, %v5066_v20 }
0x1c93   : > { %4649 = vmatprep.subr.bf16.mxu0 %v5064_v18 }
0x1c96   : > { %4651 = vmatpush3.bf16.msra.mxu0 %v5214_v19 }
0x1c97   : > { %4658 = vmatprep.subr.bf16.mxu0 %v5064_v18 }
0x1d64   : > { %v1497_v2 = vpop.f32.mrb[10].mxu0 }
0x1d65   : > { %v1502_v9 = vrot.slane %v1497_v2, 4  ;;  %v4310_v10 = vpop.f32.mrb[11].mxu0 }
0x1d67   : > { %v1504_v11 = vadd.f32 %v1502_v9, %v5198_v5 }
0x1d69   : > { %4880 = vtanh.f32 %v1504_v11  ;;  %v3938_v13 = vmul.f32 -1.442695, %v1504_v11 }
0x1d6b   : > { %4882 = vpow2.f32 %v3938_v13 }
0x1d73   : > { %v4881_v12 = vpop.eup %4880 }
0x1d74   : > { %1517 = vrot.lane.b32.xlu0 %v4881_v12, %s5067_s21 }
0x1d75   : > { %v4883_v14 = vpop.eup %4882 }
0x1d76   : > { %v1508_v21 = vadd.f32 1.0, %v4883_v14 }
0x1d78   : > { %4884 = vrcp.f32 %v1508_v21 }
0x1d82   : > { %v4885_v22 = vpop.eup %4884 }
0x1d83   : > { %v1515_v27 = vmul.f32 %v4885_v22, %v1513_v26 }
0x1de6   : > { %v1518_v23 = vpop.permute.xlu0 %1517 }
0x1de7   : > { %v1520_v24 = vmul.f32 %v4885_v22, %v1518_v23 }
0x1de9   : > { %1522 = vrot.lane.b32.xlu1 %v1520_v24, %s5068_s25 }
0x1e5b   : > { %v1523_v28 = vpop.permute.xlu1 %1522 }
0x1e5c   : > { %v1525_v29 = vadd.f32 %v1523_v28, %v1515_v27 }
0x1e5e   : > { %4886 = vtanh.f32 %v1525_v29  ;;  %v1620_v49 = vrot.slane %v1525_v29, 6 }
0x1e68   : > { %v4887_v30 = vpop.eup %4886 }
0x1e69   : > { %1528 = vrot.lane.b32.xlu0 %v4887_v30, %s5067_s21 }
0x1edb   : > { %v1529_v31 = vpop.permute.xlu0 %1528 }
0x1edc   : > { %v1531_v32 = vmul.f32 %v4885_v22, %v1529_v31 }
0x1ede   : > { %v1533_v34 = vrot.slane %v1531_v32, 4  ;;  %v2073_v35 = vsel %vm2065_vm3, %v2072_v33, %v1531_v32 }
0x1ee0   : > { %1534 = vrot.lane.b32.xlu1 %v1533_v34, %s5068_s25 }
0x1f52   : > { %v1535_v36 = vpop.permute.xlu1 %1534 }
0x1f53   : > { %4320 = vmatmul.mubr.msk.f32.vlgmr.msra.gmra.mrb[10].mxu1 %vm372_vm1, %v1535_v36 }
0x1f54   : > { %4654 = vmatpush3.bf16.msra.mxu1 %v5207_v17  ;;  %4341 = vmatprep.mubr.msk.f32.mxu1 %vm5065_vm0, %v5066_v20 }
0x1f55   : > { %4655 = vmatprep.subr.bf16.mxu1 %v5064_v18 }
0x1f58   : > { %4657 = vmatpush3.bf16.msra.mxu1 %v5214_v19 }
0x1f59   : > { %4664 = vmatprep.subr.bf16.mxu1 %v5064_v18 }
0x2026   : > { %v1604_v37 = vpop.f32.mrb[10].mxu1 }
0x2027   : > { %v1609_v38 = vrot.slane %v1604_v37, 2  ;;  %v4321_v39 = vpop.f32.mrb[11].mxu1 }
0x2029   : > { %v1611_v40 = vadd.f32 %v1609_v38, %v5198_v5 }
0x202b   : > { %4888 = vtanh.f32 %v1611_v40  ;;  %v3940_v42 = vmul.f32 -1.442695, %v1611_v40 }
0x202d   : > { %4890 = vpow2.f32 %v3940_v42 }
0x2035   : > { %v4889_v41 = vpop.eup %4888 }
0x2036   : > { %1624 = vrot.lane.b32.xlu0 %v4889_v41, %s5067_s21 }
0x2037   : > { %v4891_v43 = vpop.eup %4890 }
0x2038   : > { %v1615_v44 = vadd.f32 1.0, %v4891_v43 }
0x203a   : > { %4892 = vrcp.f32 %v1615_v44 }
0x2044   : > { %v4893_v45 = vpop.eup %4892 }
0x2045   : > { %v1622_v50 = vmul.f32 %v4893_v45, %v1620_v49 }
0x20a8   : > { %v1625_v46 = vpop.permute.xlu0 %1624 }
0x20a9   : > { %v1627_v48 = vmul.f32 %v4893_v45, %v1625_v46 }
0x20ab   : > { %1629 = vrot.lane.b32.xlu1 %v1627_v48, %s5068_s25 }
0x211d   : > { %v1630_v51 = vpop.permute.xlu1 %1629 }
0x211e   : > { %v1632_v52 = vadd.f32 %v1630_v51, %v1622_v50 }
0x2120   : > { %4894 = vtanh.f32 %v1632_v52  ;;  %v1724_v11 = vrot.slane %v1632_v52, 6 }
0x212a   : > { %v4895_v53 = vpop.eup %4894 }
0x212b   : > { %1635 = vrot.lane.b32.xlu0 %v4895_v53, %s5067_s21 }
0x219d   : > { %v1636_v54 = vpop.permute.xlu0 %1635 }
0x219e   : > { %v1638_v55 = vmul.f32 %v4893_v45, %v1636_v54 }
0x21a0   : > { %v1640_v56 = vrot.slane %v1638_v55, 6  ;;  %v5395_v57 = vsel %vm2067_vm4, %v2073_v35, %v1638_v55 }
0x21a2   : > { %1641 = vrot.lane.b32.xlu1 %v1640_v56, %s5068_s25 }
0x2214   : > { %v1642_v58 = vpop.permute.xlu1 %1641 }
0x2215   : > { %4331 = vmatmul.mubr.msk.f32.vlgmr.msra.gmra.mrb[12].mxu0 %vm372_vm1, %v1642_v58 }
0x2216   : > { %4660 = vmatpush3.bf16.msra.mxu0 %v5207_v17  ;;  %4352 = vmatprep.mubr.msk.f32.mxu0 %vm5065_vm0, %v5066_v20 }
0x2217   : > { %4661 = vmatprep.subr.bf16.mxu0 %v5064_v18 }
0x221a   : > { %4663 = vmatpush3.bf16.msra.mxu0 %v5214_v19 }
0x22e8   : > { %v1711_v59 = vpop.f32.mrb[12].mxu0 }
0x22e9   : > { %v1715_v60 = vadd.f32 %v1711_v59, %v5202_v16  ;;  %v4332_v61 = vpop.f32.mrb[13].mxu0 }
0x22eb   : > { %4896 = vtanh.f32 %v1715_v60  ;;  %v3942_v63 = vmul.f32 -1.442695, %v1715_v60 }
0x22ed   : > { %4898 = vpow2.f32 %v3942_v63 }
0x22f5   : > { %v4897_v62 = vpop.eup %4896 }
0x22f6   : > { %1728 = vrot.lane.b32.xlu0 %v4897_v62, %s5067_s21 }
0x22f7   : > { %v4899_v0 = vpop.eup %4898 }
0x22f8   : > { %v1719_v1 = vadd.f32 1.0, %v4899_v0 }
0x22fa   : > { %4900 = vrcp.f32 %v1719_v1 }
0x2304   : > { %v4901_v2 = vpop.eup %4900 }
0x2305   : > { %v1726_v12 = vmul.f32 %v4901_v2, %v1724_v11 }
0x2368   : > { %v1729_v9 = vpop.permute.xlu0 %1728 }
0x2369   : > { %v1731_v10 = vmul.f32 %v4901_v2, %v1729_v9 }
0x236b   : > { %1733 = vrot.lane.b32.xlu1 %v1731_v10, %s5068_s25 }
0x23dd   : > { %v1734_v13 = vpop.permute.xlu1 %1733 }
0x23de   : > { %v1736_v14 = vadd.f32 %v1734_v13, %v1726_v12 }
0x23e0   : > { %4902 = vtanh.f32 %v1736_v14 }
0x23ea   : > { %v4903_v21 = vpop.eup %4902 }
0x23eb   : > { %1739 = vrot.lane.b32.xlu0 %v4903_v21, %s5067_s21 }
0x245d   : > { %v1740_v22 = vpop.permute.xlu0 %1739 }
0x245e   : > { %v5408_v23 = vmul.f32 %v4901_v2, %v1740_v22 }
0x2460   : > { %1744 = vrot.lane.b32.xlu1 %v5408_v23, %s5068_s25 }
0x24d2   : > { %v1745_v24 = vpop.permute.xlu1 %1744 }
0x24d3   : > { %4342 = vmatmul.mubr.msk.f32.vlgmr.msra.gmra.mrb[12].mxu1 %vm372_vm1, %v1745_v24 }
0x24d4   : > { %4666 = vmatpush3.bf16.msra.mxu1 %v5207_v17  ;;  %4363 = vmatprep.mubr.msk.f32.mxu1 %vm5065_vm0, %v5066_v20 }
0x24d5   : > { %4667 = vmatprep.subr.bf16.mxu1 %v5064_v18  ;;  %v1830_v18 = vrot.slane %v1736_v14, 6 }
0x24d8   : > { %4669 = vmatpush3.bf16.msra.mxu1 %v5214_v19 }
0x25a6   : > { %v1814_v26 = vpop.f32.mrb[12].mxu1 }
0x25a7   : > { %v1819_v27 = vrot.slane %v1814_v26, 6  ;;  %v4343_v28 = vpop.f32.mrb[13].mxu1 }
0x25a9   : > { %v1821_v29 = vadd.f32 %v1819_v27, %v5202_v16 }
0x25ab   : > { %4904 = vtanh.f32 %v1821_v29  ;;  %v3944_v31 = vmul.f32 -1.442695, %v1821_v29 }
0x25ad   : > { %4906 = vpow2.f32 %v3944_v31 }
0x25b5   : > { %v4905_v30 = vpop.eup %4904 }
0x25b6   : > { %1834 = vrot.lane.b32.xlu0 %v4905_v30, %s5067_s21 }
0x25b7   : > { %v4907_v32 = vpop.eup %4906 }
0x25b8   : > { %v1825_v17 = vadd.f32 1.0, %v4907_v32 }
0x25ba   : > { %4908 = vrcp.f32 %v1825_v17 }
0x25c4   : > { %v4909_v33 = vpop.eup %4908 }
0x25c5   : > { %v1832_v19 = vmul.f32 %v4909_v33, %v1830_v18 }
0x2628   : > { %v1835_v20 = vpop.permute.xlu0 %1834 }
0x2629   : > { %v1837_v34 = vmul.f32 %v4909_v33, %v1835_v20 }
0x262b   : > { %1839 = vrot.lane.b32.xlu1 %v1837_v34, %s5068_s25 }
0x269d   : > { %v1840_v35 = vpop.permute.xlu1 %1839 }
0x269e   : > { %v1842_v36 = vadd.f32 %v1840_v35, %v1832_v19 }
0x26a0   : > { %4910 = vtanh.f32 %v1842_v36  ;;  %v1937_v54 = vrot.slane %v1842_v36, 6 }
0x26aa   : > { %v4911_v37 = vpop.eup %4910 }
0x26ab   : > { %1845 = vrot.lane.b32.xlu0 %v4911_v37, %s5067_s21 }
0x271d   : > { %v1846_v38 = vpop.permute.xlu0 %1845 }
0x271e   : > { %v1848_v39 = vmul.f32 %v4909_v33, %v1846_v38 }
0x2720   : > { %v1850_v40 = vrot.slane %v1848_v39, 2  ;;  %v2075_v62 = vsel %vm2063_vm2, %v5408_v23, %v1848_v39 }
0x2722   : > { %1851 = vrot.lane.b32.xlu1 %v1850_v40, %s5068_s25 }
0x2794   : > { %v1852_v41 = vpop.permute.xlu1 %1851 }
0x2795   : > { %4353 = vmatmul.mubr.msk.f32.vlgmr.msra.gmra.mrb[14].mxu0 %vm372_vm1, %v1852_v41 }
0x2868   : > { %v1921_v42 = vpop.f32.mrb[14].mxu0 }
0x2869   : > { %v1926_v43 = vrot.slane %v1921_v42, 4  ;;  %v4354_v44 = vpop.f32.mrb[15].mxu0 }
0x286b   : > { %v1928_v45 = vadd.f32 %v1926_v43, %v5202_v16 }
0x286d   : > { %4912 = vtanh.f32 %v1928_v45  ;;  %v3946_v48 = vmul.f32 -1.442695, %v1928_v45 }
0x286f   : > { %4914 = vpow2.f32 %v3946_v48 }
0x2877   : > { %v4913_v46 = vpop.eup %4912 }
0x2878   : > { %1941 = vrot.lane.b32.xlu0 %v4913_v46, %s5067_s21 }
0x2879   : > { %v4915_v49 = vpop.eup %4914 }
0x287a   : > { %v1932_v50 = vadd.f32 1.0, %v4915_v49 }
0x287c   : > { %4916 = vrcp.f32 %v1932_v50 }
0x2886   : > { %v4917_v51 = vpop.eup %4916 }
0x2887   : > { %v1939_v55 = vmul.f32 %v4917_v51, %v1937_v54 }
0x28ea   : > { %v1942_v52 = vpop.permute.xlu0 %1941 }
0x28eb   : > { %v1944_v53 = vmul.f32 %v4917_v51, %v1942_v52 }
0x28ed   : > { %1946 = vrot.lane.b32.xlu1 %v1944_v53, %s5068_s25 }
0x295f   : > { %v1947_v56 = vpop.permute.xlu1 %1946 }
0x2960   : > { %v1949_v58 = vadd.f32 %v1947_v56, %v1939_v55 }
0x2962   : > { %4918 = vtanh.f32 %v1949_v58  ;;  %v2044_v26 = vrot.slane %v1949_v58, 6 }
0x296c   : > { %v4919_v59 = vpop.eup %4918 }
0x296d   : > { %1952 = vrot.lane.b32.xlu0 %v4919_v59, %s5067_s21 }
0x29df   : > { %v1953_v60 = vpop.permute.xlu0 %1952 }
0x29e0   : > { %v1955_v61 = vmul.f32 %v4917_v51, %v1953_v60 }
0x29e2   : > { %v1957_v63 = vrot.slane %v1955_v61, 4  ;;  %v2076_v0 = vsel %vm2065_vm3, %v2075_v62, %v1955_v61 }
0x29e4   : > { %1958 = vrot.lane.b32.xlu1 %v1957_v63, %s5068_s25 }
0x2a56   : > { %v1959_v1 = vpop.permute.xlu1 %1958 }
0x2a57   : > { %4364 = vmatmul.mubr.msk.f32.vlgmr.msra.gmra.mrb[14].mxu1 %vm372_vm1, %v1959_v1 }
0x2b2a   : > { %v2028_v2 = vpop.f32.mrb[14].mxu1 }
0x2b2b   : > { %v2033_v9 = vrot.slane %v2028_v2, 2  ;;  %v4365_v10 = vpop.f32.mrb[15].mxu1 }
0x2b2d   : > { %v2035_v11 = vadd.f32 %v2033_v9, %v5202_v16 }
0x2b2f   : > { %4920 = vtanh.f32 %v2035_v11  ;;  %v3948_v13 = vmul.f32 -1.442695, %v2035_v11 }
0x2b31   : > { %4922 = vpow2.f32 %v3948_v13 }
0x2b39   : > { %v4921_v12 = vpop.eup %4920 }
0x2b3a   : > { %2048 = vrot.lane.b32.xlu0 %v4921_v12, %s5067_s21 }
0x2b3b   : > { %v4923_v14 = vpop.eup %4922 }
0x2b3c   : > { %v2039_v21 = vadd.f32 1.0, %v4923_v14 }
0x2b3e   : > { %4924 = vrcp.f32 %v2039_v21 }
0x2b48   : > { %v4925_v22 = vpop.eup %4924 }
0x2b49   : > { %v2046_v27 = vmul.f32 %v4925_v22, %v2044_v26 }
0x2bac   : > { %v2049_v23 = vpop.permute.xlu0 %2048 }
0x2bad   : > { %v2051_v24 = vmul.f32 %v4925_v22, %v2049_v23 }
0x2baf   : > { %2053 = vrot.lane.b32.xlu1 %v2051_v24, %s5068_s25 }
0x2bb3   : > { %2082 = vrot.lane.b32.xlu1 %v5281_v47, %s5068_s25 }
0x2bb7   : > { %2086 = vrot.lane.b32.xlu1 %v5395_v57, %s5068_s25 }
0x2c21   : > { %v2054_v28 = vpop.permute.xlu1 %2053 }
0x2c22   : > { %v2056_v29 = vadd.f32 %v2054_v28, %v2046_v27 }
0x2c24   : > { %4926 = vtanh.f32 %v2056_v29 }
0x2c25   : > { %v2083_v30 = vpop.permute.xlu1 %2082 }
0x2c26   : > { %2094 = vst.msk [vmem:[%s5132_s6] sm:$0xff] %vm372_vm1, %v2083_v30 }
0x2c29   : > { %v2087_v31 = vpop.permute.xlu1 %2086 }
0x2c2a   : > { %2096 = vst.msk [vmem:[%s5132_s6 + $0x10] sm:$0xff] %vm372_vm1, %v2087_v31 }
0x2c2e   : > { %v4927_v32 = vpop.eup %4926 }
0x2c2f   : > { %2059 = vrot.lane.b32.xlu0 %v4927_v32, %s5067_s21 }
0x2c33   : > { %2084 = vrot.lane.b32.xlu0 %v5338_v25, %s5068_s25 }
0x2ca1   : > { %v2060_v47 = vpop.permute.xlu0 %2059 }
0x2ca2   : > { %v2062_v57 = vmul.f32 %v4925_v22, %v2060_v47 }
0x2ca4   : > { %v2077_v17 = vsel %vm2067_vm4, %v2076_v0, %v2062_v57 }
0x2ca5   : > { %2088 = vrot.lane.b32.xlu0 %v2077_v17, %s5068_s25  ;;  %v2085_v33 = vpop.permute.xlu0 %2084 }
0x2ca6   : > { %2095 = vst.msk [vmem:[%s5132_s6 + $0x8] sm:$0xff] %vm372_vm1, %v2085_v33 }
0x2d17   : > { %v2089_v20 = vpop.permute.xlu0 %2088 }
0x2d18   : > { %2097 = vst.msk [vmem:[%s5132_s6 + $0x18] sm:$0xff] %vm372_vm1, %v2089_v20 }
0x2d19 PF: > { %p3949_p5 = scmp.ne.s32.totalorder %s5105_s16, 1 }
0x2d1a   : > { %v5456_v34 = vpack.c.bf16 (!%p3949_p5), %v5138_v6, %v5136_v4  ;;  %v5069_v25 = vmov (!%p3949_p5), 0.0|0.0   ;;  %v5463_v18 = vpack.c.bf16 (!%p3949_p5), %v5142_v8, %v5140_v7  ;;  %vm5070_vm5 = vmmov (!%p3949_p5), 0   ;;  %s5072_s16 = smov (!%p3949_p5), 64   ;;  %s5073_s26 = smov (!%p3949_p5), 32  }
0x2d1b   : > { %2101 = sbr.rel (%p3949_p5) target bundleno = 22843 (0x593b), region = 44  ;;  %4670 = vmatprep.subr.bf16.mxu0 (!%p3949_p5), %v5069_v25  ;;  %4676 = vmatprep.subr.bf16.mxu1 (!%p3949_p5), %v5069_v25  ;;  %v5071_v19 = vmov (!%p3949_p5), 0.0   ;;  %vm2102_vm6 = vcmask (!%p3949_p5), 261120   ;;  %vm3794_vm7 = vcmask (!%p3949_p5), 1041408   ;;  %vm3796_vm8 = vcmask (!%p3949_p5), 1043456  }
0x2d1c   : > { %4672 = vmatpush3.bf16.msra.mxu0 (!%p3949_p5), %v5456_v34  ;;  %4374 = vmatprep.mubr.msk.f32.mxu0 (!%p3949_p5), %vm5070_vm5, %v5071_v19  ;;  %vm3798_vm9 = vcmask (!%p3949_p5), 1045504  }
0x2d1d   : > { %4673 = vmatprep.subr.bf16.mxu0 (!%p3949_p5), %v5069_v25  ;;  %4678 = vmatpush3.bf16.msra.mxu1 (!%p3949_p5), %v5456_v34 }
0x2d1e   : > { %4679 = vmatprep.subr.bf16.mxu1 (!%p3949_p5), %v5069_v25  ;;  %4385 = vmatprep.mubr.msk.f32.mxu1 (!%p3949_p5), %vm5070_vm5, %v5071_v19 }
0x2d20   : > { %4675 = vmatpush3.bf16.msra.mxu0 (!%p3949_p5), %v5463_v18 }
0x2d21   : > { %4681 = vmatpush3.bf16.msra.mxu1 (!%p3949_p5), %v5463_v18  ;;  %4682 = vmatprep.subr.bf16.mxu0 (!%p3949_p5), %v5069_v25 }
0x2d22   : > { %4688 = vmatprep.subr.bf16.mxu1 %v5069_v25 }
0x2d23   : > { %4375 = vmatmul.mubr.f32.vlgmr.msra.gmra.mrb[0].mxu0 %v5071_v19 }
0x2d24   : > { %4684 = vmatpush3.bf16.msra.mxu0 %v5456_v34  ;;  %4396 = vmatprep.mubr.msk.f32.mxu0 %vm5070_vm5, %v5071_v19 }
0x2d25   : > { %4685 = vmatprep.subr.bf16.mxu0 %v5069_v25 }
0x2d28   : > { %4687 = vmatpush3.bf16.msra.mxu0 %v5463_v18 }
0x2d29   : > { %4694 = vmatprep.subr.bf16.mxu0 %v5069_v25 }
0x2df6   : > { %v2172_v4 = vpop.f32.mrb[0].mxu0 }
0x2df7   : > { %v2177_v6 = vrot.slane %v2172_v4, 2  ;;  %v4376_v7 = vpop.f32.mrb[1].mxu0 }
0x2df9   : > { %v2179_v8 = vadd.f32 %v2177_v6, %v5202_v16 }
0x2dfb   : > { %4928 = vtanh.f32 %v2179_v8  ;;  %v3950_v36 = vmul.f32 -1.442695, %v2179_v8 }
0x2dfd   : > { %4930 = vpow2.f32 %v3950_v36 }
0x2e05   : > { %v4929_v35 = vpop.eup %4928 }
0x2e06   : > { %2189 = vrot.lane.b32.xlu0 %v4929_v35, %s5072_s16 }
0x2e07   : > { %v4931_v37 = vpop.eup %4930 }
0x2e08   : > { %v2183_v38 = vadd.f32 1.0, %v4931_v37 }
0x2e0a   : > { %4932 = vrcp.f32 %v2183_v38 }
0x2e14   : > { %v4933_v39 = vpop.eup %4932 }
0x2e15   : > { %v2187_v42 = vmul.f32 0.0, %v4933_v39 }
0x2e78   : > { %v2190_v40 = vpop.permute.xlu0 %2189 }
0x2e79   : > { %v2192_v41 = vmul.f32 %v4933_v39, %v2190_v40 }
0x2e7b   : > { %2194 = vrot.lane.b32.xlu0 %v2192_v41, %s5073_s26 }
0x2eed   : > { %v2195_v43 = vpop.permute.xlu0 %2194 }
0x2eee   : > { %v2197_v44 = vadd.f32 %v2195_v43, %v2187_v42 }
0x2ef0   : > { %4934 = vtanh.f32 %v2197_v44  ;;  %v2292_v63 = vrot.slane %v2197_v44, 2 }
0x2efa   : > { %v4935_v45 = vpop.eup %4934 }
0x2efb   : > { %2200 = vrot.lane.b32.xlu1 %v4935_v45, %s5072_s16 }
0x2f6d   : > { %v2201_v46 = vpop.permute.xlu1 %2200 }
0x2f6e   : > { %v5487_v48 = vmul.f32 %v4933_v39, %v2201_v46 }
0x2f70   : > { %v2205_v49 = vrot.slane %v5487_v48, 6 }
0x2f72   : > { %2206 = vrot.lane.b32.xlu1 %v2205_v49, %s5073_s26 }
0x2fe4   : > { %v2207_v50 = vpop.permute.xlu1 %2206 }
0x2fe5   : > { %4386 = vmatmul.mubr.msk.f32.vlgmr.msra.gmra.mrb[0].mxu1 %vm2102_vm6, %v2207_v50 }
0x2fe6   : > { %4690 = vmatpush3.bf16.msra.mxu1 %v5456_v34  ;;  %4407 = vmatprep.mubr.msk.f32.mxu1 %vm5070_vm5, %v5071_v19 }
0x2fe7   : > { %4691 = vmatprep.subr.bf16.mxu1 %v5069_v25 }
0x2fea   : > { %4693 = vmatpush3.bf16.msra.mxu1 %v5463_v18 }
0x2feb   : > { %4700 = vmatprep.subr.bf16.mxu1 %v5069_v25 }
0x30b8   : > { %v2276_v51 = vpop.f32.mrb[0].mxu1 }
0x30b9   : > { %v2281_v52 = vrot.slane %v2276_v51, 4  ;;  %v4387_v53 = vpop.f32.mrb[1].mxu1 }
0x30bb   : > { %v2283_v54 = vadd.f32 %v2281_v52, %v5202_v16 }
0x30bd   : > { %4936 = vtanh.f32 %v2283_v54  ;;  %v3952_v56 = vmul.f32 -1.442695, %v2283_v54 }
0x30bf   : > { %4938 = vpow2.f32 %v3952_v56 }
0x30c7   : > { %v4937_v55 = vpop.eup %4936 }
0x30c8   : > { %2296 = vrot.lane.b32.xlu0 %v4937_v55, %s5072_s16 }
0x30c9   : > { %v4939_v58 = vpop.eup %4938 }
0x30ca   : > { %v2287_v59 = vadd.f32 1.0, %v4939_v58 }
0x30cc   : > { %4940 = vrcp.f32 %v2287_v59 }
0x30d6   : > { %v4941_v60 = vpop.eup %4940 }
0x30d7   : > { %v2294_v0 = vmul.f32 %v4941_v60, %v2292_v63 }
0x313a   : > { %v2297_v61 = vpop.permute.xlu0 %2296 }
0x313b   : > { %v2299_v62 = vmul.f32 %v4941_v60, %v2297_v61 }
0x313d   : > { %2301 = vrot.lane.b32.xlu1 %v2299_v62, %s5073_s26 }
0x31af   : > { %v2302_v1 = vpop.permute.xlu1 %2301 }
0x31b0   : > { %v2304_v2 = vadd.f32 %v2302_v1, %v2294_v0 }
0x31b2   : > { %4942 = vtanh.f32 %v2304_v2  ;;  %v2399_v32 = vrot.slane %v2304_v2, 2 }
0x31bc   : > { %v4943_v9 = vpop.eup %4942 }
0x31bd   : > { %2307 = vrot.lane.b32.xlu0 %v4943_v9, %s5072_s16 }
0x322f   : > { %v2308_v10 = vpop.permute.xlu0 %2307 }
0x3230   : > { %v5502_v11 = vmul.f32 %v4941_v60, %v2308_v10 }
0x3232   : > { %v2312_v12 = vrot.slane %v5502_v11, 4 }
0x3234   : > { %2313 = vrot.lane.b32.xlu1 %v2312_v12, %s5073_s26 }
0x32a6   : > { %v2314_v13 = vpop.permute.xlu1 %2313 }
0x32a7   : > { %4397 = vmatmul.mubr.msk.f32.vlgmr.msra.gmra.mrb[2].mxu0 %vm2102_vm6, %v2314_v13 }
0x32a8   : > { %4696 = vmatpush3.bf16.msra.mxu0 %v5456_v34  ;;  %4418 = vmatprep.mubr.msk.f32.mxu0 %vm5070_vm5, %v5071_v19 }
0x32a9   : > { %4697 = vmatprep.subr.bf16.mxu0 %v5069_v25 }
0x32ac   : > { %4699 = vmatpush3.bf16.msra.mxu0 %v5463_v18 }
0x32ad   : > { %4706 = vmatprep.subr.bf16.mxu0 %v5069_v25 }
0x337a   : > { %v2383_v14 = vpop.f32.mrb[2].mxu0 }
0x337b   : > { %v2388_v21 = vrot.slane %v2383_v14, 6  ;;  %v4398_v22 = vpop.f32.mrb[3].mxu0 }
0x337d   : > { %v2390_v23 = vadd.f32 %v2388_v21, %v5202_v16 }
0x337f   : > { %4944 = vtanh.f32 %v2390_v23  ;;  %v3954_v26 = vmul.f32 -1.442695, %v2390_v23 }
0x3381   : > { %4946 = vpow2.f32 %v3954_v26 }
0x3389   : > { %v4945_v24 = vpop.eup %4944 }
0x338a   : > { %2403 = vrot.lane.b32.xlu0 %v4945_v24, %s5072_s16 }
0x338b   : > { %v4947_v27 = vpop.eup %4946 }
0x338c   : > { %v2394_v28 = vadd.f32 1.0, %v4947_v27 }
0x338e   : > { %4948 = vrcp.f32 %v2394_v28 }
0x3398   : > { %v4949_v29 = vpop.eup %4948 }
0x3399   : > { %v2401_v47 = vmul.f32 %v4949_v29, %v2399_v32 }
0x33fc   : > { %v2404_v30 = vpop.permute.xlu0 %2403 }
0x33fd   : > { %v2406_v31 = vmul.f32 %v4949_v29, %v2404_v30 }
0x33ff   : > { %2408 = vrot.lane.b32.xlu1 %v2406_v31, %s5073_s26 }
0x3471   : > { %v2409_v57 = vpop.permute.xlu1 %2408 }
0x3472   : > { %v2411_v17 = vadd.f32 %v2409_v57, %v2401_v47 }
0x3474   : > { %4950 = vtanh.f32 %v2411_v17  ;;  %v2503_v44 = vrot.slane %v2411_v17, 2 }
0x347e   : > { %v4951_v33 = vpop.eup %4950 }
0x347f   : > { %2414 = vrot.lane.b32.xlu0 %v4951_v33, %s5072_s16 }
0x34f1   : > { %v2415_v20 = vpop.permute.xlu0 %2414 }
0x34f2   : > { %v5517_v4 = vmul.f32 %v4949_v29, %v2415_v20 }
0x34f4   : > { %v2419_v6 = vrot.slane %v5517_v4, 2 }
0x34f6   : > { %2420 = vrot.lane.b32.xlu1 %v2419_v6, %s5073_s26 }
0x3568   : > { %v2421_v7 = vpop.permute.xlu1 %2420 }
0x3569   : > { %4408 = vmatmul.mubr.msk.f32.vlgmr.msra.gmra.mrb[2].mxu1 %vm2102_vm6, %v2421_v7 }
0x356a   : > { %4702 = vmatpush3.bf16.msra.mxu1 %v5456_v34  ;;  %4429 = vmatprep.mubr.msk.f32.mxu1 %vm5070_vm5, %v5071_v19 }
0x356b   : > { %4703 = vmatprep.subr.bf16.mxu1 %v5069_v25 }
0x356e   : > { %4705 = vmatpush3.bf16.msra.mxu1 %v5463_v18 }
0x356f   : > { %4712 = vmatprep.subr.bf16.mxu1 %v5069_v25 }
0x363c   : > { %v2490_v8 = vpop.f32.mrb[2].mxu1 }
0x363d   : > { %v2494_v35 = vadd.f32 %v2490_v8, %v5202_v16  ;;  %v4409_v36 = vpop.f32.mrb[3].mxu1 }
0x363f   : > { %4952 = vtanh.f32 %v2494_v35  ;;  %v3956_v38 = vmul.f32 -1.442695, %v2494_v35 }
0x3641   : > { %4954 = vpow2.f32 %v3956_v38 }
0x3649   : > { %v4953_v37 = vpop.eup %4952 }
0x364a   : > { %2507 = vrot.lane.b32.xlu0 %v4953_v37, %s5072_s16 }
0x364b   : > { %v4955_v39 = vpop.eup %4954 }
0x364c   : > { %v2498_v40 = vadd.f32 1.0, %v4955_v39 }
0x364e   : > { %4956 = vrcp.f32 %v2498_v40 }
0x3658   : > { %v4957_v41 = vpop.eup %4956 }
0x3659   : > { %v2505_v45 = vmul.f32 %v4957_v41, %v2503_v44 }
0x36bc   : > { %v2508_v42 = vpop.permute.xlu0 %2507 }
0x36bd   : > { %v2510_v43 = vmul.f32 %v4957_v41, %v2508_v42 }
0x36bf   : > { %2512 = vrot.lane.b32.xlu1 %v2510_v43, %s5073_s26 }
0x3731   : > { %v2513_v46 = vpop.permute.xlu1 %2512 }
0x3732   : > { %v2515_v49 = vadd.f32 %v2513_v46, %v2505_v45 }
0x3734   : > { %4958 = vtanh.f32 %v2515_v49  ;;  %v2609_v1 = vrot.slane %v2515_v49, 2 }
0x373e   : > { %v4959_v16 = vpop.eup %4958 }
0x373f   : > { %2518 = vrot.lane.b32.xlu0 %v4959_v16, %s5072_s16 }
0x37b1   : > { %v2519_v50 = vpop.permute.xlu0 %2518 }
0x37b2   : > { %v5532_v51 = vmul.f32 %v4957_v41, %v2519_v50 }
0x37b4   : > { %2523 = vrot.lane.b32.xlu1 %v5532_v51, %s5073_s26 }
0x3826   : > { %v2524_v52 = vpop.permute.xlu1 %2523 }
0x3827   : > { %4419 = vmatmul.mubr.msk.f32.vlgmr.msra.gmra.mrb[4].mxu0 %vm2102_vm6, %v2524_v52 }
0x3828   : > { %4708 = vmatpush3.bf16.msra.mxu0 %v5456_v34  ;;  %4440 = vmatprep.mubr.msk.f32.mxu0 %vm5070_vm5, %v5071_v19 }
0x3829   : > { %4709 = vmatprep.subr.bf16.mxu0 %v5069_v25 }
0x382c   : > { %4711 = vmatpush3.bf16.msra.mxu0 %v5463_v18 }
0x382d   : > { %4718 = vmatprep.subr.bf16.mxu0 %v5069_v25 }
0x38fa   : > { %v2593_v53 = vpop.f32.mrb[4].mxu0 }
0x38fb   : > { %v2598_v54 = vrot.slane %v2593_v53, 2  ;;  %v4420_v55 = vpop.f32.mrb[5].mxu0 }
0x38fd   : > { %v2600_v56 = vadd.f32 %v2598_v54, %v5198_v5 }
0x38ff   : > { %4960 = vtanh.f32 %v2600_v56  ;;  %v3958_v59 = vmul.f32 -1.442695, %v2600_v56 }
0x3901   : > { %4962 = vpow2.f32 %v3958_v59 }
0x3909   : > { %v4961_v58 = vpop.eup %4960 }
0x390a   : > { %2613 = vrot.lane.b32.xlu0 %v4961_v58, %s5072_s16 }
0x390b   : > { %v4963_v60 = vpop.eup %4962 }
0x390c   : > { %v2604_v61 = vadd.f32 1.0, %v4963_v60 }
0x390e   : > { %4964 = vrcp.f32 %v2604_v61 }
0x3918   : > { %v4965_v62 = vpop.eup %4964 }
0x3919   : > { %v2611_v2 = vmul.f32 %v4965_v62, %v2609_v1 }
0x397c   : > { %v2614_v63 = vpop.permute.xlu0 %2613 }
0x397d   : > { %v2616_v0 = vmul.f32 %v4965_v62, %v2614_v63 }
0x397f   : > { %2618 = vrot.lane.b32.xlu1 %v2616_v0, %s5073_s26 }
0x39f1   : > { %v2619_v9 = vpop.permute.xlu1 %2618 }
0x39f2   : > { %v2621_v10 = vadd.f32 %v2619_v9, %v2611_v2 }
0x39f4   : > { %4966 = vtanh.f32 %v2621_v10  ;;  %v2716_v17 = vrot.slane %v2621_v10, 2 }
0x39fe   : > { %v4967_v12 = vpop.eup %4966 }
0x39ff   : > { %2624 = vrot.lane.b32.xlu0 %v4967_v12, %s5072_s16 }
0x3a71   : > { %v2625_v13 = vpop.permute.xlu0 %2624 }
0x3a72   : > { %v5547_v14 = vmul.f32 %v4965_v62, %v2625_v13 }
0x3a74   : > { %v2629_v21 = vrot.slane %v5547_v14, 6 }
0x3a76   : > { %2630 = vrot.lane.b32.xlu1 %v2629_v21, %s5073_s26 }
0x3ae8   : > { %v2631_v22 = vpop.permute.xlu1 %2630 }
0x3ae9   : > { %4430 = vmatmul.mubr.msk.f32.vlgmr.msra.gmra.mrb[4].mxu1 %vm2102_vm6, %v2631_v22 }
0x3aea   : > { %4714 = vmatpush3.bf16.msra.mxu1 %v5456_v34  ;;  %4451 = vmatprep.mubr.msk.f32.mxu1 %vm5070_vm5, %v5071_v19 }
0x3aeb   : > { %4715 = vmatprep.subr.bf16.mxu1 %v5069_v25 }
0x3aee   : > { %4717 = vmatpush3.bf16.msra.mxu1 %v5463_v18 }
0x3aef   : > { %4724 = vmatprep.subr.bf16.mxu1 %v5069_v25 }
0x3bbc   : > { %v2700_v23 = vpop.f32.mrb[4].mxu1 }
0x3bbd   : > { %v2705_v24 = vrot.slane %v2700_v23, 4  ;;  %v4431_v26 = vpop.f32.mrb[5].mxu1 }
0x3bbf   : > { %v2707_v27 = vadd.f32 %v2705_v24, %v5198_v5 }
0x3bc1   : > { %4968 = vtanh.f32 %v2707_v27  ;;  %v3960_v29 = vmul.f32 -1.442695, %v2707_v27 }
0x3bc3   : > { %4970 = vpow2.f32 %v3960_v29 }
0x3bcb   : > { %v4969_v28 = vpop.eup %4968 }
0x3bcc   : > { %2720 = vrot.lane.b32.xlu0 %v4969_v28, %s5072_s16 }
0x3bcd   : > { %v4971_v30 = vpop.eup %4970 }
0x3bce   : > { %v2711_v31 = vadd.f32 1.0, %v4971_v30 }
0x3bd0   : > { %4972 = vrcp.f32 %v2711_v31 }
0x3bda   : > { %v4973_v32 = vpop.eup %4972 }
0x3bdb   : > { %v2718_v33 = vmul.f32 %v4973_v32, %v2716_v17 }
0x3c3e   : > { %v2721_v47 = vpop.permute.xlu0 %2720 }
0x3c3f   : > { %v2723_v57 = vmul.f32 %v4973_v32, %v2721_v47 }
0x3c41   : > { %2725 = vrot.lane.b32.xlu1 %v2723_v57, %s5073_s26 }
0x3cb3   : > { %v2726_v20 = vpop.permute.xlu1 %2725 }
0x3cb4   : > { %v2728_v6 = vadd.f32 %v2726_v20, %v2718_v33 }
0x3cb6   : > { %4974 = vtanh.f32 %v2728_v6  ;;  %v2823_v50 = vrot.slane %v2728_v6, 2 }
0x3cc0   : > { %v4975_v7 = vpop.eup %4974 }
0x3cc1   : > { %2731 = vrot.lane.b32.xlu0 %v4975_v7, %s5072_s16 }
0x3d33   : > { %v2732_v8 = vpop.permute.xlu0 %2731 }
0x3d34   : > { %v5562_v35 = vmul.f32 %v4973_v32, %v2732_v8 }
0x3d36   : > { %v2736_v36 = vrot.slane %v5562_v35, 4 }
0x3d38   : > { %2737 = vrot.lane.b32.xlu1 %v2736_v36, %s5073_s26 }
0x3daa   : > { %v2738_v37 = vpop.permute.xlu1 %2737 }
0x3dab   : > { %4441 = vmatmul.mubr.msk.f32.vlgmr.msra.gmra.mrb[6].mxu0 %vm2102_vm6, %v2738_v37 }
0x3dac   : > { %4720 = vmatpush3.bf16.msra.mxu0 %v5456_v34  ;;  %4462 = vmatprep.mubr.msk.f32.mxu0 %vm5070_vm5, %v5071_v19 }
0x3dad   : > { %4721 = vmatprep.subr.bf16.mxu0 %v5069_v25 }
0x3db0   : > { %4723 = vmatpush3.bf16.msra.mxu0 %v5463_v18 }
0x3db1   : > { %4730 = vmatprep.subr.bf16.mxu0 %v5069_v25 }
0x3e7e   : > { %v2807_v38 = vpop.f32.mrb[6].mxu0 }
0x3e7f   : > { %v2812_v39 = vrot.slane %v2807_v38, 6  ;;  %v4442_v40 = vpop.f32.mrb[7].mxu0 }
0x3e81   : > { %v2814_v41 = vadd.f32 %v2812_v39, %v5198_v5 }
0x3e83   : > { %4976 = vtanh.f32 %v2814_v41  ;;  %v3962_v43 = vmul.f32 -1.442695, %v2814_v41 }
0x3e85   : > { %4978 = vpow2.f32 %v3962_v43 }
0x3e8d   : > { %v4977_v42 = vpop.eup %4976 }
0x3e8e   : > { %2827 = vrot.lane.b32.xlu0 %v4977_v42, %s5072_s16 }
0x3e8f   : > { %v4979_v44 = vpop.eup %4978 }
0x3e90   : > { %v2818_v45 = vadd.f32 1.0, %v4979_v44 }
0x3e92   : > { %4980 = vrcp.f32 %v2818_v45 }
0x3e9c   : > { %v4981_v46 = vpop.eup %4980 }
0x3e9d   : > { %v2825_v52 = vmul.f32 %v4981_v46, %v2823_v50 }
0x3f00   : > { %v2828_v49 = vpop.permute.xlu0 %2827 }
0x3f01   : > { %v2830_v16 = vmul.f32 %v4981_v46, %v2828_v49 }
0x3f03   : > { %2832 = vrot.lane.b32.xlu1 %v2830_v16, %s5073_s26 }
0x3f75   : > { %v2833_v53 = vpop.permute.xlu1 %2832 }
0x3f76   : > { %v2835_v54 = vadd.f32 %v2833_v53, %v2825_v52 }
0x3f78   : > { %4982 = vtanh.f32 %v2835_v54  ;;  %v2927_v21 = vrot.slane %v2835_v54, 2 }
0x3f82   : > { %v4983_v55 = vpop.eup %4982 }
0x3f83   : > { %2838 = vrot.lane.b32.xlu0 %v4983_v55, %s5072_s16 }
0x3ff5   : > { %v2839_v56 = vpop.permute.xlu0 %2838 }
0x3ff6   : > { %v5577_v58 = vmul.f32 %v4981_v46, %v2839_v56 }
0x3ff8   : > { %v2843_v59 = vrot.slane %v5577_v58, 2 }
0x3ffa   : > { %2844 = vrot.lane.b32.xlu1 %v2843_v59, %s5073_s26 }
0x406c   : > { %v2845_v60 = vpop.permute.xlu1 %2844 }
0x406d   : > { %4452 = vmatmul.mubr.msk.f32.vlgmr.msra.gmra.mrb[6].mxu1 %vm2102_vm6, %v2845_v60 }
0x406e   : > { %4726 = vmatpush3.bf16.msra.mxu1 %v5456_v34  ;;  %4473 = vmatprep.mubr.msk.f32.mxu1 %vm5070_vm5, %v5071_v19 }
0x406f   : > { %4727 = vmatprep.subr.bf16.mxu1 %v5069_v25 }
0x4072   : > { %4729 = vmatpush3.bf16.msra.mxu1 %v5463_v18 }
0x4073   : > { %4736 = vmatprep.subr.bf16.mxu1 %v5069_v25 }
0x4140   : > { %v2914_v61 = vpop.f32.mrb[6].mxu1 }
0x4141   : > { %v2918_v62 = vadd.f32 %v2914_v61, %v5198_v5  ;;  %v4453_v63 = vpop.f32.mrb[7].mxu1 }
0x4143   : > { %4984 = vtanh.f32 %v2918_v62  ;;  %v3964_v1 = vmul.f32 -1.442695, %v2918_v62 }
0x4145   : > { %4986 = vpow2.f32 %v3964_v1 }
0x414d   : > { %v4985_v0 = vpop.eup %4984 }
0x414e   : > { %2931 = vrot.lane.b32.xlu0 %v4985_v0, %s5072_s16 }
0x414f   : > { %v4987_v2 = vpop.eup %4986 }
0x4150   : > { %v2922_v9 = vadd.f32 1.0, %v4987_v2 }
0x4152   : > { %4988 = vrcp.f32 %v2922_v9 }
0x415c   : > { %v4989_v10 = vpop.eup %4988 }
0x415d   : > { %v2929_v22 = vmul.f32 %v4989_v10, %v2927_v21 }
0x41c0   : > { %v2932_v12 = vpop.permute.xlu0 %2931 }
0x41c1   : > { %v2934_v13 = vmul.f32 %v4989_v10, %v2932_v12 }
0x41c3   : > { %2936 = vrot.lane.b32.xlu1 %v2934_v13, %s5073_s26 }
0x4235   : > { %v2937_v23 = vpop.permute.xlu1 %2936 }
0x4236   : > { %v2939_v24 = vadd.f32 %v2937_v23, %v2929_v22 }
0x4238   : > { %4990 = vtanh.f32 %v2939_v24  ;;  %v3033_v8 = vrot.slane %v2939_v24, 2 }
0x4242   : > { %v4991_v5 = vpop.eup %4990 }
0x4243   : > { %2942 = vrot.lane.b32.xlu0 %v4991_v5, %s5072_s16 }
0x42b5   : > { %v2943_v26 = vpop.permute.xlu0 %2942 }
0x42b6   : > { %v5592_v27 = vmul.f32 %v4989_v10, %v2943_v26 }
0x42b8   : > { %2947 = vrot.lane.b32.xlu1 %v5592_v27, %s5073_s26 }
0x432a   : > { %v2948_v28 = vpop.permute.xlu1 %2947 }
0x432b   : > { %4463 = vmatmul.mubr.msk.f32.vlgmr.msra.gmra.mrb[8].mxu0 %vm2102_vm6, %v2948_v28 }
0x432c   : > { %4732 = vmatpush3.bf16.msra.mxu0 %v5456_v34  ;;  %4484 = vmatprep.mubr.msk.f32.mxu0 %vm5070_vm5, %v5071_v19 }
0x432d   : > { %4733 = vmatprep.subr.bf16.mxu0 %v5069_v25 }
0x4330   : > { %4735 = vmatpush3.bf16.msra.mxu0 %v5463_v18 }
0x4331   : > { %4742 = vmatprep.subr.bf16.mxu0 %v5069_v25 }
0x43fe   : > { %v3017_v29 = vpop.f32.mrb[8].mxu0 }
0x43ff   : > { %v3022_v30 = vrot.slane %v3017_v29, 2  ;;  %v4464_v31 = vpop.f32.mrb[9].mxu0 }
0x4401   : > { %v3024_v32 = vadd.f32 %v3022_v30, %v5200_v15 }
0x4403   : > { %4992 = vtanh.f32 %v3024_v32  ;;  %v3966_v57 = vmul.f32 -1.442695, %v3024_v32 }
0x4405   : > { %4994 = vpow2.f32 %v3966_v57 }
0x440d   : > { %v4993_v47 = vpop.eup %4992 }
0x440e   : > { %3037 = vrot.lane.b32.xlu0 %v4993_v47, %s5072_s16 }
0x440f   : > { %v4995_v17 = vpop.eup %4994 }
0x4410   : > { %v3028_v33 = vadd.f32 1.0, %v4995_v17 }
0x4412   : > { %4996 = vrcp.f32 %v3028_v33 }
0x441c   : > { %v4997_v20 = vpop.eup %4996 }
0x441d   : > { %v3035_v36 = vmul.f32 %v4997_v20, %v3033_v8 }
0x4480   : > { %v3038_v6 = vpop.permute.xlu0 %3037 }
0x4481   : > { %v3040_v7 = vmul.f32 %v4997_v20, %v3038_v6 }
0x4483   : > { %3042 = vrot.lane.b32.xlu1 %v3040_v7, %s5073_s26 }
0x44f5   : > { %v3043_v37 = vpop.permute.xlu1 %3042 }
0x44f6   : > { %v3045_v38 = vadd.f32 %v3043_v37, %v3035_v36 }
0x44f8   : > { %4998 = vtanh.f32 %v3045_v38  ;;  %v3140_v59 = vrot.slane %v3045_v38, 2 }
0x4502   : > { %v4999_v39 = vpop.eup %4998 }
0x4503   : > { %3048 = vrot.lane.b32.xlu0 %v4999_v39, %s5072_s16 }
0x4575   : > { %v3049_v40 = vpop.permute.xlu0 %3048 }
0x4576   : > { %v5607_v41 = vmul.f32 %v4997_v20, %v3049_v40 }
0x4578   : > { %v3053_v42 = vrot.slane %v5607_v41, 6 }
0x457a   : > { %3054 = vrot.lane.b32.xlu1 %v3053_v42, %s5073_s26 }
0x45ec   : > { %v3055_v43 = vpop.permute.xlu1 %3054 }
0x45ed   : > { %4474 = vmatmul.mubr.msk.f32.vlgmr.msra.gmra.mrb[8].mxu1 %vm2102_vm6, %v3055_v43 }
0x45ee   : > { %4738 = vmatpush3.bf16.msra.mxu1 %v5456_v34  ;;  %4495 = vmatprep.mubr.msk.f32.mxu1 %vm5070_vm5, %v5071_v19 }
0x45ef   : > { %4739 = vmatprep.subr.bf16.mxu1 %v5069_v25 }
0x45f2   : > { %4741 = vmatpush3.bf16.msra.mxu1 %v5463_v18 }
0x45f3   : > { %4748 = vmatprep.subr.bf16.mxu1 %v5069_v25 }
0x46c0   : > { %v3124_v44 = vpop.f32.mrb[8].mxu1 }
0x46c1   : > { %v3129_v45 = vrot.slane %v3124_v44, 4  ;;  %v4475_v46 = vpop.f32.mrb[9].mxu1 }
0x46c3   : > { %v3131_v49 = vadd.f32 %v3129_v45, %v5200_v15 }
0x46c5   : > { %5000 = vtanh.f32 %v3131_v49  ;;  %v3968_v50 = vmul.f32 -1.442695, %v3131_v49 }
0x46c7   : > { %5002 = vpow2.f32 %v3968_v50 }
0x46cf   : > { %v5001_v16 = vpop.eup %5000 }
0x46d0   : > { %3144 = vrot.lane.b32.xlu0 %v5001_v16, %s5072_s16 }
0x46d1   : > { %v5003_v52 = vpop.eup %5002 }
0x46d2   : > { %v3135_v53 = vadd.f32 1.0, %v5003_v52 }
0x46d4   : > { %5004 = vrcp.f32 %v3135_v53 }
0x46de   : > { %v5005_v54 = vpop.eup %5004 }
0x46df   : > { %v3142_v60 = vmul.f32 %v5005_v54, %v3140_v59 }
0x4742   : > { %v3145_v55 = vpop.permute.xlu0 %3144 }
0x4743   : > { %v3147_v56 = vmul.f32 %v5005_v54, %v3145_v55 }
0x4745   : > { %3149 = vrot.lane.b32.xlu1 %v3147_v56, %s5073_s26 }
0x47b7   : > { %v3150_v61 = vpop.permute.xlu1 %3149 }
0x47b8   : > { %v3152_v62 = vadd.f32 %v3150_v61, %v3142_v60 }
0x47ba   : > { %5006 = vtanh.f32 %v3152_v62  ;;  %v3247_v30 = vrot.slane %v3152_v62, 2 }
0x47c4   : > { %v5007_v63 = vpop.eup %5006 }
0x47c5   : > { %3155 = vrot.lane.b32.xlu0 %v5007_v63, %s5072_s16 }
0x4837   : > { %v3156_v0 = vpop.permute.xlu0 %3155 }
0x4838   : > { %v5622_v1 = vmul.f32 %v5005_v54, %v3156_v0 }
0x483a   : > { %v3160_v2 = vrot.slane %v5622_v1, 4 }
0x483c   : > { %3161 = vrot.lane.b32.xlu1 %v3160_v2, %s5073_s26 }
0x48ae   : > { %v3162_v9 = vpop.permute.xlu1 %3161 }
0x48af   : > { %4485 = vmatmul.mubr.msk.f32.vlgmr.msra.gmra.mrb[10].mxu0 %vm2102_vm6, %v3162_v9 }
0x48b0   : > { %4744 = vmatpush3.bf16.msra.mxu0 %v5456_v34  ;;  %4506 = vmatprep.mubr.msk.f32.mxu0 %vm5070_vm5, %v5071_v19 }
0x48b1   : > { %4745 = vmatprep.subr.bf16.mxu0 %v5069_v25 }
0x48b4   : > { %4747 = vmatpush3.bf16.msra.mxu0 %v5463_v18 }
0x48b5   : > { %4754 = vmatprep.subr.bf16.mxu0 %v5069_v25 }
0x4982   : > { %v3231_v10 = vpop.f32.mrb[10].mxu0 }
0x4983   : > { %v3236_v12 = vrot.slane %v3231_v10, 6  ;;  %v4486_v13 = vpop.f32.mrb[11].mxu0 }
0x4985   : > { %v3238_v21 = vadd.f32 %v3236_v12, %v5200_v15 }
0x4987   : > { %5008 = vtanh.f32 %v3238_v21  ;;  %v3970_v23 = vmul.f32 -1.442695, %v3238_v21 }
0x4989   : > { %5010 = vpow2.f32 %v3970_v23 }
0x4991   : > { %v5009_v22 = vpop.eup %5008 }
0x4992   : > { %3251 = vrot.lane.b32.xlu0 %v5009_v22, %s5072_s16 }
0x4993   : > { %v5011_v24 = vpop.eup %5010 }
0x4994   : > { %v3242_v5 = vadd.f32 1.0, %v5011_v24 }
0x4996   : > { %5012 = vrcp.f32 %v3242_v5 }
0x49a0   : > { %v5013_v26 = vpop.eup %5012 }
0x49a1   : > { %v3249_v31 = vmul.f32 %v5013_v26, %v3247_v30 }
0x4a04   : > { %v3252_v28 = vpop.permute.xlu0 %3251 }
0x4a05   : > { %v3254_v29 = vmul.f32 %v5013_v26, %v3252_v28 }
0x4a07   : > { %3256 = vrot.lane.b32.xlu1 %v3254_v29, %s5073_s26 }
0x4a79   : > { %v3257_v32 = vpop.permute.xlu1 %3256 }
0x4a7a   : > { %v3259_v47 = vadd.f32 %v3257_v32, %v3249_v31 }
0x4a7c   : > { %5014 = vtanh.f32 %v3259_v47  ;;  %v3351_v45 = vrot.slane %v3259_v47, 2 }
0x4a86   : > { %v5015_v57 = vpop.eup %5014 }
0x4a87   : > { %3262 = vrot.lane.b32.xlu0 %v5015_v57, %s5072_s16 }
0x4af9   : > { %v3263_v17 = vpop.permute.xlu0 %3262 }
0x4afa   : > { %v5637_v33 = vmul.f32 %v5013_v26, %v3263_v17 }
0x4afc   : > { %v3267_v20 = vrot.slane %v5637_v33, 2 }
0x4afe   : > { %3268 = vrot.lane.b32.xlu1 %v3267_v20, %s5073_s26 }
0x4b70   : > { %v3269_v6 = vpop.permute.xlu1 %3268 }
0x4b71   : > { %4496 = vmatmul.mubr.msk.f32.vlgmr.msra.gmra.mrb[10].mxu1 %vm2102_vm6, %v3269_v6 }
0x4b72   : > { %4750 = vmatpush3.bf16.msra.mxu1 %v5456_v34  ;;  %4517 = vmatprep.mubr.msk.f32.mxu1 %vm5070_vm5, %v5071_v19 }
0x4b73   : > { %4751 = vmatprep.subr.bf16.mxu1 %v5069_v25 }
0x4b76   : > { %4753 = vmatpush3.bf16.msra.mxu1 %v5463_v18 }
0x4b77   : > { %4760 = vmatprep.subr.bf16.mxu1 %v5069_v25 }
0x4c44   : > { %v3338_v7 = vpop.f32.mrb[10].mxu1 }
0x4c45   : > { %v3342_v8 = vadd.f32 %v3338_v7, %v5200_v15  ;;  %v4497_v36 = vpop.f32.mrb[11].mxu1 }
0x4c47   : > { %5016 = vtanh.f32 %v3342_v8  ;;  %v3972_v38 = vmul.f32 -1.442695, %v3342_v8 }
0x4c49   : > { %5018 = vpow2.f32 %v3972_v38 }
0x4c51   : > { %v5017_v37 = vpop.eup %5016 }
0x4c52   : > { %3355 = vrot.lane.b32.xlu0 %v5017_v37, %s5072_s16 }
0x4c53   : > { %v5019_v39 = vpop.eup %5018 }
0x4c54   : > { %v3346_v40 = vadd.f32 1.0, %v5019_v39 }
0x4c56   : > { %5020 = vrcp.f32 %v3346_v40 }
0x4c60   : > { %v5021_v42 = vpop.eup %5020 }
0x4c61   : > { %v3353_v46 = vmul.f32 %v5021_v42, %v3351_v45 }
0x4cc4   : > { %v3356_v43 = vpop.permute.xlu0 %3355 }
0x4cc5   : > { %v3358_v44 = vmul.f32 %v5021_v42, %v3356_v43 }
0x4cc7   : > { %3360 = vrot.lane.b32.xlu1 %v3358_v44, %s5073_s26 }
0x4d39   : > { %v3361_v49 = vpop.permute.xlu1 %3360 }
0x4d3a   : > { %v3363_v16 = vadd.f32 %v3361_v49, %v3353_v46 }
0x4d3c   : > { %5022 = vtanh.f32 %v3363_v16  ;;  %v3457_v10 = vrot.slane %v3363_v16, 2 }
0x4d46   : > { %v5023_v15 = vpop.eup %5022 }
0x4d47   : > { %3366 = vrot.lane.b32.xlu0 %v5023_v15, %s5072_s16 }
0x4db9   : > { %v3367_v50 = vpop.permute.xlu0 %3366 }
0x4dba   : > { %v5652_v52 = vmul.f32 %v5021_v42, %v3367_v50 }
0x4dbc   : > { %3371 = vrot.lane.b32.xlu1 %v5652_v52, %s5073_s26 }
0x4e2e   : > { %v3372_v53 = vpop.permute.xlu1 %3371 }
0x4e2f   : > { %4507 = vmatmul.mubr.msk.f32.vlgmr.msra.gmra.mrb[12].mxu0 %vm2102_vm6, %v3372_v53 }
0x4e30   : > { %4756 = vmatpush3.bf16.msra.mxu0 %v5456_v34  ;;  %4528 = vmatprep.mubr.msk.f32.mxu0 %vm5070_vm5, %v5071_v19 }
0x4e31   : > { %4757 = vmatprep.subr.bf16.mxu0 %v5069_v25 }
0x4e34   : > { %4759 = vmatpush3.bf16.msra.mxu0 %v5463_v18 }
0x4f02   : > { %v3441_v54 = vpop.f32.mrb[12].mxu0 }
0x4f03   : > { %v3446_v55 = vrot.slane %v3441_v54, 2  ;;  %v4508_v56 = vpop.f32.mrb[13].mxu0 }
0x4f05   : > { %v3448_v59 = vadd.f32 %v3446_v55, %v5196_v3 }
0x4f07   : > { %5024 = vtanh.f32 %v3448_v59  ;;  %v3974_v61 = vmul.f32 -1.442695, %v3448_v59 }
0x4f09   : > { %5026 = vpow2.f32 %v3974_v61 }
0x4f11   : > { %v5025_v60 = vpop.eup %5024 }
0x4f12   : > { %3461 = vrot.lane.b32.xlu0 %v5025_v60, %s5072_s16 }
0x4f13   : > { %v5027_v62 = vpop.eup %5026 }
0x4f14   : > { %v3452_v63 = vadd.f32 1.0, %v5027_v62 }
0x4f16   : > { %5028 = vrcp.f32 %v3452_v63 }
0x4f20   : > { %v5029_v0 = vpop.eup %5028 }
0x4f21   : > { %v3459_v12 = vmul.f32 %v5029_v0, %v3457_v10 }
0x4f84   : > { %v3462_v2 = vpop.permute.xlu0 %3461 }
0x4f85   : > { %v3464_v9 = vmul.f32 %v5029_v0, %v3462_v2 }
0x4f87   : > { %3466 = vrot.lane.b32.xlu1 %v3464_v9, %s5073_s26 }
0x4ff9   : > { %v3467_v13 = vpop.permute.xlu1 %3466 }
0x4ffa   : > { %v3469_v21 = vadd.f32 %v3467_v13, %v3459_v12 }
0x4ffc   : > { %5030 = vtanh.f32 %v3469_v21 }
0x5006   : > { %v5031_v22 = vpop.eup %5030 }
0x5007   : > { %3472 = vrot.lane.b32.xlu0 %v5031_v22, %s5072_s16 }
0x5079   : > { %v3473_v23 = vpop.permute.xlu0 %3472 }
0x507a   : > { %v5666_v24 = vmul.f32 %v5029_v0, %v3473_v23 }
0x507c   : > { %v3477_v5 = vrot.slane %v5666_v24, 6 }
0x507e   : > { %3478 = vrot.lane.b32.xlu1 %v3477_v5, %s5073_s26 }
0x50f0   : > { %v3479_v26 = vpop.permute.xlu1 %3478 }
0x50f1   : > { %4518 = vmatmul.mubr.msk.f32.vlgmr.msra.gmra.mrb[12].mxu1 %vm2102_vm6, %v3479_v26 }
0x50f2   : > { %4762 = vmatpush3.bf16.msra.mxu1 %v5456_v34  ;;  %4539 = vmatprep.mubr.msk.f32.mxu1 %vm5070_vm5, %v5071_v19 }
0x50f3   : > { %4763 = vmatprep.subr.bf16.mxu1 %v5069_v25  ;;  %v3564_v25 = vrot.slane %v3469_v21, 2 }
0x50f6   : > { %4765 = vmatpush3.bf16.msra.mxu1 %v5463_v18 }
0x51c4   : > { %v3548_v28 = vpop.f32.mrb[12].mxu1 }
0x51c5   : > { %v3553_v29 = vrot.slane %v3548_v28, 4  ;;  %v4519_v30 = vpop.f32.mrb[13].mxu1 }
0x51c7   : > { %v3555_v31 = vadd.f32 %v3553_v29, %v5196_v3 }
0x51c9   : > { %5032 = vtanh.f32 %v3555_v31  ;;  %v3976_v47 = vmul.f32 -1.442695, %v3555_v31 }
0x51cb   : > { %5034 = vpow2.f32 %v3976_v47 }
0x51d3   : > { %v5033_v32 = vpop.eup %5032 }
0x51d4   : > { %3568 = vrot.lane.b32.xlu0 %v5033_v32, %s5072_s16 }
0x51d5   : > { %v5035_v57 = vpop.eup %5034 }
0x51d6   : > { %v3559_v34 = vadd.f32 1.0, %v5035_v57  ;;  %v3806_v57 = vsel %vm3794_vm7, %v5532_v51, %v5517_v4  ;;  %v3803_v4 = vsel %vm3794_vm7, %v5592_v27, %v5577_v58 }
0x51d8   : > { %5036 = vrcp.f32 %v3559_v34 }
0x51e2   : > { %v5037_v17 = vpop.eup %5036 }
0x51e3   : > { %v3566_v18 = vmul.f32 %v5037_v17, %v3564_v25 }
0x5246   : > { %v3569_v19 = vpop.permute.xlu0 %3568 }
0x5247   : > { %v3571_v20 = vmul.f32 %v5037_v17, %v3569_v19 }
0x5249   : > { %3573 = vrot.lane.b32.xlu1 %v3571_v20, %s5073_s26 }
0x52bb   : > { %v3574_v6 = vpop.permute.xlu1 %3573 }
0x52bc   : > { %v3576_v7 = vadd.f32 %v3574_v6, %v3566_v18 }
0x52be   : > { %5038 = vtanh.f32 %v3576_v7  ;;  %v3671_v54 = vrot.slane %v3576_v7, 2 }
0x52c8   : > { %v5039_v8 = vpop.eup %5038 }
0x52c9   : > { %3579 = vrot.lane.b32.xlu0 %v5039_v8, %s5072_s16 }
0x533b   : > { %v3580_v36 = vpop.permute.xlu0 %3579 }
0x533c   : > { %v5680_v37 = vmul.f32 %v5037_v17, %v3580_v36 }
0x533e   : > { %v3584_v38 = vrot.slane %v5680_v37, 4 }
0x5340   : > { %3585 = vrot.lane.b32.xlu1 %v3584_v38, %s5073_s26 }
0x53b2   : > { %v3586_v39 = vpop.permute.xlu1 %3585 }
0x53b3   : > { %4529 = vmatmul.mubr.msk.f32.vlgmr.msra.gmra.mrb[14].mxu0 %vm2102_vm6, %v3586_v39 }
0x5486   : > { %v3655_v40 = vpop.f32.mrb[14].mxu0 }
0x5487   : > { %v3660_v42 = vrot.slane %v3655_v40, 6  ;;  %v4530_v43 = vpop.f32.mrb[15].mxu0 }
0x5489   : > { %v3662_v44 = vadd.f32 %v3660_v42, %v5196_v3 }
0x548b   : > { %5040 = vtanh.f32 %v3662_v44  ;;  %v3978_v46 = vmul.f32 -1.442695, %v3662_v44 }
0x548d   : > { %5042 = vpow2.f32 %v3978_v46 }
0x5495   : > { %v5041_v45 = vpop.eup %5040 }
0x5496   : > { %3675 = vrot.lane.b32.xlu0 %v5041_v45, %s5072_s16 }
0x5497   : > { %v5043_v49 = vpop.eup %5042 }
0x5498   : > { %v3666_v16 = vadd.f32 1.0, %v5043_v49 }
0x549a   : > { %5044 = vrcp.f32 %v3666_v16 }
0x54a4   : > { %v5045_v15 = vpop.eup %5044 }
0x54a5   : > { %v3673_v55 = vmul.f32 %v5045_v15, %v3671_v54 }
0x5508   : > { %v3676_v50 = vpop.permute.xlu0 %3675 }
0x5509   : > { %v3678_v53 = vmul.f32 %v5045_v15, %v3676_v50 }
0x550b   : > { %3680 = vrot.lane.b32.xlu1 %v3678_v53, %s5073_s26 }
0x557d   : > { %v3681_v56 = vpop.permute.xlu1 %3680 }
0x557e   : > { %v3683_v59 = vadd.f32 %v3681_v56, %v3673_v55 }
0x5580   : > { %5046 = vtanh.f32 %v3683_v59  ;;  %v3775_v28 = vrot.slane %v3683_v59, 2 }
0x558a   : > { %v5047_v60 = vpop.eup %5046 }
0x558b   : > { %3686 = vrot.lane.b32.xlu0 %v5047_v60, %s5072_s16 }
0x55fd   : > { %v3687_v61 = vpop.permute.xlu0 %3686 }
0x55fe   : > { %v3689_v62 = vmul.f32 %v5045_v15, %v3687_v61 }
0x5600   : > { %v3691_v63 = vrot.slane %v3689_v62, 2 }
0x5602   : > { %3692 = vrot.lane.b32.xlu1 %v3691_v63, %s5073_s26 }
0x5674   : > { %v3693_v0 = vpop.permute.xlu1 %3692 }
0x5675   : > { %4540 = vmatmul.mubr.msk.f32.vlgmr.msra.gmra.mrb[14].mxu1 %vm2102_vm6, %v3693_v0 }
0x5748   : > { %v3762_v2 = vpop.f32.mrb[14].mxu1 }
0x5749   : > { %v3766_v9 = vadd.f32 %v3762_v2, %v5196_v3  ;;  %v4541_v10 = vpop.f32.mrb[15].mxu1  ;;  %v3800_v3 = vsel %vm3794_vm7, %v5652_v52, %v5637_v33  ;;  %v3807_v33 = vsel %vm3796_vm8, %v3806_v57, %v5502_v11  ;;  %v3804_v11 = vsel %vm3796_vm8, %v3803_v4, %v5562_v35 }
0x574a   : > { %v3801_v47 = vsel %vm3796_vm8, %v3800_v3, %v5622_v1  ;;  %v3808_v52 = vsel %vm3798_vm9, %v3807_v33, %v5487_v48  ;;  %v3805_v58 = vsel %vm3798_vm9, %v3804_v11, %v5547_v14 }
0x574b   : > { %5048 = vtanh.f32 %v3766_v9  ;;  %v3980_v13 = vmul.f32 -1.442695, %v3766_v9  ;;  %v3802_v34 = vsel %vm3798_vm9, %v3801_v47, %v5607_v41 }
0x574d   : > { %5050 = vpow2.f32 %v3980_v13 }
0x5755   : > { %v5049_v12 = vpop.eup %5048 }
0x5756   : > { %3779 = vrot.lane.b32.xlu0 %v5049_v12, %s5072_s16 }
0x5757   : > { %v5051_v21 = vpop.eup %5050 }
0x5758   : > { %v3770_v22 = vadd.f32 1.0, %v5051_v21 }
0x575a   : > { %5052 = vrcp.f32 %v3770_v22 }
0x5764   : > { %v5053_v23 = vpop.eup %5052 }
0x5765   : > { %v3777_v29 = vmul.f32 %v5053_v23, %v3775_v28 }
0x57c8   : > { %v3780_v5 = vpop.permute.xlu0 %3779 }
0x57c9   : > { %v3782_v26 = vmul.f32 %v5053_v23, %v3780_v5 }
0x57cb   : > { %3784 = vrot.lane.b32.xlu1 %v3782_v26, %s5073_s26 }
0x583d   : > { %v3785_v30 = vpop.permute.xlu1 %3784 }
0x583e   : > { %v3787_v31 = vadd.f32 %v3785_v30, %v3777_v29 }
0x5840   : > { %5054 = vtanh.f32 %v3787_v31 }
0x584a   : > { %v5055_v32 = vpop.eup %5054 }
0x584b   : > { %3790 = vrot.lane.b32.xlu0 %v5055_v32, %s5072_s16 }
0x584f   : > { %3815 = vrot.lane.b32.xlu0 %v3802_v34, %s5073_s26 }
0x5853   : > { %3819 = vrot.lane.b32.xlu0 %v3808_v52, %s5073_s26 }
0x58bd   : > { %v3791_v1 = vpop.permute.xlu0 %3790 }
0x58be   : > { %v3793_v17 = vmul.f32 %v5053_v23, %v3791_v1 }
0x58c0   : > { %v3795_v51 = vsel %vm3794_vm7, %v3793_v17, %v3689_v62 }
0x58c1   : > { %v3816_v41 = vpop.permute.xlu0 %3815  ;;  %v3797_v19 = vsel %vm3796_vm8, %v3795_v51, %v5680_v37 }
0x58c2   : > { %3826 = vst.msk [vmem:[%s5132_s6 + $0x8] sm:$0xff] %vm2102_vm6, %v3816_v41  ;;  %v3799_v48 = vsel %vm3798_vm9, %v3797_v19, %v5666_v24 }
0x58c3   : > { %3813 = vrot.lane.b32.xlu1 %v3799_v48, %s5073_s26 }
0x58c5   : > { %v3820_v20 = vpop.permute.xlu0 %3819 }
0x58c6   : > { %3828 = vst.msk [vmem:[%s5132_s6 + $0x18] sm:$0xff] %vm2102_vm6, %v3820_v20 }
0x58c7   : > { %3817 = vrot.lane.b32.xlu1 %v3805_v58, %s5073_s26 }
0x5935   : > { %v3814_v27 = vpop.permute.xlu1 %3813 }
0x5936   : > { %3825 = vst.msk [vmem:[%s5132_s6] sm:$0xff] %vm2102_vm6, %v3814_v27 }
0x5939   : > { %v3818_v25 = vpop.permute.xlu1 %3817 }
0x593a   : > { %3827 = vst.msk [vmem:[%s5132_s6 + $0x10] sm:$0xff] %vm2102_vm6, %v3818_v25 }
0x593b PF: > { %s14_s15 = sadd.s32 1, %s5062_s15  }
0x593c   : > { %p11_p6 = scmp.ge.s32.totalorder %s14_s15, 4  }
0x593e   :  { %13 = sbr.rel (!%p11_p6) target bundleno = 1 (0x1), region = 80 }

</bundles_post_ra>
